<compile_context>
chip_gen: v5e
topology: v5e:2x2
jax: 0.10.0
libtpu: 0.0.40
codegen_flags: <defaults>
</compile_context>

<pallas_src>
import functools

import jax
import jax.numpy as jnp
from jax import lax
from jax.experimental import pallas as pl
from jax.experimental.pallas import tpu as pltpu

_INV_SQRT2 = 0.7071067811865476
_ROW_TILE_MAX = 2048   # rows per grid step cap for pointwise kernels
_MODE_TILE = 16        # modes per grid step for the spectral mode-mix


def _gelu(x):
    # exact (erf) GeLU, matching torch.nn.functional.gelu default
    # (jax.nn.gelu(approximate=True) would shift work VALU->EUP on v5e;
    #  kept exact to match torch semantics)
    return 0.5 * x * (1.0 + lax.erf(x * _INV_SQRT2))


def _round_up(x, m):
    return ((x + m - 1) // m) * m


@functools.lru_cache(maxsize=None)
def _vmem_limit_bytes():
    # Per-generation scoped-VMEM cap: ~3/4 of physical
    # (~96 MiB on v5e/v6e with 128 MiB physical, ~48 MiB on v7x with 64 MiB).
    cap = 64 * 1024 * 1024
    try:
        cap = int(getattr(pltpu.get_tpu_info(), "vmem_capacity_bytes", cap))
    except Exception:
        pass
    return max(32 * 1024 * 1024, min((cap * 3) // 4, 96 * 1024 * 1024))


def _cparams():
    return pltpu.CompilerParams(dimension_semantics=("parallel",),
                                vmem_limit_bytes=_vmem_limit_bytes())


def _pick_row_tile(n):
    # HBM-bandwidth-bound pointwise kernels: biggest tile that still leaves
    # >=2 grid steps (so v7x's two TensorCores both get work); multiple of
    # 128 so the lane-dense head output block stays an unmasked vst.
    return max(128, min(_ROW_TILE_MAX, _round_up(pl.cdiv(n, 2), 128)))


def _pad_rows(a, tile):
    n = a.shape[0]
    n_pad = _round_up(n, tile)
    if n_pad != n:
        a = jnp.pad(a, ((0, n_pad - n),) + ((0, 0),) * (a.ndim - 1))
    return a, n_pad


# --------------------------- Pallas kernels ---------------------------------

def _fc0_kernel(x_ref, g_ref, w_ref, b_ref, o_ref, *, kx, kg):
    # fused cat([x, grid], -1) @ W + b ; K is tiny (3) so broadcast MACs on VPU
    acc = jnp.zeros(o_ref.shape, jnp.float32)
    for j in range(kx):
        acc = acc + x_ref[:, j:j + 1] * w_ref[j:j + 1, :]
    for j in range(kg):
        acc = acc + g_ref[:, j:j + 1] * w_ref[kx + j:kx + j + 1, :]
    o_ref[...] = (acc + b_ref[...]).astype(o_ref.dtype)


def pallas_fc0(x2d, g2d, w, b):
    n, kx = x2d.shape
    kg = g2d.shape[1]
    cout = w.shape[1]
    tile = _pick_row_tile(n)
    xp, n_pad = _pad_rows(x2d, tile)
    gp, _ = _pad_rows(g2d, tile)
    out = pl.pallas_call(
        functools.partial(_fc0_kernel, kx=kx, kg=kg),
        out_shape=jax.ShapeDtypeStruct((n_pad, cout), jnp.float32),
        grid=(n_pad // tile,),
        in_specs=[
            pl.BlockSpec((tile, kx), lambda i: (i, 0)),
            pl.BlockSpec((tile, kg), lambda i: (i, 0)),
            pl.BlockSpec((kx + kg, cout), lambda i: (0, 0)),
            pl.BlockSpec((1, cout), lambda i: (0, 0)),
        ],
        out_specs=pl.BlockSpec((tile, cout), lambda i: (i, 0)),
        compiler_params=_cparams(),
    )(xp, gp, w, b.reshape(1, cout))
    return out[:n]


def _block_tail_kernel(x_ref, s_ref, w_ref, b_ref, o_ref):
    # gelu(spectral + x @ W_1x1 + b), bf16 MXU operands, f32 accumulation
    y = jnp.dot(x_ref[...].astype(jnp.bfloat16),
                w_ref[...].astype(jnp.bfloat16),
                preferred_element_type=jnp.float32)
    y = y + b_ref[...] + s_ref[...]
    o_ref[...] = _gelu(y).astype(o_ref.dtype)


def pallas_conv1x1_add_gelu(x2d, s2d, w, b):
    n, c = x2d.shape
    cout = w.shape[1]
    tile = _pick_row_tile(n)
    xp, n_pad = _pad_rows(x2d, tile)
    sp, _ = _pad_rows(s2d, tile)
    out = pl.pallas_call(
        _block_tail_kernel,
        out_shape=jax.ShapeDtypeStruct((n_pad, cout), jnp.float32),
        grid=(n_pad // tile,),
        in_specs=[
            pl.BlockSpec((tile, c), lambda i: (i, 0)),
            pl.BlockSpec((tile, cout), lambda i: (i, 0)),
            pl.BlockSpec((c, cout), lambda i: (0, 0)),
            pl.BlockSpec((1, cout), lambda i: (0, 0)),
        ],
        out_specs=pl.BlockSpec((tile, cout), lambda i: (i, 0)),
        compiler_params=_cparams(),
    )(xp, sp, w, b.reshape(1, cout))
    return out[:n]


def _head_kernel(x_ref, w1_ref, b1_ref, w2t_ref, b2_ref, o_ref):
    # fused fc1 + GeLU + fc2 : hidden never leaves VMEM/vregs
    h = jnp.dot(x_ref[...].astype(jnp.bfloat16),
                w1_ref[...].astype(jnp.bfloat16),
                preferred_element_type=jnp.float32) + b1_ref[...]
    h = _gelu(h)
    # fc2 with the row axis as the matmul N dim -> the result lands as
    # (cout, rows): lane-dense output block even when out_channels == 1
    # (no masked partial stores).
    y_t = lax.dot_general(w2t_ref[...].astype(jnp.bfloat16),
                          h.astype(jnp.bfloat16),
                          dimension_numbers=(((1,), (1,)), ((), ())),
                          preferred_element_type=jnp.float32)
    o_ref[...] = (y_t + b2_ref[...]).astype(o_ref.dtype)


def pallas_fc1_gelu_fc2(x2d, w1, b1, w2, b2):
    n, c = x2d.shape
    chid = w1.shape[1]
    cout = w2.shape[1]
    tile = _pick_row_tile(n)
    xp, n_pad = _pad_rows(x2d, tile)
    out_t = pl.pallas_call(
        _head_kernel,
        out_shape=jax.ShapeDtypeStruct((cout, n_pad), jnp.float32),
        grid=(n_pad // tile,),
        in_specs=[
            pl.BlockSpec((tile, c), lambda i: (i, 0)),
            pl.BlockSpec((c, chid), lambda i: (0, 0)),
            pl.BlockSpec((1, chid), lambda i: (0, 0)),
            pl.BlockSpec((cout, chid), lambda i: (0, 0)),
            pl.BlockSpec((cout, 1), lambda i: (0, 0)),
        ],
        out_specs=pl.BlockSpec((cout, tile), lambda i: (0, i)),
        compiler_params=_cparams(),
    )(xp, w1, b1.reshape(1, chid), w2.T, b2.reshape(cout, 1))
    return out_t[:, :n].T           # (n, cout); tiny XLA transpose (narrow cout)


def _modemix_kernel(xr_ref, xi_ref, w_ref, or_ref, oi_ref, *, cout):
    # Complex mode mix, batched over modes on the MXU.  w = [wr | wi] in bf16,
    # shape (mt, Cin, 2*Cout): only the unique weight bytes are streamed.
    #   yr = xr @ [wr|wi],  yi = xi @ [wr|wi]        (K = Cin, N = 2*Cout)
    #   out_r = xr@wr - xi@wi,  out_i = xr@wi + xi@wr  (VPU add/sub)
    # f32 accumulation keeps most of the spectral-path accuracy.
    dn = (((2,), (1,)), ((0,), (0,)))
    w = w_ref[...]
    yr = lax.dot_general(xr_ref[...].astype(jnp.bfloat16), w, dn,
                         preferred_element_type=jnp.float32)      # (mt, B, 2*Cout)
    yi = lax.dot_general(xi_ref[...].astype(jnp.bfloat16), w, dn,
                         preferred_element_type=jnp.float32)
    or_ref[...] = (yr[..., :cout] - yi[..., cout:]).astype(or_ref.dtype)
    oi_ref[...] = (yr[..., cout:] + yi[..., :cout]).astype(oi_ref.dtype)


def pallas_modemix(xr, xi, w_cat):
    # xr, xi: (M2, B, Cin) f32   w_cat: (M2, Cin, 2*Cout) bf16 -> (M2, B, Cout) x2
    m2, b, cin = xr.shape
    cout2 = w_cat.shape[-1]
    cout = cout2 // 2
    mt = min(_MODE_TILE, m2)
    m_pad = _round_up(m2, mt)
    if m_pad != m2:
        pad = ((0, m_pad - m2), (0, 0), (0, 0))
        xr, xi, w_cat = jnp.pad(xr, pad), jnp.pad(xi, pad), jnp.pad(w_cat, pad)
    out_sd = jax.ShapeDtypeStruct((m_pad, b, cout), jnp.float32)
    # If xprof shows the weight-slab DMA still exposed, add
    # pipeline_mode=pl.Buffered(3) on the weight spec and/or bump _MODE_TILE.
    out_r, out_i = pl.pallas_call(
        functools.partial(_modemix_kernel, cout=cout),
        out_shape=(out_sd, out_sd),
        grid=(m_pad // mt,),
        in_specs=[
            pl.BlockSpec((mt, b, cin), lambda i: (i, 0, 0)),
            pl.BlockSpec((mt, b, cin), lambda i: (i, 0, 0)),
            pl.BlockSpec((mt, cin, cout2), lambda i: (i, 0, 0)),
        ],
        out_specs=(pl.BlockSpec((mt, b, cout), lambda i: (i, 0, 0)),
                   pl.BlockSpec((mt, b, cout), lambda i: (i, 0, 0))),
        compiler_params=_cparams(),
    )(xr, xi, w_cat)
    return out_r[:m2], out_i[:m2]


# --------------------------- model pieces (JAX glue) ------------------------

def spectral_conv2d(z, bp, m1, m2):
    """SpectralConv2d.forward on NHWC z: (B, Hp, Wp, Cin)."""
    b, hp, wp, cin = z.shape
    cout = bp['w_cat'].shape[-1] // 2
    m = m1 * m2
    z_ft = jnp.fft.rfft2(z, axes=(1, 2))            # (B, Hp, Wf, Cin) complex64
    wf = z_ft.shape[2]

    # Both frequency corners fused along the mode axis -> one pallas_call,
    # 2*M modes of work per streamed weight slab.
    corners = jnp.concatenate(
        [z_ft[:, :m1, :m2, :].reshape(b, m, cin),
         z_ft[:, hp - m1:, :m2, :].reshape(b, m, cin)], axis=1)   # (B, 2M, Cin)
    xs = jnp.transpose(corners, (1, 0, 2))                        # tiny transpose
    o_r, o_i = pallas_modemix(jnp.real(xs), jnp.imag(xs), bp['w_cat'])
    out = jnp.transpose(o_r + 1j * o_i, (1, 0, 2))                # (B, 2M, Cout)

    out_ft = jnp.zeros((b, hp, wf, cout), jnp.complex64)
    out_ft = out_ft.at[:, :m1, :m2, :].set(out[:, :m, :].reshape(b, m1, m2, cout))
    out_ft = out_ft.at[:, hp - m1:, :m2, :].set(out[:, m:, :].reshape(b, m1, m2, cout))
    return jnp.fft.irfft2(out_ft, s=(hp, wp), axes=(1, 2))


def fno_block(z, bp, m1, m2):
    """FNOBlock2d.forward: gelu(spectral(z) + conv1x1(z))."""
    b, hp, wp, c = z.shape
    x1 = spectral_conv2d(z, bp, m1, m2)
    n = b * hp * wp
    y = pallas_conv1x1_add_gelu(z.reshape(n, c), x1.reshape(n, c),
                                bp['conv_w'], bp['conv_b'])
    return y.reshape(b, hp, wp, c)


def fno2d_forward(params, x, grid, *, modes1, modes2, padding=2):
    """FNO2d.forward.  x: (B,H,W), grid: (B,H,W,2) -> (B,H,W) for out_ch=1."""
    b, h, w = x.shape
    width = params['fc0_w'].shape[1]
    n = b * h * w
    # fc0 fused with the (x.unsqueeze(-1), grid) channel concat
    z2d = pallas_fc0(x.reshape(n, 1), grid.reshape(n, 2),
                     params['fc0_w'], params['fc0_b'])
    z = z2d.reshape(b, h, w, width)
    # torch: permute NCHW then F.pad([0,p,0,p]) pads W and H on right/bottom
    if padding:
        z = jnp.pad(z, ((0, 0), (0, padding), (0, padding), (0, 0)))

    for bp in params['blocks']:
        z = fno_block(z, bp, modes1, modes2)

    z = z[:, :h, :w, :]               # also correct for padding == 0
    out2d = pallas_fc1_gelu_fc2(z.reshape(n, width),
                                params['fc1_w'], params['fc1_b'],
                                params['fc2_w'], params['fc2_b'])
    out = out2d.reshape(b, h, w, -1)
    if out.shape[-1] == 1:            # torch .squeeze(-1)
        out = out[..., 0]
    return out


# --------------------------- deterministic params ---------------------------

def init_params(key, in_channels, out_channels, modes1, modes2, width, num_blocks):
    def lin(k, ci, co):
        kw, kb = jax.random.split(k)
        bound = 1.0 / float(ci) ** 0.5
        w_ = jax.random.uniform(kw, (ci, co), jnp.float32, -bound, bound)
        b_ = jax.random.uniform(kb, (co,), jnp.float32, -bound, bound)
        return w_, b_

    ks = jax.random.split(key, num_blocks + 3)
    p = {}
    p['fc0_w'], p['fc0_b'] = lin(ks[0], in_channels, width)

    m = modes1 * modes2
    scale = 1.0 / (width * width)
    blocks = []
    for i in range(num_blocks):
        kb = jax.random.split(ks[1 + i], 3)

        def cplx_cat(k):
            kr, ki = jax.random.split(k)
            wr = scale * jax.random.uniform(kr, (m, width, width), jnp.float32)
            wi = scale * jax.random.uniform(ki, (m, width, width), jnp.float32)
            return jnp.concatenate([wr, wi], axis=-1)     # (M, Cin, 2*Cout)

        w1c = cplx_cat(kb[0])
        w2c = cplx_cat(kb[1])
        conv_w, conv_b = lin(kb[2], width, width)
        blocks.append({
            # both corners stacked along modes, stored un-duplicated as
            # [wr|wi] and cast to bf16: 4x less spectral weight DMA than the
            # old f32 [wr;-wi]/[wi;wr] stacking.
            'w_cat': jnp.concatenate([w1c, w2c], axis=0).astype(jnp.bfloat16),
            'conv_w': conv_w,
            'conv_b': conv_b,
        })
    p['blocks'] = blocks
    p['fc1_w'], p['fc1_b'] = lin(ks[-2], width, width)
    p['fc2_w'], p['fc2_b'] = lin(ks[-1], width, out_channels)
    return p


# --------------------------- main -------------------------------------------

if __name__ == "__main__":
    key = jax.random.PRNGKey(0)
    kx, kg, kp = jax.random.split(key, 3)

    # small toy config (production widths of 128/256 give dense MXU lane fill;
    # width=32 here keeps the example tiny)
    B, H, W = 2, 16, 16
    in_channels, out_channels = 3, 1      # 1 solution channel + 2 grid coords
    modes1 = modes2 = 4
    width = 32
    num_blocks = 2

    x = jax.random.normal(kx, (B, H, W), jnp.float32)
    grid = jax.random.normal(kg, (B, H, W, 2), jnp.float32)
    params = init_params(kp, in_channels, out_channels, modes1, modes2,
                         width, num_blocks)

    fwd = jax.jit(functools.partial(fno2d_forward, modes1=modes1, modes2=modes2))
    out = fwd(params, x, grid)
    jax.block_until_ready(out)

    assert out.shape == (B, H, W), out.shape
    assert out.dtype == jnp.float32
    assert bool(jnp.all(jnp.isfinite(out)))
    print("KERNEL_OK")
</pallas_src>

<mosaic_0001>
module attributes {stable_mosaic.version = 11 : i64} {
  func.func @_fc0_kernel(%arg0: i32, %arg1: memref<256x1xf32, #tpu.memory_space<vmem>>, %arg2: memref<256x2xf32, #tpu.memory_space<vmem>>, %arg3: memref<3x32xf32, #tpu.memory_space<vmem>>, %arg4: memref<1x32xf32, #tpu.memory_space<vmem>>, %arg5: memref<256x32xf32, #tpu.memory_space<vmem>>) attributes {dimension_semantics = [#tpu.dimension_semantics<parallel>], iteration_bounds = array<i64: 2>, scalar_prefetch = 0 : i64, scratch_operands = 0 : i64, tpu.core_type = #tpu.core_type<tc>, window_params = [{transform_indices = @transform_0, window_bounds = array<i64: 256, 1>}, {transform_indices = @transform_1, window_bounds = array<i64: 256, 2>}, {pipeline_mode = #tpu.pipeline_mode<synchronous>, transform_indices = @transform_2, window_bounds = array<i64: 3, 32>}, {pipeline_mode = #tpu.pipeline_mode<synchronous>, transform_indices = @transform_3, window_bounds = array<i64: 1, 32>}, {transform_indices = @transform_4, window_bounds = array<i64: 256, 32>}]} {
    %cst = arith.constant 0.000000e+00 : f32
    %0 = vector.broadcast %cst : f32 to vector<256x32xf32>
    %c0 = arith.constant 0 : index
    %c0_0 = arith.constant 0 : index
    %1 = vector.load %arg1[%c0, %c0_0] : memref<256x1xf32, #tpu.memory_space<vmem>>, vector<256x1xf32>
    %c0_1 = arith.constant 0 : index
    %c0_2 = arith.constant 0 : index
    %2 = vector.load %arg3[%c0_1, %c0_2] : memref<3x32xf32, #tpu.memory_space<vmem>>, vector<1x32xf32>
    %3 = vector.broadcast %1 : vector<256x1xf32> to vector<256x32xf32>
    %4 = vector.broadcast %2 : vector<1x32xf32> to vector<256x32xf32>
    %5 = arith.mulf %3, %4 : vector<256x32xf32>
    %6 = arith.addf %0, %5 : vector<256x32xf32>
    %c0_3 = arith.constant 0 : index
    %c0_4 = arith.constant 0 : index
    %7 = vector.load %arg2[%c0_3, %c0_4] : memref<256x2xf32, #tpu.memory_space<vmem>>, vector<256x1xf32>
    %c1 = arith.constant 1 : index
    %c0_5 = arith.constant 0 : index
    %8 = vector.load %arg3[%c1, %c0_5] : memref<3x32xf32, #tpu.memory_space<vmem>>, vector<1x32xf32>
    %9 = vector.broadcast %7 : vector<256x1xf32> to vector<256x32xf32>
    %10 = vector.broadcast %8 : vector<1x32xf32> to vector<256x32xf32>
    %11 = arith.mulf %9, %10 : vector<256x32xf32>
    %12 = arith.addf %6, %11 : vector<256x32xf32>
    %c0_6 = arith.constant 0 : index
    %c1_7 = arith.constant 1 : index
    %13 = vector.load %arg2[%c0_6, %c1_7] : memref<256x2xf32, #tpu.memory_space<vmem>>, vector<256x1xf32>
    %c2 = arith.constant 2 : index
    %c0_8 = arith.constant 0 : index
    %14 = vector.load %arg3[%c2, %c0_8] : memref<3x32xf32, #tpu.memory_space<vmem>>, vector<1x32xf32>
    %15 = vector.broadcast %13 : vector<256x1xf32> to vector<256x32xf32>
    %16 = vector.broadcast %14 : vector<1x32xf32> to vector<256x32xf32>
    %17 = arith.mulf %15, %16 : vector<256x32xf32>
    %18 = arith.addf %12, %17 : vector<256x32xf32>
    %c0_9 = arith.constant 0 : index
    %c0_10 = arith.constant 0 : index
    %19 = vector.load %arg4[%c0_9, %c0_10] : memref<1x32xf32, #tpu.memory_space<vmem>>, vector<1x32xf32>
    %20 = vector.broadcast %19 : vector<1x32xf32> to vector<256x32xf32>
    %21 = arith.addf %18, %20 : vector<256x32xf32>
    %c0_11 = arith.constant 0 : index
    %c0_12 = arith.constant 0 : index
    %22 = vector.load %arg5[%c0_11, %c0_12] : memref<256x32xf32, #tpu.memory_space<vmem>>, vector<256x32xf32>
    tpu.vector_store %arg5[%c0_11, %c0_12], %21 {strides = array<i32>} : memref<256x32xf32, #tpu.memory_space<vmem>>, vector<256x32xf32>,
    return
  }
  func.func @transform_0(%arg0: i32) -> (i32, i32) {
    %c0_i32 = arith.constant 0 : i32
    %c0_i32_0 = arith.constant 0 : i32
    return %arg0, %c0_i32 : i32, i32
  }
  func.func @transform_1(%arg0: i32) -> (i32, i32) {
    %c0_i32 = arith.constant 0 : i32
    %c0_i32_0 = arith.constant 0 : i32
    return %arg0, %c0_i32 : i32, i32
  }
  func.func @transform_2(%arg0: i32) -> (i32, i32) {
    %c0_i32 = arith.constant 0 : i32
    %c0_i32_0 = arith.constant 0 : i32
    %c0_i32_1 = arith.constant 0 : i32
    return %c0_i32, %c0_i32_0 : i32, i32
  }
  func.func @transform_3(%arg0: i32) -> (i32, i32) {
    %c0_i32 = arith.constant 0 : i32
    %c0_i32_0 = arith.constant 0 : i32
    %c0_i32_1 = arith.constant 0 : i32
    return %c0_i32, %c0_i32_0 : i32, i32
  }
  func.func @transform_4(%arg0: i32) -> (i32, i32) {
    %c0_i32 = arith.constant 0 : i32
    %c0_i32_0 = arith.constant 0 : i32
    return %arg0, %c0_i32 : i32, i32
  }
}

module attributes {stable_mosaic.version = 11 : i64} {
  func.func @_modemix_kernel(%arg0: i32, %arg1: memref<16x2x32xf32, #tpu.memory_space<vmem>>, %arg2: memref<16x2x32xf32, #tpu.memory_space<vmem>>, %arg3: memref<16x32x64xbf16, #tpu.memory_space<vmem>>, %arg4: memref<16x2x32xf32, #tpu.memory_space<vmem>>, %arg5: memref<16x2x32xf32, #tpu.memory_space<vmem>>) attributes {dimension_semantics = [#tpu.dimension_semantics<parallel>], iteration_bounds = array<i64: 2>, scalar_prefetch = 0 : i64, scratch_operands = 0 : i64, tpu.core_type = #tpu.core_type<tc>, window_params = [{transform_indices = @transform_0, window_bounds = array<i64: 16, 2, 32>}, {transform_indices = @transform_1, window_bounds = array<i64: 16, 2, 32>}, {transform_indices = @transform_2, window_bounds = array<i64: 16, 32, 64>}, {transform_indices = @transform_3, window_bounds = array<i64: 16, 2, 32>}, {transform_indices = @transform_4, window_bounds = array<i64: 16, 2, 32>}]} {
    %c0 = arith.constant 0 : index
    %c0_0 = arith.constant 0 : index
    %c0_1 = arith.constant 0 : index
    %0 = vector.load %arg3[%c0, %c0_0, %c0_1] : memref<16x32x64xbf16, #tpu.memory_space<vmem>>, vector<16x32x64xbf16>
    %c0_2 = arith.constant 0 : index
    %c0_3 = arith.constant 0 : index
    %c0_4 = arith.constant 0 : index
    %1 = vector.load %arg1[%c0_2, %c0_3, %c0_4] : memref<16x2x32xf32, #tpu.memory_space<vmem>>, vector<16x2x32xf32>
    %2 = arith.truncf %1 : vector<16x2x32xf32> to vector<16x2x32xbf16>
    %cst = arith.constant dense<0.000000e+00> : vector<16x2x64xf32>
    %3 = tpu.matmul %2, %0, %cst {dimension_numbers = #tpu.dot_dimension_numbers<[2], [1], [1], [2], [0, 0, 0, 1, 1, 2], [0], [0]>} : vector<16x2x32xbf16>, vector<16x32x64xbf16>, vector<16x2x64xf32> -> vector<16x2x64xf32>
    %c0_5 = arith.constant 0 : index
    %c0_6 = arith.constant 0 : index
    %c0_7 = arith.constant 0 : index
    %4 = vector.load %arg2[%c0_5, %c0_6, %c0_7] : memref<16x2x32xf32, #tpu.memory_space<vmem>>, vector<16x2x32xf32>
    %5 = arith.truncf %4 : vector<16x2x32xf32> to vector<16x2x32xbf16>
    %cst_8 = arith.constant dense<0.000000e+00> : vector<16x2x64xf32>
    %6 = tpu.matmul %5, %0, %cst_8 {dimension_numbers = #tpu.dot_dimension_numbers<[2], [1], [1], [2], [0, 0, 0, 1, 1, 2], [0], [0]>} : vector<16x2x32xbf16>, vector<16x32x64xbf16>, vector<16x2x64xf32> -> vector<16x2x64xf32>
    %7 = vector.extract_strided_slice %3 {offsets = [0, 0, 0], sizes = [16, 2, 32], strides = [1, 1, 1]} : vector<16x2x64xf32> to vector<16x2x32xf32>
    %8 = vector.extract_strided_slice %6 {offsets = [0, 0, 32], sizes = [16, 2, 32], strides = [1, 1, 1]} : vector<16x2x64xf32> to vector<16x2x32xf32>
    %9 = arith.subf %7, %8 : vector<16x2x32xf32>
    %c0_9 = arith.constant 0 : index
    %c0_10 = arith.constant 0 : index
    %c0_11 = arith.constant 0 : index
    %10 = vector.load %arg4[%c0_9, %c0_10, %c0_11] : memref<16x2x32xf32, #tpu.memory_space<vmem>>, vector<16x2x32xf32>
    tpu.vector_store %arg4[%c0_9, %c0_10, %c0_11], %9 {strides = array<i32>} : memref<16x2x32xf32, #tpu.memory_space<vmem>>, vector<16x2x32xf32>,
    %11 = vector.extract_strided_slice %3 {offsets = [0, 0, 32], sizes = [16, 2, 32], strides = [1, 1, 1]} : vector<16x2x64xf32> to vector<16x2x32xf32>
    %12 = vector.extract_strided_slice %6 {offsets = [0, 0, 0], sizes = [16, 2, 32], strides = [1, 1, 1]} : vector<16x2x64xf32> to vector<16x2x32xf32>
    %13 = arith.addf %11, %12 : vector<16x2x32xf32>
    %c0_12 = arith.constant 0 : index
    %c0_13 = arith.constant 0 : index
    %c0_14 = arith.constant 0 : index
    %14 = vector.load %arg5[%c0_12, %c0_13, %c0_14] : memref<16x2x32xf32, #tpu.memory_space<vmem>>, vector<16x2x32xf32>
    tpu.vector_store %arg5[%c0_12, %c0_13, %c0_14], %13 {strides = array<i32>} : memref<16x2x32xf32, #tpu.memory_space<vmem>>, vector<16x2x32xf32>,
    return
  }
  func.func @transform_0(%arg0: i32) -> (i32, i32, i32) {
    %c0_i32 = arith.constant 0 : i32
    %c0_i32_0 = arith.constant 0 : i32
    %c0_i32_1 = arith.constant 0 : i32
    return %arg0, %c0_i32, %c0_i32_0 : i32, i32, i32
  }
  func.func @transform_1(%arg0: i32) -> (i32, i32, i32) {
    %c0_i32 = arith.constant 0 : i32
    %c0_i32_0 = arith.constant 0 : i32
    %c0_i32_1 = arith.constant 0 : i32
    return %arg0, %c0_i32, %c0_i32_0 : i32, i32, i32
  }
  func.func @transform_2(%arg0: i32) -> (i32, i32, i32) {
    %c0_i32 = arith.constant 0 : i32
    %c0_i32_0 = arith.constant 0 : i32
    %c0_i32_1 = arith.constant 0 : i32
    return %arg0, %c0_i32, %c0_i32_0 : i32, i32, i32
  }
  func.func @transform_3(%arg0: i32) -> (i32, i32, i32) {
    %c0_i32 = arith.constant 0 : i32
    %c0_i32_0 = arith.constant 0 : i32
    %c0_i32_1 = arith.constant 0 : i32
    return %arg0, %c0_i32, %c0_i32_0 : i32, i32, i32
  }
  func.func @transform_4(%arg0: i32) -> (i32, i32, i32) {
    %c0_i32 = arith.constant 0 : i32
    %c0_i32_0 = arith.constant 0 : i32
    %c0_i32_1 = arith.constant 0 : i32
    return %arg0, %c0_i32, %c0_i32_0 : i32, i32, i32
  }
}

module attributes {stable_mosaic.version = 11 : i64} {
  func.func @_block_tail_kernel(%arg0: i32, %arg1: memref<384x32xf32, #tpu.memory_space<vmem>>, %arg2: memref<384x32xf32, #tpu.memory_space<vmem>>, %arg3: memref<32x32xf32, #tpu.memory_space<vmem>>, %arg4: memref<1x32xf32, #tpu.memory_space<vmem>>, %arg5: memref<384x32xf32, #tpu.memory_space<vmem>>) attributes {dimension_semantics = [#tpu.dimension_semantics<parallel>], iteration_bounds = array<i64: 2>, scalar_prefetch = 0 : i64, scratch_operands = 0 : i64, tpu.core_type = #tpu.core_type<tc>, window_params = [{transform_indices = @transform_0, window_bounds = array<i64: 384, 32>}, {transform_indices = @transform_1, window_bounds = array<i64: 384, 32>}, {pipeline_mode = #tpu.pipeline_mode<synchronous>, transform_indices = @transform_2, window_bounds = array<i64: 32, 32>}, {pipeline_mode = #tpu.pipeline_mode<synchronous>, transform_indices = @transform_3, window_bounds = array<i64: 1, 32>}, {transform_indices = @transform_4, window_bounds = array<i64: 384, 32>}]} {
    %c0 = arith.constant 0 : index
    %c0_0 = arith.constant 0 : index
    %0 = vector.load %arg1[%c0, %c0_0] : memref<384x32xf32, #tpu.memory_space<vmem>>, vector<384x32xf32>
    %1 = arith.truncf %0 : vector<384x32xf32> to vector<384x32xbf16>
    %c0_1 = arith.constant 0 : index
    %c0_2 = arith.constant 0 : index
    %2 = vector.load %arg3[%c0_1, %c0_2] : memref<32x32xf32, #tpu.memory_space<vmem>>, vector<32x32xf32>
    %3 = arith.truncf %2 : vector<32x32xf32> to vector<32x32xbf16>
    %cst = arith.constant dense<0.000000e+00> : vector<384x32xf32>
    %4 = tpu.matmul %1, %3, %cst {dimension_numbers = #tpu.dot_dimension_numbers<[1], [0], [0], [1], [0, 0, 1, 1], [], []>} : vector<384x32xbf16>, vector<32x32xbf16>, vector<384x32xf32> -> vector<384x32xf32>
    %c0_3 = arith.constant 0 : index
    %c0_4 = arith.constant 0 : index
    %5 = vector.load %arg4[%c0_3, %c0_4] : memref<1x32xf32, #tpu.memory_space<vmem>>, vector<1x32xf32>
    %6 = vector.broadcast %5 : vector<1x32xf32> to vector<384x32xf32>
    %7 = arith.addf %4, %6 : vector<384x32xf32>
    %c0_5 = arith.constant 0 : index
    %c0_6 = arith.constant 0 : index
    %8 = vector.load %arg2[%c0_5, %c0_6] : memref<384x32xf32, #tpu.memory_space<vmem>>, vector<384x32xf32>
    %9 = arith.addf %7, %8 : vector<384x32xf32>
    %cst_7 = arith.constant 5.000000e-01 : f32
    %10 = vector.broadcast %cst_7 : f32 to vector<384x32xf32>
    %11 = arith.mulf %10, %9 : vector<384x32xf32>
    %cst_8 = arith.constant 0.707106769 : f32
    %12 = vector.broadcast %cst_8 : f32 to vector<384x32xf32>
    %13 = arith.mulf %9, %12 : vector<384x32xf32>
    %14 = math.erf %13 : vector<384x32xf32>
    %cst_9 = arith.constant 1.000000e+00 : f32
    %15 = vector.broadcast %cst_9 : f32 to vector<384x32xf32>
    %16 = arith.addf %15, %14 : vector<384x32xf32>
    %17 = arith.mulf %11, %16 : vector<384x32xf32>
    %c0_10 = arith.constant 0 : index
    %c0_11 = arith.constant 0 : index
    %18 = vector.load %arg5[%c0_10, %c0_11] : memref<384x32xf32, #tpu.memory_space<vmem>>, vector<384x32xf32>
    tpu.vector_store %arg5[%c0_10, %c0_11], %17 {strides = array<i32>} : memref<384x32xf32, #tpu.memory_space<vmem>>, vector<384x32xf32>,
    return
  }
  func.func @transform_0(%arg0: i32) -> (i32, i32) {
    %c0_i32 = arith.constant 0 : i32
    %c0_i32_0 = arith.constant 0 : i32
    return %arg0, %c0_i32 : i32, i32
  }
  func.func @transform_1(%arg0: i32) -> (i32, i32) {
    %c0_i32 = arith.constant 0 : i32
    %c0_i32_0 = arith.constant 0 : i32
    return %arg0, %c0_i32 : i32, i32
  }
  func.func @transform_2(%arg0: i32) -> (i32, i32) {
    %c0_i32 = arith.constant 0 : i32
    %c0_i32_0 = arith.constant 0 : i32
    %c0_i32_1 = arith.constant 0 : i32
    return %c0_i32, %c0_i32_0 : i32, i32
  }
  func.func @transform_3(%arg0: i32) -> (i32, i32) {
    %c0_i32 = arith.constant 0 : i32
    %c0_i32_0 = arith.constant 0 : i32
    %c0_i32_1 = arith.constant 0 : i32
    return %c0_i32, %c0_i32_0 : i32, i32
  }
  func.func @transform_4(%arg0: i32) -> (i32, i32) {
    %c0_i32 = arith.constant 0 : i32
    %c0_i32_0 = arith.constant 0 : i32
    return %arg0, %c0_i32 : i32, i32
  }
}

module attributes {stable_mosaic.version = 11 : i64} {
  func.func @_head_kernel(%arg0: i32, %arg1: memref<256x32xf32, #tpu.memory_space<vmem>>, %arg2: memref<32x32xf32, #tpu.memory_space<vmem>>, %arg3: memref<1x32xf32, #tpu.memory_space<vmem>>, %arg4: memref<1x32xf32, #tpu.memory_space<vmem>>, %arg5: memref<1x1xf32, #tpu.memory_space<vmem>>, %arg6: memref<1x256xf32, #tpu.memory_space<vmem>>) attributes {dimension_semantics = [#tpu.dimension_semantics<parallel>], iteration_bounds = array<i64: 2>, scalar_prefetch = 0 : i64, scratch_operands = 0 : i64, tpu.core_type = #tpu.core_type<tc>, window_params = [{transform_indices = @transform_0, window_bounds = array<i64: 256, 32>}, {pipeline_mode = #tpu.pipeline_mode<synchronous>, transform_indices = @transform_1, window_bounds = array<i64: 32, 32>}, {pipeline_mode = #tpu.pipeline_mode<synchronous>, transform_indices = @transform_2, window_bounds = array<i64: 1, 32>}, {pipeline_mode = #tpu.pipeline_mode<synchronous>, transform_indices = @transform_3, window_bounds = array<i64: 1, 32>}, {pipeline_mode = #tpu.pipeline_mode<synchronous>, transform_indices = @transform_4, window_bounds = array<i64: 1, 1>}, {transform_indices = @transform_5, window_bounds = array<i64: 1, 256>}]} {
    %c0 = arith.constant 0 : index
    %c0_0 = arith.constant 0 : index
    %0 = vector.load %arg1[%c0, %c0_0] : memref<256x32xf32, #tpu.memory_space<vmem>>, vector<256x32xf32>
    %1 = arith.truncf %0 : vector<256x32xf32> to vector<256x32xbf16>
    %c0_1 = arith.constant 0 : index
    %c0_2 = arith.constant 0 : index
    %2 = vector.load %arg2[%c0_1, %c0_2] : memref<32x32xf32, #tpu.memory_space<vmem>>, vector<32x32xf32>
    %3 = arith.truncf %2 : vector<32x32xf32> to vector<32x32xbf16>
    %cst = arith.constant dense<0.000000e+00> : vector<256x32xf32>
    %4 = tpu.matmul %1, %3, %cst {dimension_numbers = #tpu.dot_dimension_numbers<[1], [0], [0], [1], [0, 0, 1, 1], [], []>} : vector<256x32xbf16>, vector<32x32xbf16>, vector<256x32xf32> -> vector<256x32xf32>
    %c0_3 = arith.constant 0 : index
    %c0_4 = arith.constant 0 : index
    %5 = vector.load %arg3[%c0_3, %c0_4] : memref<1x32xf32, #tpu.memory_space<vmem>>, vector<1x32xf32>
    %6 = vector.broadcast %5 : vector<1x32xf32> to vector<256x32xf32>
    %7 = arith.addf %4, %6 : vector<256x32xf32>
    %cst_5 = arith.constant 5.000000e-01 : f32
    %8 = vector.broadcast %cst_5 : f32 to vector<256x32xf32>
    %9 = arith.mulf %8, %7 : vector<256x32xf32>
    %cst_6 = arith.constant 0.707106769 : f32
    %10 = vector.broadcast %cst_6 : f32 to vector<256x32xf32>
    %11 = arith.mulf %7, %10 : vector<256x32xf32>
    %12 = math.erf %11 : vector<256x32xf32>
    %cst_7 = arith.constant 1.000000e+00 : f32
    %13 = vector.broadcast %cst_7 : f32 to vector<256x32xf32>
    %14 = arith.addf %13, %12 : vector<256x32xf32>
    %15 = arith.mulf %9, %14 : vector<256x32xf32>
    %c0_8 = arith.constant 0 : index
    %c0_9 = arith.constant 0 : index
    %16 = vector.load %arg4[%c0_8, %c0_9] : memref<1x32xf32, #tpu.memory_space<vmem>>, vector<1x32xf32>
    %17 = arith.truncf %16 : vector<1x32xf32> to vector<1x32xbf16>
    %18 = arith.truncf %15 : vector<256x32xf32> to vector<256x32xbf16>
    %cst_10 = arith.constant dense<0.000000e+00> : vector<1x256xf32>
    %19 = tpu.matmul %17, %18, %cst_10 {dimension_numbers = #tpu.dot_dimension_numbers<[1], [1], [0], [0], [0, 0, 1, 0], [], []>} : vector<1x32xbf16>, vector<256x32xbf16>, vector<1x256xf32> -> vector<1x256xf32>
    %c0_11 = arith.constant 0 : index
    %c0_12 = arith.constant 0 : index
    %20 = vector.load %arg5[%c0_11, %c0_12] : memref<1x1xf32, #tpu.memory_space<vmem>>, vector<1x1xf32>
    %21 = vector.broadcast %20 : vector<1x1xf32> to vector<1x256xf32>
    %22 = arith.addf %19, %21 : vector<1x256xf32>
    %c0_13 = arith.constant 0 : index
    %c0_14 = arith.constant 0 : index
    %23 = vector.load %arg6[%c0_13, %c0_14] : memref<1x256xf32, #tpu.memory_space<vmem>>, vector<1x256xf32>
    tpu.vector_store %arg6[%c0_13, %c0_14], %22 {strides = array<i32>} : memref<1x256xf32, #tpu.memory_space<vmem>>, vector<1x256xf32>,
    return
  }
  func.func @transform_0(%arg0: i32) -> (i32, i32) {
    %c0_i32 = arith.constant 0 : i32
    %c0_i32_0 = arith.constant 0 : i32
    return %arg0, %c0_i32 : i32, i32
  }
  func.func @transform_1(%arg0: i32) -> (i32, i32) {
    %c0_i32 = arith.constant 0 : i32
    %c0_i32_0 = arith.constant 0 : i32
    %c0_i32_1 = arith.constant 0 : i32
    return %c0_i32, %c0_i32_0 : i32, i32
  }
  func.func @transform_2(%arg0: i32) -> (i32, i32) {
    %c0_i32 = arith.constant 0 : i32
    %c0_i32_0 = arith.constant 0 : i32
    %c0_i32_1 = arith.constant 0 : i32
    return %c0_i32, %c0_i32_0 : i32, i32
  }
  func.func @transform_3(%arg0: i32) -> (i32, i32) {
    %c0_i32 = arith.constant 0 : i32
    %c0_i32_0 = arith.constant 0 : i32
    %c0_i32_1 = arith.constant 0 : i32
    return %c0_i32, %c0_i32_0 : i32, i32
  }
  func.func @transform_4(%arg0: i32) -> (i32, i32) {
    %c0_i32 = arith.constant 0 : i32
    %c0_i32_0 = arith.constant 0 : i32
    %c0_i32_1 = arith.constant 0 : i32
    return %c0_i32, %c0_i32_0 : i32, i32
  }
  func.func @transform_5(%arg0: i32) -> (i32, i32) {
    %c0_i32 = arith.constant 0 : i32
    %c0_i32_0 = arith.constant 0 : i32
    return %c0_i32, %arg0 : i32, i32
  }
}

</mosaic_0001>

<bundles_post_ra>
// kernel: fno2d_forward.6
= control target key start
LH: loop header
LB: loop body
LE: loop exit
PB: predicated region body
PF: predicated region fallthrough
CT: control target
= control target key end

     0   :  { %s1138_s15 = smov 0   ;;  %s1765_s0 = inlined_call_operand.vmem [shape: f32[512,1], index: 0, kind: input, shape index: {}]   ;;  %s1766_s1 = inlined_call_operand.vmem [shape: f32[512,2], index: 1, kind: input, shape index: {}]   ;;  %s1767_s2 = inlined_call_operand.vmem [shape: f32[3,32], index: 2, kind: input, shape index: {}]   ;;  %s1768_s3 = inlined_call_operand.vmem [shape: f32[1,32], index: 3, kind: input, shape index: {}]   ;;  %s1769_s4 = inlined_call_operand.vmem [shape: f32[512,32], index: 4, kind: output, shape index: {}]  }
   0x1 LB: > { %s1070_s16 = sadd.s32 4294967295, %s1109_s15   ;;  %p1074_p0 = scmp.ge.s32.totalorder %s1109_s15, 1  ;;  %s1109_s15 = sphi %s1138_s15, %s14_s15  }
   0x2   : > { %p174_p1 = scmp.lt.s32.totalorder %s1109_s15, 3 }
   0x4   : > { %p175_p2 = pnand %p1074_p0, %p174_p1 }
   0x6   : > { %178 = sbr.rel (%p175_p2) target bundleno = 391 (0x187), region = 36 }
   0xb   : > { %s1075_s17 = sshll.u32 %s1070_s16, 5  ;;  %v1111_v0 = vmov 0   ;;  %vm969_vm0 = vcmask 261120  }
   0xc   : > { %1095 = vset.pattern.permute.xlu2 %v1111_v0  ;;  %1094 = vset.pattern.permute.xlu1 %v1111_v0  ;;  %p206_p3 = scmp.lt.s32.totalorder %s1075_s17, 63 }
   0xd   : > { %1093 = vset.pattern.permute.xlu0 %v1111_v0 }
   0xe   : > { %s1777_s17 = smov (!%p206_p3, %s1075_s17), 63 }
   0xf   : > { %s1146_s18 = sshll.u32 %s1777_s17, 3 }
  0x10   : > { %s1152_s21 = scalar_lea.vmem %s1765_s0, %s1146_s18  ;;  %s1188_s24 = scalar_lea.vmem %s1766_s1, %s1146_s18 }
  0x11   : > { %v227_v1 = vld [vmem:[%s1152_s21 + $0x20] sm:$0xff]  ;;  %v225_v2 = vld [vmem:[%s1152_s21 + $0x10] sm:$0xff]  ;;  %v228_v4 = vld [vmem:[%s1152_s21 + $0x28] sm:$0xff]  ;;  %s1574_s9 = scalar_lea.vmem %s1769_s4, %s1146_s18 }
  0x12   : > { %v223_v3 = vld [vmem:[%s1152_s21] sm:$0xff]  ;;  %278 = vperm.xlu2 %1095, %v227_v1   ;;  %268 = vperm.xlu1 %1094, %v225_v2   ;;  %v226_v5 = vld [vmem:[%s1152_s21 + $0x18] sm:$0xff]  ;;  %v224_v6 = vld [vmem:[%s1152_s21 + $0x8] sm:$0xff] }
  0x13   : > { %258 = vperm.xlu0 %1093, %v223_v3   ;;  %v231_v7 = vld [vmem:[%s1152_s21 + $0x40] sm:$0xff]  ;;  %v230_v8 = vld [vmem:[%s1152_s21 + $0x38] sm:$0xff]  ;;  %v229_v9 = vld [vmem:[%s1152_s21 + $0x30] sm:$0xff] }
  0x14   : > { %v234_v10 = vld [vmem:[%s1152_s21 + $0x58] sm:$0xff]  ;;  %v233_v11 = vld [vmem:[%s1152_s21 + $0x50] sm:$0xff]  ;;  %v232_v12 = vld [vmem:[%s1152_s21 + $0x48] sm:$0xff] }
  0x15   : > { %v237_v13 = vld [vmem:[%s1152_s21 + $0x70] sm:$0xff]  ;;  %v236_v14 = vld [vmem:[%s1152_s21 + $0x68] sm:$0xff]  ;;  %v235_v15 = vld [vmem:[%s1152_s21 + $0x60] sm:$0xff] }
  0x16   : > { %v240_v16 = vld [vmem:[%s1152_s21 + $0x88] sm:$0xff]  ;;  %v239_v17 = vld [vmem:[%s1152_s21 + $0x80] sm:$0xff]  ;;  %v238_v18 = vld [vmem:[%s1152_s21 + $0x78] sm:$0xff] }
  0x17   : > { %v243_v19 = vld [vmem:[%s1152_s21 + $0xa0] sm:$0xff]  ;;  %v242_v20 = vld [vmem:[%s1152_s21 + $0x98] sm:$0xff]  ;;  %v241_v21 = vld [vmem:[%s1152_s21 + $0x90] sm:$0xff] }
  0x18   : > { %v246_v22 = vld [vmem:[%s1152_s21 + $0xb8] sm:$0xff]  ;;  %v245_v23 = vld [vmem:[%s1152_s21 + $0xb0] sm:$0xff]  ;;  %v244_v24 = vld [vmem:[%s1152_s21 + $0xa8] sm:$0xff] }
  0x19   : > { %v249_v25 = vld [vmem:[%s1152_s21 + $0xd0] sm:$0xff]  ;;  %v248_v26 = vld [vmem:[%s1152_s21 + $0xc8] sm:$0xff]  ;;  %v247_v27 = vld [vmem:[%s1152_s21 + $0xc0] sm:$0xff] }
  0x1a   : > { %283 = vperm.xlu2 %1095, %v228_v4   ;;  %273 = vperm.xlu1 %1094, %v226_v5   ;;  %v252_v28 = vld [vmem:[%s1152_s21 + $0xe8] sm:$0xff]  ;;  %v251_v29 = vld [vmem:[%s1152_s21 + $0xe0] sm:$0xff]  ;;  %v250_v30 = vld [vmem:[%s1152_s21 + $0xd8] sm:$0xff] }
  0x1b   : > { %263 = vperm.xlu0 %1093, %v224_v6   ;;  %v1191_v31 = vld [vmem:[%s1188_s24] sm:$0xff]  ;;  %v254_v32 = vld [vmem:[%s1152_s21 + $0xf8] sm:$0xff]  ;;  %v253_v33 = vld [vmem:[%s1152_s21 + $0xf0] sm:$0xff] }
  0x1c   : > { %v1197_v34 = vld [vmem:[%s1188_s24 + $0x18] sm:$0xff]  ;;  %v1200_v35 = vld [vmem:[%s1188_s24 + $0x10] sm:$0xff]  ;;  %v1203_v36 = vld [vmem:[%s1188_s24 + $0x8] sm:$0xff] }
  0x1d   : > { %v1211_v38 = vld [vmem:[%s1188_s24 + $0x30] sm:$0xff]  ;;  %v1214_v39 = vld [vmem:[%s1188_s24 + $0x28] sm:$0xff]  ;;  %v1217_v40 = vld [vmem:[%s1188_s24 + $0x20] sm:$0xff] }
  0x1e   : > { %v1225_v42 = vld [vmem:[%s1188_s24 + $0x48] sm:$0xff]  ;;  %v1228_v43 = vld [vmem:[%s1188_s24 + $0x40] sm:$0xff]  ;;  %v1231_v44 = vld [vmem:[%s1188_s24 + $0x38] sm:$0xff] }
  0x1f   : > { %v1239_v46 = vld [vmem:[%s1188_s24 + $0x60] sm:$0xff]  ;;  %v1242_v47 = vld [vmem:[%s1188_s24 + $0x58] sm:$0xff]  ;;  %v1245_v48 = vld [vmem:[%s1188_s24 + $0x50] sm:$0xff] }
  0x20   : > { %v1257_v52 = vld [vmem:[%s1188_s24 + $0x78] sm:$0xff]  ;;  %v1260_v53 = vld [vmem:[%s1188_s24 + $0x70] sm:$0xff]  ;;  %v1263_v54 = vld [vmem:[%s1188_s24 + $0x68] sm:$0xff] }
  0x21   : > { %v1275_v58 = vld [vmem:[%s1188_s24 + $0x90] sm:$0xff]  ;;  %v1278_v59 = vld [vmem:[%s1188_s24 + $0x88] sm:$0xff]  ;;  %v1281_v60 = vld [vmem:[%s1188_s24 + $0x80] sm:$0xff] }
  0x22   : > { %298 = vperm.xlu2 %1095, %v231_v7   ;;  %293 = vperm.xlu1 %1094, %v230_v8   ;;  %v1293_v0 = vld [vmem:[%s1188_s24 + $0xa8] sm:$0xff]  ;;  %v1296_v1 = vld [vmem:[%s1188_s24 + $0xa0] sm:$0xff]  ;;  %v1299_v2 = vld [vmem:[%s1188_s24 + $0x98] sm:$0xff] }
  0x23   : > { %288 = vperm.xlu0 %1093, %v229_v9   ;;  %v1311_v6 = vld [vmem:[%s1188_s24 + $0xc0] sm:$0xff]  ;;  %v1314_v7 = vld [vmem:[%s1188_s24 + $0xb8] sm:$0xff]  ;;  %v1317_v8 = vld [vmem:[%s1188_s24 + $0xb0] sm:$0xff] }
  0x2a   : > { %313 = vperm.xlu2 %1095, %v234_v10   ;;  %308 = vperm.xlu1 %1094, %v233_v11  }
  0x2b   : > { %303 = vperm.xlu0 %1093, %v232_v12   ;;  %v1329_v12 = vld [vmem:[%s1188_s24 + $0xd8] sm:$0xff] }
  0x32   : > { %328 = vperm.xlu2 %1095, %v237_v13   ;;  %323 = vperm.xlu1 %1094, %v236_v14   ;;  %v1332_v13 = vld [vmem:[%s1188_s24 + $0xd0] sm:$0xff]  ;;  %v1335_v14 = vld [vmem:[%s1188_s24 + $0xc8] sm:$0xff] }
  0x33   : > { %318 = vperm.xlu0 %1093, %v235_v15  }
  0x3a   : > { %343 = vperm.xlu2 %1095, %v240_v16   ;;  %338 = vperm.xlu1 %1094, %v239_v17  }
  0x3b   : > { %333 = vperm.xlu0 %1093, %v238_v18   ;;  %v1347_v18 = vld [vmem:[%s1188_s24 + $0xf0] sm:$0xff] }
  0x42   : > { %358 = vperm.xlu2 %1095, %v243_v19   ;;  %353 = vperm.xlu1 %1094, %v242_v20   ;;  %v1350_v19 = vld [vmem:[%s1188_s24 + $0xe8] sm:$0xff]  ;;  %v1353_v20 = vld [vmem:[%s1188_s24 + $0xe0] sm:$0xff] }
  0x43   : > { %348 = vperm.xlu0 %1093, %v241_v21  }
  0x4a   : > { %373 = vperm.xlu2 %1095, %v246_v22   ;;  %368 = vperm.xlu1 %1094, %v245_v23  }
  0x4b   : > { %363 = vperm.xlu0 %1093, %v244_v24   ;;  %v1365_v24 = vld [vmem:[%s1188_s24 + $0xf8] sm:$0xff] }
  0x52   : > { %388 = vperm.xlu2 %1095, %v249_v25   ;;  %383 = vperm.xlu1 %1094, %v248_v26   ;;  %v1370_v25 = vld [vmem:[%s1767_s2] ss:$0 sm:$0xff]  ;;  %v1375_v26 = vld [vmem:[%s1767_s2 + $0x1] ss:$0 sm:$0xff] }
  0x53   : > { %378 = vperm.xlu0 %1093, %v247_v27   ;;  %v1112_v27 = vmov 1  }
  0x5a   : > { %403 = vperm.xlu2 %1095, %v252_v28   ;;  %398 = vperm.xlu1 %1094, %v251_v29  }
  0x5b   : > { %393 = vperm.xlu0 %1093, %v250_v30  }
  0x62   : > { %516 = vperm.xlu2 %1095, %v1191_v31   ;;  %413 = vperm.xlu1 %1094, %v254_v32  }
  0x63   : > { %408 = vperm.xlu0 %1093, %v253_v33  }
  0x6a   : > { %531 = vperm.xlu2 %1095, %v1197_v34   ;;  %526 = vperm.xlu1 %1094, %v1200_v35  }
  0x6b   : > { %521 = vperm.xlu0 %1093, %v1203_v36  }
  0x6c   : > { %v1208_v37 = vpop.permute.xlu2 %278 }
  0x6d   : > { %1770 = vst [vmem:[#allocation2_spill] sm:$0xff] %v1208_v37 }
  0x72   : > { %546 = vperm.xlu2 %1095, %v1211_v38   ;;  %541 = vperm.xlu1 %1094, %v1214_v39  }
  0x73   : > { %536 = vperm.xlu0 %1093, %v1217_v40  }
  0x74   : > { %v1222_v41 = vpop.permute.xlu2 %283 }
  0x7a   : > { %561 = vperm.xlu2 %1095, %v1225_v42   ;;  %556 = vperm.xlu1 %1094, %v1228_v43  }
  0x7b   : > { %551 = vperm.xlu0 %1093, %v1231_v44  }
  0x7c   : > { %v1236_v45 = vpop.permute.xlu2 %298 }
  0x82   : > { %576 = vperm.xlu2 %1095, %v1239_v46   ;;  %571 = vperm.xlu1 %1094, %v1242_v47  }
  0x83   : > { %566 = vperm.xlu0 %1093, %v1245_v48  }
  0x84   : > { %v1250_v49 = vpop.permute.xlu2 %313  ;;  %v1252_v50 = vpop.permute.xlu1 %268 }
  0x85   : > { %v1254_v51 = vpop.permute.xlu0 %258 }
  0x86   : > { %v417_v30 = vmul.f32 %v1370_v25, %v1254_v51 }
  0x8a   : > { %591 = vperm.xlu2 %1095, %v1257_v52   ;;  %586 = vperm.xlu1 %1094, %v1260_v53  }
  0x8b   : > { %581 = vperm.xlu0 %1093, %v1263_v54  }
  0x8c   : > { %v1268_v55 = vpop.permute.xlu2 %328  ;;  %v1270_v56 = vpop.permute.xlu1 %273 }
  0x8d   : > { %v1272_v57 = vpop.permute.xlu0 %263 }
  0x92   : > { %606 = vperm.xlu2 %1095, %v1275_v58   ;;  %601 = vperm.xlu1 %1094, %v1278_v59  }
  0x93   : > { %596 = vperm.xlu0 %1093, %v1281_v60  }
  0x94   : > { %v1286_v61 = vpop.permute.xlu2 %343  ;;  %v1288_v62 = vpop.permute.xlu1 %293 }
  0x95   : > { %v1290_v63 = vpop.permute.xlu0 %288 }
  0x9a   : > { %621 = vperm.xlu2 %1095, %v1293_v0   ;;  %616 = vperm.xlu1 %1094, %v1296_v1  }
  0x9b   : > { %611 = vperm.xlu0 %1093, %v1299_v2  }
  0x9c   : > { %v1304_v3 = vpop.permute.xlu2 %358  ;;  %v1306_v4 = vpop.permute.xlu1 %308 }
  0x9d   : > { %v1308_v5 = vpop.permute.xlu0 %303 }
  0xa2   : > { %636 = vperm.xlu2 %1095, %v1311_v6   ;;  %631 = vperm.xlu1 %1094, %v1314_v7  }
  0xa3   : > { %626 = vperm.xlu0 %1093, %v1317_v8  }
  0xa4   : > { %v1322_v9 = vpop.permute.xlu2 %373  ;;  %v1324_v10 = vpop.permute.xlu1 %323 }
  0xa5   : > { %v1326_v11 = vpop.permute.xlu0 %318 }
  0xaa   : > { %651 = vperm.xlu2 %1095, %v1329_v12   ;;  %646 = vperm.xlu1 %1094, %v1332_v13  }
  0xab   : > { %641 = vperm.xlu0 %1093, %v1335_v14  }
  0xac   : > { %v1340_v15 = vpop.permute.xlu2 %388  ;;  %v1342_v16 = vpop.permute.xlu1 %338 }
  0xad   : > { %1771 = vst [vmem:[#allocation3_spill] sm:$0xff] %v1340_v15  ;;  %v1344_v17 = vpop.permute.xlu0 %333  ;;  %v420_v15 = vmul.f32 %v1370_v25, %v1270_v56 }
  0xb2   : > { %666 = vperm.xlu2 %1095, %v1347_v18   ;;  %661 = vperm.xlu1 %1094, %v1350_v19  }
  0xb3   : > { %656 = vperm.xlu0 %1093, %v1353_v20  }
  0xb4   : > { %v1358_v21 = vpop.permute.xlu2 %403  ;;  %v1360_v22 = vpop.permute.xlu1 %353 }
  0xb5   : > { %1772 = vst [vmem:[#allocation4_spill] sm:$0xff] %v1358_v21  ;;  %v1362_v23 = vpop.permute.xlu0 %348 }
  0xba   : > { %1097 = vset.pattern.permute.xlu2 %v1112_v27  ;;  %1096 = vset.pattern.permute.xlu1 %v1112_v27 }
  0xbb   : > { %671 = vperm.xlu0 %1093, %v1365_v24   ;;  %745 = vperm.xlu2 %1097, %v1203_v36  }
  0xbc   : > { %741 = vperm.xlu1 %1096, %v1191_v31   ;;  %v517_v28 = vpop.permute.xlu2 %516  ;;  %v1380_v29 = vpop.permute.xlu1 %368 }
  0xbd   : > { %v675_v32 = vmul.f32 %v1375_v26, %v517_v28  ;;  %v1385_v33 = vpop.permute.xlu0 %363 }
  0xbf   : > { %v1387_v21 = vadd.f32 %v675_v32, %v417_v30 }
  0xc3   : > { %1098 = vset.pattern.permute.xlu0 %v1112_v27  ;;  %757 = vperm.xlu2 %1097, %v1217_v40   ;;  %v423_v40 = vmul.f32 %v1370_v25, %v1290_v63 }
  0xc4   : > { %753 = vperm.xlu1 %1096, %v1197_v34   ;;  %749 = vperm.xlu0 %1098, %v1200_v35   ;;  %v532_v31 = vpop.permute.xlu2 %531  ;;  %v1392_v36 = vpop.permute.xlu1 %383 }
  0xc5   : > { %v678_v51 = vmul.f32 %v1375_v26, %v532_v31  ;;  %v1397_v28 = vpop.permute.xlu0 %378 }
  0xc7   : > { %v1399_v37 = vadd.f32 %v678_v51, %v420_v15 }
  0xcb   : > { %765 = vperm.xlu2 %1097, %v1211_v38  }
  0xcc   : > { %761 = vperm.xlu1 %1096, %v1214_v39   ;;  %769 = vperm.xlu0 %1098, %v1231_v44   ;;  %v547_v34 = vpop.permute.xlu2 %546  ;;  %v1404_v35 = vpop.permute.xlu1 %398  ;;  %v426_v44 = vmul.f32 %v1370_v25, %v1308_v5  ;;  %v429_v5 = vmul.f32 %v1370_v25, %v1326_v11  ;;  %v432_v11 = vmul.f32 %v1370_v25, %v1344_v17 }
  0xcd   : > { %v681_v56 = vmul.f32 %v1375_v26, %v547_v34  ;;  %v1409_v27 = vpop.permute.xlu0 %393  ;;  %v435_v17 = vmul.f32 %v1370_v25, %v1362_v23 }
  0xcf   : > { %v1411_v30 = vadd.f32 %v681_v56, %v423_v40 }
  0xd3   : > { %777 = vperm.xlu2 %1097, %v1225_v42  }
  0xd4   : > { %773 = vperm.xlu1 %1096, %v1228_v43   ;;  %781 = vperm.xlu0 %1098, %v1245_v48   ;;  %v562_v38 = vpop.permute.xlu2 %561  ;;  %v1416_v39 = vpop.permute.xlu1 %413  ;;  %v419_v48 = vmul.f32 %v1370_v25, %v1252_v50 }
  0xd5   : > { %v684_v63 = vmul.f32 %v1375_v26, %v562_v38  ;;  %v1421_v15 = vpop.permute.xlu0 %408 }
  0xd7   : > { %v1423_v32 = vadd.f32 %v684_v63, %v426_v44 }
  0xdb   : > { %789 = vperm.xlu2 %1097, %v1239_v46  }
  0xdc   : > { %785 = vperm.xlu1 %1096, %v1242_v47   ;;  %793 = vperm.xlu0 %1098, %v1263_v54   ;;  %v577_v42 = vpop.permute.xlu2 %576  ;;  %v527_v43 = vpop.permute.xlu1 %526  ;;  %v422_v54 = vmul.f32 %v1370_v25, %v1222_v41 }
  0xdd   : > { %v687_v31 = vmul.f32 %v1375_v26, %v577_v42  ;;  %v677_v51 = vmul.f32 %v1375_v26, %v527_v43  ;;  %v1434_v34 = vpop.permute.xlu0 %521 }
  0xdf   : > { %v1436_v40 = vadd.f32 %v687_v31, %v429_v5  ;;  %v1438_v46 = vadd.f32 %v677_v51, %v419_v48  ;;  %v428_v51 = vmul.f32 %v1370_v25, %v1250_v49 }
  0xe3   : > { %801 = vperm.xlu2 %1097, %v1257_v52  }
  0xe4   : > { %797 = vperm.xlu1 %1096, %v1260_v53   ;;  %805 = vperm.xlu0 %1098, %v1281_v60   ;;  %v592_v47 = vpop.permute.xlu2 %591  ;;  %v542_v50 = vpop.permute.xlu1 %541  ;;  %v425_v60 = vmul.f32 %v1370_v25, %v1236_v45 }
  0xe5   : > { %v690_v56 = vmul.f32 %v1375_v26, %v592_v47  ;;  %v680_v38 = vmul.f32 %v1375_v26, %v542_v50  ;;  %v1449_v44 = vpop.permute.xlu0 %536 }
  0xe7   : > { %v1451_v63 = vadd.f32 %v690_v56, %v432_v11  ;;  %v1453_v52 = vadd.f32 %v680_v38, %v422_v54  ;;  %v431_v38 = vmul.f32 %v1370_v25, %v1268_v55 }
  0xeb   : > { %813 = vperm.xlu2 %1097, %v1275_v58   ;;  %v424_v58 = vmul.f32 %v1370_v25, %v1288_v62  ;;  %v438_v62 = vmul.f32 %v1370_v25, %v1385_v33 }
  0xec   : > { %809 = vperm.xlu1 %1096, %v1278_v59   ;;  %817 = vperm.xlu0 %1098, %v1299_v2   ;;  %v607_v41 = vpop.permute.xlu2 %606  ;;  %v557_v53 = vpop.permute.xlu1 %556 }
  0xed   : > { %v693_v42 = vmul.f32 %v1375_v26, %v607_v41  ;;  %v683_v43 = vmul.f32 %v1375_v26, %v557_v53  ;;  %v552_v48 = vpop.permute.xlu0 %551 }
  0xee   : > { %v682_v59 = vmul.f32 %v1375_v26, %v552_v48 }
  0xef   : > { %v1467_v5 = vadd.f32 %v693_v42, %v435_v17  ;;  %v1469_v2 = vadd.f32 %v683_v43, %v425_v60  ;;  %v434_v43 = vmul.f32 %v1370_v25, %v1286_v61 }
  0xf0   : > { %v1471_v31 = vadd.f32 %v682_v59, %v424_v58 }
  0xf3   : > { %825 = vperm.xlu2 %1097, %v1293_v0   ;;  %v427_v0 = vmul.f32 %v1370_v25, %v1306_v4  ;;  %v441_v4 = vmul.f32 %v1370_v25, %v1397_v28 }
  0xf4   : > { %821 = vperm.xlu1 %1096, %v1296_v1   ;;  %829 = vperm.xlu0 %1098, %v1317_v8   ;;  %v622_v45 = vpop.permute.xlu2 %621  ;;  %v572_v23 = vpop.permute.xlu1 %571 }
  0xf5   : > { %v696_v47 = vmul.f32 %v1375_v26, %v622_v45  ;;  %v686_v50 = vmul.f32 %v1375_v26, %v572_v23  ;;  %v567_v54 = vpop.permute.xlu0 %566 }
  0xf6   : > { %v685_v1 = vmul.f32 %v1375_v26, %v567_v54 }
  0xf7   : > { %v1485_v11 = vadd.f32 %v696_v47, %v438_v62  ;;  %v1487_v8 = vadd.f32 %v686_v50, %v428_v51  ;;  %v437_v51 = vmul.f32 %v1370_v25, %v1304_v3  ;;  %v676_v3 = vmul.f32 %v1375_v26, %v1434_v34 }
  0xf8   : > { %v1489_v56 = vadd.f32 %v685_v1, %v427_v0  ;;  %v439_v34 = vmul.f32 %v1370_v25, %v1380_v29  ;;  %v679_v29 = vmul.f32 %v1375_v26, %v1449_v44 }
  0xfb   : > { %837 = vperm.xlu2 %1097, %v1311_v6   ;;  %v430_v6 = vmul.f32 %v1370_v25, %v1324_v10  ;;  %v444_v10 = vmul.f32 %v1370_v25, %v1409_v27 }
  0xfc   : > { %833 = vperm.xlu1 %1096, %v1314_v7   ;;  %841 = vperm.xlu0 %1098, %v1335_v14   ;;  %v637_v49 = vpop.permute.xlu2 %636  ;;  %v587_v33 = vpop.permute.xlu1 %586 }
  0xfd   : > { %v699_v41 = vmul.f32 %v1375_v26, %v637_v49  ;;  %v689_v53 = vmul.f32 %v1375_v26, %v587_v33  ;;  %v582_v60 = vpop.permute.xlu0 %581  ;;  %v440_v49 = vmul.f32 %v1370_v25, %v1322_v9 }
  0xfe   : > { %v688_v7 = vmul.f32 %v1375_v26, %v582_v60  ;;  %v1563_v60 = vld [vmem:[%s1768_s3] ss:$0 sm:$0xff] }
  0xff   : > { %v1503_v17 = vadd.f32 %v699_v41, %v441_v4  ;;  %v1505_v14 = vadd.f32 %v689_v53, %v431_v38 }
 0x100   : > { %v1507_v42 = vadd.f32 %v688_v7, %v430_v6 }
 0x103   : > { %849 = vperm.xlu2 %1097, %v1329_v12   ;;  %v433_v12 = vmul.f32 %v1370_v25, %v1342_v16  ;;  %v447_v16 = vmul.f32 %v1370_v25, %v1421_v15  ;;  %v1550_v15 = vld [vmem:[%s1767_s2 + $0x2] ss:$0 sm:$0xff] }
 0x104   : > { %845 = vperm.xlu1 %1096, %v1332_v13   ;;  %853 = vperm.xlu0 %1098, %v1353_v20   ;;  %v652_v55 = vpop.permute.xlu2 %651  ;;  %v602_v28 = vpop.permute.xlu1 %601 }
 0x105   : > { %v702_v48 = vmul.f32 %v1375_v26, %v652_v55  ;;  %v692_v58 = vmul.f32 %v1375_v26, %v602_v28  ;;  %v597_v59 = vpop.permute.xlu0 %596  ;;  %v1773_v28 = vld [vmem:[#allocation2_spill] sm:$0xff] }
 0x106   : > { %v691_v13 = vmul.f32 %v1375_v26, %v597_v59 }
 0x107   : > { %v1521_v45 = vadd.f32 %v702_v48, %v444_v10  ;;  %v1523_v20 = vadd.f32 %v692_v58, %v434_v43  ;;  %v421_v43 = vmul.f32 %v1370_v25, %v1773_v28  ;;  %v1774_v48 = vld [vmem:[#allocation3_spill] sm:$0xff] }
 0x108   : > { %v1525_v23 = vadd.f32 %v691_v13, %v433_v12  ;;  %v443_v58 = vmul.f32 %v1370_v25, %v1774_v48 }
 0x109   : > { %v711_v44 = vadd.f32 %v679_v29, %v421_v43 }
 0x10b   : > { %861 = vperm.xlu2 %1097, %v1347_v18   ;;  %v436_v18 = vmul.f32 %v1370_v25, %v1360_v22  ;;  %v418_v22 = vmul.f32 %v1370_v25, %v1272_v57 }
 0x10c   : > { %857 = vperm.xlu1 %1096, %v1350_v19   ;;  %865 = vperm.xlu0 %1098, %v1365_v24   ;;  %v667_v61 = vpop.permute.xlu2 %666  ;;  %v617_v27 = vpop.permute.xlu1 %616 }
 0x10d   : > { %v705_v62 = vmul.f32 %v1375_v26, %v667_v61  ;;  %v695_v47 = vmul.f32 %v1375_v26, %v617_v27  ;;  %v612_v50 = vpop.permute.xlu0 %611  ;;  %v708_v41 = vadd.f32 %v676_v3, %v418_v22  ;;  %v442_v61 = vmul.f32 %v1370_v25, %v1392_v36 }
 0x10e   : > { %v694_v19 = vmul.f32 %v1375_v26, %v612_v50 }
 0x10f   : > { %v1539_v54 = vadd.f32 %v705_v62, %v447_v16  ;;  %v1541_v24 = vadd.f32 %v695_v47, %v437_v51 }
 0x110   : > { %v1543_v0 = vadd.f32 %v694_v19, %v436_v18  ;;  %v1775_v19 = vld [vmem:[#allocation4_spill] sm:$0xff] }
 0x111   : > { %v446_v3 = vmul.f32 %v1370_v25, %v1775_v19 }
 0x114   : > { %v632_v1 = vpop.permute.xlu1 %631 }
 0x115   : > { %v698_v33 = vmul.f32 %v1375_v26, %v632_v1  ;;  %v627_v38 = vpop.permute.xlu0 %626  ;;  %v746_v4 = vpop.permute.xlu2 %745 }
 0x116   : > { %v697_v53 = vmul.f32 %v1375_v26, %v627_v38  ;;  %v870_v57 = vmul.f32 %v1550_v15, %v746_v4 }
 0x117   : > { %v1566_v6 = vadd.f32 %v698_v33, %v440_v49  ;;  %v445_v49 = vmul.f32 %v1370_v25, %v1404_v35  ;;  %v448_v35 = vmul.f32 %v1370_v25, %v1416_v39 }
 0x118   : > { %v1568_v9 = vadd.f32 %v697_v53, %v439_v34  ;;  %v902_v7 = vadd.f32 %v870_v57, %v708_v41 }
 0x11a   : > { %v938_v55 = vadd.f32 %v1563_v60, %v902_v7 }
 0x11c   : > { %971 = vst.msk [vmem:[%s1574_s9 + $0x8] sm:$0xff] %vm969_vm0, %v938_v55  ;;  %v647_v10 = vpop.permute.xlu1 %646 }
 0x11d   : > { %v701_v59 = vmul.f32 %v1375_v26, %v647_v10  ;;  %v642_v12 = vpop.permute.xlu0 %641  ;;  %v758_v13 = vpop.permute.xlu2 %757 }
 0x11e   : > { %v700_v27 = vmul.f32 %v1375_v26, %v642_v12  ;;  %v873_v51 = vmul.f32 %v1550_v15, %v758_v13 }
 0x11f   : > { %v1590_v16 = vadd.f32 %v701_v59, %v443_v58 }
 0x120   : > { %v1592_v62 = vadd.f32 %v700_v27, %v442_v61  ;;  %v905_v47 = vadd.f32 %v873_v51, %v711_v44 }
 0x122   : > { %v941_v50 = vadd.f32 %v1563_v60, %v905_v47 }
 0x124   : > { %974 = vst.msk [vmem:[%s1574_s9 + $0x20] sm:$0xff] %vm969_vm0, %v941_v50  ;;  %v662_v18 = vpop.permute.xlu1 %661 }
 0x125   : > { %v704_v36 = vmul.f32 %v1375_v26, %v662_v18  ;;  %v657_v22 = vpop.permute.xlu0 %656  ;;  %v766_v1 = vpop.permute.xlu2 %765 }
 0x126   : > { %v703_v33 = vmul.f32 %v1375_v26, %v657_v22  ;;  %v875_v38 = vmul.f32 %v1550_v15, %v766_v1 }
 0x127   : > { %v1604_v4 = vadd.f32 %v704_v36, %v446_v3 }
 0x128   : > { %v1606_v34 = vadd.f32 %v703_v33, %v445_v49  ;;  %v907_v41 = vadd.f32 %v875_v38, %v1411_v30 }
 0x12a   : > { %v943_v53 = vadd.f32 %v1563_v60, %v907_v41 }
 0x12c   : > { %976 = vst.msk [vmem:[%s1574_s9 + $0x30] sm:$0xff] %vm969_vm0, %v943_v53 }
 0x12d   : > { %v672_v57 = vpop.permute.xlu0 %671  ;;  %v778_v7 = vpop.permute.xlu2 %777 }
 0x12e   : > { %v706_v29 = vmul.f32 %v1375_v26, %v672_v57  ;;  %v878_v55 = vmul.f32 %v1550_v15, %v778_v7  ;;  %v742_v28 = vpop.permute.xlu1 %741 }
 0x12f   : > { %v869_v43 = vmul.f32 %v1550_v15, %v742_v28 }
 0x130   : > { %v1617_v10 = vadd.f32 %v706_v29, %v448_v35  ;;  %v910_v30 = vadd.f32 %v878_v55, %v1423_v32 }
 0x131   : > { %v901_v48 = vadd.f32 %v869_v43, %v1387_v21 }
 0x132   : > { %v946_v58 = vadd.f32 %v1563_v60, %v910_v30 }
 0x133   : > { %v937_v59 = vadd.f32 %v1563_v60, %v901_v48 }
 0x134   : > { %979 = vst.msk [vmem:[%s1574_s9 + $0x48] sm:$0xff] %vm969_vm0, %v946_v58 }
 0x135   : > { %970 = vst.msk [vmem:[%s1574_s9] sm:$0xff] %vm969_vm0, %v937_v59  ;;  %v790_v25 = vpop.permute.xlu2 %789 }
 0x136   : > { %v881_v26 = vmul.f32 %v1550_v15, %v790_v25  ;;  %v754_v39 = vpop.permute.xlu1 %753  ;;  %v750_v12 = vpop.permute.xlu0 %749 }
 0x137   : > { %v872_v32 = vmul.f32 %v1550_v15, %v754_v39  ;;  %v871_v21 = vmul.f32 %v1550_v15, %v750_v12 }
 0x138   : > { %v913_v13 = vadd.f32 %v881_v26, %v1436_v40 }
 0x139   : > { %v904_v61 = vadd.f32 %v872_v32, %v1399_v37  ;;  %v903_v44 = vadd.f32 %v871_v21, %v1438_v46 }
 0x13a   : > { %v949_v27 = vadd.f32 %v1563_v60, %v913_v13 }
 0x13b   : > { %v940_v51 = vadd.f32 %v1563_v60, %v904_v61  ;;  %v939_v47 = vadd.f32 %v1563_v60, %v903_v44 }
 0x13c   : > { %982 = vst.msk [vmem:[%s1574_s9 + $0x60] sm:$0xff] %vm969_vm0, %v949_v27 }
 0x13d   : > { %973 = vst.msk [vmem:[%s1574_s9 + $0x18] sm:$0xff] %vm969_vm0, %v940_v51  ;;  %v802_v50 = vpop.permute.xlu2 %801 }
 0x13e   : > { %972 = vst.msk [vmem:[%s1574_s9 + $0x10] sm:$0xff] %vm969_vm0, %v939_v47  ;;  %v884_v37 = vmul.f32 %v1550_v15, %v802_v50  ;;  %v762_v40 = vpop.permute.xlu1 %761  ;;  %v770_v46 = vpop.permute.xlu0 %769 }
 0x13f   : > { %v874_v18 = vmul.f32 %v1550_v15, %v762_v40  ;;  %v876_v19 = vmul.f32 %v1550_v15, %v770_v46 }
 0x140   : > { %v916_v3 = vadd.f32 %v884_v37, %v1451_v63 }
 0x141   : > { %v906_v36 = vadd.f32 %v874_v18, %v1453_v52  ;;  %v908_v22 = vadd.f32 %v876_v19, %v1471_v31 }
 0x142   : > { %v952_v1 = vadd.f32 %v1563_v60, %v916_v3 }
 0x143   : > { %v942_v49 = vadd.f32 %v1563_v60, %v906_v36  ;;  %v944_v33 = vadd.f32 %v1563_v60, %v908_v22 }
 0x144   : > { %985 = vst.msk [vmem:[%s1574_s9 + $0x78] sm:$0xff] %vm969_vm0, %v952_v1 }
 0x145   : > { %975 = vst.msk [vmem:[%s1574_s9 + $0x28] sm:$0xff] %vm969_vm0, %v942_v49  ;;  %v814_v38 = vpop.permute.xlu2 %813 }
 0x146   : > { %977 = vst.msk [vmem:[%s1574_s9 + $0x38] sm:$0xff] %vm969_vm0, %v944_v33  ;;  %v887_v63 = vmul.f32 %v1550_v15, %v814_v38  ;;  %v774_v52 = vpop.permute.xlu1 %773  ;;  %v782_v31 = vpop.permute.xlu0 %781 }
 0x147   : > { %v877_v41 = vmul.f32 %v1550_v15, %v774_v52  ;;  %v879_v53 = vmul.f32 %v1550_v15, %v782_v31 }
 0x148   : > { %v919_v57 = vadd.f32 %v887_v63, %v1467_v5 }
 0x149   : > { %v909_v7 = vadd.f32 %v877_v41, %v1469_v2  ;;  %v911_v35 = vadd.f32 %v879_v53, %v1489_v56 }
 0x14a   : > { %v955_v29 = vadd.f32 %v1563_v60, %v919_v57 }
 0x14b   : > { %v945_v55 = vadd.f32 %v1563_v60, %v909_v7  ;;  %v947_v28 = vadd.f32 %v1563_v60, %v911_v35 }
 0x14c   : > { %988 = vst.msk [vmem:[%s1574_s9 + $0x90] sm:$0xff] %vm969_vm0, %v955_v29 }
 0x14d   : > { %978 = vst.msk [vmem:[%s1574_s9 + $0x40] sm:$0xff] %vm969_vm0, %v945_v55  ;;  %v826_v43 = vpop.permute.xlu2 %825 }
 0x14e   : > { %980 = vst.msk [vmem:[%s1574_s9 + $0x50] sm:$0xff] %vm969_vm0, %v947_v28  ;;  %v890_v5 = vmul.f32 %v1550_v15, %v826_v43  ;;  %v786_v2 = vpop.permute.xlu1 %785  ;;  %v794_v56 = vpop.permute.xlu0 %793 }
 0x14f   : > { %v880_v30 = vmul.f32 %v1550_v15, %v786_v2  ;;  %v882_v48 = vmul.f32 %v1550_v15, %v794_v56 }
 0x150   : > { %v922_v58 = vadd.f32 %v890_v5, %v1485_v11 }
 0x151   : > { %v912_v59 = vadd.f32 %v880_v30, %v1487_v8  ;;  %v914_v25 = vadd.f32 %v882_v48, %v1507_v42 }
 0x152   : > { %v958_v26 = vadd.f32 %v1563_v60, %v922_v58 }
 0x153   : > { %v948_v39 = vadd.f32 %v1563_v60, %v912_v59  ;;  %v950_v12 = vadd.f32 %v1563_v60, %v914_v25 }
 0x154   : > { %991 = vst.msk [vmem:[%s1574_s9 + $0xa8] sm:$0xff] %vm969_vm0, %v958_v26 }
 0x155   : > { %981 = vst.msk [vmem:[%s1574_s9 + $0x58] sm:$0xff] %vm969_vm0, %v948_v39  ;;  %v838_v32 = vpop.permute.xlu2 %837 }
 0x156   : > { %983 = vst.msk [vmem:[%s1574_s9 + $0x68] sm:$0xff] %vm969_vm0, %v950_v12  ;;  %v893_v11 = vmul.f32 %v1550_v15, %v838_v32  ;;  %v798_v8 = vpop.permute.xlu1 %797  ;;  %v806_v42 = vpop.permute.xlu0 %805 }
 0x157   : > { %v883_v21 = vmul.f32 %v1550_v15, %v798_v8  ;;  %v885_v13 = vmul.f32 %v1550_v15, %v806_v42 }
 0x158   : > { %v925_v61 = vadd.f32 %v893_v11, %v1503_v17 }
 0x159   : > { %v915_v44 = vadd.f32 %v883_v21, %v1505_v14  ;;  %v917_v27 = vadd.f32 %v885_v13, %v1525_v23 }
 0x15a   : > { %v961_v51 = vadd.f32 %v1563_v60, %v925_v61 }
 0x15b   : > { %v951_v47 = vadd.f32 %v1563_v60, %v915_v44  ;;  %v953_v50 = vadd.f32 %v1563_v60, %v917_v27 }
 0x15c   : > { %994 = vst.msk [vmem:[%s1574_s9 + $0xc0] sm:$0xff] %vm969_vm0, %v961_v51 }
 0x15d   : > { %984 = vst.msk [vmem:[%s1574_s9 + $0x70] sm:$0xff] %vm969_vm0, %v951_v47  ;;  %v850_v37 = vpop.permute.xlu2 %849 }
 0x15e   : > { %986 = vst.msk [vmem:[%s1574_s9 + $0x80] sm:$0xff] %vm969_vm0, %v953_v50  ;;  %v896_v17 = vmul.f32 %v1550_v15, %v850_v37  ;;  %v810_v14 = vpop.permute.xlu1 %809  ;;  %v818_v23 = vpop.permute.xlu0 %817 }
 0x15f   : > { %v886_v40 = vmul.f32 %v1550_v15, %v810_v14  ;;  %v888_v46 = vmul.f32 %v1550_v15, %v818_v23 }
 0x160   : > { %v928_v18 = vadd.f32 %v896_v17, %v1521_v45 }
 0x161   : > { %v918_v19 = vadd.f32 %v886_v40, %v1523_v20  ;;  %v920_v3 = vadd.f32 %v888_v46, %v1543_v0 }
 0x162   : > { %v964_v36 = vadd.f32 %v1563_v60, %v928_v18 }
 0x163   : > { %v954_v22 = vadd.f32 %v1563_v60, %v918_v19  ;;  %v956_v1 = vadd.f32 %v1563_v60, %v920_v3 }
 0x164   : > { %997 = vst.msk [vmem:[%s1574_s9 + $0xd8] sm:$0xff] %vm969_vm0, %v964_v36 }
 0x165   : > { %987 = vst.msk [vmem:[%s1574_s9 + $0x88] sm:$0xff] %vm969_vm0, %v954_v22  ;;  %v862_v49 = vpop.permute.xlu2 %861 }
 0x166   : > { %989 = vst.msk [vmem:[%s1574_s9 + $0x98] sm:$0xff] %vm969_vm0, %v956_v1  ;;  %v899_v45 = vmul.f32 %v1550_v15, %v862_v49  ;;  %v822_v20 = vpop.permute.xlu1 %821  ;;  %v830_v0 = vpop.permute.xlu0 %829 }
 0x167   : > { %v889_v33 = vmul.f32 %v1550_v15, %v822_v20  ;;  %v891_v38 = vmul.f32 %v1550_v15, %v830_v0 }
 0x168   : > { %v931_v63 = vadd.f32 %v899_v45, %v1539_v54 }
 0x169   : > { %v921_v52 = vadd.f32 %v889_v33, %v1541_v24  ;;  %v923_v31 = vadd.f32 %v891_v38, %v1568_v9 }
 0x16a   : > { %v967_v41 = vadd.f32 %v1563_v60, %v931_v63 }
 0x16b   : > { %v957_v53 = vadd.f32 %v1563_v60, %v921_v52  ;;  %v959_v57 = vadd.f32 %v1563_v60, %v923_v31 }
 0x16c   : > { %1000 = vst.msk [vmem:[%s1574_s9 + $0xf0] sm:$0xff] %vm969_vm0, %v967_v41 }
 0x16d   : > { %990 = vst.msk [vmem:[%s1574_s9 + $0xa0] sm:$0xff] %vm969_vm0, %v957_v53 }
 0x16e   : > { %992 = vst.msk [vmem:[%s1574_s9 + $0xb0] sm:$0xff] %vm969_vm0, %v959_v57  ;;  %v834_v7 = vpop.permute.xlu1 %833  ;;  %v842_v54 = vpop.permute.xlu0 %841 }
 0x16f   : > { %v892_v24 = vmul.f32 %v1550_v15, %v834_v7  ;;  %v894_v9 = vmul.f32 %v1550_v15, %v842_v54 }
 0x171   : > { %v924_v35 = vadd.f32 %v892_v24, %v1566_v6  ;;  %v926_v29 = vadd.f32 %v894_v9, %v1592_v62 }
 0x173   : > { %v960_v55 = vadd.f32 %v1563_v60, %v924_v35  ;;  %v962_v28 = vadd.f32 %v1563_v60, %v926_v29 }
 0x175   : > { %993 = vst.msk [vmem:[%s1574_s9 + $0xb8] sm:$0xff] %vm969_vm0, %v960_v55 }
 0x176   : > { %995 = vst.msk [vmem:[%s1574_s9 + $0xc8] sm:$0xff] %vm969_vm0, %v962_v28  ;;  %v846_v43 = vpop.permute.xlu1 %845  ;;  %v854_v5 = vpop.permute.xlu0 %853 }
 0x177   : > { %v895_v2 = vmul.f32 %v1550_v15, %v846_v43  ;;  %v897_v56 = vmul.f32 %v1550_v15, %v854_v5 }
 0x179   : > { %v927_v6 = vadd.f32 %v895_v2, %v1590_v16  ;;  %v929_v62 = vadd.f32 %v897_v56, %v1606_v34 }
 0x17b   : > { %v963_v30 = vadd.f32 %v1563_v60, %v927_v6  ;;  %v965_v48 = vadd.f32 %v1563_v60, %v929_v62 }
 0x17d   : > { %996 = vst.msk [vmem:[%s1574_s9 + $0xd0] sm:$0xff] %vm969_vm0, %v963_v30 }
 0x17e   : > { %998 = vst.msk [vmem:[%s1574_s9 + $0xe0] sm:$0xff] %vm969_vm0, %v965_v48  ;;  %v858_v58 = vpop.permute.xlu1 %857  ;;  %v866_v59 = vpop.permute.xlu0 %865 }
 0x17f   : > { %v898_v25 = vmul.f32 %v1550_v15, %v858_v58  ;;  %v900_v26 = vmul.f32 %v1550_v15, %v866_v59 }
 0x181   : > { %v930_v39 = vadd.f32 %v898_v25, %v1604_v4  ;;  %v932_v16 = vadd.f32 %v900_v26, %v1617_v10 }
 0x183   : > { %v966_v34 = vadd.f32 %v1563_v60, %v930_v39  ;;  %v968_v12 = vadd.f32 %v1563_v60, %v932_v16 }
 0x185   : > { %999 = vst.msk [vmem:[%s1574_s9 + $0xe8] sm:$0xff] %vm969_vm0, %v966_v34 }
 0x186   : > { %1001 = vst.msk [vmem:[%s1574_s9 + $0xf8] sm:$0xff] %vm969_vm0, %v968_v12 }
 0x187 PF: > { %s14_s15 = sadd.s32 1, %s1109_s15  }
 0x188   : > { %p11_p4 = scmp.ge.s32.totalorder %s14_s15, 4  }
 0x18a   :  { %13 = sbr.rel (!%p11_p4) target bundleno = 1 (0x1), region = 69 }

// kernel: fno2d_forward.7
= control target key start
LH: loop header
LB: loop body
LE: loop exit
PB: predicated region body
PF: predicated region fallthrough
CT: control target
= control target key end

     0   :  { %s1707_s15 = smov 0   ;;  %s2149_s0 = inlined_call_operand.vmem [shape: f32[32,2,32], index: 0, kind: input, shape index: {}]   ;;  %s2150_s1 = inlined_call_operand.vmem [shape: f32[32,2,32], index: 1, kind: input, shape index: {}]   ;;  %s2151_s2 = inlined_call_operand.vmem [shape: bf16[32,32,64], index: 2, kind: input, shape index: {}]   ;;  %s2152_s3 = inlined_call_operand.vmem [shape: f32[32,2,32], index: 3, kind: output, shape index: {0}]   ;;  %s2153_s4 = inlined_call_operand.vmem [shape: f32[32,2,32], index: 4, kind: output, shape index: {1}]  }
   0x1 LB: > { %s1451_s16 = sadd.s32 4294967295, %s1678_s15   ;;  %p1455_p0 = scmp.ge.s32.totalorder %s1678_s15, 1  ;;  %s1678_s15 = sphi %s1707_s15, %s15_s15  }
   0x2   : > { %p189_p1 = scmp.lt.s32.totalorder %s1678_s15, 3 }
   0x4   : > { %p190_p2 = pnand %p1455_p0, %p189_p1 }
   0x5   : > { %s1456_s17 = sshll.u32 (!%p190_p2), %s1451_s16, 4  ;;  %s1680_s29 = smov (!%p190_p2), 32  }
   0x6   : > { %193 = sbr.rel (%p190_p2) target bundleno = 526 (0x20e), region = 32  ;;  %p232_p3 = scmp.lt.s32.totalorder (!%p190_p2), %s1456_s17, 31 }
   0x7   : > { %s1681_s30 = smov (!%p190_p2), 96  }
   0xb   : > { %s2155_s17 = smov (!%p232_p3, %s1456_s17), 31  ;;  %vm371_vm0 = vcmask 261120   ;;  %vm1176_vm1 = vcmask 254976  }
   0xc   : > { %s1629_s18 = sshll.u32 %s2155_s17, 4  ;;  %s1715_s19 = sshll.u32 %s2155_s17, 1 }
   0xd   : > { %s1720_s22 = scalar_lea.vmem %s2151_s2, %s1629_s18  ;;  %s1726_s25 = scalar_lea.vmem %s2149_s0, %s1715_s19 }
   0xe   : > { %v1729_v0 = vld [vmem:[%s1720_s22 + $0x8] sm:$0xff]  ;;  %v1732_v1 = vld [vmem:[%s1720_s22 + $0x18] sm:$0xff]  ;;  %v1738_v3 = vld [vmem:[%s1720_s22] sm:$0xff]  ;;  %s1905_s28 = scalar_lea.vmem %s2150_s1, %s1715_s19  ;;  %s2028_s7 = scalar_lea.vmem %s2152_s3, %s1715_s19 }
   0xf   : > { %v1735_v2 = vld [vmem:[%s1720_s22 + $0x28] sm:$0xff]  ;;  %v1741_v4 = vld [vmem:[%s1720_s22 + $0x10] sm:$0xff]  ;;  %381 = vmatpush.bf16.msra.mxu0 %v1729_v0  ;;  %409 = vmatpush.bf16.msra.mxu1 %v1732_v1  ;;  %v1746_v5 = vld [vmem:[%s1720_s22 + $0x20] sm:$0xff]  ;;  %s2112_s10 = scalar_lea.vmem %s2153_s4, %s1715_s19 }
  0x10   : > { %v327_v6 = vld [vmem:[%s1726_s25] sm:$0x3]  ;;  %v328_v7 = vld [vmem:[%s1726_s25 + $0x2] sm:$0x3]  ;;  %437 = vmatpush.bf16.msra.mxu2 %v1735_v2  ;;  %v1752_v8 = vld [vmem:[%s1720_s22 + $0x48] sm:$0xff] }
  0x11   : > { %v329_v9 = vld [vmem:[%s1726_s25 + $0x4] sm:$0x3]  ;;  %v1756_v10 = vld [vmem:[%s1720_s22 + $0x38] sm:$0xff]  ;;  %v343_v12 = vpack.c.bf16 %v327_v6, %v327_v6  ;;  %v344_v13 = vpack.c.bf16 %v328_v7, %v328_v7  ;;  %v1763_v14 = vld [vmem:[%s1720_s22 + $0x68] sm:$0xff] }
  0x12   : > { %v1759_v11 = vld [vmem:[%s1720_s22 + $0x58] sm:$0xff]  ;;  %465 = vmatpush.bf16.msra.mxu3 %v1756_v10  ;;  %v345_v15 = vpack.c.bf16 %v329_v9, %v329_v9  ;;  %v1768_v16 = vld [vmem:[%s1720_s22 + $0x30] sm:$0xff]  ;;  %v330_v17 = vld [vmem:[%s1726_s25 + $0x6] sm:$0x3] }
  0x13   : > { %382 = vmatpush.bf16.msra.mxu0 %v1738_v3  ;;  %410 = vmatpush.bf16.msra.mxu1 %v1741_v4  ;;  %v1774_v18 = vld [vmem:[%s1720_s22 + $0x40] sm:$0xff]  ;;  %v1777_v19 = vld [vmem:[%s1720_s22 + $0x78] sm:$0xff]  ;;  %v1782_v20 = vld [vmem:[%s1720_s22 + $0x50] sm:$0xff]  ;;  %v346_v22 = vpack.c.bf16 %v330_v17, %v330_v17 }
  0x14   : > { %438 = vmatpush.bf16.msra.mxu2 %v1746_v5  ;;  %v1785_v21 = vld [vmem:[%s1720_s22 + $0x60] sm:$0xff]  ;;  %v1790_v23 = vld [vmem:[%s1720_s22 + $0x88] sm:$0xff]  ;;  %v1795_v24 = vld [vmem:[%s1720_s22 + $0x98] sm:$0xff] }
  0x15   : > { %v1798_v25 = vld [vmem:[%s1720_s22 + $0xa8] sm:$0xff]  ;;  %v1803_v26 = vld [vmem:[%s1720_s22 + $0x70] sm:$0xff]  ;;  %v1808_v27 = vld [vmem:[%s1720_s22 + $0xb8] sm:$0xff] }
  0x16   : > { %1475 = vmatmul.msk.bf16.vlgmr.msra.gmra.mxu0 %vm371_vm0, %v343_v12  ;;  %1484 = vmatmul.msk.bf16.vlgmr.msra.gmra.mxu1 %vm371_vm0, %v344_v13  ;;  %v1813_v28 = vld [vmem:[%s1720_s22 + $0x80] sm:$0xff]  ;;  %v1818_v29 = vld [vmem:[%s1720_s22 + $0x90] sm:$0xff]  ;;  %v331_v32 = vld [vmem:[%s1726_s25 + $0x8] sm:$0x3] }
  0x17   : > { %493 = vmatpush.bf16.msrb.mxu0 %v1752_v8  ;;  %521 = vmatpush.bf16.msrb.mxu1 %v1759_v11  ;;  %v1821_v30 = vld [vmem:[%s1720_s22 + $0xa0] sm:$0xff]  ;;  %v1826_v31 = vld [vmem:[%s1720_s22 + $0xb0] sm:$0xff]  ;;  %v332_v33 = vld [vmem:[%s1726_s25 + $0xa] sm:$0x3]  ;;  %v347_v35 = vpack.c.bf16 %v331_v32, %v331_v32 }
  0x18   : > { %549 = vmatpush.bf16.msrb.mxu2 %v1763_v14  ;;  %466 = vmatpush.bf16.msra.mxu3 %v1768_v16  ;;  %v333_v34 = vld [vmem:[%s1726_s25 + $0xc] sm:$0x3]  ;;  %v348_v36 = vpack.c.bf16 %v332_v33, %v332_v33  ;;  %v334_v38 = vld [vmem:[%s1726_s25 + $0xe] sm:$0x3]  ;;  %v1840_v40 = vld [vmem:[%s1720_s22 + $0xd8] sm:$0xff] }
  0x19   : > { %1493 = vmatmul.msk.bf16.vlgmr.msra.gmra.mxu2 %vm371_vm0, %v345_v15  ;;  %v349_v37 = vpack.c.bf16 %v333_v34, %v333_v34  ;;  %v1837_v39 = vld [vmem:[%s1720_s22 + $0xc8] sm:$0xff]  ;;  %v350_v42 = vpack.c.bf16 %v334_v38, %v334_v38  ;;  %v1850_v43 = vld [vmem:[%s1720_s22 + $0xc0] sm:$0xff]  ;;  %v1853_v44 = vld [vmem:[%s1720_s22 + $0xf8] sm:$0xff] }
  0x1a   : > { %v1843_v41 = vld [vmem:[%s1720_s22 + $0xe8] sm:$0xff]  ;;  %v1858_v45 = vld [vmem:[%s1720_s22 + $0xd0] sm:$0xff]  ;;  %v1861_v46 = vld [vmem:[%s1720_s22 + $0xe0] sm:$0xff] }
  0x1b   : > { %494 = vmatpush.bf16.msrb.mxu0 %v1774_v18  ;;  %522 = vmatpush.bf16.msrb.mxu1 %v1782_v20  ;;  %v1867_v47 = vld [vmem:[%s1720_s22 + $0xf0] sm:$0xff]  ;;  %v339_v56 = vld [vmem:[%s1726_s25 + $0x18] sm:$0x3]  ;;  %v340_v57 = vld [vmem:[%s1726_s25 + $0x1a] sm:$0x3] }
  0x1c   : > { %577 = vmatpush.bf16.msrb.mxu3 %v1777_v19  ;;  %550 = vmatpush.bf16.msrb.mxu2 %v1785_v21  ;;  %v335_v48 = vld [vmem:[%s1726_s25 + $0x10] sm:$0x3]  ;;  %v336_v49 = vld [vmem:[%s1726_s25 + $0x12] sm:$0x3]  ;;  %v337_v50 = vld [vmem:[%s1726_s25 + $0x14] sm:$0x3]  ;;  %v355_v59 = vpack.c.bf16 %v339_v56, %v339_v56  ;;  %v356_v60 = vpack.c.bf16 %v340_v57, %v340_v57 }
  0x1d   : > { %1502 = vmatmul.msk.bf16.vlgmr.msra.gmra.mxu3 %vm371_vm0, %v346_v22  ;;  %v351_v51 = vpack.c.bf16 %v335_v48, %v335_v48  ;;  %v352_v52 = vpack.c.bf16 %v336_v49, %v336_v49  ;;  %v353_v53 = vpack.c.bf16 %v337_v50, %v337_v50  ;;  %v338_v54 = vld [vmem:[%s1726_s25 + $0x16] sm:$0x3]  ;;  %v341_v58 = vld [vmem:[%s1726_s25 + $0x1c] sm:$0x3]  ;;  %v342_v62 = vld [vmem:[%s1726_s25 + $0x1e] sm:$0x3] }
  0x1e   : > { %v354_v55 = vpack.c.bf16 %v338_v54, %v338_v54  ;;  %v357_v61 = vpack.c.bf16 %v341_v58, %v341_v58  ;;  %v358_v63 = vpack.c.bf16 %v342_v62, %v342_v62  ;;  %v811_v6 = vld [vmem:[%s1905_s28 + $0x6] sm:$0x3]  ;;  %v813_v9 = vld [vmem:[%s1905_s28 + $0xa] sm:$0x3]  ;;  %v816_v17 = vld [vmem:[%s1905_s28 + $0x10] sm:$0x3] }
  0x1f   : > { %605 = vmatpush.bf16.msra.mxu0 %v1790_v23  ;;  %633 = vmatpush.bf16.msra.mxu1 %v1795_v24  ;;  %v827_v7 = vpack.c.bf16 %v811_v6, %v811_v6  ;;  %v829_v12 = vpack.c.bf16 %v813_v9, %v813_v9 }
  0x20   : > { %661 = vmatpush.bf16.msra.mxu2 %v1798_v25  ;;  %578 = vmatpush.bf16.msrb.mxu3 %v1803_v26 }
  0x23   : > { %606 = vmatpush.bf16.msra.mxu0 %v1813_v28  ;;  %634 = vmatpush.bf16.msra.mxu1 %v1818_v29 }
  0x24   : > { %689 = vmatpush.bf16.msra.mxu3 %v1808_v27  ;;  %662 = vmatpush.bf16.msra.mxu2 %v1821_v30 }
  0x26   : > { %1511 = vmatmul.msk.bf16.vlgmr.msrb.gmra.mxu0 %vm371_vm0, %v347_v35  ;;  %1520 = vmatmul.msk.bf16.vlgmr.msrb.gmra.mxu1 %vm371_vm0, %v348_v36 }
  0x27   : > { %717 = vmatpush.bf16.msrb.mxu0 %v1837_v39  ;;  %745 = vmatpush.bf16.msrb.mxu1 %v1840_v40 }
  0x28   : > { %690 = vmatpush.bf16.msra.mxu3 %v1826_v31 }
  0x29   : > { %1529 = vmatmul.msk.bf16.vlgmr.msrb.gmra.mxu2 %vm371_vm0, %v349_v37 }
  0x2a   : > { %773 = vmatpush.bf16.msrb.mxu2 %v1843_v41 }
  0x2b   : > { %718 = vmatpush.bf16.msrb.mxu0 %v1850_v43  ;;  %746 = vmatpush.bf16.msrb.mxu1 %v1858_v45 }
  0x2d   : > { %1538 = vmatmul.msk.bf16.vlgmr.msrb.gmra.mxu3 %vm371_vm0, %v350_v42 }
  0x2e   : > { %801 = vmatpush.bf16.msrb.mxu3 %v1853_v44  ;;  %774 = vmatpush.bf16.msrb.mxu2 %v1861_v46 }
  0x32   : > { %802 = vmatpush.bf16.msrb.mxu3 %v1867_v47 }
  0x36   : > { %1547 = vmatmul.msk.bf16.vlgmr.msra.gmra.mxu0 %vm371_vm0, %v351_v51  ;;  %1556 = vmatmul.msk.bf16.vlgmr.msra.gmra.mxu1 %vm371_vm0, %v352_v52 }
  0x37   : > { %849 = vmatpush.bf16.msra.mxu0 %v1729_v0  ;;  %865 = vmatpush.bf16.msra.mxu1 %v1732_v1  ;;  %v808_v0 = vld [vmem:[%s1905_s28] sm:$0x3]  ;;  %v809_v1 = vld [vmem:[%s1905_s28 + $0x2] sm:$0x3] }
  0x39   : > { %1565 = vmatmul.msk.bf16.vlgmr.msra.gmra.mxu2 %vm371_vm0, %v353_v53 }
  0x3a   : > { %881 = vmatpush.bf16.msra.mxu2 %v1735_v2  ;;  %v810_v2 = vld [vmem:[%s1905_s28 + $0x4] sm:$0x3] }
  0x3b   : > { %850 = vmatpush.bf16.msra.mxu0 %v1738_v3  ;;  %866 = vmatpush.bf16.msra.mxu1 %v1741_v4  ;;  %v824_v3 = vpack.c.bf16 %v808_v0, %v808_v0  ;;  %v825_v4 = vpack.c.bf16 %v809_v1, %v809_v1 }
  0x3d   : > { %1574 = vmatmul.msk.bf16.vlgmr.msra.gmra.mxu3 %vm371_vm0, %v354_v55 }
  0x3e   : > { %897 = vmatpush.bf16.msra.mxu3 %v1756_v10  ;;  %882 = vmatpush.bf16.msra.mxu2 %v1746_v5  ;;  %v826_v5 = vpack.c.bf16 %v810_v2, %v810_v2  ;;  %v814_v10 = vld [vmem:[%s1905_s28 + $0xc] sm:$0x3] }
  0x3f   : > { %v830_v13 = vpack.c.bf16 %v814_v10, %v814_v10 }
  0x42   : > { %898 = vmatpush.bf16.msra.mxu3 %v1768_v16  ;;  %v817_v16 = vld [vmem:[%s1905_s28 + $0x12] sm:$0x3] }
  0x46   : > { %1583 = vmatmul.msk.bf16.vlgmr.msrb.gmra.mxu0 %vm371_vm0, %v355_v59  ;;  %1592 = vmatmul.msk.bf16.vlgmr.msrb.gmra.mxu1 %vm371_vm0, %v356_v60 }
  0x47   : > { %929 = vmatpush.bf16.msrb.mxu1 %v1759_v11  ;;  %913 = vmatpush.bf16.msrb.mxu0 %v1752_v8  ;;  %v812_v8 = vld [vmem:[%s1905_s28 + $0x8] sm:$0x3] }
  0x48   : > { %v828_v11 = vpack.c.bf16 %v812_v8, %v812_v8 }
  0x49   : > { %1601 = vmatmul.msk.bf16.vlgmr.msrb.gmra.mxu2 %vm371_vm0, %v357_v61 }
  0x4a   : > { %945 = vmatpush.bf16.msrb.mxu2 %v1763_v14  ;;  %v815_v14 = vld [vmem:[%s1905_s28 + $0xe] sm:$0x3] }
  0x4b   : > { %930 = vmatpush.bf16.msrb.mxu1 %v1782_v20  ;;  %914 = vmatpush.bf16.msrb.mxu0 %v1774_v18  ;;  %v831_v15 = vpack.c.bf16 %v815_v14, %v815_v14  ;;  %v818_v18 = vld [vmem:[%s1905_s28 + $0x14] sm:$0x3]  ;;  %v832_v20 = vpack.c.bf16 %v816_v17, %v816_v17 }
  0x4c   : > { %v834_v22 = vpack.c.bf16 %v818_v18, %v818_v18 }
  0x4d   : > { %1610 = vmatmul.msk.bf16.vlgmr.msrb.gmra.mxu3 %vm371_vm0, %v358_v63 }
  0x4e   : > { %961 = vmatpush.bf16.msrb.mxu3 %v1777_v19  ;;  %946 = vmatpush.bf16.msrb.mxu2 %v1785_v21  ;;  %v833_v19 = vpack.c.bf16 %v817_v16, %v817_v16  ;;  %v819_v21 = vld [vmem:[%s1905_s28 + $0x16] sm:$0x3] }
  0x52   : > { %962 = vmatpush.bf16.msrb.mxu3 %v1803_v26  ;;  %v822_v26 = vld [vmem:[%s1905_s28 + $0x1c] sm:$0x3] }
  0x56   : > { %1611 = vmatmul.msk.bf16.vlgmr.msra.gmra.mxu0 %vm371_vm0, %v824_v3  ;;  %1612 = vmatmul.msk.bf16.vlgmr.msra.gmra.mxu1 %vm371_vm0, %v825_v4 }
  0x57   : > { %993 = vmatpush.bf16.msra.mxu1 %v1795_v24  ;;  %977 = vmatpush.bf16.msra.mxu0 %v1790_v23  ;;  %v835_v23 = vpack.c.bf16 %v819_v21, %v819_v21  ;;  %v820_v24 = vld [vmem:[%s1905_s28 + $0x18] sm:$0x3] }
  0x59   : > { %1613 = vmatmul.msk.bf16.vlgmr.msra.gmra.mxu2 %vm371_vm0, %v826_v5 }
  0x5a   : > { %1009 = vmatpush.bf16.msra.mxu2 %v1798_v25  ;;  %v821_v25 = vld [vmem:[%s1905_s28 + $0x1a] sm:$0x3] }
  0x5b   : > { %994 = vmatpush.bf16.msra.mxu1 %v1818_v29  ;;  %978 = vmatpush.bf16.msra.mxu0 %v1813_v28  ;;  %v837_v28 = vpack.c.bf16 %v821_v25, %v821_v25  ;;  %v823_v29 = vld [vmem:[%s1905_s28 + $0x1e] sm:$0x3] }
  0x5d   : > { %1614 = vmatmul.msk.bf16.vlgmr.msra.gmra.mxu3 %vm371_vm0, %v827_v7 }
  0x5e   : > { %1025 = vmatpush.bf16.msra.mxu3 %v1808_v27  ;;  %1010 = vmatpush.bf16.msra.mxu2 %v1821_v30  ;;  %v836_v27 = vpack.c.bf16 %v820_v24, %v820_v24  ;;  %v838_v30 = vpack.c.bf16 %v822_v26, %v822_v26 }
  0x62   : > { %1026 = vmatpush.bf16.msra.mxu3 %v1826_v31  ;;  %v839_v31 = vpack.c.bf16 %v823_v29, %v823_v29 }
  0x66   : > { %1615 = vmatmul.msk.bf16.vlgmr.msrb.gmra.mxu0 %vm371_vm0, %v828_v11  ;;  %1616 = vmatmul.msk.bf16.vlgmr.msrb.gmra.mxu1 %vm371_vm0, %v829_v12 }
  0x67   : > { %1041 = vmatpush.bf16.msrb.mxu0 %v1837_v39  ;;  %1057 = vmatpush.bf16.msrb.mxu1 %v1840_v40 }
  0x69   : > { %1617 = vmatmul.msk.bf16.vlgmr.msrb.gmra.mxu2 %vm371_vm0, %v830_v13 }
  0x6a   : > { %1073 = vmatpush.bf16.msrb.mxu2 %v1843_v41 }
  0x6b   : > { %1042 = vmatpush.bf16.msrb.mxu0 %v1850_v43  ;;  %1058 = vmatpush.bf16.msrb.mxu1 %v1858_v45 }
  0x6d   : > { %1618 = vmatmul.msk.bf16.vlgmr.msrb.gmra.mxu3 %vm371_vm0, %v831_v15 }
  0x6e   : > { %1089 = vmatpush.bf16.msrb.mxu3 %v1853_v44  ;;  %1074 = vmatpush.bf16.msrb.mxu2 %v1861_v46 }
  0x72   : > { %1090 = vmatpush.bf16.msrb.mxu3 %v1867_v47 }
  0x76   : > { %1620 = vmatmul.msk.bf16.vlgmr.msra.gmra.mxu1 %vm371_vm0, %v833_v19  ;;  %1619 = vmatmul.msk.bf16.vlgmr.msra.gmra.mxu0 %vm371_vm0, %v832_v20 }
  0x79   : > { %1621 = vmatmul.msk.bf16.vlgmr.msra.gmra.mxu2 %vm371_vm0, %v834_v22 }
  0x7d   : > { %1622 = vmatmul.msk.bf16.vlgmr.msra.gmra.mxu3 %vm371_vm0, %v835_v23 }
  0x86   : > { %1623 = vmatmul.msk.bf16.vlgmr.msrb.gmra.mxu0 %vm371_vm0, %v836_v27  ;;  %1624 = vmatmul.msk.bf16.vlgmr.msrb.gmra.mxu1 %vm371_vm0, %v837_v28 }
  0x89   : > { %1625 = vmatmul.msk.bf16.vlgmr.msrb.gmra.mxu2 %vm371_vm0, %v838_v30 }
  0x8d   : > { %1626 = vmatmul.msk.bf16.vlgmr.msrb.gmra.mxu3 %vm371_vm0, %v839_v31 }
  0x93   : > { %v1958_v32 = vpop.f32.mrf.mxu0  ;;  %v1960_v33 = vpop.f32.mrf.mxu1 }
  0x9b   : > { %v386_v35 = vpop.f32.mrf.mxu0  ;;  %v414_v36 = vpop.f32.mrf.mxu1 }
  0x9c   : > { %v1962_v34 = vpop.f32.mrf.mxu2 }
  0xa0   : > { %v1964_v37 = vpop.f32.mrf.mxu3 }
  0xa3   : > { %v1966_v39 = vpop.f32.mrf.mxu0  ;;  %v1968_v40 = vpop.f32.mrf.mxu1 }
  0xa4   : > { %v442_v38 = vpop.f32.mrf.mxu2 }
  0xa8   : > { %v470_v41 = vpop.f32.mrf.mxu3 }
  0xab   : > { %v498_v43 = vpop.f32.mrf.mxu0  ;;  %v526_v44 = vpop.f32.mrf.mxu1 }
  0xac   : > { %v1970_v42 = vpop.f32.mrf.mxu2 }
  0xb0   : > { %v1972_v45 = vpop.f32.mrf.mxu3 }
  0xb3   : > { %v1974_v47 = vpop.f32.mrf.mxu0  ;;  %v1976_v48 = vpop.f32.mrf.mxu1 }
  0xb4   : > { %v554_v46 = vpop.f32.mrf.mxu2 }
  0xb8   : > { %v582_v49 = vpop.f32.mrf.mxu3 }
  0xbb   : > { %v610_v51 = vpop.f32.mrf.mxu0  ;;  %v638_v52 = vpop.f32.mrf.mxu1 }
  0xbc   : > { %v1978_v50 = vpop.f32.mrf.mxu2 }
  0xc0   : > { %v1980_v53 = vpop.f32.mrf.mxu3 }
  0xc3   : > { %v1982_v55 = vpop.f32.mrf.mxu0  ;;  %v1984_v56 = vpop.f32.mrf.mxu1 }
  0xc4   : > { %v666_v54 = vpop.f32.mrf.mxu2 }
  0xc8   : > { %v694_v57 = vpop.f32.mrf.mxu3 }
  0xcb   : > { %v722_v59 = vpop.f32.mrf.mxu0  ;;  %v750_v60 = vpop.f32.mrf.mxu1 }
  0xcc   : > { %v1986_v58 = vpop.f32.mrf.mxu2 }
  0xd0   : > { %v1988_v61 = vpop.f32.mrf.mxu3 }
  0xd3   : > { %v852_v63 = vpop.f32.mrf.mxu0  ;;  %v868_v0 = vpop.f32.mrf.mxu1 }
  0xd4   : > { %v778_v62 = vpop.f32.mrf.mxu2  ;;  %1195 = vrot.lane.b32.xlu2 %v868_v0, %s1680_s29  ;;  %1193 = vrot.lane.b32.xlu1 %v852_v63, %s1680_s29 }
  0xd5   : > { %1112 = vrot.lane.b32.xlu0 %v852_v63, %s1681_s30 }
  0xd8   : > { %v806_v1 = vpop.f32.mrf.mxu3 }
  0xdb   : > { %v854_v3 = vpop.f32.mrf.mxu0  ;;  %v870_v4 = vpop.f32.mrf.mxu1 }
  0xdc   : > { %v884_v2 = vpop.f32.mrf.mxu2 }
  0xdd   : > { %1116 = vrot.lane.b32.xlu1 %v884_v2, %s1681_s30  ;;  %1114 = vrot.lane.b32.xlu0 %v868_v0, %s1681_s30 }
  0xe0   : > { %v900_v5 = vpop.f32.mrf.mxu3 }
  0xe3   : > { %v916_v7 = vpop.f32.mrf.mxu0  ;;  %v932_v8 = vpop.f32.mrf.mxu1 }
  0xe4   : > { %v886_v6 = vpop.f32.mrf.mxu2  ;;  %1120 = vrot.lane.b32.xlu2 %v916_v7, %s1681_s30 }
  0xe5   : > { %1118 = vrot.lane.b32.xlu1 %v900_v5, %s1681_s30  ;;  %1197 = vrot.lane.b32.xlu0 %v884_v2, %s1680_s29 }
  0xe8   : > { %v902_v9 = vpop.f32.mrf.mxu3 }
  0xeb   : > { %v934_v11 = vpop.f32.mrf.mxu1  ;;  %v918_v12 = vpop.f32.mrf.mxu0 }
  0xec   : > { %v948_v10 = vpop.f32.mrf.mxu2  ;;  %1122 = vrot.lane.b32.xlu2 %v932_v8, %s1681_s30 }
  0xed   : > { %1199 = vrot.lane.b32.xlu1 %v900_v5, %s1680_s29  ;;  %1203 = vrot.lane.b32.xlu0 %v932_v8, %s1680_s29 }
  0xf0   : > { %v964_v13 = vpop.f32.mrf.mxu3 }
  0xf3   : > { %v996_v15 = vpop.f32.mrf.mxu1  ;;  %v980_v16 = vpop.f32.mrf.mxu0 }
  0xf4   : > { %v950_v14 = vpop.f32.mrf.mxu2  ;;  %1201 = vrot.lane.b32.xlu2 %v916_v7, %s1680_s29 }
  0xf5   : > { %1126 = vrot.lane.b32.xlu1 %v964_v13, %s1681_s30  ;;  %1124 = vrot.lane.b32.xlu0 %v948_v10, %s1681_s30 }
  0xf8   : > { %v966_v17 = vpop.f32.mrf.mxu3 }
  0xfb   : > { %v998_v19 = vpop.f32.mrf.mxu1  ;;  %v982_v20 = vpop.f32.mrf.mxu0 }
  0xfc   : > { %v1012_v18 = vpop.f32.mrf.mxu2  ;;  %1207 = vrot.lane.b32.xlu2 %v964_v13, %s1680_s29 }
  0xfd   : > { %1205 = vrot.lane.b32.xlu1 %v948_v10, %s1680_s29  ;;  %1130 = vrot.lane.b32.xlu0 %v996_v15, %s1681_s30 }
 0x100   : > { %v1028_v21 = vpop.f32.mrf.mxu3 }
 0x103   : > { %v1044_v23 = vpop.f32.mrf.mxu0  ;;  %v1060_v24 = vpop.f32.mrf.mxu1 }
 0x104   : > { %v1014_v22 = vpop.f32.mrf.mxu2  ;;  %1128 = vrot.lane.b32.xlu2 %v980_v16, %s1681_s30 }
 0x105   : > { %1211 = vrot.lane.b32.xlu1 %v996_v15, %s1680_s29  ;;  %1209 = vrot.lane.b32.xlu0 %v980_v16, %s1680_s29 }
 0x108   : > { %v1030_v25 = vpop.f32.mrf.mxu3 }
 0x10b   : > { %v1046_v27 = vpop.f32.mrf.mxu0  ;;  %v1062_v28 = vpop.f32.mrf.mxu1 }
 0x10c   : > { %v1076_v26 = vpop.f32.mrf.mxu2  ;;  %1134 = vrot.lane.b32.xlu2 %v1028_v21, %s1681_s30 }
 0x10d   : > { %1132 = vrot.lane.b32.xlu1 %v1012_v18, %s1681_s30  ;;  %1215 = vrot.lane.b32.xlu0 %v1028_v21, %s1680_s29 }
 0x110   : > { %v1092_v29 = vpop.f32.mrf.mxu3 }
 0x114   : > { %v1078_v30 = vpop.f32.mrf.mxu2  ;;  %1213 = vrot.lane.b32.xlu2 %v1012_v18, %s1680_s29 }
 0x115   : > { %1138 = vrot.lane.b32.xlu1 %v1060_v24, %s1681_s30  ;;  %1136 = vrot.lane.b32.xlu0 %v1044_v23, %s1681_s30 }
 0x118   : > { %v1094_v31 = vpop.f32.mrf.mxu3 }
 0x11c   : > { %1219 = vrot.lane.b32.xlu2 %v1060_v24, %s1680_s29 }
 0x11d   : > { %1217 = vrot.lane.b32.xlu1 %v1044_v23, %s1680_s29  ;;  %1142 = vrot.lane.b32.xlu0 %v1092_v29, %s1681_s30 }
 0x124   : > { %1140 = vrot.lane.b32.xlu2 %v1076_v26, %s1681_s30 }
 0x125   : > { %1223 = vrot.lane.b32.xlu1 %v1092_v29, %s1680_s29  ;;  %1221 = vrot.lane.b32.xlu0 %v1076_v26, %s1680_s29 }
 0x12e   : > { %v1196_v35 = vpop.permute.xlu2 %1195 }
 0x12f   : > { %v1242_v36 = vadd.f32 %v1196_v35, %v1960_v33 }
 0x131   : > { %1275 = vrot.lane.b32.xlu0 %v1242_v36, %s1681_s30 }
 0x13e   : > { %v1121_v38 = vpop.permute.xlu2 %1120 }
 0x13f   : > { %v1164_v41 = vsub.f32 %v1966_v39, %v1121_v38 }
 0x141   : > { %1181 = vst.msk [vmem:[%s2028_s7 + $0x8] sm:$0x3] %vm1176_vm1, %v1164_v41 }
 0x146   : > { %v1194_v43 = vpop.permute.xlu1 %1193  ;;  %v1123_v44 = vpop.permute.xlu2 %1122 }
 0x147   : > { %v1241_v46 = vadd.f32 %v1194_v43, %v1958_v32  ;;  %v1113_v49 = vpop.permute.xlu0 %1112  ;;  %v1165_v51 = vsub.f32 %v1968_v40, %v1123_v44 }
 0x148   : > { %v1160_v52 = vsub.f32 %v1958_v32, %v1113_v49 }
 0x149   : > { %1182 = vst.msk [vmem:[%s2028_s7 + $0xa] sm:$0x3] %vm1176_vm1, %v1165_v51  ;;  %1273 = vrot.lane.b32.xlu2 %v1241_v46, %s1681_s30 }
 0x14a   : > { %1177 = vst.msk [vmem:[%s2028_s7] sm:$0x3] %vm1176_vm1, %v1160_v52 }
 0x14e   : > { %v1202_v57 = vpop.permute.xlu2 %1201 }
 0x14f   : > { %v1117_v54 = vpop.permute.xlu1 %1116  ;;  %v1115_v60 = vpop.permute.xlu0 %1114  ;;  %v1245_v62 = vadd.f32 %v1202_v57, %v1966_v39 }
 0x150   : > { %v1162_v59 = vsub.f32 %v1962_v34, %v1117_v54  ;;  %v1161_v63 = vsub.f32 %v1960_v33, %v1115_v60 }
 0x151   : > { %1281 = vrot.lane.b32.xlu0 %v1245_v62, %s1681_s30 }
 0x152   : > { %1179 = vst.msk [vmem:[%s2028_s7 + $0x4] sm:$0x3] %vm1176_vm1, %v1162_v59 }
 0x153   : > { %1178 = vst.msk [vmem:[%s2028_s7 + $0x2] sm:$0x3] %vm1176_vm1, %v1161_v63 }
 0x156   : > { %v1208_v0 = vpop.permute.xlu2 %1207 }
 0x157   : > { %v1119_v32 = vpop.permute.xlu1 %1118  ;;  %v1198_v2 = vpop.permute.xlu0 %1197  ;;  %v1248_v3 = vadd.f32 %v1208_v0, %v1972_v45 }
 0x158   : > { %v1163_v1 = vsub.f32 %v1964_v37, %v1119_v32  ;;  %v1243_v4 = vadd.f32 %v1198_v2, %v1962_v34 }
 0x159   : > { %1287 = vrot.lane.b32.xlu0 %v1248_v3, %s1681_s30 }
 0x15a   : > { %1180 = vst.msk [vmem:[%s2028_s7 + $0x6] sm:$0x3] %vm1176_vm1, %v1163_v1  ;;  %1277 = vrot.lane.b32.xlu1 %v1243_v4, %s1681_s30 }
 0x15e   : > { %v1129_v39 = vpop.permute.xlu2 %1128 }
 0x15f   : > { %v1200_v33 = vpop.permute.xlu1 %1199  ;;  %v1204_v6 = vpop.permute.xlu0 %1203  ;;  %v1168_v7 = vsub.f32 %v1974_v47, %v1129_v39 }
 0x160   : > { %v1244_v5 = vadd.f32 %v1200_v33, %v1964_v37  ;;  %v1246_v8 = vadd.f32 %v1204_v6, %v1968_v40 }
 0x161   : > { %1185 = vst.msk [vmem:[%s2028_s7 + $0x10] sm:$0x3] %vm1176_vm1, %v1168_v7 }
 0x162   : > { %1279 = vrot.lane.b32.xlu2 %v1244_v5, %s1681_s30  ;;  %1283 = vrot.lane.b32.xlu1 %v1246_v8, %s1681_s30 }
 0x166   : > { %v1135_v9 = vpop.permute.xlu2 %1134 }
 0x167   : > { %v1127_v34 = vpop.permute.xlu1 %1126  ;;  %v1125_v11 = vpop.permute.xlu0 %1124  ;;  %v1171_v12 = vsub.f32 %v1980_v53, %v1135_v9 }
 0x168   : > { %v1167_v10 = vsub.f32 %v1972_v45, %v1127_v34  ;;  %v1166_v37 = vsub.f32 %v1970_v42, %v1125_v11 }
 0x169   : > { %1188 = vst.msk [vmem:[%s2028_s7 + $0x16] sm:$0x3] %vm1176_vm1, %v1171_v12 }
 0x16a   : > { %1184 = vst.msk [vmem:[%s2028_s7 + $0xe] sm:$0x3] %vm1176_vm1, %v1167_v10 }
 0x16b   : > { %1183 = vst.msk [vmem:[%s2028_s7 + $0xc] sm:$0x3] %vm1176_vm1, %v1166_v37 }
 0x16e   : > { %v1214_v13 = vpop.permute.xlu2 %1213 }
 0x16f   : > { %v1206_v40 = vpop.permute.xlu1 %1205  ;;  %v1131_v15 = vpop.permute.xlu0 %1130  ;;  %v1251_v16 = vadd.f32 %v1214_v13, %v1978_v50 }
 0x170   : > { %v1247_v14 = vadd.f32 %v1206_v40, %v1970_v42  ;;  %v1169_v45 = vsub.f32 %v1976_v48, %v1131_v15 }
 0x171   : > { %1293 = vrot.lane.b32.xlu0 %v1251_v16, %s1681_s30 }
 0x172   : > { %1285 = vrot.lane.b32.xlu2 %v1247_v14, %s1681_s30  ;;  %1186 = vst.msk [vmem:[%s2028_s7 + $0x12] sm:$0x3] %vm1176_vm1, %v1169_v45 }
 0x176   : > { %v1220_v18 = vpop.permute.xlu2 %1219 }
 0x177   : > { %v1212_v17 = vpop.permute.xlu1 %1211  ;;  %v1210_v20 = vpop.permute.xlu0 %1209  ;;  %v1254_v42 = vadd.f32 %v1220_v18, %v1984_v56 }
 0x178   : > { %v1250_v19 = vadd.f32 %v1212_v17, %v1976_v48  ;;  %v1249_v21 = vadd.f32 %v1210_v20, %v1974_v47 }
 0x179   : > { %1299 = vrot.lane.b32.xlu0 %v1254_v42, %s1681_s30 }
 0x17a   : > { %1291 = vrot.lane.b32.xlu2 %v1250_v19, %s1681_s30  ;;  %1289 = vrot.lane.b32.xlu1 %v1249_v21, %s1681_s30 }
 0x17e   : > { %v1141_v23 = vpop.permute.xlu2 %1140 }
 0x17f   : > { %v1133_v22 = vpop.permute.xlu1 %1132  ;;  %v1216_v25 = vpop.permute.xlu0 %1215  ;;  %v1174_v48 = vsub.f32 %v1986_v58, %v1141_v23 }
 0x180   : > { %v1170_v24 = vsub.f32 %v1978_v50, %v1133_v22  ;;  %v1252_v26 = vadd.f32 %v1216_v25, %v1980_v53 }
 0x181   : > { %1191 = vst.msk [vmem:[%s2028_s7 + $0x1c] sm:$0x3] %vm1176_vm1, %v1174_v48 }
 0x182   : > { %1187 = vst.msk [vmem:[%s2028_s7 + $0x14] sm:$0x3] %vm1176_vm1, %v1170_v24  ;;  %1295 = vrot.lane.b32.xlu1 %v1252_v26, %s1681_s30 }
 0x187   : > { %v1139_v47 = vpop.permute.xlu1 %1138  ;;  %v1137_v28 = vpop.permute.xlu0 %1136 }
 0x188   : > { %v1173_v27 = vsub.f32 %v1984_v56, %v1139_v47  ;;  %v1172_v29 = vsub.f32 %v1982_v55, %v1137_v28 }
 0x18a   : > { %1190 = vst.msk [vmem:[%s2028_s7 + $0x1a] sm:$0x3] %vm1176_vm1, %v1173_v27 }
 0x18b   : > { %1189 = vst.msk [vmem:[%s2028_s7 + $0x18] sm:$0x3] %vm1176_vm1, %v1172_v29 }
 0x18f   : > { %v1218_v50 = vpop.permute.xlu1 %1217  ;;  %v1143_v30 = vpop.permute.xlu0 %1142 }
 0x190   : > { %v1253_v53 = vadd.f32 %v1218_v50, %v1982_v55  ;;  %v1175_v31 = vsub.f32 %v1988_v61, %v1143_v30 }
 0x192   : > { %1297 = vrot.lane.b32.xlu2 %v1253_v53, %s1681_s30  ;;  %1192 = vst.msk [vmem:[%s2028_s7 + $0x1e] sm:$0x3] %vm1176_vm1, %v1175_v31 }
 0x197   : > { %v1224_v35 = vpop.permute.xlu1 %1223  ;;  %v1222_v36 = vpop.permute.xlu0 %1221 }
 0x198   : > { %v1256_v56 = vadd.f32 %v1224_v35, %v1988_v61  ;;  %v1255_v38 = vadd.f32 %v1222_v36, %v1986_v58 }
 0x19a   : > { %1303 = vrot.lane.b32.xlu2 %v1256_v56, %s1681_s30  ;;  %1301 = vrot.lane.b32.xlu1 %v1255_v38, %s1681_s30 }
 0x1a3   : > { %v1274_v55 = vpop.permute.xlu2 %1273  ;;  %v1276_v61 = vpop.permute.xlu0 %1275 }
 0x1a4   : > { %1321 = vst.msk [vmem:[%s2112_s10] sm:$0x3] %vm1176_vm1, %v1274_v55 }
 0x1a5   : > { %1322 = vst.msk [vmem:[%s2112_s10 + $0x2] sm:$0x3] %vm1176_vm1, %v1276_v61 }
 0x1bc   : > { %v1280_v58 = vpop.permute.xlu2 %1279 }
 0x1bd   : > { %1324 = vst.msk [vmem:[%s2112_s10 + $0x6] sm:$0x3] %vm1176_vm1, %v1280_v58 }
 0x1c3   : > { %v1282_v41 = vpop.permute.xlu0 %1281 }
 0x1c4   : > { %1325 = vst.msk [vmem:[%s2112_s10 + $0x8] sm:$0x3] %vm1176_vm1, %v1282_v41 }
 0x1cb   : > { %v1288_v44 = vpop.permute.xlu0 %1287 }
 0x1cc   : > { %v1286_v43 = vpop.permute.xlu2 %1285  ;;  %v1278_v46 = vpop.permute.xlu1 %1277  ;;  %1328 = vst.msk [vmem:[%s2112_s10 + $0xe] sm:$0x3] %vm1176_vm1, %v1288_v44 }
 0x1cd   : > { %1327 = vst.msk [vmem:[%s2112_s10 + $0xc] sm:$0x3] %vm1176_vm1, %v1286_v43 }
 0x1ce   : > { %1323 = vst.msk [vmem:[%s2112_s10 + $0x4] sm:$0x3] %vm1176_vm1, %v1278_v46 }
 0x1d4   : > { %v1292_v49 = vpop.permute.xlu2 %1291  ;;  %v1284_v51 = vpop.permute.xlu1 %1283 }
 0x1d5   : > { %1330 = vst.msk [vmem:[%s2112_s10 + $0x12] sm:$0x3] %vm1176_vm1, %v1292_v49 }
 0x1d6   : > { %1326 = vst.msk [vmem:[%s2112_s10 + $0xa] sm:$0x3] %vm1176_vm1, %v1284_v51 }
 0x1e3   : > { %v1294_v52 = vpop.permute.xlu0 %1293 }
 0x1e4   : > { %1331 = vst.msk [vmem:[%s2112_s10 + $0x14] sm:$0x3] %vm1176_vm1, %v1294_v52 }
 0x1eb   : > { %v1300_v57 = vpop.permute.xlu0 %1299 }
 0x1ec   : > { %v1298_v54 = vpop.permute.xlu2 %1297  ;;  %v1290_v59 = vpop.permute.xlu1 %1289  ;;  %1334 = vst.msk [vmem:[%s2112_s10 + $0x1a] sm:$0x3] %vm1176_vm1, %v1300_v57 }
 0x1ed   : > { %1333 = vst.msk [vmem:[%s2112_s10 + $0x18] sm:$0x3] %vm1176_vm1, %v1298_v54 }
 0x1ee   : > { %1329 = vst.msk [vmem:[%s2112_s10 + $0x10] sm:$0x3] %vm1176_vm1, %v1290_v59 }
 0x1f4   : > { %v1304_v60 = vpop.permute.xlu2 %1303  ;;  %v1296_v62 = vpop.permute.xlu1 %1295 }
 0x1f5   : > { %1336 = vst.msk [vmem:[%s2112_s10 + $0x1e] sm:$0x3] %vm1176_vm1, %v1304_v60 }
 0x1f6   : > { %1332 = vst.msk [vmem:[%s2112_s10 + $0x16] sm:$0x3] %vm1176_vm1, %v1296_v62 }
 0x20c   : > { %v1302_v63 = vpop.permute.xlu1 %1301 }
 0x20d   : > { %1335 = vst.msk [vmem:[%s2112_s10 + $0x1c] sm:$0x3] %vm1176_vm1, %v1302_v63 }
 0x20e PF: > { %s15_s15 = sadd.s32 1, %s1678_s15  }
 0x20f   : > { %p12_p4 = scmp.ge.s32.totalorder %s15_s15, 4  }
 0x211   :  { %14 = sbr.rel (!%p12_p4) target bundleno = 1 (0x1), region = 80 }

// kernel: reverse.4
= control target key start
LH: loop header
LB: loop body
LE: loop exit
PB: predicated region body
PF: predicated region fallthrough
CT: control target
= control target key end

     0   :  { %s584_s0 = inlined_call_operand.vmem [shape: f32[2,32,18,8], index: 0, kind: input, shape index: {}]   ;;  %s585_s1 = inlined_call_operand.vmem [shape: f32[2,32,18,8], index: 1, kind: output, shape index: {}]  }
   0x1   :  { %v192_v0 = vld [vmem:[%s584_s0 + $0xa8] sm:$0xff]  ;;  %v195_v2 = vld [vmem:[%s584_s0 + $0x90] sm:$0xff]  ;;  %v199_v4 = vld [vmem:[%s584_s0 + $0x78] sm:$0xff] }
   0x2   :  { %v193_v1 = vld [vmem:[%s584_s0 + $0x168] sm:$0xff]  ;;  %4 = vst [vmem:[%s585_s1] sm:$0xff] %v192_v0  ;;  %v197_v3 = vld [vmem:[%s584_s0 + $0x150] sm:$0xff]  ;;  %v201_v5 = vld [vmem:[%s584_s0 + $0x138] sm:$0xff] }
   0x3   :  { %194 = vst [vmem:[%s585_s1 + $0xc0] sm:$0xff] %v193_v1  ;;  %v203_v6 = vld [vmem:[%s584_s0 + $0x60] sm:$0xff]  ;;  %v207_v8 = vld [vmem:[%s584_s0 + $0x48] sm:$0xff]  ;;  %v211_v10 = vld [vmem:[%s584_s0 + $0x30] sm:$0xff] }
   0x4   :  { %196 = vst [vmem:[%s585_s1 + $0x18] sm:$0xff] %v195_v2  ;;  %v205_v7 = vld [vmem:[%s584_s0 + $0x120] sm:$0xff]  ;;  %v209_v9 = vld [vmem:[%s584_s0 + $0x108] sm:$0xff]  ;;  %v213_v11 = vld [vmem:[%s584_s0 + $0xf0] sm:$0xff] }
   0x5   :  { %198 = vst [vmem:[%s585_s1 + $0xd8] sm:$0xff] %v197_v3  ;;  %v215_v12 = vld [vmem:[%s584_s0 + $0x18] sm:$0xff]  ;;  %v57_v14 = vld [vmem:[%s584_s0] sm:$0xff]  ;;  %v222_v16 = vld [vmem:[%s584_s0 + $0xb0] sm:$0xff] }
   0x6   :  { %200 = vst [vmem:[%s585_s1 + $0x30] sm:$0xff] %v199_v4  ;;  %v217_v13 = vld [vmem:[%s584_s0 + $0xd8] sm:$0xff]  ;;  %v220_v15 = vld [vmem:[%s584_s0 + $0xc0] sm:$0xff]  ;;  %v224_v17 = vld [vmem:[%s584_s0 + $0x170] sm:$0xff] }
   0x7   :  { %202 = vst [vmem:[%s585_s1 + $0xf0] sm:$0xff] %v201_v5  ;;  %v226_v18 = vld [vmem:[%s584_s0 + $0x98] sm:$0xff]  ;;  %v230_v20 = vld [vmem:[%s584_s0 + $0x80] sm:$0xff]  ;;  %v234_v22 = vld [vmem:[%s584_s0 + $0x68] sm:$0xff] }
   0x8   :  { %204 = vst [vmem:[%s585_s1 + $0x48] sm:$0xff] %v203_v6  ;;  %v228_v19 = vld [vmem:[%s584_s0 + $0x158] sm:$0xff]  ;;  %v232_v21 = vld [vmem:[%s584_s0 + $0x140] sm:$0xff]  ;;  %v236_v23 = vld [vmem:[%s584_s0 + $0x128] sm:$0xff] }
   0x9   :  { %206 = vst [vmem:[%s585_s1 + $0x108] sm:$0xff] %v205_v7  ;;  %v238_v24 = vld [vmem:[%s584_s0 + $0x50] sm:$0xff]  ;;  %v242_v26 = vld [vmem:[%s584_s0 + $0x38] sm:$0xff]  ;;  %v246_v28 = vld [vmem:[%s584_s0 + $0x20] sm:$0xff] }
   0xa   :  { %208 = vst [vmem:[%s585_s1 + $0x60] sm:$0xff] %v207_v8  ;;  %v240_v25 = vld [vmem:[%s584_s0 + $0x110] sm:$0xff]  ;;  %v244_v27 = vld [vmem:[%s584_s0 + $0xf8] sm:$0xff]  ;;  %v248_v29 = vld [vmem:[%s584_s0 + $0xe0] sm:$0xff] }
   0xb   :  { %210 = vst [vmem:[%s585_s1 + $0x120] sm:$0xff] %v209_v9  ;;  %v250_v30 = vld [vmem:[%s584_s0 + $0x8] sm:$0xff]  ;;  %v254_v32 = vld [vmem:[%s584_s0 + $0xb8] sm:$0xff]  ;;  %v258_v34 = vld [vmem:[%s584_s0 + $0xa0] sm:$0xff] }
   0xc   :  { %212 = vst [vmem:[%s585_s1 + $0x78] sm:$0xff] %v211_v10  ;;  %v252_v31 = vld [vmem:[%s584_s0 + $0xc8] sm:$0xff]  ;;  %v256_v33 = vld [vmem:[%s584_s0 + $0x178] sm:$0xff]  ;;  %v260_v35 = vld [vmem:[%s584_s0 + $0x160] sm:$0xff] }
   0xd   :  { %214 = vst [vmem:[%s585_s1 + $0x138] sm:$0xff] %v213_v11  ;;  %v262_v36 = vld [vmem:[%s584_s0 + $0x88] sm:$0xff]  ;;  %v266_v38 = vld [vmem:[%s584_s0 + $0x70] sm:$0xff]  ;;  %v270_v40 = vld [vmem:[%s584_s0 + $0x58] sm:$0xff] }
   0xe   :  { %216 = vst [vmem:[%s585_s1 + $0x90] sm:$0xff] %v215_v12  ;;  %v264_v37 = vld [vmem:[%s584_s0 + $0x148] sm:$0xff]  ;;  %v268_v39 = vld [vmem:[%s584_s0 + $0x130] sm:$0xff]  ;;  %v272_v41 = vld [vmem:[%s584_s0 + $0x118] sm:$0xff] }
   0xf   :  { %218 = vst [vmem:[%s585_s1 + $0x150] sm:$0xff] %v217_v13  ;;  %v274_v42 = vld [vmem:[%s584_s0 + $0x40] sm:$0xff]  ;;  %v278_v44 = vld [vmem:[%s584_s0 + $0x28] sm:$0xff]  ;;  %v282_v46 = vld [vmem:[%s584_s0 + $0x10] sm:$0xff] }
  0x10   :  { %219 = vst [vmem:[%s585_s1 + $0xa8] sm:$0xff] %v57_v14  ;;  %v276_v43 = vld [vmem:[%s584_s0 + $0x100] sm:$0xff]  ;;  %v280_v45 = vld [vmem:[%s584_s0 + $0xe8] sm:$0xff]  ;;  %v284_v47 = vld [vmem:[%s584_s0 + $0xd0] sm:$0xff] }
  0x11   :  { %221 = vst [vmem:[%s585_s1 + $0x168] sm:$0xff] %v220_v15 }
  0x12   :  { %223 = vst [vmem:[%s585_s1 + $0x8] sm:$0xff] %v222_v16 }
  0x13   :  { %225 = vst [vmem:[%s585_s1 + $0xc8] sm:$0xff] %v224_v17 }
  0x14   :  { %227 = vst [vmem:[%s585_s1 + $0x20] sm:$0xff] %v226_v18 }
  0x15   :  { %229 = vst [vmem:[%s585_s1 + $0xe0] sm:$0xff] %v228_v19 }
  0x16   :  { %231 = vst [vmem:[%s585_s1 + $0x38] sm:$0xff] %v230_v20 }
  0x17   :  { %233 = vst [vmem:[%s585_s1 + $0xf8] sm:$0xff] %v232_v21 }
  0x18   :  { %235 = vst [vmem:[%s585_s1 + $0x50] sm:$0xff] %v234_v22 }
  0x19   :  { %237 = vst [vmem:[%s585_s1 + $0x110] sm:$0xff] %v236_v23 }
  0x1a   :  { %239 = vst [vmem:[%s585_s1 + $0x68] sm:$0xff] %v238_v24 }
  0x1b   :  { %241 = vst [vmem:[%s585_s1 + $0x128] sm:$0xff] %v240_v25 }
  0x1c   :  { %243 = vst [vmem:[%s585_s1 + $0x80] sm:$0xff] %v242_v26 }
  0x1d   :  { %245 = vst [vmem:[%s585_s1 + $0x140] sm:$0xff] %v244_v27 }
  0x1e   :  { %247 = vst [vmem:[%s585_s1 + $0x98] sm:$0xff] %v246_v28 }
  0x1f   :  { %249 = vst [vmem:[%s585_s1 + $0x158] sm:$0xff] %v248_v29 }
  0x20   :  { %251 = vst [vmem:[%s585_s1 + $0xb0] sm:$0xff] %v250_v30 }
  0x21   :  { %253 = vst [vmem:[%s585_s1 + $0x170] sm:$0xff] %v252_v31 }
  0x22   :  { %255 = vst [vmem:[%s585_s1 + $0x10] sm:$0xff] %v254_v32 }
  0x23   :  { %257 = vst [vmem:[%s585_s1 + $0xd0] sm:$0xff] %v256_v33 }
  0x24   :  { %259 = vst [vmem:[%s585_s1 + $0x28] sm:$0xff] %v258_v34 }
  0x25   :  { %261 = vst [vmem:[%s585_s1 + $0xe8] sm:$0xff] %v260_v35 }
  0x26   :  { %263 = vst [vmem:[%s585_s1 + $0x40] sm:$0xff] %v262_v36 }
  0x27   :  { %265 = vst [vmem:[%s585_s1 + $0x100] sm:$0xff] %v264_v37 }
  0x28   :  { %267 = vst [vmem:[%s585_s1 + $0x58] sm:$0xff] %v266_v38 }
  0x29   :  { %269 = vst [vmem:[%s585_s1 + $0x118] sm:$0xff] %v268_v39 }
  0x2a   :  { %271 = vst [vmem:[%s585_s1 + $0x70] sm:$0xff] %v270_v40 }
  0x2b   :  { %273 = vst [vmem:[%s585_s1 + $0x130] sm:$0xff] %v272_v41 }
  0x2c   :  { %275 = vst [vmem:[%s585_s1 + $0x88] sm:$0xff] %v274_v42 }
  0x2d   :  { %277 = vst [vmem:[%s585_s1 + $0x148] sm:$0xff] %v276_v43 }
  0x2e   :  { %279 = vst [vmem:[%s585_s1 + $0xa0] sm:$0xff] %v278_v44 }
  0x2f   :  { %281 = vst [vmem:[%s585_s1 + $0x160] sm:$0xff] %v280_v45 }
  0x30   :  { %283 = vst [vmem:[%s585_s1 + $0xb8] sm:$0xff] %v282_v46 }
  0x31   :  { %285 = vst [vmem:[%s585_s1 + $0x178] sm:$0xff] %v284_v47 }

// kernel: fno2d_forward.8
= control target key start
LH: loop header
LB: loop body
LE: loop exit
PB: predicated region body
PF: predicated region fallthrough
CT: control target
= control target key end

     0   :  { %s3062_s15 = smov 0   ;;  %s5067_s0 = inlined_call_operand.vmem [shape: f32[768,32], index: 0, kind: input, shape index: {}]   ;;  %s5068_s1 = inlined_call_operand.vmem [shape: f32[768,32], index: 1, kind: input, shape index: {}]   ;;  %s5069_s2 = inlined_call_operand.vmem [shape: f32[32,32], index: 2, kind: input, shape index: {}]   ;;  %s5070_s3 = inlined_call_operand.vmem [shape: f32[1,32], index: 3, kind: input, shape index: {}]   ;;  %s5071_s4 = inlined_call_operand.vmem [shape: f32[768,32], index: 4, kind: output, shape index: {}]  }
   0x1 LB: > { %s2832_s16 = sadd.s32 4294967295, %s3035_s15   ;;  %p2836_p0 = scmp.ge.s32.totalorder %s3035_s15, 1  ;;  %s3035_s15 = sphi %s3062_s15, %s14_s15  }
   0x2   : > { %p174_p1 = scmp.lt.s32.totalorder %s3035_s15, 3 }
   0x4   : > { %p175_p2 = pnand %p2836_p0, %p174_p1 }
   0x5   : > { %s205_s23 = smul.u32 (!%p175_p2), 48, %s2832_s16 }
   0x6   : > { %178 = sbr.rel (%p175_p2) target bundleno = 702 (0x2be), region = 36 }
   0x7   : > { %p206_p3 = scmp.lt.s32.totalorder (!%p175_p2), %s205_s23, 95 }
   0xb   : > { %v298_v0 = vld [vmem:[%s5069_s2 + $0x10] sm:$0xff]  ;;  %v299_v1 = vld [vmem:[%s5069_s2 + $0x18] sm:$0xff]  ;;  %v296_v2 = vld [vmem:[%s5069_s2] sm:$0xff]  ;;  %s5131_s23 = smov (!%p206_p3, %s205_s23), 95  ;;  %vm306_vm0 = vcmask 261120  }
   0xc   : > { %v301_v3 = vpack.c.bf16 %v299_v1, %v298_v0  ;;  %v297_v4 = vld [vmem:[%s5069_s2 + $0x8] sm:$0xff]  ;;  %s3082_s26 = sshll.u32 %s5131_s23, 3 }
   0xd   : > { %v300_v5 = vpack.c.bf16 %v297_v4, %v296_v2  ;;  %s3088_s29 = scalar_lea.vmem %s5067_s0, %s3082_s26  ;;  %s3166_s6 = scalar_lea.vmem %s5068_s1, %s3082_s26 }
   0xe   : > { %385 = vmatpush.bf16.msra.mxu0 %v301_v3  ;;  %2914 = vmatpush.bf16.msra.mxu1 %v301_v3  ;;  %v224_v6 = vld [vmem:[%s3088_s29] sm:$0xff]  ;;  %v225_v7 = vld [vmem:[%s3088_s29 + $0x8] sm:$0xff]  ;;  %v226_v18 = vld [vmem:[%s3088_s29 + $0x10] sm:$0xff]  ;;  %s3359_s11 = scalar_lea.vmem %s5071_s4, %s3082_s26 }
   0xf   : > { %2915 = vmatpush.bf16.msra.mxu2 %v301_v3  ;;  %2916 = vmatpush.bf16.msra.mxu3 %v301_v3  ;;  %v236_v8 = vld [vmem:[%s3088_s29 + $0x60] sm:$0xff]  ;;  %v272_v9 = vpack.c.bf16 %v225_v7, %v224_v6  ;;  %v237_v10 = vld [vmem:[%s3088_s29 + $0x68] sm:$0xff]  ;;  %v227_v19 = vld [vmem:[%s3088_s29 + $0x18] sm:$0xff] }
  0x10   : > { %v248_v11 = vld [vmem:[%s3088_s29 + $0xc0] sm:$0xff]  ;;  %v249_v12 = vld [vmem:[%s3088_s29 + $0xc8] sm:$0xff]  ;;  %v278_v13 = vpack.c.bf16 %v237_v10, %v236_v8  ;;  %v238_v20 = vld [vmem:[%s3088_s29 + $0x70] sm:$0xff]  ;;  %v273_v26 = vpack.c.bf16 %v227_v19, %v226_v18 }
  0x11   : > { %v284_v14 = vpack.c.bf16 %v249_v12, %v248_v11  ;;  %v260_v15 = vld [vmem:[%s3088_s29 + $0x120] sm:$0xff]  ;;  %v261_v16 = vld [vmem:[%s3088_s29 + $0x128] sm:$0xff]  ;;  %v239_v21 = vld [vmem:[%s3088_s29 + $0x78] sm:$0xff] }
  0x12   : > { %386 = vmatpush.bf16.msra.mxu0 %v300_v5  ;;  %2917 = vmatpush.bf16.msra.mxu1 %v300_v5  ;;  %v290_v17 = vpack.c.bf16 %v261_v16, %v260_v15  ;;  %v250_v22 = vld [vmem:[%s3088_s29 + $0xd0] sm:$0xff]  ;;  %v251_v23 = vld [vmem:[%s3088_s29 + $0xd8] sm:$0xff]  ;;  %v279_v27 = vpack.c.bf16 %v239_v21, %v238_v20  ;;  %v228_v30 = vld [vmem:[%s3088_s29 + $0x20] sm:$0xff] }
  0x13   : > { %2918 = vmatpush.bf16.msra.mxu2 %v300_v5  ;;  %2919 = vmatpush.bf16.msra.mxu3 %v300_v5  ;;  %v262_v24 = vld [vmem:[%s3088_s29 + $0x130] sm:$0xff]  ;;  %v263_v25 = vld [vmem:[%s3088_s29 + $0x138] sm:$0xff]  ;;  %v285_v28 = vpack.c.bf16 %v251_v23, %v250_v22  ;;  %v229_v31 = vld [vmem:[%s3088_s29 + $0x28] sm:$0xff] }
  0x14   : > { %v291_v29 = vpack.c.bf16 %v263_v25, %v262_v24  ;;  %v240_v32 = vld [vmem:[%s3088_s29 + $0x80] sm:$0xff]  ;;  %v241_v33 = vld [vmem:[%s3088_s29 + $0x88] sm:$0xff]  ;;  %v274_v38 = vpack.c.bf16 %v229_v31, %v228_v30  ;;  %v230_v42 = vld [vmem:[%s3088_s29 + $0x30] sm:$0xff] }
  0x15   : > { %2840 = vmatmul.msk.bf16.vlgmr.msra.gmra.mxu0 %vm306_vm0, %v272_v9  ;;  %2846 = vmatmul.msk.bf16.vlgmr.msra.gmra.mxu1 %vm306_vm0, %v278_v13  ;;  %v252_v34 = vld [vmem:[%s3088_s29 + $0xe0] sm:$0xff]  ;;  %v253_v35 = vld [vmem:[%s3088_s29 + $0xe8] sm:$0xff]  ;;  %v280_v39 = vpack.c.bf16 %v241_v33, %v240_v32  ;;  %v231_v43 = vld [vmem:[%s3088_s29 + $0x38] sm:$0xff] }
  0x16   : > { %2852 = vmatmul.msk.bf16.vlgmr.msra.gmra.mxu2 %vm306_vm0, %v284_v14  ;;  %2858 = vmatmul.msk.bf16.vlgmr.msra.gmra.mxu3 %vm306_vm0, %v290_v17  ;;  %v264_v36 = vld [vmem:[%s3088_s29 + $0x140] sm:$0xff]  ;;  %v265_v37 = vld [vmem:[%s3088_s29 + $0x148] sm:$0xff]  ;;  %v286_v40 = vpack.c.bf16 %v253_v35, %v252_v34  ;;  %v242_v44 = vld [vmem:[%s3088_s29 + $0x90] sm:$0xff]  ;;  %v275_v50 = vpack.c.bf16 %v231_v43, %v230_v42 }
  0x17   : > { %v292_v41 = vpack.c.bf16 %v265_v37, %v264_v36  ;;  %v243_v45 = vld [vmem:[%s3088_s29 + $0x98] sm:$0xff]  ;;  %v254_v46 = vld [vmem:[%s3088_s29 + $0xf0] sm:$0xff]  ;;  %v232_v54 = vld [vmem:[%s3088_s29 + $0x40] sm:$0xff] }
  0x18   : > { %v255_v47 = vld [vmem:[%s3088_s29 + $0xf8] sm:$0xff]  ;;  %v266_v48 = vld [vmem:[%s3088_s29 + $0x150] sm:$0xff]  ;;  %v281_v51 = vpack.c.bf16 %v243_v45, %v242_v44  ;;  %v233_v55 = vld [vmem:[%s3088_s29 + $0x48] sm:$0xff] }
  0x19   : > { %v267_v49 = vld [vmem:[%s3088_s29 + $0x158] sm:$0xff]  ;;  %v287_v52 = vpack.c.bf16 %v255_v47, %v254_v46  ;;  %v244_v56 = vld [vmem:[%s3088_s29 + $0xa0] sm:$0xff]  ;;  %v245_v57 = vld [vmem:[%s3088_s29 + $0xa8] sm:$0xff]  ;;  %v276_v62 = vpack.c.bf16 %v233_v55, %v232_v54 }
  0x1a   : > { %v293_v53 = vpack.c.bf16 %v267_v49, %v266_v48  ;;  %v256_v58 = vld [vmem:[%s3088_s29 + $0x100] sm:$0xff]  ;;  %v257_v59 = vld [vmem:[%s3088_s29 + $0x108] sm:$0xff]  ;;  %v282_v63 = vpack.c.bf16 %v245_v57, %v244_v56  ;;  %v234_v2 = vld [vmem:[%s3088_s29 + $0x50] sm:$0xff] }
  0x1b   : > { %v268_v60 = vld [vmem:[%s3088_s29 + $0x160] sm:$0xff]  ;;  %v269_v61 = vld [vmem:[%s3088_s29 + $0x168] sm:$0xff]  ;;  %v288_v0 = vpack.c.bf16 %v257_v59, %v256_v58  ;;  %v235_v3 = vld [vmem:[%s3088_s29 + $0x58] sm:$0xff] }
  0x1c   : > { %v294_v1 = vpack.c.bf16 %v269_v61, %v268_v60  ;;  %v246_v4 = vld [vmem:[%s3088_s29 + $0xb0] sm:$0xff]  ;;  %v247_v5 = vld [vmem:[%s3088_s29 + $0xb8] sm:$0xff]  ;;  %v277_v10 = vpack.c.bf16 %v235_v3, %v234_v2  ;;  %v3171_v14 = vld [vmem:[%s5070_s3] ss:$0 sm:$0xff] }
  0x1d   : > { %v258_v6 = vld [vmem:[%s3088_s29 + $0x110] sm:$0xff]  ;;  %v259_v7 = vld [vmem:[%s3088_s29 + $0x118] sm:$0xff]  ;;  %v283_v11 = vpack.c.bf16 %v247_v5, %v246_v4  ;;  %v508_v16 = vld [vmem:[%s3166_s6] sm:$0xff] }
  0x1e   : > { %v270_v8 = vld [vmem:[%s3088_s29 + $0x170] sm:$0xff]  ;;  %v271_v9 = vld [vmem:[%s3088_s29 + $0x178] sm:$0xff]  ;;  %v289_v12 = vpack.c.bf16 %v259_v7, %v258_v6  ;;  %v520_v19 = vld [vmem:[%s3166_s6 + $0x60] sm:$0xff] }
  0x1f   : > { %v295_v13 = vpack.c.bf16 %v271_v9, %v270_v8  ;;  %v544_v31 = vld [vmem:[%s3166_s6 + $0x120] sm:$0xff]  ;;  %v509_v43 = vld [vmem:[%s3166_s6 + $0x8] sm:$0xff] }
  0x20   : > { %v521_v8 = vld [vmem:[%s3166_s6 + $0x68] sm:$0xff] }
  0x25   : > { %2841 = vmatmul.msk.bf16.gmra.mxu0 %vm306_vm0, %v273_v26  ;;  %2847 = vmatmul.msk.bf16.gmra.mxu1 %vm306_vm0, %v279_v27  ;;  %v532_v27 = vld [vmem:[%s3166_s6 + $0xc0] sm:$0xff] }
  0x26   : > { %2853 = vmatmul.msk.bf16.gmra.mxu2 %vm306_vm0, %v285_v28  ;;  %2859 = vmatmul.msk.bf16.gmra.mxu3 %vm306_vm0, %v291_v29 }
  0x35   : > { %2842 = vmatmul.msk.bf16.gmra.mxu0 %vm306_vm0, %v274_v38  ;;  %2848 = vmatmul.msk.bf16.gmra.mxu1 %vm306_vm0, %v280_v39 }
  0x36   : > { %2854 = vmatmul.msk.bf16.gmra.mxu2 %vm306_vm0, %v286_v40  ;;  %2860 = vmatmul.msk.bf16.gmra.mxu3 %vm306_vm0, %v292_v41 }
  0x45   : > { %2843 = vmatmul.msk.bf16.gmra.mxu0 %vm306_vm0, %v275_v50  ;;  %2849 = vmatmul.msk.bf16.gmra.mxu1 %vm306_vm0, %v281_v51 }
  0x46   : > { %2855 = vmatmul.msk.bf16.gmra.mxu2 %vm306_vm0, %v287_v52  ;;  %2861 = vmatmul.msk.bf16.gmra.mxu3 %vm306_vm0, %v293_v53 }
  0x55   : > { %2844 = vmatmul.msk.bf16.gmra.mxu0 %vm306_vm0, %v276_v62  ;;  %2850 = vmatmul.msk.bf16.gmra.mxu1 %vm306_vm0, %v282_v63 }
  0x56   : > { %2856 = vmatmul.msk.bf16.gmra.mxu2 %vm306_vm0, %v288_v0  ;;  %2862 = vmatmul.msk.bf16.gmra.mxu3 %vm306_vm0, %v294_v1 }
  0x65   : > { %2845 = vmatmul.msk.bf16.gmra.mxu0 %vm306_vm0, %v277_v10  ;;  %2851 = vmatmul.msk.bf16.gmra.mxu1 %vm306_vm0, %v283_v11 }
  0x66   : > { %2857 = vmatmul.msk.bf16.gmra.mxu2 %vm306_vm0, %v289_v12  ;;  %2863 = vmatmul.msk.bf16.gmra.mxu3 %vm306_vm0, %v295_v13 }
  0x92   : > { %v388_v15 = vpop.f32.mrf.mxu0  ;;  %v418_v18 = vpop.f32.mrf.mxu1 }
  0x93   : > { %v389_v17 = vadd.f32 %v3171_v14, %v388_v15  ;;  %v419_v20 = vadd.f32 %v3171_v14, %v418_v18 }
  0x95   : > { %v556_v21 = vadd.f32 %v508_v16, %v389_v17  ;;  %v3177_v22 = vadd.f32 %v520_v19, %v419_v20 }
  0x97   : > { %v3179_v23 = vmul.f32 0.70710677, %v556_v21  ;;  %v3182_v24 = vmul.f32 0.70710677, %v3177_v22  ;;  %v3224_v60 = vmul.f32 0.5, %v556_v21 }
  0x99   : > { %v700_v25 = vmul.f32 %v3179_v23, %v3179_v23  ;;  %v448_v26 = vpop.f32.mrf.mxu2  ;;  %v1180_v28 = vmul.f32 %v3182_v24, %v3182_v24  ;;  %v478_v30 = vpop.f32.mrf.mxu3 }
  0x9a   : > { %v449_v29 = vadd.f32 %v3171_v14, %v448_v26  ;;  %v479_v33 = vadd.f32 %v3171_v14, %v478_v30  ;;  %v390_v34 = vpop.f32.mrf.mxu0  ;;  %v420_v63 = vpop.f32.mrf.mxu1 }
  0x9b   : > { %v3191_v32 = vmin.f32 %v700_v25, 16.0  ;;  %v3194_v35 = vmin.f32 %v1180_v28, 16.0  ;;  %v391_v42 = vadd.f32 %v3171_v14, %v390_v34  ;;  %v421_v12 = vadd.f32 %v3171_v14, %v420_v63 }
  0x9c   : > { %v3196_v36 = vadd.f32 %v532_v27, %v449_v29  ;;  %v3200_v39 = vadd.f32 %v544_v31, %v479_v33 }
  0x9d   : > { %v702_v37 = vmul.f32 2.1237322e-06, %v3191_v32  ;;  %v713_v38 = vmul.f32 3.8918573e-05, %v3191_v32  ;;  %v1182_v40 = vmul.f32 2.1237322e-06, %v3194_v35  ;;  %v3218_v55 = vadd.f32 %v509_v43, %v391_v42 }
  0x9e   : > { %v1193_v41 = vmul.f32 3.8918573e-05, %v3194_v35  ;;  %v3207_v46 = vmul.f32 0.70710677, %v3196_v36  ;;  %v3214_v52 = vmul.f32 0.70710677, %v3200_v39  ;;  %v3247_v31 = vadd.f32 %v521_v8, %v421_v12 }
  0x9f   : > { %v703_v44 = vadd.f32 0.00028619796, %v702_v37  ;;  %v714_v45 = vadd.f32 0.001143296, %v713_v38  ;;  %v1183_v47 = vadd.f32 0.00028619796, %v1182_v40 }
  0xa0   : > { %v1194_v48 = vadd.f32 0.001143296, %v1193_v41  ;;  %v1660_v51 = vmul.f32 %v3207_v46, %v3207_v46  ;;  %v2140_v59 = vmul.f32 %v3214_v52, %v3214_v52  ;;  %v3235_v7 = vmul.f32 0.70710677, %v3218_v55 }
  0xa1   : > { %v704_v49 = vmul.f32 %v703_v44, %v3191_v32  ;;  %v715_v50 = vmul.f32 %v714_v45, %v3191_v32  ;;  %v1184_v53 = vmul.f32 %v1183_v47, %v3194_v35 }
  0xa2   : > { %v1195_v54 = vmul.f32 %v1194_v48, %v3194_v35  ;;  %v3220_v58 = vmin.f32 %v1660_v51, 16.0  ;;  %v3232_v6 = vmin.f32 %v2140_v59, 16.0  ;;  %v740_v38 = vmul.f32 %v3235_v7, %v3235_v7  ;;  %v480_v59 = vpop.f32.mrf.mxu3 }
  0xa3   : > { %v705_v56 = vadd.f32 0.0036580483, %v704_v49  ;;  %v716_v57 = vadd.f32 0.014752088, %v715_v50  ;;  %v1185_v61 = vadd.f32 0.0036580483, %v1184_v53 }
  0xa4   : > { %v1196_v62 = vadd.f32 0.014752088, %v1195_v54  ;;  %v1662_v2 = vmul.f32 2.1237322e-06, %v3220_v58  ;;  %v1673_v3 = vmul.f32 3.8918573e-05, %v3220_v58 }
  0xa5   : > { %v706_v0 = vmul.f32 %v705_v56, %v3191_v32  ;;  %v717_v1 = vmul.f32 %v716_v57, %v3191_v32  ;;  %v1186_v4 = vmul.f32 %v1185_v61, %v3194_v35  ;;  %v2142_v20 = vmul.f32 2.1237322e-06, %v3232_v6 }
  0xa6   : > { %v1197_v5 = vmul.f32 %v1196_v62, %v3194_v35  ;;  %v1663_v11 = vadd.f32 0.00028619796, %v1662_v2  ;;  %v1674_v16 = vadd.f32 0.001143296, %v1673_v3  ;;  %v2153_v27 = vmul.f32 3.8918573e-05, %v3232_v6 }
  0xa7   : > { %v707_v9 = vadd.f32 0.05243302, %v706_v0  ;;  %v718_v10 = vadd.f32 0.112945676, %v717_v1  ;;  %v1187_v13 = vadd.f32 0.05243302, %v1186_v4 }
  0xa8   : > { %v1198_v15 = vadd.f32 0.112945676, %v1197_v5  ;;  %v1664_v19 = vmul.f32 %v1663_v11, %v3220_v58  ;;  %v1675_v26 = vmul.f32 %v1674_v16, %v3220_v58  ;;  %v2143_v43 = vadd.f32 0.00028619796, %v2142_v20 }
  0xa9   : > { %v708_v17 = vmul.f32 %v707_v9, %v3191_v32  ;;  %v719_v18 = vmul.f32 %v718_v10, %v3191_v32  ;;  %v1188_v21 = vmul.f32 %v1187_v13, %v3194_v35  ;;  %v2154_v48 = vadd.f32 0.001143296, %v2153_v27 }
  0xaa   : > { %v1199_v25 = vmul.f32 %v1198_v15, %v3194_v35  ;;  %v1665_v30 = vadd.f32 0.0036580483, %v1664_v19  ;;  %v1676_v37 = vadd.f32 0.014752088, %v1675_v26  ;;  %v3260_v50 = vmul.f32 0.5, %v3177_v22 }
  0xab   : > { %v709_v28 = vadd.f32 0.18741608, %v708_v17  ;;  %v720_v29 = vadd.f32 0.4994258, %v719_v18  ;;  %v1189_v33 = vadd.f32 0.18741608, %v1188_v21  ;;  %v2144_v56 = vmul.f32 %v2143_v43, %v3232_v6 }
  0xac   : > { %v1200_v34 = vadd.f32 0.4994258, %v1199_v25  ;;  %v1666_v42 = vmul.f32 %v1665_v30, %v3220_v58  ;;  %v1677_v47 = vmul.f32 %v1676_v37, %v3220_v58  ;;  %v3263_v53 = vmul.f32 0.70710677, %v3247_v31 }
  0xad   : > { %v710_v40 = vmul.f32 %v709_v28, %v3191_v32  ;;  %v721_v41 = vmul.f32 %v720_v29, %v3191_v32  ;;  %v1190_v44 = vmul.f32 %v1189_v33, %v3194_v35  ;;  %v2155_v57 = vmul.f32 %v2154_v48, %v3232_v6 }
  0xae   : > { %v1201_v45 = vmul.f32 %v1200_v34, %v3194_v35  ;;  %v1667_v51 = vadd.f32 0.05243302, %v1666_v42  ;;  %v1678_v54 = vadd.f32 0.112945676, %v1677_v47  ;;  %v450_v35 = vpop.f32.mrf.mxu2  ;;  %v3271_v62 = vmul.f32 0.5, %v3196_v36 }
  0xaf   : > { %v3257_v49 = vadd.f32 1.0, %v721_v41  ;;  %v711_v61 = vadd.f32 1.1283791, %v710_v40  ;;  %v3273_v22 = vmin.f32 %v740_v38, 16.0  ;;  %v1191_v63 = vadd.f32 1.1283791, %v1190_v44 }
  0xb0   : > { %v3265_v32 = vadd.f32 1.0, %v1201_v45  ;;  %v3277_v0 = vmul.f32 0.5, %v3200_v39  ;;  %v3280_v1 = vmul.f32 0.5, %v3218_v55  ;;  %v1668_v2 = vmul.f32 %v1667_v51, %v3220_v58 }
  0xb1   : > { %2929 = vrcp.f32 %v3257_v49  ;;  %v1220_v3 = vmul.f32 %v3263_v53, %v3263_v53  ;;  %v3286_v4 = vadd.f32 %v3171_v14, %v450_v35  ;;  %v3289_v36 = vadd.f32 %v3171_v14, %v480_v59 }
  0xb2   : > { %2931 = vrcp.f32 %v3265_v32  ;;  %v732_v5 = vand.u32 2147483647, %v3257_v49  ;;  %v1679_v8 = vmul.f32 %v1678_v54, %v3220_v58  ;;  %v2145_v39 = vadd.f32 0.0036580483, %v2144_v56 }
  0xb3   : > { %v2156_v9 = vadd.f32 0.014752088, %v2155_v57  ;;  %v712_v55 = vmul.f32 %v711_v61, %v3179_v23  ;;  %v734_v10 = vand.u32 2147483648, %v3257_v49  ;;  %v1212_v11 = vand.u32 2147483647, %v3265_v32 }
  0xb4   : > { %v742_v12 = vmul.f32 2.1237322e-06, %v3273_v22  ;;  %vm728_vm1 = vweird.f32 %v3257_v49  ;;  %v1192_v13 = vmul.f32 %v1191_v63, %v3182_v24  ;;  %v1680_v15 = vadd.f32 0.4994258, %v1679_v8 }
  0xb5   : > { %v2146_v16 = vmul.f32 %v2145_v39, %v3232_v6  ;;  %v2157_v17 = vmul.f32 %v2156_v9, %v3232_v6  ;;  %vm1208_vm2 = vweird.f32 %v3265_v32  ;;  %v1669_v19 = vadd.f32 0.18741608, %v1668_v2 }
  0xb6   : > { %v743_v23 = vadd.f32 0.00028619796, %v742_v12  ;;  %v753_v20 = vmul.f32 3.8918573e-05, %v3273_v22  ;;  %vm3304_vm3 = vcmp.eq.f32.partialorder %v732_v5, 8.507059e+37  ;;  %v1214_v24 = vand.u32 2147483648, %v3265_v32 }
  0xb7   : > { %v2930_v18 = vpop.eup %2929  ;;  %v1681_v27 = vmul.f32 %v1680_v15, %v3220_v58  ;;  %v2147_v28 = vadd.f32 0.05243302, %v2146_v16  ;;  %v735_v29 = vor.u32 1.1754944e-38, %v734_v10  ;;  %vm3311_vm4 = vcmp.eq.f32.partialorder %v1212_v11, 8.507059e+37  ;;  %v533_v10 = vld [vmem:[%s3166_s6 + $0xc8] sm:$0xff] }
  0xb8   : > { %v2932_v21 = vpop.eup %2931  ;;  %v724_v25 = vmul.f32 %v2930_v18, %v3257_v49  ;;  %v2158_v34 = vadd.f32 0.112945676, %v2157_v17  ;;  %v744_v41 = vmul.f32 %v743_v23, %v3273_v22  ;;  %v1670_v43 = vmul.f32 %v1669_v19, %v3220_v58 }
  0xb9   : > { %v1204_v30 = vmul.f32 %v2932_v21, %v3265_v32  ;;  %v3315_v38 = vadd.f32 1.0, %v1681_v27  ;;  %v2148_v40 = vmul.f32 %v2147_v28, %v3232_v6  ;;  %v754_v45 = vadd.f32 0.001143296, %v753_v20 }
  0xba   : > { %v725_v37 = vsub.f32 1.0, %v724_v25  ;;  %v2159_v44 = vmul.f32 %v2158_v34, %v3232_v6  ;;  %vm729_vm5 = vweird.f32 %v2930_v18  ;;  %v3322_v48 = vmin.f32 %v1220_v3, 16.0 }
  0xbb   : > { %v1205_v42 = vsub.f32 1.0, %v1204_v30  ;;  %2933 = vrcp.f32 %v3315_v38  ;;  %vm1209_vm6 = vweird.f32 %v2932_v21  ;;  %v2149_v54 = vadd.f32 0.18741608, %v2148_v40  ;;  %vm730_vm7 = vmor %vm728_vm1, %vm729_vm5 }
  0xbc   : > { %v726_v47 = vmul.f32 %v2930_v18, %v725_v37  ;;  %v2160_v56 = vadd.f32 0.4994258, %v2159_v44  ;;  %v1215_v35 = vor.u32 1.1754944e-38, %v1214_v24  ;;  %v745_v59 = vadd.f32 0.0036580483, %v744_v41  ;;  %vm1210_vm8 = vmor %vm1208_vm2, %vm1209_vm6 }
  0xbd   : > { %v1206_v51 = vmul.f32 %v2932_v21, %v1205_v42  ;;  %v755_v61 = vmul.f32 %v754_v45, %v3273_v22  ;;  %v1671_v63 = vadd.f32 1.1283791, %v1670_v43  ;;  %v1692_v2 = vand.u32 2147483647, %v3315_v38  ;;  %v545_v43 = vld [vmem:[%s3166_s6 + $0x128] sm:$0xff] }
  0xbe   : > { %v727_v57 = vadd.f32 %v2930_v18, %v726_v47  ;;  %v2161_v3 = vmul.f32 %v2160_v56, %v3232_v6  ;;  %v2150_v8 = vmul.f32 %v2149_v54, %v3232_v6  ;;  %v746_v39 = vmul.f32 %v745_v59, %v3273_v22 }
  0xbf   : > { %v1207_v58 = vadd.f32 %v2932_v21, %v1206_v51  ;;  %v756_v9 = vadd.f32 0.014752088, %v755_v61  ;;  %v1222_v15 = vmul.f32 2.1237322e-06, %v3322_v48  ;;  %v1672_v23 = vmul.f32 %v1671_v63, %v3207_v46 }
  0xc0   : > { %v731_v5 = vsel %vm730_vm7, %v2930_v18, %v727_v57  ;;  %v3336_v12 = vadd.f32 1.0, %v2161_v3  ;;  %v747_v18 = vadd.f32 0.05243302, %v746_v39  ;;  %vm1688_vm9 = vweird.f32 %v3315_v38 }
  0xc1   : > { %v736_v49 = vsel %vm3304_vm3, %v735_v29, %v731_v5  ;;  %v1211_v11 = vsel %vm1210_vm8, %v2932_v21, %v1207_v58  ;;  %v2934_v16 = vpop.eup %2933  ;;  %v757_v6 = vmul.f32 %v756_v9, %v3273_v22  ;;  %v3345_v21 = vadd.f32 %v533_v10, %v3286_v4 }
  0xc2   : > { %v737_v17 = vmul.f32 %v736_v49, %v712_v55  ;;  %v1216_v32 = vsel %vm3311_vm4, %v1215_v35, %v1211_v11  ;;  %v1684_v20 = vmul.f32 %v2934_v16, %v3315_v38  ;;  %v1694_v55 = vand.u32 2147483648, %v3315_v38 }
  0xc3   : > { %v1217_v19 = vmul.f32 %v1216_v32, %v1192_v13  ;;  %2935 = vrcp.f32 %v3336_v12  ;;  %v2151_v27 = vadd.f32 1.1283791, %v2150_v8  ;;  %v748_v13 = vmul.f32 %v747_v18, %v3273_v22 }
  0xc4   : > { %v2864_v25 = vclamps-f32 %v737_v17, 1.0  ;;  %v1685_v24 = vsub.f32 1.0, %v1684_v20  ;;  %vm3351_vm10 = vcmp.eq.f32.partialorder %v1692_v2, 8.507059e+37  ;;  %v758_v4 = vadd.f32 0.112945676, %v757_v6 }
  0xc5   : > { %v2876_v26 = vclamps-f32 %v1217_v19, 1.0  ;;  %v1223_v29 = vadd.f32 0.00028619796, %v1222_v15  ;;  %vm1689_vm11 = vweird.f32 %v2934_v16  ;;  %v749_v34 = vadd.f32 0.18741608, %v748_v13  ;;  %v393_v15 = vpop.f32.mrf.mxu0 }
  0xc6   : > { %v2620_v28 = vadd.f32 1.0, %v2864_v25  ;;  %v1686_v33 = vmul.f32 %v2934_v16, %v1685_v24  ;;  %v759_v40 = vmul.f32 %v758_v4, %v3273_v22  ;;  %v1233_v42 = vmul.f32 3.8918573e-05, %v3322_v48  ;;  %vm1690_vm12 = vmor %vm1688_vm9, %vm1689_vm11 }
  0xc7   : > { %v2632_v30 = vadd.f32 1.0, %v2876_v26  ;;  %v1224_v41 = vmul.f32 %v1223_v29, %v3322_v48  ;;  %v1695_v47 = vor.u32 1.1754944e-38, %v1694_v55  ;;  %v2172_v51 = vand.u32 2147483647, %v3336_v12 }
  0xc8   : > { %v2668_v37 = vmul.f32 %v2620_v28, %v3224_v60  ;;  %v1687_v45 = vadd.f32 %v2934_v16, %v1686_v33  ;;  %v2152_v60 = vmul.f32 %v2151_v27, %v3214_v52  ;;  %v2174_v56 = vand.u32 2147483648, %v3336_v12 }
  0xc9   : > { %v2680_v44 = vmul.f32 %v2632_v30, %v3260_v50  ;;  %v2936_v54 = vpop.eup %2935  ;;  %v760_v57 = vadd.f32 0.4994258, %v759_v40  ;;  %v1225_v35 = vadd.f32 0.0036580483, %v1224_v41  ;;  %v750_v61 = vmul.f32 %v749_v34, %v3273_v22 }
  0xca   : > { %2716 = vst.msk [vmem:[%s3359_s11] sm:$0xff] %vm306_vm0, %v2668_v37  ;;  %v1691_v59 = vsel %vm1690_vm12, %v2934_v16, %v1687_v45  ;;  %v2164_v50 = vmul.f32 %v2936_v54, %v3336_v12  ;;  %v3379_v58 = vadd.f32 %v545_v43, %v3289_v36  ;;  %v1234_v2 = vadd.f32 0.001143296, %v1233_v42  ;;  %v510_v37 = vld [vmem:[%s3166_s6 + $0x10] sm:$0xff] }
  0xcb   : > { %2728 = vst.msk [vmem:[%s3359_s11 + $0x60] sm:$0xff] %vm306_vm0, %v2680_v44  ;;  %v1696_v38 = vsel %vm3351_vm10, %v1695_v47, %v1691_v59  ;;  %v761_v63 = vmul.f32 %v760_v57, %v3273_v22  ;;  %v1226_v52 = vmul.f32 %v1225_v35, %v3322_v48  ;;  %vm2168_vm13 = vweird.f32 %v3336_v12 }
  0xcc   : > { %v1697_v3 = vmul.f32 %v1696_v38, %v1672_v23  ;;  %v2165_v5 = vsub.f32 1.0, %v2164_v50  ;;  %v3387_v8 = vmul.f32 0.70710677, %v3345_v21  ;;  %vm2169_vm14 = vweird.f32 %v2936_v54 }
  0xcd   : > { %v3389_v39 = vadd.f32 1.0, %v761_v63  ;;  %v1227_v36 = vadd.f32 0.05243302, %v1226_v52  ;;  %v1235_v9 = vmul.f32 %v1234_v2, %v3322_v48  ;;  %v3395_v11 = vmul.f32 0.70710677, %v3379_v58  ;;  %vm2170_vm1 = vmor %vm2168_vm13, %vm2169_vm14  ;;  %v423_v2 = vpop.f32.mrf.mxu1 }
  0xce   : > { %v2888_v10 = vclamps-f32 %v1697_v3, 1.0  ;;  %v2166_v49 = vmul.f32 %v2936_v54, %v2165_v5  ;;  %v1700_v22 = vmul.f32 %v3387_v8, %v3387_v8  ;;  %vm3397_vm15 = vcmp.eq.f32.partialorder %v2172_v51, 8.507059e+37 }
  0xcf   : > { %v2175_v17 = vor.u32 1.1754944e-38, %v2174_v56  ;;  %v751_v32 = vadd.f32 1.1283791, %v750_v61  ;;  %2937 = vrcp.f32 %v3389_v39  ;;  %v1228_v19 = vmul.f32 %v1227_v36, %v3322_v48 }
  0xd0   : > { %v2644_v18 = vadd.f32 1.0, %v2888_v10  ;;  %v2167_v6 = vadd.f32 %v2936_v54, %v2166_v49  ;;  %v1236_v23 = vadd.f32 0.014752088, %v1235_v9  ;;  %v774_v20 = vand.u32 2147483648, %v3389_v39 }
  0xd1   : > { %v3407_v25 = vmin.f32 %v1700_v22, 16.0  ;;  %v2180_v55 = vmul.f32 %v3395_v11, %v3395_v11  ;;  %v394_v26 = vadd.f32 %v3171_v14, %v393_v15  ;;  %v1229_v13 = vadd.f32 0.18741608, %v1228_v19  ;;  %v522_v19 = vld [vmem:[%s3166_s6 + $0x70] sm:$0xff] }
  0xd2   : > { %v2692_v24 = vmul.f32 %v2644_v18, %v3271_v62  ;;  %v2171_v27 = vsel %vm2170_vm1, %v2936_v54, %v2167_v6  ;;  %v1237_v28 = vmul.f32 %v1236_v23, %v3322_v48  ;;  %v752_v33 = vmul.f32 %v751_v32, %v3235_v7 }
  0xd3   : > { %v2176_v12 = vsel %vm3397_vm15, %v2175_v17, %v2171_v27  ;;  %v1702_v46 = vmul.f32 2.1237322e-06, %v3407_v25  ;;  %v1713_v4 = vmul.f32 3.8918573e-05, %v3407_v25  ;;  %v3418_v29 = vmin.f32 %v2180_v55, 16.0 }
  0xd4   : > { %2740 = vst.msk [vmem:[%s3359_s11 + $0xc0] sm:$0xff] %vm306_vm0, %v2692_v24  ;;  %v2177_v30 = vmul.f32 %v2176_v12, %v2152_v60  ;;  %v772_v62 = vand.u32 2147483647, %v3389_v39  ;;  %v1238_v34 = vadd.f32 0.112945676, %v1237_v28  ;;  %vm768_vm2 = vweird.f32 %v3389_v39 }
  0xd5   : > { %v2938_v40 = vpop.eup %2937  ;;  %v1703_v41 = vadd.f32 0.00028619796, %v1702_v46  ;;  %v1714_v42 = vadd.f32 0.001143296, %v1713_v4  ;;  %v2182_v43 = vmul.f32 2.1237322e-06, %v3418_v29  ;;  %v1230_v51 = vmul.f32 %v1229_v13, %v3322_v48 }
  0xd6   : > { %v2900_v44 = vclamps-f32 %v2177_v30, 1.0  ;;  %v764_v45 = vmul.f32 %v2938_v40, %v3389_v39  ;;  %v775_v47 = vor.u32 1.1754944e-38, %v774_v20  ;;  %v1239_v54 = vmul.f32 %v1238_v34, %v3322_v48 }
  0xd7   : > { %v1704_v7 = vmul.f32 %v1703_v41, %v3407_v25  ;;  %v1715_v60 = vmul.f32 %v1714_v42, %v3407_v25  ;;  %v2183_v56 = vadd.f32 0.00028619796, %v2182_v43  ;;  %v2193_v59 = vmul.f32 3.8918573e-05, %v3418_v29 }
  0xd8   : > { %v2656_v57 = vadd.f32 1.0, %v2900_v44  ;;  %v765_v35 = vsub.f32 1.0, %v764_v45  ;;  %v3433_v50 = vadd.f32 %v510_v37, %v394_v26  ;;  %v1240_v61 = vadd.f32 0.4994258, %v1239_v54 }
  0xd9   : > { %v1705_v38 = vadd.f32 0.0036580483, %v1704_v7  ;;  %v1716_v63 = vadd.f32 0.014752088, %v1715_v60  ;;  %v2184_v52 = vmul.f32 %v2183_v56, %v3418_v29  ;;  %vm769_vm3 = vweird.f32 %v2938_v40 }
  0xda   : > { %v2704_v3 = vmul.f32 %v2656_v57, %v3277_v0  ;;  %v766_v5 = vmul.f32 %v2938_v40, %v765_v35  ;;  %v2194_v36 = vadd.f32 0.001143296, %v2193_v59  ;;  %v1241_v9 = vmul.f32 %v1240_v61, %v3322_v48  ;;  %vm770_vm4 = vmor %vm768_vm2, %vm769_vm3 }
  0xdb   : > { %v1706_v10 = vmul.f32 %v1705_v38, %v3407_v25  ;;  %v1717_v49 = vmul.f32 %v1716_v63, %v3407_v25  ;;  %v2185_v22 = vadd.f32 0.0036580483, %v2184_v52  ;;  %v3444_v17 = vmul.f32 0.70710677, %v3433_v50 }
  0xdc   : > { %2752 = vst.msk [vmem:[%s3359_s11 + $0x120] sm:$0xff] %vm306_vm0, %v2704_v3  ;;  %v767_v15 = vadd.f32 %v2938_v40, %v766_v5  ;;  %v2195_v16 = vmul.f32 %v2194_v36, %v3418_v29  ;;  %v424_v0 = vadd.f32 %v3171_v14, %v423_v2  ;;  %v3449_v32 = vadd.f32 1.0, %v1241_v9 }
  0xdd   : > { %v1707_v48 = vadd.f32 0.05243302, %v1706_v10  ;;  %v1718_v18 = vadd.f32 0.112945676, %v1717_v49  ;;  %v2186_v6 = vmul.f32 %v2185_v22, %v3418_v29  ;;  %vm773_vm5 = vcmp.eq.f32.partialorder %v772_v62, 8.507059e+37 }
  0xde   : > { %v771_v23 = vsel %vm770_vm4, %v2938_v40, %v767_v15  ;;  %v2196_v20 = vadd.f32 0.014752088, %v2195_v16  ;;  %v780_v55 = vmul.f32 %v3444_v17, %v3444_v17  ;;  %v3456_v24 = vmul.f32 0.5, %v3247_v31 }
  0xdf   : > { %v776_v26 = vsel %vm773_vm5, %v775_v47, %v771_v23  ;;  %2939 = vrcp.f32 %v3449_v32  ;;  %v3460_v39 = vmul.f32 0.5, %v3345_v21  ;;  %v1708_v13 = vmul.f32 %v1707_v48, %v3407_v25 }
  0xe0   : > { %v777_v27 = vmul.f32 %v776_v26, %v752_v33  ;;  %v1719_v28 = vmul.f32 %v1718_v18, %v3407_v25  ;;  %v3464_v12 = vadd.f32 %v522_v19, %v424_v0  ;;  %v1231_v46 = vadd.f32 1.1283791, %v1230_v51  ;;  %v453_v18 = vpop.f32.mrf.mxu2 }
  0xe1   : > { %v2187_v4 = vadd.f32 0.05243302, %v2186_v6  ;;  %v2197_v30 = vmul.f32 %v2196_v20, %v3418_v29  ;;  %v3467_v62 = vmin.f32 %v780_v55, 16.0  ;;  %v1709_v34 = vadd.f32 0.18741608, %v1708_v13 }
  0xe2   : > { %v2865_v31 = vclamps-f32 %v777_v27, 1.0  ;;  %v1720_v37 = vadd.f32 0.4994258, %v1719_v28  ;;  %v3470_v40 = vmul.f32 0.5, %v3379_v58  ;;  %v3477_v45 = vmul.f32 0.70710677, %v3464_v12 }
  0xe3   : > { %v2198_v21 = vadd.f32 0.112945676, %v2197_v30  ;;  %v782_v33 = vmul.f32 2.1237322e-06, %v3467_v62  ;;  %v793_v41 = vmul.f32 3.8918573e-05, %v3467_v62  ;;  %v2188_v44 = vmul.f32 %v2187_v4, %v3418_v29 }
  0xe4   : > { %v2621_v42 = vadd.f32 1.0, %v2865_v31  ;;  %v1721_v43 = vmul.f32 %v1720_v37, %v3407_v25  ;;  %v1710_v51 = vmul.f32 %v1709_v34, %v3407_v25  ;;  %v1232_v56 = vmul.f32 %v1231_v46, %v3263_v53  ;;  %v534_v31 = vld [vmem:[%s3166_s6 + $0xd0] sm:$0xff] }
  0xe5   : > { %v2940_v47 = vpop.eup %2939  ;;  %v2199_v58 = vmul.f32 %v2198_v21, %v3418_v29  ;;  %v783_v54 = vadd.f32 0.00028619796, %v782_v33  ;;  %v794_v7 = vadd.f32 0.001143296, %v793_v41  ;;  %v1252_v35 = vand.u32 2147483647, %v3449_v32 }
  0xe6   : > { %v2669_v60 = vmul.f32 %v2621_v42, %v3280_v1  ;;  %v1244_v57 = vmul.f32 %v2940_v47, %v3449_v32  ;;  %v1254_v59 = vand.u32 2147483648, %v3449_v32  ;;  %v3486_v61 = vadd.f32 1.0, %v1721_v43 }
  0xe7   : > { %v2200_v38 = vadd.f32 0.4994258, %v2199_v58  ;;  %v784_v63 = vmul.f32 %v783_v54, %v3467_v62  ;;  %v2189_v52 = vadd.f32 0.18741608, %v2188_v44  ;;  %v795_v2 = vmul.f32 %v794_v7, %v3467_v62 }
  0xe8   : > { %2717 = vst.msk [vmem:[%s3359_s11 + $0x8] sm:$0xff] %vm306_vm0, %v2669_v60  ;;  %v1245_v25 = vsub.f32 1.0, %v1244_v57  ;;  %v1260_v53 = vmul.f32 %v3477_v45, %v3477_v45  ;;  %vm1248_vm6 = vweird.f32 %v3449_v32  ;;  %v1711_v1 = vadd.f32 1.1283791, %v1710_v51 }
  0xe9   : > { %2941 = vrcp.f32 %v3486_v61  ;;  %v3497_v3 = vmul.f32 0.5, %v3433_v50  ;;  %vm1249_vm7 = vweird.f32 %v2940_v47  ;;  %v2201_v36 = vmul.f32 %v2200_v38, %v3418_v29 }
  0xea   : > { %v1246_v5 = vmul.f32 %v2940_v47, %v1245_v25  ;;  %v785_v9 = vadd.f32 0.0036580483, %v784_v63  ;;  %vm3500_vm8 = vcmp.eq.f32.partialorder %v1252_v35, 8.507059e+37  ;;  %v1255_v49 = vor.u32 1.1754944e-38, %v1254_v59  ;;  %vm1250_vm9 = vmor %vm1248_vm6, %vm1249_vm7 }
  0xeb   : > { %v796_v22 = vadd.f32 0.014752088, %v795_v2  ;;  %v3504_v15 = vmin.f32 %v1260_v53, 16.0  ;;  %v2190_v0 = vmul.f32 %v2189_v52, %v3418_v29  ;;  %v3507_v48 = vadd.f32 1.0, %v2201_v36 }
  0xec   : > { %v1247_v16 = vadd.f32 %v2940_v47, %v1246_v5  ;;  %v786_v50 = vmul.f32 %v785_v9, %v3467_v62  ;;  %v1712_v6 = vmul.f32 %v1711_v1, %v3387_v8  ;;  %v1732_v19 = vand.u32 2147483647, %v3486_v61 }
  0xed   : > { %v797_v23 = vmul.f32 %v796_v22, %v3467_v62  ;;  %v1262_v20 = vmul.f32 2.1237322e-06, %v3504_v15  ;;  %v1734_v29 = vand.u32 2147483648, %v3486_v61  ;;  %2943 = vrcp.f32 %v3507_v48 }
  0xee   : > { %v1251_v55 = vsel %vm1250_vm9, %v2940_v47, %v1247_v16  ;;  %v1273_v26 = vmul.f32 3.8918573e-05, %v3504_v15  ;;  %v787_v13 = vadd.f32 0.05243302, %v786_v50  ;;  %v454_v28 = vadd.f32 %v3171_v14, %v453_v18  ;;  %v483_v47 = vpop.f32.mrf.mxu3 }
  0xef   : > { %v2942_v27 = vpop.eup %2941  ;;  %v1256_v32 = vsel %vm3500_vm8, %v1255_v49, %v1251_v55  ;;  %v798_v8 = vadd.f32 0.112945676, %v797_v23  ;;  %vm1728_vm10 = vweird.f32 %v3486_v61  ;;  %v2191_v30 = vadd.f32 1.1283791, %v2190_v0  ;;  %v546_v49 = vld [vmem:[%s3166_s6 + $0x130] sm:$0xff] }
  0xf0   : > { %v1257_v46 = vmul.f32 %v1256_v32, %v1232_v56  ;;  %v1724_v4 = vmul.f32 %v2942_v27, %v3486_v61  ;;  %vm3525_vm11 = vcmp.eq.f32.partialorder %v1732_v19, 8.507059e+37  ;;  %v788_v37 = vmul.f32 %v787_v13, %v3467_v62 }
  0xf1   : > { %v799_v21 = vmul.f32 %v798_v8, %v3467_v62  ;;  %v1263_v33 = vadd.f32 0.00028619796, %v1262_v20  ;;  %v1735_v43 = vor.u32 1.1754944e-38, %v1734_v29  ;;  %v1274_v44 = vadd.f32 0.001143296, %v1273_v26 }
  0xf2   : > { %v2877_v41 = vclamps-f32 %v1257_v46, 1.0  ;;  %v1725_v42 = vsub.f32 1.0, %v1724_v4  ;;  %vm1729_vm12 = vweird.f32 %v2942_v27  ;;  %v3532_v54 = vadd.f32 %v534_v31, %v454_v28 }
  0xf3   : > { %v800_v51 = vadd.f32 0.4994258, %v799_v21  ;;  %v1264_v58 = vmul.f32 %v1263_v33, %v3504_v15  ;;  %v2944_v7 = vpop.eup %2943  ;;  %v789_v57 = vadd.f32 0.18741608, %v788_v37  ;;  %v1275_v35 = vmul.f32 %v1274_v44, %v3504_v15  ;;  %vm1730_vm13 = vmor %vm1728_vm10, %vm1729_vm12  ;;  %v395_v33 = vpop.f32.mrf.mxu0 }
  0xf4   : > { %v2633_v60 = vadd.f32 1.0, %v2877_v41  ;;  %v1726_v56 = vmul.f32 %v2942_v27, %v1725_v42  ;;  %v2204_v59 = vmul.f32 %v2944_v7, %v3507_v48  ;;  %v2212_v38 = vand.u32 2147483647, %v3507_v48 }
  0xf5   : > { %v801_v63 = vmul.f32 %v800_v51, %v3467_v62  ;;  %v484_v25 = vadd.f32 %v3171_v14, %v483_v47  ;;  %v1265_v53 = vadd.f32 0.0036580483, %v1264_v58  ;;  %v1276_v1 = vadd.f32 0.014752088, %v1275_v35 }
  0xf6   : > { %v2681_v52 = vmul.f32 %v2633_v60, %v3456_v24  ;;  %v1727_v2 = vadd.f32 %v2942_v27, %v1726_v56  ;;  %v2205_v5 = vsub.f32 1.0, %v2204_v59  ;;  %v2214_v36 = vand.u32 2147483648, %v3507_v48 }
  0xf7   : > { %v3544_v9 = vadd.f32 1.0, %v801_v63  ;;  %v3547_v10 = vmul.f32 0.70710677, %v3532_v54  ;;  %v790_v24 = vmul.f32 %v789_v57, %v3467_v62  ;;  %v1266_v16 = vmul.f32 %v1265_v53, %v3504_v15  ;;  %v511_v63 = vld [vmem:[%s3166_s6 + $0x18] sm:$0xff] }
  0xf8   : > { %2729 = vst.msk [vmem:[%s3359_s11 + $0x68] sm:$0xff] %vm306_vm0, %v2681_v52  ;;  %v1731_v22 = vsel %vm1730_vm13, %v2942_v27, %v1727_v2  ;;  %v1277_v0 = vmul.f32 %v1276_v1, %v3504_v15  ;;  %v2206_v50 = vmul.f32 %v2944_v7, %v2205_v5  ;;  %vm2209_vm14 = vweird.f32 %v2944_v7  ;;  %v425_v5 = vpop.f32.mrf.mxu1 }
  0xf9   : > { %v1736_v61 = vsel %vm3525_vm11, %v1735_v43, %v1731_v22  ;;  %2945 = vrcp.f32 %v3544_v9  ;;  %v2192_v19 = vmul.f32 %v2191_v30, %v3395_v11  ;;  %vm2208_vm15 = vweird.f32 %v3507_v48 }
  0xfa   : > { %v1737_v18 = vmul.f32 %v1736_v61, %v1712_v6  ;;  %v3560_v23 = vadd.f32 %v546_v49, %v484_v25  ;;  %v2207_v20 = vadd.f32 %v2944_v7, %v2206_v50  ;;  %v1267_v62 = vadd.f32 0.05243302, %v1266_v16  ;;  %vm2210_vm1 = vmor %vm2208_vm15, %vm2209_vm14 }
  0xfb   : > { %v1278_v55 = vadd.f32 0.112945676, %v1277_v0  ;;  %v1740_v29 = vmul.f32 %v3547_v10, %v3547_v10  ;;  %vm2213_vm2 = vcmp.eq.f32.partialorder %v2212_v38, 8.507059e+37  ;;  %v2215_v27 = vor.u32 1.1754944e-38, %v2214_v36 }
  0xfc   : > { %v2889_v26 = vclamps-f32 %v1737_v18, 1.0  ;;  %v791_v32 = vadd.f32 1.1283791, %v790_v24  ;;  %v2211_v13 = vsel %vm2210_vm1, %v2944_v7, %v2207_v20  ;;  %v1268_v6 = vmul.f32 %v1267_v62, %v3504_v15 }
  0xfd   : > { %v1279_v11 = vmul.f32 %v1278_v55, %v3504_v15  ;;  %v3566_v8 = vmin.f32 %v1740_v29, 16.0  ;;  %v2216_v28 = vsel %vm2213_vm2, %v2215_v27, %v2211_v13  ;;  %v812_v46 = vand.u32 2147483647, %v3544_v9 }
  0xfe   : > { %v2645_v48 = vadd.f32 1.0, %v2889_v26  ;;  %v3570_v4 = vmul.f32 0.70710677, %v3560_v23  ;;  %v2217_v31 = vmul.f32 %v2216_v28, %v2192_v19  ;;  %v1269_v34 = vadd.f32 0.18741608, %v1268_v6 }
  0xff   : > { %v2946_v30 = vpop.eup %2945  ;;  %v1280_v37 = vadd.f32 0.4994258, %v1279_v11  ;;  %v1742_v21 = vmul.f32 2.1237322e-06, %v3566_v8  ;;  %v814_v43 = vand.u32 2147483648, %v3544_v9  ;;  %v396_v57 = vadd.f32 %v3171_v14, %v395_v33 }
 0x100   : > { %v2693_v41 = vmul.f32 %v2645_v48, %v3460_v39  ;;  %v804_v42 = vmul.f32 %v2946_v30, %v3544_v9  ;;  %v1753_v44 = vmul.f32 3.8918573e-05, %v3566_v8  ;;  %v2901_v47 = vclamps-f32 %v2217_v31, 1.0 }
 0x101   : > { %v1270_v51 = vmul.f32 %v1269_v34, %v3504_v15  ;;  %v1281_v58 = vmul.f32 %v1280_v37, %v3504_v15  ;;  %v1743_v7 = vadd.f32 0.00028619796, %v1742_v21  ;;  %v2220_v39 = vmul.f32 %v3570_v4, %v3570_v4 }
 0x102   : > { %2741 = vst.msk [vmem:[%s3359_s11 + $0xc8] sm:$0xff] %vm306_vm0, %v2693_v41  ;;  %v805_v60 = vsub.f32 1.0, %v804_v42  ;;  %v1754_v56 = vadd.f32 0.001143296, %v1753_v44  ;;  %v2657_v35 = vadd.f32 1.0, %v2901_v47  ;;  %vm809_vm3 = vweird.f32 %v2946_v30 }
 0x103   : > { %v3584_v59 = vadd.f32 1.0, %v1281_v58  ;;  %v1744_v38 = vmul.f32 %v1743_v7, %v3566_v8  ;;  %v1271_v15 = vadd.f32 1.1283791, %v1270_v51  ;;  %v3589_v2 = vmin.f32 %v2220_v39, 16.0 }
 0x104   : > { %v806_v25 = vmul.f32 %v2946_v30, %v805_v60  ;;  %v1755_v52 = vmul.f32 %v1754_v56, %v3566_v8  ;;  %v2705_v53 = vmul.f32 %v2657_v35, %v3470_v40  ;;  %vm808_vm4 = vweird.f32 %v3544_v9 }
 0x105   : > { %v3594_v1 = vmul.f32 0.5, %v3464_v12  ;;  %2947 = vrcp.f32 %v3584_v59  ;;  %vm813_vm5 = vcmp.eq.f32.partialorder %v812_v46, 8.507059e+37  ;;  %v1745_v49 = vadd.f32 0.0036580483, %v1744_v38  ;;  %vm810_vm6 = vmor %vm808_vm4, %vm809_vm3 }
 0x106   : > { %v807_v36 = vadd.f32 %v2946_v30, %v806_v25  ;;  %v3597_v22 = vadd.f32 %v511_v63, %v396_v57  ;;  %2753 = vst.msk [vmem:[%s3359_s11 + $0x128] sm:$0xff] %vm306_vm0, %v2705_v53  ;;  %v792_v24 = vmul.f32 %v791_v32, %v3444_v17  ;;  %v815_v40 = vor.u32 1.1754944e-38, %v814_v43  ;;  %v523_v17 = vld [vmem:[%s3166_s6 + $0x78] sm:$0xff] }
 0x107   : > { %v1756_v9 = vadd.f32 0.014752088, %v1755_v52  ;;  %v2222_v12 = vmul.f32 2.1237322e-06, %v3589_v2  ;;  %v1272_v0 = vmul.f32 %v1271_v15, %v3477_v45  ;;  %v1746_v61 = vmul.f32 %v1745_v49, %v3566_v8  ;;  %v455_v15 = vpop.f32.mrf.mxu2 }
 0x108   : > { %v811_v16 = vsel %vm810_vm6, %v2946_v30, %v807_v36  ;;  %v426_v50 = vadd.f32 %v3171_v14, %v425_v5  ;;  %v2233_v62 = vmul.f32 3.8918573e-05, %v3589_v2  ;;  %vm1288_vm7 = vweird.f32 %v3584_v59 }
 0x109   : > { %v816_v18 = vsel %vm813_vm5, %v815_v40, %v811_v16  ;;  %v1757_v19 = vmul.f32 %v1756_v9, %v3566_v8  ;;  %v2223_v20 = vadd.f32 0.00028619796, %v2222_v12  ;;  %v1292_v29 = vand.u32 2147483647, %v3584_v59 }
 0x10a   : > { %v817_v55 = vmul.f32 %v816_v18, %v792_v24  ;;  %v1747_v26 = vadd.f32 0.05243302, %v1746_v61  ;;  %v3613_v27 = vmul.f32 0.70710677, %v3597_v22  ;;  %v1294_v32 = vand.u32 2147483648, %v3584_v59 }
 0x10b   : > { %v2948_v45 = vpop.eup %2947  ;;  %v1758_v14 = vadd.f32 0.112945676, %v1757_v19  ;;  %v2224_v13 = vmul.f32 %v2223_v20, %v3589_v2  ;;  %v2234_v6 = vadd.f32 0.001143296, %v2233_v62  ;;  %v571_v46 = vadd.f32 %v523_v17, %v426_v50  ;;  %v535_v20 = vld [vmem:[%s3166_s6 + $0xd8] sm:$0xff] }
 0x10c   : > { %v2866_v11 = vclamps-f32 %v817_v55, 1.0  ;;  %v1284_v48 = vmul.f32 %v2948_v45, %v3584_v59  ;;  %v1748_v28 = vmul.f32 %v1747_v26, %v3566_v8  ;;  %v820_v37 = vmul.f32 %v3613_v27, %v3613_v27  ;;  %v3659_v59 = vld [vmem:[%s5070_s3] ss:$0 sm:$0xff] }
 0x10d   : > { %v1759_v30 = vmul.f32 %v1758_v14, %v3566_v8  ;;  %v2225_v31 = vadd.f32 0.0036580483, %v2224_v13  ;;  %v2235_v34 = vmul.f32 %v2234_v6, %v3589_v2  ;;  %vm1289_vm8 = vweird.f32 %v2948_v45 }
 0x10e   : > { %v2622_v21 = vadd.f32 1.0, %v2866_v11  ;;  %v1285_v33 = vsub.f32 1.0, %v1284_v48  ;;  %vm3623_vm9 = vcmp.eq.f32.partialorder %v1292_v29, 8.507059e+37  ;;  %v3628_v47 = vmin.f32 %v820_v37, 16.0  ;;  %vm1290_vm10 = vmor %vm1288_vm7, %vm1289_vm8 }
 0x10f   : > { %v1760_v42 = vadd.f32 0.4994258, %v1759_v30  ;;  %v2226_v43 = vmul.f32 %v2225_v31, %v3589_v2  ;;  %v2236_v44 = vadd.f32 0.014752088, %v2235_v34  ;;  %v1749_v7 = vadd.f32 0.18741608, %v1748_v28 }
 0x110   : > { %v2670_v51 = vmul.f32 %v2622_v21, %v3497_v3  ;;  %v1286_v58 = vmul.f32 %v2948_v45, %v1285_v33  ;;  %v3631_v60 = vmul.f32 0.70710677, %v571_v46  ;;  %v822_v35 = vmul.f32 2.1237322e-06, %v3628_v47 }
 0x111   : > { %v1761_v56 = vmul.f32 %v1760_v42, %v3566_v8  ;;  %v2227_v39 = vadd.f32 0.05243302, %v2226_v43  ;;  %v2237_v57 = vmul.f32 %v2236_v44, %v3589_v2  ;;  %v1295_v63 = vor.u32 1.1754944e-38, %v1294_v32  ;;  %v547_v42 = vld [vmem:[%s3166_s6 + $0x138] sm:$0xff] }
 0x112   : > { %2718 = vst.msk [vmem:[%s3359_s11 + $0x10] sm:$0xff] %vm306_vm0, %v2670_v51  ;;  %v1287_v38 = vadd.f32 %v2948_v45, %v1286_v58  ;;  %v833_v25 = vmul.f32 3.8918573e-05, %v3628_v47  ;;  %v1300_v3 = vmul.f32 %v3631_v60, %v3631_v60  ;;  %v823_v36 = vadd.f32 0.00028619796, %v822_v35 }
 0x113   : > { %v3644_v52 = vadd.f32 1.0, %v1761_v56  ;;  %v2228_v53 = vmul.f32 %v2227_v39, %v3589_v2  ;;  %v2238_v5 = vadd.f32 0.112945676, %v2237_v57  ;;  %v1750_v24 = vmul.f32 %v1749_v7, %v3566_v8 }
 0x114   : > { %v1291_v49 = vsel %vm1290_vm10, %v2948_v45, %v1287_v38  ;;  %v834_v40 = vadd.f32 0.001143296, %v833_v25  ;;  %v3648_v9 = vmin.f32 %v1300_v3, 16.0  ;;  %v3653_v16 = vmul.f32 0.5, %v3532_v54 }
 0x115   : > { %v1296_v12 = vsel %vm3623_vm9, %v1295_v63, %v1291_v49  ;;  %2949 = vrcp.f32 %v3644_v52  ;;  %v456_v61 = vadd.f32 %v3659_v59, %v455_v15  ;;  %v3663_v8 = vmul.f32 0.5, %v3560_v23  ;;  %v485_v23 = vpop.f32.mrf.mxu3 }
 0x116   : > { %v1297_v50 = vmul.f32 %v1296_v12, %v1272_v0  ;;  %v2229_v18 = vadd.f32 0.18741608, %v2228_v53  ;;  %v2239_v19 = vmul.f32 %v2238_v5, %v3589_v2  ;;  %v3668_v54 = vmul.f32 0.5, %v3597_v22 }
 0x117   : > { %v824_v62 = vmul.f32 %v823_v36, %v3628_v47  ;;  %v835_v17 = vmul.f32 %v834_v40, %v3628_v47  ;;  %v1302_v55 = vmul.f32 2.1237322e-06, %v3648_v9  ;;  %v1751_v26 = vadd.f32 1.1283791, %v1750_v24 }
 0x118   : > { %v2878_v29 = vclamps-f32 %v1297_v50, 1.0  ;;  %v2240_v45 = vadd.f32 0.4994258, %v2239_v19  ;;  %v3673_v0 = vmul.f32 0.5, %v571_v46  ;;  %v583_v6 = vadd.f32 %v535_v20, %v456_v61 }
 0x119   : > { %v825_v32 = vadd.f32 0.0036580483, %v824_v62  ;;  %v836_v14 = vadd.f32 0.014752088, %v835_v17  ;;  %v1303_v13 = vadd.f32 0.00028619796, %v1302_v55  ;;  %v2230_v22 = vmul.f32 %v2229_v18, %v3589_v2  ;;  %v398_v18 = vpop.f32.mrf.mxu0 }
 0x11a   : > { %v2634_v11 = vadd.f32 1.0, %v2878_v29  ;;  %v2241_v48 = vmul.f32 %v2240_v45, %v3589_v2  ;;  %v1313_v28 = vmul.f32 3.8918573e-05, %v3648_v9  ;;  %v486_v37 = vadd.f32 %v3659_v59, %v485_v23 }
 0x11b   : > { %v2950_v30 = vpop.eup %2949  ;;  %v826_v31 = vmul.f32 %v825_v32, %v3628_v47  ;;  %v837_v46 = vmul.f32 %v836_v14, %v3628_v47  ;;  %v1304_v34 = vmul.f32 %v1303_v13, %v3648_v9  ;;  %v1752_v33 = vmul.f32 %v1751_v26, %v3547_v10 }
 0x11c   : > { %v2682_v21 = vmul.f32 %v2634_v11, %v3594_v1  ;;  %v1764_v41 = vmul.f32 %v2950_v30, %v3644_v52  ;;  %v1772_v2 = vand.u32 2147483647, %v3644_v52  ;;  %v1774_v43 = vand.u32 2147483648, %v3644_v52 }
 0x11d   : > { %v3688_v44 = vadd.f32 1.0, %v2241_v48  ;;  %v827_v51 = vadd.f32 0.05243302, %v826_v31  ;;  %v838_v58 = vadd.f32 0.112945676, %v837_v46  ;;  %vm1768_vm11 = vweird.f32 %v3644_v52 }
 0x11e   : > { %2730 = vst.msk [vmem:[%s3359_s11 + $0x70] sm:$0xff] %vm306_vm0, %v2682_v21  ;;  %v1765_v7 = vsub.f32 1.0, %v1764_v41  ;;  %v1305_v56 = vadd.f32 0.0036580483, %v1304_v34  ;;  %v1314_v1 = vadd.f32 0.001143296, %v1313_v28  ;;  %vm1769_vm12 = vweird.f32 %v2950_v30 }
 0x11f   : > { %v2231_v10 = vadd.f32 1.1283791, %v2230_v22  ;;  %2951 = vrcp.f32 %v3688_v44  ;;  %v3694_v39 = vadd.f32 %v547_v42, %v486_v37  ;;  %v828_v35 = vmul.f32 %v827_v51, %v3628_v47  ;;  %vm1770_vm14 = vmor %vm1768_vm11, %vm1769_vm12 }
 0x120   : > { %v1766_v57 = vmul.f32 %v2950_v30, %v1765_v7  ;;  %v839_v38 = vmul.f32 %v838_v58, %v3628_v47  ;;  %v1306_v63 = vmul.f32 %v1305_v56, %v3648_v9  ;;  %vm3699_vm13 = vcmp.eq.f32.partialorder %v1772_v2, 8.507059e+37 }
 0x121   : > { %v1775_v3 = vor.u32 1.1754944e-38, %v1774_v43  ;;  %v1315_v15 = vmul.f32 %v1314_v1, %v3648_v9  ;;  %v3704_v53 = vmul.f32 0.70710677, %v583_v6  ;;  %v829_v36 = vadd.f32 0.18741608, %v828_v35 }
 0x122   : > { %v1767_v5 = vadd.f32 %v2950_v30, %v1766_v57  ;;  %v840_v49 = vadd.f32 0.4994258, %v839_v38  ;;  %v1307_v24 = vadd.f32 0.05243302, %v1306_v63  ;;  %v3709_v12 = vmul.f32 0.5, %v583_v6 }
 0x123   : > { %v1316_v40 = vadd.f32 0.014752088, %v1315_v15  ;;  %v1780_v61 = vmul.f32 %v3704_v53, %v3704_v53  ;;  %v3714_v50 = vmul.f32 0.70710677, %v3694_v39  ;;  %v2232_v20 = vmul.f32 %v2231_v10, %v3570_v4 }
 0x124   : > { %v1771_v19 = vsel %vm1770_vm14, %v2950_v30, %v1767_v5  ;;  %v830_v62 = vmul.f32 %v829_v36, %v3628_v47  ;;  %v841_v17 = vmul.f32 %v840_v49, %v3628_v47  ;;  %v1308_v4 = vmul.f32 %v1307_v24, %v3648_v9 }
 0x125   : > { %v2952_v55 = vpop.eup %2951  ;;  %v1776_v52 = vsel %vm3699_vm13, %v1775_v3, %v1771_v19  ;;  %v1317_v29 = vmul.f32 %v1316_v40, %v3648_v9  ;;  %v3722_v26 = vmin.f32 %v1780_v61, 16.0  ;;  %v2260_v45 = vmul.f32 %v3714_v50, %v3714_v50  ;;  %v512_v40 = vld [vmem:[%s3166_s6 + $0x20] sm:$0xff] }
 0x126   : > { %v1777_v23 = vmul.f32 %v1776_v52, %v1752_v33  ;;  %v2244_v32 = vmul.f32 %v2952_v55, %v3688_v44  ;;  %v399_v14 = vadd.f32 %v3659_v59, %v398_v18  ;;  %v2252_v47 = vand.u32 2147483647, %v3688_v44 }
 0x127   : > { %v2254_v13 = vand.u32 2147483648, %v3688_v44  ;;  %v3731_v6 = vadd.f32 1.0, %v841_v17  ;;  %v1318_v11 = vadd.f32 0.112945676, %v1317_v29  ;;  %v831_v28 = vadd.f32 1.1283791, %v830_v62 }
 0x128   : > { %v2890_v22 = vclamps-f32 %v1777_v23, 1.0  ;;  %v2245_v48 = vsub.f32 1.0, %v2244_v32  ;;  %v1782_v30 = vmul.f32 2.1237322e-06, %v3722_v26  ;;  %vm2248_vm15 = vweird.f32 %v3688_v44 }
 0x129   : > { %vm2249_vm1 = vweird.f32 %v2952_v55  ;;  %2953 = vrcp.f32 %v3731_v6  ;;  %v3736_v31 = vmin.f32 %v2260_v45, 16.0  ;;  %v1309_v37 = vadd.f32 0.18741608, %v1308_v4 }
 0x12a   : > { %v2646_v46 = vadd.f32 1.0, %v2890_v22  ;;  %v2246_v34 = vmul.f32 %v2952_v55, %v2245_v48  ;;  %v1319_v21 = vmul.f32 %v1318_v11, %v3648_v9  ;;  %vm3739_vm2 = vcmp.eq.f32.partialorder %v2252_v47, 8.507059e+37  ;;  %vm2250_vm3 = vmor %vm2248_vm15, %vm2249_vm1  ;;  %v428_v22 = vpop.f32.mrf.mxu1 }
 0x12b   : > { %v2255_v41 = vor.u32 1.1754944e-38, %v2254_v13  ;;  %v1783_v2 = vadd.f32 0.00028619796, %v1782_v30  ;;  %v1793_v42 = vmul.f32 3.8918573e-05, %v3722_v26  ;;  %v3746_v58 = vmul.f32 %v831_v28, %v3613_v27 }
 0x12c   : > { %v2694_v43 = vmul.f32 %v2646_v46, %v3653_v16  ;;  %v2247_v51 = vadd.f32 %v2952_v55, %v2246_v34  ;;  %v1320_v7 = vadd.f32 0.4994258, %v1319_v21  ;;  %v2262_v10 = vmul.f32 2.1237322e-06, %v3736_v31 }
 0x12d   : > { %v1784_v56 = vmul.f32 %v1783_v2, %v3722_v26  ;;  %v1794_v1 = vadd.f32 0.001143296, %v1793_v42  ;;  %v2273_v57 = vmul.f32 3.8918573e-05, %v3736_v31  ;;  %v852_v35 = vand.u32 2147483647, %v3731_v6 }
 0x12e   : > { %2742 = vst.msk [vmem:[%s3359_s11 + $0xd0] sm:$0xff] %vm306_vm0, %v2694_v43  ;;  %v2251_v16 = vsel %vm2250_vm3, %v2952_v55, %v2247_v51  ;;  %v1310_v27 = vmul.f32 %v1309_v37, %v3648_v9  ;;  %v1321_v38 = vmul.f32 %v1320_v7, %v3648_v9  ;;  %v2263_v15 = vadd.f32 0.00028619796, %v2262_v10  ;;  %v524_v42 = vld [vmem:[%s3166_s6 + $0x80] sm:$0xff] }
 0x12f   : > { %v2954_v63 = vpop.eup %2953  ;;  %v2256_v44 = vsel %vm3739_vm2, %v2255_v41, %v2251_v16  ;;  %v1785_v25 = vadd.f32 0.0036580483, %v1784_v56  ;;  %v1795_v3 = vmul.f32 %v1794_v1, %v3722_v26  ;;  %v854_v49 = vand.u32 2147483648, %v3731_v6 }
 0x130   : > { %v2257_v5 = vmul.f32 %v2256_v44, %v2232_v20  ;;  %v844_v36 = vmul.f32 %v2954_v63, %v3731_v6  ;;  %v3764_v24 = vadd.f32 1.0, %v1321_v38  ;;  %v2264_v9 = vmul.f32 %v2263_v15, %v3736_v31 }
 0x131   : > { %v1786_v61 = vmul.f32 %v1785_v25, %v3722_v26  ;;  %v1796_v18 = vadd.f32 0.014752088, %v1795_v3  ;;  %v2274_v19 = vadd.f32 0.001143296, %v2273_v57  ;;  %v1311_v55 = vadd.f32 1.1283791, %v1310_v27 }
 0x132   : > { %v2902_v62 = vclamps-f32 %v2257_v5, 1.0  ;;  %v845_v17 = vsub.f32 1.0, %v844_v36  ;;  %2955 = vrcp.f32 %v3764_v24  ;;  %vm849_vm4 = vweird.f32 %v2954_v63 }
 0x133   : > { %v1787_v20 = vadd.f32 0.05243302, %v1786_v61  ;;  %v1797_v52 = vmul.f32 %v1796_v18, %v3722_v26  ;;  %v3771_v29 = vadd.f32 %v512_v40, %v399_v14  ;;  %v2265_v32 = vadd.f32 0.0036580483, %v2264_v9 }
 0x134   : > { %v2658_v45 = vadd.f32 1.0, %v2902_v62  ;;  %v846_v23 = vmul.f32 %v2954_v63, %v845_v17  ;;  %v2275_v4 = vmul.f32 %v2274_v19, %v3736_v31  ;;  %vm848_vm5 = vweird.f32 %v3731_v6 }
 0x135   : > { %vm3775_vm6 = vcmp.eq.f32.partialorder %v852_v35, 8.507059e+37  ;;  %v1788_v13 = vmul.f32 %v1787_v20, %v3722_v26  ;;  %v1798_v11 = vadd.f32 0.112945676, %v1797_v52  ;;  %v2266_v28 = vmul.f32 %v2265_v32, %v3736_v31  ;;  %vm850_vm7 = vmor %vm848_vm5, %vm849_vm4  ;;  %v458_v32 = vpop.f32.mrf.mxu2 }
 0x136   : > { %v2706_v14 = vmul.f32 %v2658_v45, %v3663_v8  ;;  %v847_v48 = vadd.f32 %v2954_v63, %v846_v23  ;;  %v2276_v30 = vadd.f32 0.014752088, %v2275_v4  ;;  %v855_v46 = vor.u32 1.1754944e-38, %v854_v49 }
 0x137   : > { %v1312_v6 = vmul.f32 %v1311_v55, %v3631_v60  ;;  %v1799_v34 = vmul.f32 %v1798_v11, %v3722_v26  ;;  %v3786_v37 = vmul.f32 0.70710677, %v3771_v29  ;;  %v2267_v41 = vadd.f32 0.05243302, %v2266_v28 }
 0x138   : > { %v2956_v21 = vpop.eup %2955  ;;  %2754 = vst.msk [vmem:[%s3359_s11 + $0x130] sm:$0xff] %vm306_vm0, %v2706_v14  ;;  %v851_v33 = vsel %vm850_vm7, %v2954_v63, %v847_v48  ;;  %v2277_v8 = vmul.f32 %v2276_v30, %v3736_v31  ;;  %v429_v2 = vadd.f32 %v3659_v59, %v428_v22  ;;  %v1332_v51 = vand.u32 2147483647, %v3764_v24 }
 0x139   : > { %v856_v43 = vsel %vm3775_vm6, %v855_v46, %v851_v33  ;;  %v1324_v60 = vmul.f32 %v2956_v21, %v3764_v24  ;;  %v1789_v7 = vadd.f32 0.18741608, %v1788_v13  ;;  %v1800_v1 = vadd.f32 0.4994258, %v1799_v34  ;;  %v536_v33 = vld [vmem:[%s3166_s6 + $0xe0] sm:$0xff] }
 0x13a   : > { %v857_v56 = vmul.f32 %v856_v43, %v3746_v58  ;;  %v2268_v10 = vmul.f32 %v2267_v41, %v3736_v31  ;;  %v2278_v57 = vadd.f32 0.112945676, %v2277_v8  ;;  %v1334_v35 = vand.u32 2147483648, %v3764_v24 }
 0x13b   : > { %v1325_v16 = vsub.f32 1.0, %v1324_v60  ;;  %v860_v27 = vmul.f32 %v3786_v37, %v3786_v37  ;;  %v3802_v38 = vadd.f32 %v524_v42, %v429_v2  ;;  %v1801_v44 = vmul.f32 %v1800_v1, %v3722_v26 }
 0x13c   : > { %v2867_v63 = vclamps-f32 %v857_v56, 1.0  ;;  %v2269_v25 = vadd.f32 0.18741608, %v2268_v10  ;;  %v2279_v3 = vmul.f32 %v2278_v57, %v3736_v31  ;;  %vm1329_vm8 = vweird.f32 %v2956_v21 }
 0x13d   : > { %v1326_v15 = vmul.f32 %v2956_v21, %v1325_v16  ;;  %v1790_v58 = vmul.f32 %v1789_v7, %v3722_v26  ;;  %v3807_v5 = vmin.f32 %v860_v27, 16.0  ;;  %vm1328_vm9 = vweird.f32 %v3764_v24 }
 0x13e   : > { %v2623_v36 = vadd.f32 1.0, %v2867_v63  ;;  %v3810_v49 = vadd.f32 1.0, %v1801_v44  ;;  %v2280_v40 = vadd.f32 0.4994258, %v2279_v3  ;;  %v1335_v18 = vor.u32 1.1754944e-38, %v1334_v35  ;;  %vm1330_vm10 = vmor %vm1328_vm9, %vm1329_vm8 }
 0x13f   : > { %v1327_v61 = vadd.f32 %v2956_v21, %v1326_v15  ;;  %v862_v9 = vmul.f32 2.1237322e-06, %v3807_v5  ;;  %v873_v19 = vmul.f32 3.8918573e-05, %v3807_v5  ;;  %v2270_v26 = vmul.f32 %v2269_v25, %v3736_v31 }
 0x140   : > { %v2671_v62 = vmul.f32 %v2623_v36, %v3668_v54  ;;  %2957 = vrcp.f32 %v3810_v49  ;;  %v3818_v17 = vmul.f32 0.70710677, %v3802_v38  ;;  %vm1333_vm11 = vcmp.eq.f32.partialorder %v1332_v51, 8.507059e+37 }
 0x141   : > { %v1331_v24 = vsel %vm1330_vm10, %v2956_v21, %v1327_v61  ;;  %v1791_v55 = vadd.f32 1.1283791, %v1790_v58  ;;  %v2281_v20 = vmul.f32 %v2280_v40, %v3736_v31  ;;  %v3824_v45 = vmul.f32 0.5, %v3694_v39 }
 0x142   : > { %2719 = vst.msk [vmem:[%s3359_s11 + $0x18] sm:$0xff] %vm306_vm0, %v2671_v62  ;;  %v1336_v52 = vsel %vm1333_vm11, %v1335_v18, %v1331_v24  ;;  %v863_v54 = vadd.f32 0.00028619796, %v862_v9  ;;  %v874_v23 = vadd.f32 0.001143296, %v873_v19  ;;  %v1814_v13 = vand.u32 2147483648, %v3810_v49  ;;  %v488_v62 = vpop.f32.mrf.mxu3 }
 0x143   : > { %v1337_v4 = vmul.f32 %v1336_v52, %v1312_v6  ;;  %v1812_v47 = vand.u32 2147483647, %v3810_v49  ;;  %v3828_v11 = vadd.f32 1.0, %v2281_v20  ;;  %v2271_v22 = vadd.f32 1.1283791, %v2270_v26 }
 0x144   : > { %v864_v31 = vmul.f32 %v863_v54, %v3807_v5  ;;  %v875_v14 = vmul.f32 %v874_v23, %v3807_v5  ;;  %v1340_v39 = vmul.f32 %v3818_v17, %v3818_v17  ;;  %v1792_v28 = vmul.f32 %v1791_v55, %v3704_v53 }
 0x145   : > { %v2879_v48 = vclamps-f32 %v1337_v4, 1.0  ;;  %2959 = vrcp.f32 %v3828_v11  ;;  %v459_v30 = vadd.f32 %v3659_v59, %v458_v32  ;;  %vm1808_vm12 = vweird.f32 %v3810_v49 }
 0x146   : > { %v2958_v46 = vpop.eup %2957  ;;  %v865_v6 = vadd.f32 0.0036580483, %v864_v31  ;;  %v876_v34 = vadd.f32 0.014752088, %v875_v14  ;;  %v3838_v21 = vmin.f32 %v1340_v39, 16.0  ;;  %vm3842_vm13 = vcmp.eq.f32.partialorder %v1812_v47, 8.507059e+37 }
 0x147   : > { %v2635_v41 = vadd.f32 1.0, %v2879_v48  ;;  %v1804_v8 = vmul.f32 %v2958_v46, %v3810_v49  ;;  %v1815_v53 = vor.u32 1.1754944e-38, %v1814_v13  ;;  %v2272_v42 = vmul.f32 %v2271_v22, %v3714_v50  ;;  %v548_v48 = vld [vmem:[%s3166_s6 + $0x140] sm:$0xff] }
 0x148   : > { %v866_v43 = vmul.f32 %v865_v6, %v3807_v5  ;;  %v877_v60 = vmul.f32 %v876_v34, %v3807_v5  ;;  %v1342_v51 = vmul.f32 2.1237322e-06, %v3838_v21  ;;  %v1353_v1 = vmul.f32 3.8918573e-05, %v3838_v21 }
 0x149   : > { %v2683_v7 = vmul.f32 %v2635_v41, %v3673_v0  ;;  %v1805_v56 = vsub.f32 1.0, %v1804_v8  ;;  %v584_v10 = vadd.f32 %v536_v33, %v459_v30  ;;  %vm2288_vm14 = vweird.f32 %v3828_v11 }
 0x14a   : > { %v867_v57 = vadd.f32 0.05243302, %v866_v43  ;;  %v878_v16 = vadd.f32 0.112945676, %v877_v60  ;;  %v1343_v35 = vadd.f32 0.00028619796, %v1342_v51  ;;  %vm1809_vm15 = vweird.f32 %v2958_v46 }
 0x14b   : > { %v2960_v27 = vpop.eup %2959  ;;  %2731 = vst.msk [vmem:[%s3359_s11 + $0x78] sm:$0xff] %vm306_vm0, %v2683_v7  ;;  %v1806_v50 = vmul.f32 %v2958_v46, %v1805_v56  ;;  %v1354_v63 = vadd.f32 0.001143296, %v1353_v1  ;;  %v3855_v44 = vmul.f32 0.70710677, %v584_v10  ;;  %vm1810_vm1 = vmor %vm1808_vm12, %vm1809_vm15  ;;  %v2294_v9 = vand.u32 2147483648, %v3828_v11 }
 0x14c   : > { %v2284_v25 = vmul.f32 %v2960_v27, %v3828_v11  ;;  %v2292_v0 = vand.u32 2147483647, %v3828_v11  ;;  %v868_v3 = vmul.f32 %v867_v57, %v3807_v5  ;;  %v879_v15 = vmul.f32 %v878_v16, %v3807_v5  ;;  %v400_v57 = vpop.f32.mrf.mxu0 }
 0x14d   : > { %v1807_v58 = vadd.f32 %v2958_v46, %v1806_v50  ;;  %v1344_v36 = vmul.f32 %v1343_v35, %v3838_v21  ;;  %v1355_v40 = vmul.f32 %v1354_v63, %v3838_v21  ;;  %v1820_v61 = vmul.f32 %v3855_v44, %v3855_v44 }
 0x14e   : > { %v2285_v18 = vsub.f32 1.0, %v2284_v25  ;;  %vm2289_vm2 = vweird.f32 %v2960_v27  ;;  %v880_v19 = vadd.f32 0.4994258, %v879_v15  ;;  %v869_v23 = vadd.f32 0.18741608, %v868_v3 }
 0x14f   : > { %v1811_v26 = vsel %vm1810_vm1, %v2958_v46, %v1807_v58  ;;  %v1345_v24 = vadd.f32 0.0036580483, %v1344_v36  ;;  %v1356_v55 = vadd.f32 0.014752088, %v1355_v40  ;;  %v3868_v20 = vmin.f32 %v1820_v61, 16.0  ;;  %vm2290_vm3 = vmor %vm2288_vm14, %vm2289_vm2  ;;  %v513_v61 = vld [vmem:[%s3166_s6 + $0x28] sm:$0xff] }
 0x150   : > { %v1816_v52 = vsel %vm3842_vm13, %v1815_v53, %v1811_v26  ;;  %v2286_v54 = vmul.f32 %v2960_v27, %v2285_v18  ;;  %v881_v49 = vmul.f32 %v880_v19, %v3807_v5  ;;  %v489_v13 = vadd.f32 %v3659_v59, %v488_v62 }
 0x151   : > { %v1817_v32 = vmul.f32 %v1816_v52, %v1792_v28  ;;  %v1346_v4 = vmul.f32 %v1345_v24, %v3838_v21  ;;  %v1357_v47 = vmul.f32 %v1356_v55, %v3838_v21  ;;  %v1822_v14 = vmul.f32 2.1237322e-06, %v3868_v20 }
 0x152   : > { %v2287_v22 = vadd.f32 %v2960_v27, %v2286_v54  ;;  %v3876_v31 = vadd.f32 1.0, %v881_v49  ;;  %v1833_v39 = vmul.f32 3.8918573e-05, %v3868_v20  ;;  %v2295_v28 = vor.u32 1.1754944e-38, %v2294_v9 }
 0x153   : > { %v2891_v30 = vclamps-f32 %v1817_v32, 1.0  ;;  %v1347_v46 = vadd.f32 0.05243302, %v1346_v4  ;;  %v1358_v6 = vadd.f32 0.112945676, %v1357_v47  ;;  %vm2293_vm4 = vcmp.eq.f32.partialorder %v2292_v0, 8.507059e+37  ;;  %v430_v4 = vpop.f32.mrf.mxu1 }
 0x154   : > { %v2291_v34 = vsel %vm2290_vm3, %v2960_v27, %v2287_v22  ;;  %v870_v33 = vmul.f32 %v869_v23, %v3807_v5  ;;  %2961 = vrcp.f32 %v3876_v31  ;;  %v3887_v2 = vmul.f32 0.5, %v3771_v29 }
 0x155   : > { %v2647_v41 = vadd.f32 1.0, %v2891_v30  ;;  %v2296_v8 = vsel %vm2293_vm4, %v2295_v28, %v2291_v34  ;;  %v596_v53 = vadd.f32 %v548_v48, %v489_v13  ;;  %v1348_v11 = vmul.f32 %v1347_v46, %v3838_v21 }
 0x156   : > { %v2297_v43 = vmul.f32 %v2296_v8, %v2272_v42  ;;  %v1359_v60 = vmul.f32 %v1358_v6, %v3838_v21  ;;  %v1823_v51 = vadd.f32 0.00028619796, %v1822_v14  ;;  %v3893_v56 = vmul.f32 0.5, %v3802_v38 }
 0x157   : > { %v2695_v7 = vmul.f32 %v2647_v41, %v3709_v12  ;;  %v3895_v5 = vmul.f32 0.5, %v584_v10  ;;  %v1834_v1 = vadd.f32 0.001143296, %v1833_v39  ;;  %v871_v35 = vadd.f32 1.1283791, %v870_v33 }
 0x158   : > { %v2903_v16 = vclamps-f32 %v2297_v43, 1.0  ;;  %v1360_v29 = vadd.f32 0.4994258, %v1359_v60  ;;  %v1824_v42 = vmul.f32 %v1823_v51, %v3868_v20  ;;  %v1349_v27 = vadd.f32 0.18741608, %v1348_v11  ;;  %v525_v60 = vld [vmem:[%s3166_s6 + $0x88] sm:$0xff] }
 0x159   : > { %2743 = vst.msk [vmem:[%s3359_s11 + $0xd8] sm:$0xff] %vm306_vm0, %v2695_v7  ;;  %v1835_v50 = vmul.f32 %v1834_v1, %v3868_v20  ;;  %v3901_v63 = vmul.f32 0.5, %v596_v53  ;;  %v3903_v12 = vmul.f32 0.70710677, %v596_v53  ;;  %v401_v3 = vadd.f32 %v3659_v59, %v400_v57 }
 0x15a   : > { %v2962_v38 = vpop.eup %2961  ;;  %v2659_v10 = vadd.f32 1.0, %v2903_v16  ;;  %v1361_v25 = vmul.f32 %v1360_v29, %v3838_v21  ;;  %v1825_v0 = vadd.f32 0.0036580483, %v1824_v42  ;;  %v892_v58 = vand.u32 2147483647, %v3876_v31 }
 0x15b   : > { %v884_v15 = vmul.f32 %v2962_v38, %v3876_v31  ;;  %v1836_v36 = vadd.f32 0.014752088, %v1835_v50  ;;  %v2300_v40 = vmul.f32 %v3903_v12, %v3903_v12  ;;  %v894_v9 = vand.u32 2147483648, %v3876_v31 }
 0x15c   : > { %v2707_v18 = vmul.f32 %v2659_v10, %v3824_v45  ;;  %v3914_v19 = vadd.f32 1.0, %v1361_v25  ;;  %v1826_v62 = vmul.f32 %v1825_v0, %v3868_v20  ;;  %v1350_v24 = vmul.f32 %v1349_v27, %v3838_v21  ;;  %v460_v25 = vpop.f32.mrf.mxu2 }
 0x15d   : > { %v885_v26 = vsub.f32 1.0, %v884_v15  ;;  %v1837_v55 = vmul.f32 %v1836_v36, %v3868_v20  ;;  %v3919_v52 = vmin.f32 %v2300_v40, 16.0  ;;  %v872_v54 = vmul.f32 %v871_v35, %v3786_v37 }
 0x15e   : > { %2755 = vst.msk [vmem:[%s3359_s11 + $0x138] sm:$0xff] %vm306_vm0, %v2707_v18  ;;  %vm888_vm5 = vweird.f32 %v3876_v31  ;;  %2963 = vrcp.f32 %v3914_v19  ;;  %v3926_v45 = vadd.f32 %v513_v61, %v401_v3  ;;  %vm889_vm6 = vweird.f32 %v2962_v38 }
 0x15f   : > { %v886_v23 = vmul.f32 %v2962_v38, %v885_v26  ;;  %v1827_v49 = vadd.f32 0.05243302, %v1826_v62  ;;  %v1838_v32 = vadd.f32 0.112945676, %v1837_v55  ;;  %vm3928_vm7 = vcmp.eq.f32.partialorder %v892_v58, 8.507059e+37  ;;  %vm890_vm8 = vmor %vm888_vm5, %vm889_vm6 }
 0x160   : > { %v895_v47 = vor.u32 1.1754944e-38, %v894_v9  ;;  %v2302_v13 = vmul.f32 2.1237322e-06, %v3919_v52  ;;  %v2313_v37 = vmul.f32 3.8918573e-05, %v3919_v52  ;;  %v431_v6 = vadd.f32 %v3659_v59, %v430_v4 }
 0x161   : > { %v887_v22 = vadd.f32 %v2962_v38, %v886_v23  ;;  %v1351_v14 = vadd.f32 1.1283791, %v1350_v24  ;;  %v1828_v39 = vmul.f32 %v1827_v49, %v3868_v20  ;;  %v1839_v48 = vmul.f32 %v1838_v32, %v3868_v20 }
 0x162   : > { %v2303_v30 = vadd.f32 0.00028619796, %v2302_v13  ;;  %v2314_v28 = vadd.f32 0.001143296, %v2313_v37  ;;  %v3939_v46 = vmul.f32 0.70710677, %v3926_v45  ;;  %vm1368_vm9 = vweird.f32 %v3914_v19 }
 0x163   : > { %v891_v34 = vsel %vm890_vm8, %v2962_v38, %v887_v22  ;;  %v1829_v33 = vadd.f32 0.18741608, %v1828_v39  ;;  %v1840_v41 = vadd.f32 0.4994258, %v1839_v48  ;;  %v1372_v1 = vand.u32 2147483647, %v3914_v19 }
 0x164   : > { %v2964_v8 = vpop.eup %2963  ;;  %v896_v53 = vsel %vm3928_vm7, %v895_v47, %v891_v34  ;;  %v2304_v43 = vmul.f32 %v2303_v30, %v3919_v52  ;;  %v2315_v31 = vmul.f32 %v2314_v28, %v3919_v52  ;;  %v900_v11 = vmul.f32 %v3939_v46, %v3939_v46 }
 0x165   : > { %v897_v51 = vmul.f32 %v896_v53, %v872_v54  ;;  %v1364_v7 = vmul.f32 %v2964_v8, %v3914_v19  ;;  %v1374_v57 = vand.u32 2147483648, %v3914_v19  ;;  %v1841_v16 = vmul.f32 %v1840_v41, %v3868_v20  ;;  %v537_v54 = vld [vmem:[%s3166_s6 + $0xe8] sm:$0xff] }
 0x166   : > { %v2305_v35 = vadd.f32 0.0036580483, %v2304_v43  ;;  %v2316_v29 = vadd.f32 0.014752088, %v2315_v31  ;;  %v3954_v42 = vmin.f32 %v900_v11, 16.0  ;;  %v1830_v38 = vmul.f32 %v1829_v33, %v3868_v20 }
 0x167   : > { %v2868_v27 = vclamps-f32 %v897_v51, 1.0  ;;  %v1365_v50 = vsub.f32 1.0, %v1364_v7  ;;  %v3957_v10 = vadd.f32 %v525_v60, %v431_v6  ;;  %v3959_v0 = vadd.f32 1.0, %v1841_v16 }
 0x168   : > { %v2306_v3 = vmul.f32 %v2305_v35, %v3919_v52  ;;  %v2317_v15 = vmul.f32 %v2316_v29, %v3919_v52  ;;  %v902_v58 = vmul.f32 2.1237322e-06, %v3954_v42  ;;  %vm1369_vm10 = vweird.f32 %v2964_v8 }
 0x169   : > { %v2624_v36 = vadd.f32 1.0, %v2868_v27  ;;  %v1366_v40 = vmul.f32 %v2964_v8, %v1365_v50  ;;  %v913_v61 = vmul.f32 3.8918573e-05, %v3954_v42  ;;  %vm3965_vm11 = vcmp.eq.f32.partialorder %v1372_v1, 8.507059e+37  ;;  %vm1370_vm12 = vmor %vm1368_vm9, %vm1369_vm10 }
 0x16a   : > { %v1375_v18 = vor.u32 1.1754944e-38, %v1374_v57  ;;  %2965 = vrcp.f32 %v3959_v0  ;;  %v461_v9 = vadd.f32 %v3659_v59, %v460_v25  ;;  %v2307_v24 = vadd.f32 0.05243302, %v2306_v3 }
 0x16b   : > { %v2672_v62 = vmul.f32 %v2624_v36, %v3887_v2  ;;  %v1367_v26 = vadd.f32 %v2964_v8, %v1366_v40  ;;  %v2318_v55 = vadd.f32 0.112945676, %v2317_v15  ;;  %v1352_v23 = vmul.f32 %v1351_v14, %v3818_v17 }
 0x16c   : > { %v1831_v49 = vadd.f32 1.1283791, %v1830_v38  ;;  %v903_v32 = vadd.f32 0.00028619796, %v902_v58  ;;  %v914_v4 = vadd.f32 0.001143296, %v913_v61  ;;  %v2308_v47 = vmul.f32 %v2307_v24, %v3919_v52 }
 0x16d   : > { %2720 = vst.msk [vmem:[%s3359_s11 + $0x20] sm:$0xff] %vm306_vm0, %v2672_v62  ;;  %v1371_v21 = vsel %vm1370_vm12, %v2964_v8, %v1367_v26  ;;  %v2319_v13 = vmul.f32 %v2318_v55, %v3919_v52  ;;  %v3981_v2 = vmul.f32 0.70710677, %v3957_v10  ;;  %v3986_v17 = vmul.f32 0.5, %v3926_v45 }
 0x16e   : > { %v1376_v37 = vsel %vm3965_vm11, %v1375_v18, %v1371_v21  ;;  %v904_v19 = vmul.f32 %v903_v32, %v3954_v42  ;;  %v915_v22 = vmul.f32 %v914_v4, %v3954_v42  ;;  %v3992_v30 = vadd.f32 %v537_v54, %v461_v9  ;;  %v549_v18 = vld [vmem:[%s3166_s6 + $0x148] sm:$0xff] }
 0x16f   : > { %v1377_v14 = vmul.f32 %v1376_v37, %v1352_v23  ;;  %v2320_v39 = vadd.f32 0.4994258, %v2319_v13  ;;  %v1380_v48 = vmul.f32 %v3981_v2, %v3981_v2  ;;  %v2309_v6 = vadd.f32 0.18741608, %v2308_v47 }
 0x170   : > { %v2966_v28 = vpop.eup %2965  ;;  %v905_v34 = vadd.f32 0.0036580483, %v904_v19  ;;  %v916_v33 = vadd.f32 0.014752088, %v915_v22  ;;  %v1832_v8 = vmul.f32 %v1831_v49, %v3855_v44  ;;  %v1852_v53 = vand.u32 2147483647, %v3959_v0  ;;  %v490_v44 = vpop.f32.mrf.mxu3 }
 0x171   : > { %v2880_v41 = vclamps-f32 %v1377_v14, 1.0  ;;  %v1844_v45 = vmul.f32 %v2966_v28, %v3959_v0  ;;  %v2321_v43 = vmul.f32 %v2320_v39, %v3919_v52  ;;  %v4000_v60 = vmin.f32 %v1380_v48, 16.0 }
 0x172   : > { %v906_v31 = vmul.f32 %v905_v34, %v3954_v42  ;;  %v917_v11 = vmul.f32 %v916_v33, %v3954_v42  ;;  %v1854_v1 = vand.u32 2147483648, %v3959_v0  ;;  %v4004_v57 = vmul.f32 0.70710677, %v3992_v30 }
 0x173   : > { %v2636_v51 = vadd.f32 1.0, %v2880_v41  ;;  %v1845_v7 = vsub.f32 1.0, %v1844_v45  ;;  %v2310_v16 = vmul.f32 %v2309_v6, %v3919_v52  ;;  %v4007_v35 = vadd.f32 1.0, %v2321_v43 }
 0x174   : > { %v907_v29 = vadd.f32 0.05243302, %v906_v31  ;;  %v918_v27 = vadd.f32 0.112945676, %v917_v11  ;;  %vm1849_vm13 = vweird.f32 %v2966_v28  ;;  %v1382_v25 = vmul.f32 2.1237322e-06, %v4000_v60 }
 0x175   : > { %v2684_v50 = vmul.f32 %v2636_v51, %v3893_v56  ;;  %v1846_v38 = vmul.f32 %v2966_v28, %v1845_v7  ;;  %vm1848_vm14 = vweird.f32 %v3959_v0  ;;  %vm4012_vm15 = vcmp.eq.f32.partialorder %v1852_v53, 8.507059e+37 }
 0x176   : > { %2967 = vrcp.f32 %v4007_v35  ;;  %v491_v52 = vadd.f32 %v3659_v59, %v490_v44  ;;  %v908_v56 = vmul.f32 %v907_v29, %v3954_v42  ;;  %v919_v58 = vmul.f32 %v918_v27, %v3954_v42  ;;  %vm1850_vm1 = vmor %vm1848_vm14, %vm1849_vm13 }
 0x177   : > { %2732 = vst.msk [vmem:[%s3359_s11 + $0x80] sm:$0xff] %vm306_vm0, %v2684_v50  ;;  %v1847_v15 = vadd.f32 %v2966_v28, %v1846_v38  ;;  %v1383_v36 = vadd.f32 0.00028619796, %v1382_v25  ;;  %v1855_v40 = vor.u32 1.1754944e-38, %v1854_v1  ;;  %v2311_v61 = vadd.f32 1.1283791, %v2310_v16 }
 0x178   : > { %v1393_v0 = vmul.f32 3.8918573e-05, %v4000_v60  ;;  %v1860_v20 = vmul.f32 %v4004_v57, %v4004_v57  ;;  %v909_v62 = vadd.f32 0.18741608, %v908_v56  ;;  %v920_v26 = vadd.f32 0.4994258, %v919_v58  ;;  %v403_v58 = vpop.f32.mrf.mxu0 }
 0x179   : > { %v1851_v9 = vsel %vm1850_vm1, %v2966_v28, %v1847_v15  ;;  %v1384_v24 = vmul.f32 %v1383_v36, %v4000_v60  ;;  %v4030_v54 = vmul.f32 0.5, %v3957_v10  ;;  %v4035_v47 = vadd.f32 %v549_v18, %v491_v52 }
 0x17a   : > { %v1856_v55 = vsel %vm4012_vm15, %v1855_v40, %v1851_v9  ;;  %v1394_v23 = vadd.f32 0.001143296, %v1393_v0  ;;  %v4032_v49 = vmin.f32 %v1860_v20, 16.0  ;;  %v921_v4 = vmul.f32 %v920_v26, %v3954_v42 }
 0x17b   : > { %v1857_v32 = vmul.f32 %v1856_v55, %v1832_v8  ;;  %v1385_v21 = vadd.f32 0.0036580483, %v1384_v24  ;;  %v910_v37 = vmul.f32 %v909_v62, %v3954_v42  ;;  %v2312_v39 = vmul.f32 %v2311_v61, %v3903_v12 }
 0x17c   : > { %v2968_v13 = vpop.eup %2967  ;;  %v1395_v19 = vmul.f32 %v1394_v23, %v4000_v60  ;;  %v1862_v22 = vmul.f32 2.1237322e-06, %v4032_v49  ;;  %v1873_v14 = vmul.f32 3.8918573e-05, %v4032_v49  ;;  %v2332_v28 = vand.u32 2147483647, %v4007_v35 }
 0x17d   : > { %v2892_v10 = vclamps-f32 %v1857_v32, 1.0  ;;  %v2324_v48 = vmul.f32 %v2968_v13, %v4007_v35  ;;  %v4044_v6 = vadd.f32 1.0, %v921_v4  ;;  %v1386_v34 = vmul.f32 %v1385_v21, %v4000_v60 }
 0x17e   : > { %v1396_v33 = vadd.f32 0.014752088, %v1395_v19  ;;  %v1863_v41 = vadd.f32 0.00028619796, %v1862_v22  ;;  %v1874_v45 = vadd.f32 0.001143296, %v1873_v14  ;;  %vm2329_vm2 = vweird.f32 %v2968_v13 }
 0x17f   : > { %v2648_v42 = vadd.f32 1.0, %v2892_v10  ;;  %v2325_v8 = vsub.f32 1.0, %v2324_v48  ;;  %v4048_v53 = vmul.f32 0.70710677, %v4035_v47  ;;  %v2334_v12 = vand.u32 2147483648, %v4007_v35 }
 0x180   : > { %v911_v43 = vadd.f32 1.1283791, %v910_v37  ;;  %2969 = vrcp.f32 %v4044_v6  ;;  %v1387_v51 = vadd.f32 0.05243302, %v1386_v34  ;;  %v1397_v7 = vmul.f32 %v1396_v33, %v4000_v60 }
 0x181   : > { %v2696_v31 = vmul.f32 %v2648_v42, %v3895_v5  ;;  %v2326_v11 = vmul.f32 %v2968_v13, %v2325_v8  ;;  %vm2328_vm3 = vweird.f32 %v4007_v35  ;;  %vm4055_vm4 = vcmp.eq.f32.partialorder %v2332_v28, 8.507059e+37  ;;  %v514_v28 = vld [vmem:[%s3166_s6 + $0x30] sm:$0xff] }
 0x182   : > { %v1864_v44 = vmul.f32 %v1863_v41, %v4032_v49  ;;  %v1875_v16 = vmul.f32 %v1874_v45, %v4032_v49  ;;  %v1388_v27 = vmul.f32 %v1387_v51, %v4000_v60  ;;  %v1398_v5 = vadd.f32 0.112945676, %v1397_v7  ;;  %vm2330_vm5 = vmor %vm2328_vm3, %vm2329_vm2 }
 0x183   : > { %2744 = vst.msk [vmem:[%s3359_s11 + $0xe0] sm:$0xff] %vm306_vm0, %v2696_v31  ;;  %v2327_v29 = vadd.f32 %v2968_v13, %v2326_v11  ;;  %v2340_v50 = vmul.f32 %v4048_v53, %v4048_v53  ;;  %v2335_v35 = vor.u32 1.1754944e-38, %v2334_v12  ;;  %v912_v38 = vmul.f32 %v911_v43, %v3939_v46  ;;  %v4104_v11 = vld [vmem:[%s5070_s3] ss:$0 sm:$0xff] }
 0x184   : > { %v1865_v25 = vadd.f32 0.0036580483, %v1864_v44  ;;  %v1876_v3 = vadd.f32 0.014752088, %v1875_v16  ;;  %vm928_vm6 = vweird.f32 %v4044_v6  ;;  %v1399_v15 = vmul.f32 %v1398_v5, %v4000_v60  ;;  %v526_v5 = vld [vmem:[%s3166_s6 + $0x90] sm:$0xff] }
 0x185   : > { %v2331_v52 = vsel %vm2330_vm5, %v2968_v13, %v2327_v29  ;;  %v4070_v56 = vmin.f32 %v2340_v50, 16.0  ;;  %v932_v61 = vand.u32 2147483647, %v4044_v6  ;;  %v934_v9 = vand.u32 2147483648, %v4044_v6 }
 0x186   : > { %v2970_v36 = vpop.eup %2969  ;;  %v2336_v40 = vsel %vm4055_vm4, %v2335_v35, %v2331_v52  ;;  %v1866_v0 = vmul.f32 %v1865_v25, %v4032_v49  ;;  %v1877_v46 = vmul.f32 %v1876_v3, %v4032_v49  ;;  %v1389_v62 = vadd.f32 0.18741608, %v1388_v27 }
 0x187   : > { %v2337_v20 = vmul.f32 %v2336_v40, %v2312_v39  ;;  %v924_v18 = vmul.f32 %v2970_v36, %v4044_v6  ;;  %v1400_v26 = vadd.f32 0.4994258, %v1399_v15  ;;  %v404_v23 = vadd.f32 %v3659_v59, %v403_v58  ;;  %v433_v59 = vpop.f32.mrf.mxu1  ;;  %v463_v40 = vpop.f32.mrf.mxu2 }
 0x188   : > { %v1867_v24 = vadd.f32 0.05243302, %v1866_v0  ;;  %v1878_v55 = vadd.f32 0.112945676, %v1877_v46  ;;  %vm929_vm7 = vweird.f32 %v2970_v36  ;;  %v2342_v21 = vmul.f32 2.1237322e-06, %v4070_v56 }
 0x189   : > { %v2904_v32 = vclamps-f32 %v2337_v20, 1.0  ;;  %v925_v4 = vsub.f32 1.0, %v924_v18  ;;  %v1401_v13 = vmul.f32 %v1400_v26, %v4000_v60  ;;  %v2353_v22 = vmul.f32 3.8918573e-05, %v4070_v56  ;;  %vm930_vm9 = vmor %vm928_vm6, %vm929_vm7 }
 0x18a   : > { %v1868_v37 = vmul.f32 %v1867_v24, %v4032_v49  ;;  %v1879_v19 = vmul.f32 %v1878_v55, %v4032_v49  ;;  %v1390_v39 = vmul.f32 %v1389_v62, %v4000_v60  ;;  %v2343_v48 = vadd.f32 0.00028619796, %v2342_v21 }
 0x18b   : > { %v2660_v14 = vadd.f32 1.0, %v2904_v32  ;;  %v926_v10 = vmul.f32 %v2970_v36, %v925_v4  ;;  %vm4087_vm8 = vcmp.eq.f32.partialorder %v932_v61, 8.507059e+37  ;;  %v4091_v33 = vadd.f32 1.0, %v1401_v13 }
 0x18c   : > { %v1869_v41 = vadd.f32 0.18741608, %v1868_v37  ;;  %v1880_v42 = vadd.f32 0.4994258, %v1879_v19  ;;  %v2344_v12 = vmul.f32 %v2343_v48, %v4070_v56  ;;  %v2354_v43 = vadd.f32 0.001143296, %v2353_v22 }
 0x18d   : > { %v2708_v8 = vmul.f32 %v2660_v14, %v3901_v63  ;;  %v927_v45 = vadd.f32 %v2970_v36, %v926_v10  ;;  %v935_v60 = vor.u32 1.1754944e-38, %v934_v9  ;;  %2971 = vrcp.f32 %v4091_v33 }
 0x18e   : > { %v4099_v31 = vadd.f32 %v514_v28, %v404_v23  ;;  %v434_v63 = vadd.f32 %v4104_v11, %v433_v59  ;;  %v1391_v7 = vadd.f32 1.1283791, %v1390_v39  ;;  %v1881_v6 = vmul.f32 %v1880_v42, %v4032_v49 }
 0x18f   : > { %2756 = vst.msk [vmem:[%s3359_s11 + $0x140] sm:$0xff] %vm306_vm0, %v2708_v8  ;;  %v931_v51 = vsel %vm930_vm9, %v2970_v36, %v927_v45  ;;  %v2345_v1 = vadd.f32 0.0036580483, %v2344_v12  ;;  %v4113_v16 = vmul.f32 0.5, %v3992_v30  ;;  %v1870_v29 = vmul.f32 %v1869_v41, %v4032_v49 }
 0x190   : > { %v936_v44 = vsel %vm4087_vm8, %v935_v60, %v931_v51  ;;  %v2355_v27 = vmul.f32 %v2354_v43, %v4070_v56  ;;  %v1412_v35 = vand.u32 2147483647, %v4091_v33  ;;  %v4119_v25 = vadd.f32 1.0, %v1881_v6 }
 0x191   : > { %v937_v50 = vmul.f32 %v936_v44, %v912_v38  ;;  %v2346_v3 = vmul.f32 %v2345_v1, %v4070_v56  ;;  %v1414_v52 = vand.u32 2147483648, %v4091_v33  ;;  %v4124_v15 = vmul.f32 0.5, %v4035_v47 }
 0x192   : > { %v2356_v58 = vadd.f32 0.014752088, %v2355_v27  ;;  %v4127_v30 = vmul.f32 0.70710677, %v4099_v31  ;;  %v1392_v36 = vmul.f32 %v1391_v7, %v3981_v2  ;;  %2973 = vrcp.f32 %v4119_v25  ;;  %v538_v7 = vld [vmem:[%s3166_s6 + $0xf0] sm:$0xff] }
 0x193   : > { %v2869_v49 = vclamps-f32 %v937_v50, 1.0  ;;  %v4131_v38 = vadd.f32 %v526_v5, %v434_v63  ;;  %v2972_v61 = vpop.eup %2971  ;;  %vm1408_vm10 = vweird.f32 %v4091_v33  ;;  %v1871_v0 = vadd.f32 1.1283791, %v1870_v29  ;;  %v493_v29 = vpop.f32.mrf.mxu3 }
 0x194   : > { %v2347_v46 = vadd.f32 0.05243302, %v2346_v3  ;;  %v2357_v47 = vmul.f32 %v2356_v58, %v4070_v56  ;;  %v1404_v18 = vmul.f32 %v2972_v61, %v4091_v33  ;;  %vm4136_vm11 = vcmp.eq.f32.partialorder %v1412_v35, 8.507059e+37 }
 0x195   : > { %v2625_v20 = vadd.f32 1.0, %v2869_v49  ;;  %v940_v2 = vmul.f32 %v4127_v30, %v4127_v30  ;;  %v1415_v62 = vor.u32 1.1754944e-38, %v1414_v52  ;;  %v464_v55 = vadd.f32 %v4104_v11, %v463_v40 }
 0x196   : > { %v2348_v26 = vmul.f32 %v2347_v46, %v4070_v56  ;;  %v2358_v24 = vadd.f32 0.112945676, %v2357_v47  ;;  %v1405_v32 = vsub.f32 1.0, %v1404_v18  ;;  %v4148_v21 = vmul.f32 0.70710677, %v4131_v38  ;;  %v550_v47 = vld [vmem:[%s3166_s6 + $0x150] sm:$0xff] }
 0x197   : > { %v2673_v23 = vmul.f32 %v2625_v20, %v3986_v17  ;;  %v4145_v4 = vmin.f32 %v940_v2, 16.0  ;;  %vm1409_vm12 = vweird.f32 %v2972_v61  ;;  %v1872_v13 = vmul.f32 %v1871_v0, %v4004_v57 }
 0x198   : > { %vm1888_vm13 = vweird.f32 %v4119_v25  ;;  %v2359_v37 = vmul.f32 %v2358_v24, %v4070_v56  ;;  %v2974_v19 = vpop.eup %2973  ;;  %v1406_v22 = vmul.f32 %v2972_v61, %v1405_v32  ;;  %v1420_v10 = vmul.f32 %v4148_v21, %v4148_v21  ;;  %vm1410_vm14 = vmor %vm1408_vm10, %vm1409_vm12 }
 0x199   : > { %2721 = vst.msk [vmem:[%s3359_s11 + $0x28] sm:$0xff] %vm306_vm0, %v2673_v23  ;;  %v942_v14 = vmul.f32 2.1237322e-06, %v4145_v4  ;;  %v953_v17 = vmul.f32 3.8918573e-05, %v4145_v4  ;;  %v1884_v39 = vmul.f32 %v2974_v19, %v4119_v25  ;;  %vm1889_vm15 = vweird.f32 %v2974_v19 }
 0x19a   : > { %v1892_v48 = vand.u32 2147483647, %v4119_v25  ;;  %v2349_v57 = vadd.f32 0.18741608, %v2348_v26  ;;  %v2360_v28 = vadd.f32 0.4994258, %v2359_v37  ;;  %v1407_v59 = vadd.f32 %v2972_v61, %v1406_v22  ;;  %vm1890_vm1 = vmor %vm1888_vm13, %vm1889_vm15 }
 0x19b   : > { %v943_v34 = vadd.f32 0.00028619796, %v942_v14  ;;  %v954_v41 = vadd.f32 0.001143296, %v953_v17  ;;  %v4161_v42 = vmin.f32 %v1420_v10, 16.0  ;;  %v1885_v8 = vsub.f32 1.0, %v1884_v39 }
 0x19c   : > { %v1894_v45 = vand.u32 2147483648, %v4119_v25  ;;  %v2361_v12 = vmul.f32 %v2360_v28, %v4070_v56  ;;  %v1411_v43 = vsel %vm1410_vm14, %v2972_v61, %v1407_v59  ;;  %v2350_v33 = vmul.f32 %v2349_v57, %v4070_v56 }
 0x19d   : > { %v944_v60 = vmul.f32 %v943_v34, %v4145_v4  ;;  %v955_v63 = vmul.f32 %v954_v41, %v4145_v4  ;;  %v1422_v51 = vmul.f32 2.1237322e-06, %v4161_v42  ;;  %v1416_v6 = vsel %vm4136_vm11, %v1415_v62, %v1411_v43 }
 0x19e   : > { %v1886_v1 = vmul.f32 %v2974_v19, %v1885_v8  ;;  %v4175_v44 = vadd.f32 1.0, %v2361_v12  ;;  %v1417_v27 = vmul.f32 %v1416_v6, %v1392_v36  ;;  %v1895_v52 = vor.u32 1.1754944e-38, %v1894_v45 }
 0x19f   : > { %v945_v5 = vadd.f32 0.0036580483, %v944_v60  ;;  %v956_v50 = vadd.f32 0.014752088, %v955_v63  ;;  %v1423_v35 = vadd.f32 0.00028619796, %v1422_v51  ;;  %v4178_v58 = vadd.f32 %v538_v7, %v464_v55 }
 0x1a0   : > { %v1887_v3 = vadd.f32 %v2974_v19, %v1886_v1  ;;  %2975 = vrcp.f32 %v4175_v44  ;;  %v2881_v49 = vclamps-f32 %v1417_v27, 1.0  ;;  %v494_v36 = vadd.f32 %v4104_v11, %v493_v29 }
 0x1a1   : > { %v946_v56 = vmul.f32 %v945_v5, %v4145_v4  ;;  %v957_v40 = vmul.f32 %v956_v50, %v4145_v4  ;;  %vm1893_vm2 = vcmp.eq.f32.partialorder %v1892_v48, 8.507059e+37  ;;  %v1424_v0 = vmul.f32 %v1423_v35, %v4161_v42 }
 0x1a2   : > { %v1891_v61 = vsel %vm1890_vm1, %v2974_v19, %v1887_v3  ;;  %v1433_v46 = vmul.f32 3.8918573e-05, %v4161_v42  ;;  %v2637_v20 = vadd.f32 1.0, %v2881_v49  ;;  %v2351_v9 = vadd.f32 1.1283791, %v2350_v33 }
 0x1a3   : > { %v1896_v18 = vsel %vm1893_vm2, %v1895_v52, %v1891_v61  ;;  %v947_v2 = vadd.f32 0.05243302, %v946_v56  ;;  %v958_v62 = vadd.f32 0.112945676, %v957_v40  ;;  %v1425_v26 = vadd.f32 0.0036580483, %v1424_v0  ;;  %v405_v61 = vpop.f32.mrf.mxu0 }
 0x1a4   : > { %v1897_v25 = vmul.f32 %v1896_v18, %v1872_v13  ;;  %v1434_v24 = vadd.f32 0.001143296, %v1433_v46  ;;  %v2685_v55 = vmul.f32 %v2637_v20, %v4030_v54  ;;  %v4192_v32 = vmul.f32 0.70710677, %v4178_v58 }
 0x1a5   : > { %v948_v23 = vmul.f32 %v947_v2, %v4145_v4  ;;  %v4194_v37 = vadd.f32 %v550_v47, %v494_v36  ;;  %v959_v14 = vmul.f32 %v958_v62, %v4145_v4  ;;  %v1426_v17 = vmul.f32 %v1425_v26, %v4161_v42 }
 0x1a6   : > { %v2976_v19 = vpop.eup %2975  ;;  %v2893_v22 = vclamps-f32 %v1897_v25, 1.0  ;;  %v1435_v13 = vmul.f32 %v1434_v24, %v4161_v42  ;;  %2733 = vst.msk [vmem:[%s3359_s11 + $0x88] sm:$0xff] %vm306_vm0, %v2685_v55  ;;  %v2372_v54 = vand.u32 2147483647, %v4175_v44  ;;  %v1900_v48 = vmul.f32 %v4192_v32, %v4192_v32  ;;  %v515_v55 = vld [vmem:[%s3166_s6 + $0x38] sm:$0xff] }
 0x1a7   : > { %v2364_v10 = vmul.f32 %v2976_v19, %v4175_v44  ;;  %v949_v39 = vadd.f32 0.18741608, %v948_v23  ;;  %v4206_v28 = vmul.f32 0.5, %v4099_v31  ;;  %v960_v59 = vadd.f32 0.4994258, %v959_v14 }
 0x1a8   : > { %v2649_v57 = vadd.f32 1.0, %v2893_v22  ;;  %v1427_v34 = vadd.f32 0.05243302, %v1426_v17  ;;  %v2374_v8 = vand.u32 2147483648, %v4175_v44  ;;  %v1436_v45 = vadd.f32 0.014752088, %v1435_v13 }
 0x1a9   : > { %v2365_v41 = vsub.f32 1.0, %v2364_v10  ;;  %v4209_v12 = vmin.f32 %v1900_v48, 16.0  ;;  %v961_v60 = vmul.f32 %v960_v59, %v4145_v4  ;;  %v4215_v51 = vmul.f32 0.70710677, %v4194_v37 }
 0x1aa   : > { %v2697_v43 = vmul.f32 %v2649_v57, %v4113_v16  ;;  %v1428_v63 = vmul.f32 %v1427_v34, %v4161_v42  ;;  %vm2369_vm3 = vweird.f32 %v2976_v19  ;;  %v1437_v31 = vmul.f32 %v1436_v45, %v4161_v42 }
 0x1ab   : > { %v2366_v7 = vmul.f32 %v2976_v19, %v2365_v41  ;;  %v1902_v6 = vmul.f32 2.1237322e-06, %v4209_v12  ;;  %vm2368_vm4 = vweird.f32 %v4175_v44  ;;  %v950_v1 = vmul.f32 %v949_v39, %v4145_v4 }
 0x1ac   : > { %2745 = vst.msk [vmem:[%s3359_s11 + $0xe8] sm:$0xff] %vm306_vm0, %v2697_v43  ;;  %v4223_v16 = vadd.f32 1.0, %v961_v60  ;;  %v1913_v33 = vmul.f32 3.8918573e-05, %v4209_v12  ;;  %v1429_v27 = vadd.f32 0.18741608, %v1428_v63  ;;  %v2352_v35 = vmul.f32 %v2351_v9, %v4048_v53  ;;  %vm2370_vm5 = vmor %vm2368_vm4, %vm2369_vm3 }
 0x1ad   : > { %v2367_v29 = vadd.f32 %v2976_v19, %v2366_v7  ;;  %v1438_v5 = vadd.f32 0.112945676, %v1437_v31  ;;  %v1903_v50 = vadd.f32 0.00028619796, %v1902_v6  ;;  %v2375_v3 = vor.u32 1.1754944e-38, %v2374_v8  ;;  %v435_v8 = vpop.f32.mrf.mxu1 }
 0x1ae   : > { %2977 = vrcp.f32 %v4223_v16  ;;  %v2380_v52 = vmul.f32 %v4215_v51, %v4215_v51  ;;  %vm2373_vm6 = vcmp.eq.f32.partialorder %v2372_v54, 8.507059e+37  ;;  %v951_v40 = vadd.f32 1.1283791, %v950_v1 }
 0x1af   : > { %v2371_v44 = vsel %vm2370_vm5, %v2976_v19, %v2367_v29  ;;  %v1439_v4 = vmul.f32 %v1438_v5, %v4161_v42  ;;  %v1904_v49 = vmul.f32 %v1903_v50, %v4209_v12  ;;  %v4233_v36 = vmul.f32 0.5, %v4131_v38  ;;  %v527_v29 = vld [vmem:[%s3166_s6 + $0x98] sm:$0xff] }
 0x1b0   : > { %v2376_v56 = vsel %vm2373_vm6, %v2375_v3, %v2371_v44  ;;  %v1914_v53 = vadd.f32 0.001143296, %v1913_v33  ;;  %v1430_v46 = vmul.f32 %v1429_v27, %v4161_v42  ;;  %v972_v18 = vand.u32 2147483647, %v4223_v16 }
 0x1b1   : > { %v2377_v0 = vmul.f32 %v2376_v56, %v2352_v35  ;;  %v1440_v47 = vadd.f32 0.4994258, %v1439_v4  ;;  %v1905_v20 = vadd.f32 0.0036580483, %v1904_v49  ;;  %v974_v9 = vand.u32 2147483648, %v4223_v16 }
 0x1b2   : > { %v1915_v2 = vmul.f32 %v1914_v53, %v4209_v12  ;;  %v4239_v25 = vmin.f32 %v2380_v52, 16.0  ;;  %v406_v24 = vadd.f32 %v4104_v11, %v405_v61  ;;  %v952_v19 = vmul.f32 %v951_v40, %v4127_v30 }
 0x1b3   : > { %v2905_v62 = vclamps-f32 %v2377_v0, 1.0  ;;  %v1441_v26 = vmul.f32 %v1440_v47, %v4161_v42  ;;  %v1906_v38 = vmul.f32 %v1905_v20, %v4209_v12  ;;  %v1431_v54 = vadd.f32 1.1283791, %v1430_v46 }
 0x1b4   : > { %v2978_v23 = vpop.eup %2977  ;;  %v1916_v22 = vadd.f32 0.014752088, %v1915_v2  ;;  %v2382_v14 = vmul.f32 2.1237322e-06, %v4239_v25  ;;  %v2393_v17 = vmul.f32 3.8918573e-05, %v4239_v25  ;;  %v4254_v41 = vadd.f32 %v515_v55, %v406_v24 }
 0x1b5   : > { %v2661_v13 = vadd.f32 1.0, %v2905_v62  ;;  %v964_v10 = vmul.f32 %v2978_v23, %v4223_v16  ;;  %v4249_v39 = vadd.f32 1.0, %v1441_v26  ;;  %v1907_v42 = vadd.f32 0.05243302, %v1906_v38 }
 0x1b6   : > { %v1917_v48 = vmul.f32 %v1916_v22, %v4209_v12  ;;  %v2383_v57 = vadd.f32 0.00028619796, %v2382_v14  ;;  %v2394_v59 = vadd.f32 0.001143296, %v2393_v17  ;;  %vm968_vm7 = vweird.f32 %v4223_v16  ;;  %v465_v17 = vpop.f32.mrf.mxu2 }
 0x1b7   : > { %v2709_v34 = vmul.f32 %v2661_v13, %v4124_v15  ;;  %v965_v30 = vsub.f32 1.0, %v964_v10  ;;  %2979 = vrcp.f32 %v4249_v39  ;;  %vm4257_vm8 = vcmp.eq.f32.partialorder %v972_v18, 8.507059e+37 }
 0x1b8   : > { %v1908_v43 = vmul.f32 %v1907_v42, %v4209_v12  ;;  %v1918_v60 = vadd.f32 0.112945676, %v1917_v48  ;;  %vm969_vm9 = vweird.f32 %v2978_v23  ;;  %v2384_v15 = vmul.f32 %v2383_v57, %v4239_v25 }
 0x1b9   : > { %2757 = vst.msk [vmem:[%s3359_s11 + $0x148] sm:$0xff] %vm306_vm0, %v2709_v34  ;;  %v966_v63 = vmul.f32 %v2978_v23, %v965_v30  ;;  %v2395_v7 = vmul.f32 %v2394_v59, %v4239_v25  ;;  %v975_v31 = vor.u32 1.1754944e-38, %v974_v9  ;;  %v1432_v6 = vmul.f32 %v1431_v54, %v4148_v21  ;;  %vm970_vm10 = vmor %vm968_vm7, %vm969_vm9 }
 0x1ba   : > { %v1919_v1 = vmul.f32 %v1918_v60, %v4209_v12  ;;  %v436_v33 = vadd.f32 %v4104_v11, %v435_v8  ;;  %v2385_v5 = vadd.f32 0.0036580483, %v2384_v15  ;;  %v4271_v35 = vmul.f32 0.70710677, %v4254_v41 }
 0x1bb   : > { %v967_v27 = vadd.f32 %v2978_v23, %v966_v63  ;;  %v2396_v50 = vadd.f32 0.014752088, %v2395_v7  ;;  %vm1448_vm11 = vweird.f32 %v4249_v39  ;;  %v1452_v3 = vand.u32 2147483647, %v4249_v39 }
 0x1bc   : > { %v1909_v52 = vadd.f32 0.18741608, %v1908_v43  ;;  %v1920_v21 = vadd.f32 0.4994258, %v1919_v1  ;;  %v2386_v49 = vmul.f32 %v2385_v5, %v4239_v25  ;;  %v980_v40 = vmul.f32 %v4271_v35, %v4271_v35 }
 0x1bd   : > { %v2980_v44 = vpop.eup %2979  ;;  %v971_v4 = vsel %vm970_vm10, %v2978_v23, %v967_v27  ;;  %v2397_v56 = vmul.f32 %v2396_v50, %v4239_v25  ;;  %v1454_v61 = vand.u32 2147483648, %v4249_v39  ;;  %v4285_v0 = vadd.f32 %v527_v29, %v436_v33  ;;  %v495_v27 = vpop.f32.mrf.mxu3 }
 0x1be   : > { %v976_v53 = vsel %vm4257_vm8, %v975_v31, %v971_v4  ;;  %v1444_v16 = vmul.f32 %v2980_v44, %v4249_v39  ;;  %v1921_v47 = vmul.f32 %v1920_v21, %v4209_v12  ;;  %v2387_v20 = vadd.f32 0.05243302, %v2386_v49 }
 0x1bf   : > { %v977_v46 = vmul.f32 %v976_v53, %v952_v19  ;;  %v2398_v18 = vadd.f32 0.112945676, %v2397_v56  ;;  %vm4288_vm12 = vcmp.eq.f32.partialorder %v1452_v3, 8.507059e+37  ;;  %v1910_v62 = vmul.f32 %v1909_v52, %v4209_v12 }
 0x1c0   : > { %v1445_v9 = vsub.f32 1.0, %v1444_v16  ;;  %v4293_v26 = vmin.f32 %v980_v40, 16.0  ;;  %v4295_v24 = vadd.f32 1.0, %v1921_v47  ;;  %v2388_v55 = vmul.f32 %v2387_v20, %v4239_v25 }
 0x1c1   : > { %v2870_v38 = vclamps-f32 %v977_v46, 1.0  ;;  %v2399_v23 = vmul.f32 %v2398_v18, %v4239_v25  ;;  %vm1449_vm13 = vweird.f32 %v2980_v44  ;;  %v1455_v10 = vor.u32 1.1754944e-38, %v1454_v61  ;;  %v551_v61 = vld [vmem:[%s3166_s6 + $0x158] sm:$0xff] }
 0x1c2   : > { %v1446_v19 = vmul.f32 %v2980_v44, %v1445_v9  ;;  %v982_v22 = vmul.f32 2.1237322e-06, %v4293_v26  ;;  %v993_v14 = vmul.f32 3.8918573e-05, %v4293_v26  ;;  %2981 = vrcp.f32 %v4295_v24  ;;  %vm1450_vm14 = vmor %vm1448_vm11, %vm1449_vm13 }
 0x1c3   : > { %v2626_v13 = vadd.f32 1.0, %v2870_v38  ;;  %v4303_v12 = vmul.f32 0.70710677, %v4285_v0  ;;  %v1911_v42 = vadd.f32 1.1283791, %v1910_v62  ;;  %v466_v8 = vadd.f32 %v4104_v11, %v465_v17 }
 0x1c4   : > { %v1447_v54 = vadd.f32 %v2980_v44, %v1446_v19  ;;  %v2389_v48 = vadd.f32 0.18741608, %v2388_v55  ;;  %v2400_v57 = vadd.f32 0.4994258, %v2399_v23  ;;  %v983_v34 = vadd.f32 0.00028619796, %v982_v22 }
 0x1c5   : > { %v2674_v59 = vmul.f32 %v2626_v13, %v4206_v28  ;;  %v994_v30 = vadd.f32 0.001143296, %v993_v14  ;;  %v1932_v43 = vand.u32 2147483647, %v4295_v24  ;;  %v1460_v7 = vmul.f32 %v4303_v12, %v4303_v12 }
 0x1c6   : > { %v1451_v45 = vsel %vm1450_vm14, %v2980_v44, %v1447_v54  ;;  %v2390_v60 = vmul.f32 %v2389_v48, %v4239_v25  ;;  %v2401_v63 = vmul.f32 %v2400_v57, %v4239_v25  ;;  %v984_v39 = vmul.f32 %v983_v34, %v4293_v26  ;;  %v539_v25 = vld [vmem:[%s3166_s6 + $0xf8] sm:$0xff] }
 0x1c7   : > { %2722 = vst.msk [vmem:[%s3359_s11 + $0x30] sm:$0xff] %vm306_vm0, %v2674_v59  ;;  %v1456_v28 = vsel %vm4288_vm12, %v1455_v10, %v1451_v45  ;;  %v995_v15 = vmul.f32 %v994_v30, %v4293_v26  ;;  %v4321_v1 = vmul.f32 0.5, %v4178_v58  ;;  %v1912_v33 = vmul.f32 %v1911_v42, %v4192_v32 }
 0x1c8   : > { %v1457_v31 = vmul.f32 %v1456_v28, %v1432_v6  ;;  %v4324_v29 = vadd.f32 1.0, %v2401_v63  ;;  %v2982_v5 = vpop.eup %2981  ;;  %v1934_v50 = vand.u32 2147483648, %v4295_v24  ;;  %v985_v3 = vadd.f32 0.0036580483, %v984_v39 }
 0x1c9   : > { %v996_v52 = vadd.f32 0.014752088, %v995_v15  ;;  %v4328_v21 = vmin.f32 %v1460_v7, 16.0  ;;  %v1924_v6 = vmul.f32 %v2982_v5, %v4295_v24  ;;  %vm1928_vm15 = vweird.f32 %v4295_v24 }
 0x1ca   : > { %v2882_v44 = vclamps-f32 %v1457_v31, 1.0  ;;  %vm4332_vm1 = vcmp.eq.f32.partialorder %v1932_v43, 8.507059e+37  ;;  %v2391_v32 = vadd.f32 1.1283791, %v2390_v60  ;;  %2983 = vrcp.f32 %v4324_v29 }
 0x1cb   : > { %v4337_v4 = vadd.f32 %v539_v25, %v466_v8  ;;  %v496_v49 = vadd.f32 %v4104_v11, %v495_v27  ;;  %v1925_v40 = vsub.f32 1.0, %v1924_v6  ;;  %v986_v53 = vmul.f32 %v985_v3, %v4293_v26 }
 0x1cc   : > { %v2638_v56 = vadd.f32 1.0, %v2882_v44  ;;  %v997_v16 = vmul.f32 %v996_v52, %v4293_v26  ;;  %vm1929_vm2 = vweird.f32 %v2982_v5  ;;  %v1935_v46 = vor.u32 1.1754944e-38, %v1934_v50 }
 0x1cd   : > { %v1462_v47 = vmul.f32 2.1237322e-06, %v4328_v21  ;;  %v1473_v20 = vmul.f32 3.8918573e-05, %v4328_v21  ;;  %v1926_v9 = vmul.f32 %v2982_v5, %v1925_v40  ;;  %v987_v2 = vadd.f32 0.05243302, %v986_v53  ;;  %vm1930_vm3 = vmor %vm1928_vm15, %vm1929_vm2 }
 0x1ce   : > { %v2686_v18 = vmul.f32 %v2638_v56, %v4233_v36  ;;  %v998_v62 = vadd.f32 0.112945676, %v997_v16  ;;  %v2392_v38 = vmul.f32 %v2391_v32, %v4215_v51  ;;  %v4347_v19 = vadd.f32 %v551_v61, %v496_v49 }
 0x1cf   : > { %v1463_v55 = vadd.f32 0.00028619796, %v1462_v47  ;;  %v1474_v23 = vadd.f32 0.001143296, %v1473_v20  ;;  %v1927_v22 = vadd.f32 %v2982_v5, %v1926_v9  ;;  %v988_v14 = vmul.f32 %v987_v2, %v4293_v26  ;;  %v408_v9 = vpop.f32.mrf.mxu0 }
 0x1d0   : > { %2734 = vst.msk [vmem:[%s3359_s11 + $0x90] sm:$0xff] %vm306_vm0, %v2686_v18  ;;  %v999_v17 = vmul.f32 %v998_v62, %v4293_v26  ;;  %v4354_v13 = vmul.f32 0.70710677, %v4337_v4  ;;  %v2984_v36 = vpop.eup %2983  ;;  %v2412_v51 = vand.u32 2147483647, %v4324_v29  ;;  %v2414_v59 = vand.u32 2147483648, %v4324_v29 }
 0x1d1   : > { %v1464_v10 = vmul.f32 %v1463_v55, %v4328_v21  ;;  %v1475_v54 = vmul.f32 %v1474_v23, %v4328_v21  ;;  %v4363_v42 = vmul.f32 0.70710677, %v4347_v19  ;;  %v1931_v48 = vsel %vm1930_vm3, %v2982_v5, %v1927_v22 }
 0x1d2   : > { %v2404_v57 = vmul.f32 %v2984_v36, %v4324_v29  ;;  %v989_v34 = vadd.f32 0.18741608, %v988_v14  ;;  %v1936_v30 = vsel %vm4332_vm1, %v1935_v46, %v1931_v48  ;;  %v1000_v24 = vadd.f32 0.4994258, %v999_v17  ;;  %v516_v48 = vld [vmem:[%s3166_s6 + $0x40] sm:$0xff] }
 0x1d3   : > { %v1465_v8 = vadd.f32 0.0036580483, %v1464_v10  ;;  %v1476_v45 = vadd.f32 0.014752088, %v1475_v54  ;;  %v1937_v43 = vmul.f32 %v1936_v30, %v1912_v33  ;;  %v1940_v28 = vmul.f32 %v4354_v13, %v4354_v13 }
 0x1d4   : > { %v2405_v60 = vsub.f32 1.0, %v2404_v57  ;;  %v990_v63 = vmul.f32 %v989_v34, %v4293_v26  ;;  %v1001_v39 = vmul.f32 %v1000_v24, %v4293_v26  ;;  %v2420_v31 = vmul.f32 %v4363_v42, %v4363_v42  ;;  %v438_v57 = vpop.f32.mrf.mxu1 }
 0x1d5   : > { %v1466_v15 = vmul.f32 %v1465_v8, %v4328_v21  ;;  %v1477_v7 = vmul.f32 %v1476_v45, %v4328_v21  ;;  %v2894_v25 = vclamps-f32 %v1937_v43, 1.0  ;;  %vm2409_vm4 = vweird.f32 %v2984_v36 }
 0x1d6   : > { %v2406_v27 = vmul.f32 %v2984_v36, %v2405_v60  ;;  %v4377_v5 = vmin.f32 %v1940_v28, 16.0  ;;  %vm2408_vm5 = vweird.f32 %v4324_v29  ;;  %v4380_v33 = vadd.f32 1.0, %v1001_v39 }
 0x1d7   : > { %v1467_v50 = vadd.f32 0.05243302, %v1466_v15  ;;  %v1478_v3 = vadd.f32 0.112945676, %v1477_v7  ;;  %v2650_v52 = vadd.f32 1.0, %v2894_v25  ;;  %vm2413_vm6 = vcmp.eq.f32.partialorder %v2412_v51, 8.507059e+37  ;;  %vm2410_vm7 = vmor %vm2408_vm5, %vm2409_vm4 }
 0x1d8   : > { %v2407_v26 = vadd.f32 %v2984_v36, %v2406_v27  ;;  %v1942_v44 = vmul.f32 2.1237322e-06, %v4377_v5  ;;  %v2415_v6 = vor.u32 1.1754944e-38, %v2414_v59  ;;  %v991_v58 = vadd.f32 1.1283791, %v990_v63 }
 0x1d9   : > { %2985 = vrcp.f32 %v4380_v33  ;;  %v4384_v32 = vmin.f32 %v2420_v31, 16.0  ;;  %v2698_v49 = vmul.f32 %v2650_v52, %v4321_v1  ;;  %v1468_v56 = vmul.f32 %v1467_v50, %v4328_v21  ;;  %v528_v50 = vld [vmem:[%s3166_s6 + $0xa0] sm:$0xff] }
 0x1da   : > { %v2411_v29 = vsel %vm2410_vm7, %v2984_v36, %v2407_v26  ;;  %v1479_v40 = vmul.f32 %v1478_v3, %v4328_v21  ;;  %v646_v53 = vmul.f32 0.5, %v4194_v37  ;;  %v4391_v61 = vmul.f32 0.5, %v4254_v41 }
 0x1db   : > { %v2416_v16 = vsel %vm2413_vm6, %v2415_v6, %v2411_v29  ;;  %v1943_v46 = vadd.f32 0.00028619796, %v1942_v44  ;;  %2746 = vst.msk [vmem:[%s3359_s11 + $0xf0] sm:$0xff] %vm306_vm0, %v2698_v49  ;;  %v4396_v20 = vmul.f32 0.5, %v4285_v0  ;;  %v4399_v1 = vmul.f32 0.5, %v4337_v4 }
 0x1dc   : > { %v2417_v47 = vmul.f32 %v2416_v16, %v2392_v38  ;;  %v1480_v18 = vadd.f32 0.4994258, %v1479_v40  ;;  %v992_v2 = vmul.f32 %v991_v58, %v4271_v35  ;;  %v1953_v41 = vmul.f32 3.8918573e-05, %v4377_v5 }
 0x1dd   : > { %v1944_v37 = vmul.f32 %v1943_v46, %v4377_v5  ;;  %v2422_v62 = vmul.f32 2.1237322e-06, %v4384_v32  ;;  %v1469_v23 = vadd.f32 0.18741608, %v1468_v56  ;;  %v2433_v0 = vmul.f32 3.8918573e-05, %v4384_v32 }
 0x1de   : > { %v2906_v55 = vclamps-f32 %v2417_v47, 1.0  ;;  %v1481_v38 = vmul.f32 %v1480_v18, %v4328_v21  ;;  %v1954_v4 = vadd.f32 0.001143296, %v1953_v41  ;;  %v409_v36 = vadd.f32 %v4104_v11, %v408_v9 }
 0x1df   : > { %v2986_v22 = vpop.eup %2985  ;;  %v1945_v14 = vadd.f32 0.0036580483, %v1944_v37  ;;  %v2423_v17 = vadd.f32 0.00028619796, %v2422_v62  ;;  %v1012_v10 = vand.u32 2147483647, %v4380_v33  ;;  %v1470_v43 = vmul.f32 %v1469_v23, %v4328_v21 }
 0x1e0   : > { %v2662_v35 = vadd.f32 1.0, %v2906_v55  ;;  %v1004_v51 = vmul.f32 %v2986_v22, %v4380_v33  ;;  %v1014_v54 = vand.u32 2147483648, %v4380_v33  ;;  %v4412_v59 = vadd.f32 1.0, %v1481_v38 }
 0x1e1   : > { %v1946_v34 = vmul.f32 %v1945_v14, %v4377_v5  ;;  %v1955_v30 = vmul.f32 %v1954_v4, %v4377_v5  ;;  %v2424_v24 = vmul.f32 %v2423_v17, %v4384_v32  ;;  %v2434_v60 = vadd.f32 0.001143296, %v2433_v0 }
 0x1e2   : > { %v2710_v8 = vmul.f32 %v2662_v35, %v646_v53  ;;  %v1005_v45 = vsub.f32 1.0, %v1004_v51  ;;  %vm1009_vm8 = vweird.f32 %v2986_v22  ;;  %2987 = vrcp.f32 %v4412_v59 }
 0x1e3   : > { %v4419_v63 = vadd.f32 %v516_v48, %v409_v36  ;;  %v439_v28 = vadd.f32 %v4104_v11, %v438_v57  ;;  %v1947_v15 = vadd.f32 0.05243302, %v1946_v34  ;;  %v1956_v7 = vadd.f32 0.014752088, %v1955_v30 }
 0x1e4   : > { %2758 = vst.msk [vmem:[%s3359_s11 + $0x150] sm:$0xff] %vm306_vm0, %v2710_v8  ;;  %v1006_v39 = vmul.f32 %v2986_v22, %v1005_v45  ;;  %v2435_v31 = vmul.f32 %v2434_v60, %v4384_v32  ;;  %vm1008_vm9 = vweird.f32 %v4380_v33  ;;  %vm4426_vm10 = vcmp.eq.f32.partialorder %v1012_v10, 8.507059e+37 }
 0x1e5   : > { %v1015_v21 = vor.u32 1.1754944e-38, %v1014_v54  ;;  %v2425_v27 = vadd.f32 0.0036580483, %v2424_v24  ;;  %v1948_v52 = vmul.f32 %v1947_v15, %v4377_v5  ;;  %v1957_v26 = vmul.f32 %v1956_v7, %v4377_v5  ;;  %vm1010_vm11 = vmor %vm1008_vm9, %vm1009_vm8 }
 0x1e6   : > { %v1007_v3 = vadd.f32 %v2986_v22, %v1006_v39  ;;  %v2436_v44 = vadd.f32 0.014752088, %v2435_v31  ;;  %v1471_v6 = vadd.f32 1.1283791, %v1470_v43  ;;  %v1494_v58 = vand.u32 2147483648, %v4412_v59 }
 0x1e7   : > { %v2426_v33 = vmul.f32 %v2425_v27, %v4384_v32  ;;  %v4437_v49 = vmul.f32 0.70710677, %v4419_v63  ;;  %v1958_v56 = vadd.f32 0.112945676, %v1957_v26  ;;  %v4440_v53 = vadd.f32 %v528_v50, %v439_v28  ;;  %v468_v28 = vpop.f32.mrf.mxu2  ;;  %v540_v26 = vld [vmem:[%s3166_s6 + $0x100] sm:$0xff] }
 0x1e8   : > { %v1011_v29 = vsel %vm1010_vm11, %v2986_v22, %v1007_v3  ;;  %v2437_v40 = vmul.f32 %v2436_v44, %v4384_v32  ;;  %v2988_v16 = vpop.eup %2987  ;;  %vm1488_vm12 = vweird.f32 %v4412_v59  ;;  %v1492_v41 = vand.u32 2147483647, %v4412_v59 }
 0x1e9   : > { %v1016_v46 = vsel %vm4426_vm10, %v1015_v21, %v1011_v29  ;;  %v2427_v47 = vadd.f32 0.05243302, %v2426_v33  ;;  %v1020_v18 = vmul.f32 %v4437_v49, %v4437_v49  ;;  %v1484_v37 = vmul.f32 %v2988_v16, %v4412_v59 }
 0x1ea   : > { %v1017_v9 = vmul.f32 %v1016_v46, %v992_v2  ;;  %v1949_v62 = vadd.f32 0.18741608, %v1948_v52  ;;  %v1959_v55 = vmul.f32 %v1958_v56, %v4377_v5  ;;  %v2438_v38 = vadd.f32 0.112945676, %v2437_v40  ;;  %v498_v46 = vpop.f32.mrf.mxu3 }
 0x1eb   : > { %v2428_v23 = vmul.f32 %v2427_v47, %v4384_v32  ;;  %v4451_v0 = vmin.f32 %v1020_v18, 16.0  ;;  %v1485_v14 = vsub.f32 1.0, %v1484_v37  ;;  %v1495_v4 = vor.u32 1.1754944e-38, %v1494_v58 }
 0x1ec   : > { %v2871_v22 = vclamps-f32 %v1017_v9, 1.0  ;;  %v4454_v17 = vmul.f32 0.70710677, %v4440_v53  ;;  %v1960_v36 = vadd.f32 0.4994258, %v1959_v55  ;;  %v2439_v35 = vmul.f32 %v2438_v38, %v4384_v32 }
 0x1ed   : > { %v2429_v2 = vadd.f32 0.18741608, %v2428_v23  ;;  %v1022_v51 = vmul.f32 2.1237322e-06, %v4451_v0  ;;  %v1486_v54 = vmul.f32 %v2988_v16, %v1485_v14  ;;  %vm1489_vm13 = vweird.f32 %v2988_v16 }
 0x1ee   : > { %v2627_v10 = vadd.f32 1.0, %v2871_v22  ;;  %v1033_v48 = vmul.f32 3.8918573e-05, %v4451_v0  ;;  %v1950_v57 = vmul.f32 %v1949_v62, %v4377_v5  ;;  %v1961_v34 = vmul.f32 %v1960_v36, %v4377_v5  ;;  %vm1490_vm14 = vmor %vm1488_vm12, %vm1489_vm13 }
 0x1ef   : > { %v2440_v30 = vadd.f32 0.4994258, %v2439_v35  ;;  %v1023_v24 = vadd.f32 0.00028619796, %v1022_v51  ;;  %v1487_v45 = vadd.f32 %v2988_v16, %v1486_v54  ;;  %v1500_v60 = vmul.f32 %v4454_v17, %v4454_v17 }
 0x1f0   : > { %v2675_v8 = vmul.f32 %v2627_v10, %v4391_v61  ;;  %v1034_v43 = vadd.f32 0.001143296, %v1033_v48  ;;  %v4466_v39 = vadd.f32 1.0, %v1961_v34  ;;  %v2430_v15 = vmul.f32 %v2429_v2, %v4384_v32  ;;  %v552_v48 = vld [vmem:[%s3166_s6 + $0x160] sm:$0xff] }
 0x1f1   : > { %v2441_v5 = vmul.f32 %v2440_v30, %v4384_v32  ;;  %v1024_v7 = vmul.f32 %v1023_v24, %v4451_v0  ;;  %v1472_v61 = vmul.f32 %v1471_v6, %v4303_v12  ;;  %v1491_v31 = vsel %vm1490_vm14, %v2988_v16, %v1487_v45 }
 0x1f2   : > { %2723 = vst.msk [vmem:[%s3359_s11 + $0x38] sm:$0xff] %vm306_vm0, %v2675_v8  ;;  %vm1493_vm15 = vcmp.eq.f32.partialorder %v1492_v41, 8.507059e+37  ;;  %v1035_v25 = vmul.f32 %v1034_v43, %v4451_v0  ;;  %v1951_v59 = vadd.f32 1.1283791, %v1950_v57  ;;  %2989 = vrcp.f32 %v4466_v39 }
 0x1f3   : > { %v1496_v21 = vsel %vm1493_vm15, %v1495_v4, %v1491_v31  ;;  %v469_v27 = vadd.f32 %v4104_v11, %v468_v28  ;;  %v4478_v3 = vmul.f32 0.5, %v4347_v19  ;;  %v4480_v32 = vadd.f32 1.0, %v2441_v5 }
 0x1f4   : > { %v1497_v50 = vmul.f32 %v1496_v21, %v1472_v61  ;;  %v4482_v52 = vmin.f32 %v1500_v60, 16.0  ;;  %v2431_v12 = vadd.f32 1.1283791, %v2430_v15  ;;  %v1025_v44 = vadd.f32 0.0036580483, %v1024_v7 }
 0x1f5   : > { %v1036_v6 = vadd.f32 0.014752088, %v1035_v25  ;;  %v1972_v33 = vand.u32 2147483647, %v4466_v39  ;;  %2991 = vrcp.f32 %v4480_v32  ;;  %v4488_v29 = vmul.f32 0.5, %v4419_v63 }
 0x1f6   : > { %v2883_v58 = vclamps-f32 %v1497_v50, 1.0  ;;  %v1952_v56 = vmul.f32 %v1951_v59, %v4354_v13  ;;  %v1026_v19 = vmul.f32 %v1025_v44, %v4451_v0  ;;  %v4493_v16 = vadd.f32 %v540_v26, %v469_v27 }
 0x1f7   : > { %v1037_v40 = vmul.f32 %v1036_v6, %v4451_v0  ;;  %v1974_v18 = vand.u32 2147483648, %v4466_v39  ;;  %v1502_v9 = vmul.f32 2.1237322e-06, %v4482_v52  ;;  %v1513_v37 = vmul.f32 3.8918573e-05, %v4482_v52 }
 0x1f8   : > { %v2639_v47 = vadd.f32 1.0, %v2883_v58  ;;  %v2990_v41 = vpop.eup %2989  ;;  %vm1968_vm1 = vweird.f32 %v4466_v39  ;;  %v4500_v13 = vmul.f32 %v2431_v12, %v4363_v42  ;;  %v1027_v63 = vadd.f32 0.05243302, %v1026_v19 }
 0x1f9   : > { %v1038_v62 = vadd.f32 0.112945676, %v1037_v40  ;;  %v1964_v23 = vmul.f32 %v2990_v41, %v4466_v39  ;;  %vm4504_vm2 = vcmp.eq.f32.partialorder %v1972_v33, 8.507059e+37  ;;  %v1503_v22 = vadd.f32 0.00028619796, %v1502_v9  ;;  %v410_v39 = vpop.f32.mrf.mxu0 }
 0x1fa   : > { %v2687_v55 = vmul.f32 %v2639_v47, %v4396_v20  ;;  %v499_v14 = vadd.f32 %v4104_v11, %v498_v46  ;;  %v1028_v4 = vmul.f32 %v1027_v63, %v4451_v0  ;;  %v1514_v42 = vadd.f32 0.001143296, %v1513_v37 }
 0x1fb   : > { %v1039_v36 = vmul.f32 %v1038_v62, %v4451_v0  ;;  %v4512_v2 = vmul.f32 0.70710677, %v4493_v16  ;;  %v2992_v35 = vpop.eup %2991  ;;  %v1965_v20 = vsub.f32 1.0, %v1964_v23  ;;  %v1975_v51 = vor.u32 1.1754944e-38, %v1974_v18 }
 0x1fc   : > { %2735 = vst.msk [vmem:[%s3359_s11 + $0x98] sm:$0xff] %vm306_vm0, %v2687_v55  ;;  %v2452_v10 = vand.u32 2147483647, %v4480_v32  ;;  %v1504_v54 = vmul.f32 %v1503_v22, %v4482_v52  ;;  %vm1969_vm3 = vweird.f32 %v2990_v41  ;;  %v2444_v11 = vmul.f32 %v2992_v35, %v4480_v32 }
 0x1fd   : > { %v1029_v57 = vadd.f32 0.18741608, %v1028_v4  ;;  %v1040_v34 = vadd.f32 0.4994258, %v1039_v36  ;;  %v1966_v30 = vmul.f32 %v2990_v41, %v1965_v20  ;;  %v1515_v8 = vmul.f32 %v1514_v42, %v4482_v52  ;;  %vm1970_vm4 = vmor %vm1968_vm1, %vm1969_vm3  ;;  %v517_v20 = vld [vmem:[%s3166_s6 + $0x48] sm:$0xff] }
 0x1fe   : > { %v1505_v24 = vadd.f32 0.0036580483, %v1504_v54  ;;  %v1980_v45 = vmul.f32 %v4512_v2, %v4512_v2  ;;  %v2445_v43 = vsub.f32 1.0, %v2444_v11  ;;  %v2454_v60 = vand.u32 2147483648, %v4480_v32 }
 0x1ff   : > { %v1041_v28 = vmul.f32 %v1040_v34, %v4451_v0  ;;  %v4525_v15 = vadd.f32 %v552_v48, %v499_v14  ;;  %v1967_v5 = vadd.f32 %v2990_v41, %v1966_v30  ;;  %v1516_v61 = vadd.f32 0.014752088, %v1515_v8 }
 0x200   : > { %v1506_v7 = vmul.f32 %v1505_v24, %v4482_v52  ;;  %v4528_v31 = vmin.f32 %v1980_v45, 16.0  ;;  %v2446_v25 = vmul.f32 %v2992_v35, %v2445_v43  ;;  %vm2449_vm5 = vweird.f32 %v2992_v35 }
 0x201   : > { %v1030_v21 = vmul.f32 %v1029_v57, %v4451_v0  ;;  %v4534_v59 = vadd.f32 1.0, %v1041_v28  ;;  %v1971_v27 = vsel %vm1970_vm4, %v2990_v41, %v1967_v5  ;;  %v1517_v26 = vmul.f32 %v1516_v61, %v4482_v52 }
 0x202   : > { %v1507_v50 = vadd.f32 0.05243302, %v1506_v7  ;;  %v1982_v12 = vmul.f32 2.1237322e-06, %v4528_v31  ;;  %v1976_v44 = vsel %vm4504_vm2, %v1975_v51, %v1971_v27  ;;  %v2447_v6 = vadd.f32 %v2992_v35, %v2446_v25 }
 0x203   : > { %vm2448_vm6 = vweird.f32 %v4480_v32  ;;  %2993 = vrcp.f32 %v4534_v59  ;;  %v1977_v58 = vmul.f32 %v1976_v44, %v1952_v56  ;;  %vm2453_vm8 = vcmp.eq.f32.partialorder %v2452_v10, 8.507059e+37  ;;  %v4549_v32 = vld [vmem:[%s5070_s3] ss:$0 sm:$0xff] }
 0x204   : > { %vm2450_vm7 = vmor %vm2448_vm6, %vm2449_vm5  ;;  %v2455_v0 = vor.u32 1.1754944e-38, %v2454_v60  ;;  %v4543_v33 = vmul.f32 0.70710677, %v4525_v15  ;;  %v1508_v40 = vmul.f32 %v1507_v50, %v4482_v52  ;;  %v1518_v46 = vadd.f32 0.112945676, %v1517_v26  ;;  %v440_v26 = vpop.f32.mrf.mxu1 }
 0x205   : > { %v2451_v19 = vsel %vm2450_vm7, %v2992_v35, %v2447_v6  ;;  %v1983_v47 = vadd.f32 0.00028619796, %v1982_v12  ;;  %v2895_v18 = vclamps-f32 %v1977_v58, 1.0  ;;  %v1031_v37 = vadd.f32 1.1283791, %v1030_v21 }
 0x206   : > { %v2456_v9 = vsel %vm2453_vm8, %v2455_v0, %v2451_v19  ;;  %v411_v56 = vadd.f32 %v4549_v32, %v410_v39  ;;  %v1509_v63 = vadd.f32 0.18741608, %v1508_v40  ;;  %v1519_v62 = vmul.f32 %v1518_v46, %v4482_v52 }
 0x207   : > { %v2457_v41 = vmul.f32 %v2456_v9, %v4500_v13  ;;  %v1984_v55 = vmul.f32 %v1983_v47, %v4528_v31  ;;  %v2651_v23 = vadd.f32 1.0, %v2895_v18  ;;  %v1052_v38 = vand.u32 2147483647, %v4534_v59  ;;  %v529_v47 = vld [vmem:[%s3166_s6 + $0xa8] sm:$0xff] }
 0x208   : > { %v1993_v22 = vmul.f32 3.8918573e-05, %v4528_v31  ;;  %v2460_v14 = vmul.f32 %v4543_v33, %v4543_v33  ;;  %v1520_v42 = vadd.f32 0.4994258, %v1519_v62  ;;  %v1054_v10 = vand.u32 2147483648, %v4534_v59 }
 0x209   : > { %v2994_v4 = vpop.eup %2993  ;;  %v2907_v36 = vclamps-f32 %v2457_v41, 1.0  ;;  %v1985_v35 = vadd.f32 0.0036580483, %v1984_v55  ;;  %v2699_v13 = vmul.f32 %v2651_v23, %v4399_v1  ;;  %v1510_v11 = vmul.f32 %v1509_v63, %v4482_v52 }
 0x20a   : > { %v1044_v51 = vmul.f32 %v2994_v4, %v4534_v59  ;;  %v1994_v54 = vadd.f32 0.001143296, %v1993_v22  ;;  %v1521_v57 = vmul.f32 %v1520_v42, %v4482_v52  ;;  %v4569_v8 = vmin.f32 %v2460_v14, 16.0 }
 0x20b   : > { %v2663_v48 = vadd.f32 1.0, %v2907_v36  ;;  %v1986_v34 = vmul.f32 %v1985_v35, %v4528_v31  ;;  %2747 = vst.msk [vmem:[%s3359_s11 + $0xf8] sm:$0xff] %vm306_vm0, %v2699_v13  ;;  %v4571_v1 = vadd.f32 %v517_v20, %v411_v56  ;;  %vm1049_vm9 = vweird.f32 %v2994_v4 }
 0x20c   : > { %v1045_v30 = vsub.f32 1.0, %v1044_v51  ;;  %v1995_v24 = vmul.f32 %v1994_v54, %v4528_v31  ;;  %v4574_v43 = vadd.f32 1.0, %v1521_v57  ;;  %v2462_v52 = vmul.f32 2.1237322e-06, %v4569_v8 }
 0x20d   : > { %v2711_v45 = vmul.f32 %v2663_v48, %v4478_v3  ;;  %v1987_v60 = vadd.f32 0.05243302, %v1986_v34  ;;  %v2473_v7 = vmul.f32 3.8918573e-05, %v4569_v8  ;;  %v1032_v61 = vmul.f32 %v1031_v37, %v4437_v49 }
 0x20e   : > { %v1046_v28 = vmul.f32 %v2994_v4, %v1045_v30  ;;  %v1996_v5 = vadd.f32 0.014752088, %v1995_v24  ;;  %vm1048_vm10 = vweird.f32 %v4534_v59  ;;  %v1511_v25 = vadd.f32 1.1283791, %v1510_v11 }
 0x20f   : > { %2759 = vst.msk [vmem:[%s3359_s11 + $0x158] sm:$0xff] %vm306_vm0, %v2711_v45  ;;  %2995 = vrcp.f32 %v4574_v43  ;;  %v1988_v21 = vmul.f32 %v1987_v60, %v4528_v31  ;;  %v2463_v50 = vadd.f32 0.00028619796, %v2462_v52  ;;  %vm1050_vm11 = vmor %vm1048_vm10, %vm1049_vm9  ;;  %vm1053_vm12 = vcmp.eq.f32.partialorder %v1052_v38, 8.507059e+37  ;;  %v470_v38 = vpop.f32.mrf.mxu2  ;;  %v541_v60 = vld [vmem:[%s3166_s6 + $0x108] sm:$0xff] }
 0x210   : > { %v1047_v3 = vadd.f32 %v2994_v4, %v1046_v28  ;;  %v1997_v27 = vmul.f32 %v1996_v5, %v4528_v31  ;;  %v1055_v12 = vor.u32 1.1754944e-38, %v1054_v10  ;;  %v2474_v44 = vadd.f32 0.001143296, %v2473_v7 }
 0x211   : > { %v4587_v49 = vmul.f32 0.70710677, %v4571_v1  ;;  %v1989_v6 = vadd.f32 0.18741608, %v1988_v21  ;;  %v2464_v58 = vmul.f32 %v2463_v50, %v4569_v8  ;;  %v441_v46 = vadd.f32 %v4549_v32, %v440_v26 }
 0x212   : > { %v1051_v59 = vsel %vm1050_vm11, %v2994_v4, %v1047_v3  ;;  %v1998_v39 = vadd.f32 0.112945676, %v1997_v27  ;;  %v2475_v19 = vmul.f32 %v2474_v44, %v4569_v8  ;;  %v1512_v9 = vmul.f32 %v1511_v25, %v4454_v17 }
 0x213   : > { %v1056_v0 = vsel %vm1053_vm12, %v1055_v12, %v1051_v59  ;;  %v1060_v40 = vmul.f32 %v4587_v49, %v4587_v49  ;;  %v2465_v56 = vadd.f32 0.0036580483, %v2464_v58  ;;  %v1532_v63 = vand.u32 2147483647, %v4574_v43 }
 0x214   : > { %v1057_v18 = vmul.f32 %v1056_v0, %v1032_v61  ;;  %v1999_v37 = vmul.f32 %v1998_v39, %v4528_v31  ;;  %v1534_v62 = vand.u32 2147483648, %v4574_v43  ;;  %v2476_v55 = vadd.f32 0.014752088, %v2475_v19 }
 0x215   : > { %v2996_v41 = vpop.eup %2995  ;;  %v4599_v23 = vmin.f32 %v1060_v40, 16.0  ;;  %v1990_v4 = vmul.f32 %v1989_v6, %v4528_v31  ;;  %v4603_v36 = vadd.f32 %v529_v47, %v441_v46  ;;  %v2466_v42 = vmul.f32 %v2465_v56, %v4569_v8 }
 0x216   : > { %v2872_v22 = vclamps-f32 %v1057_v18, 1.0  ;;  %v1524_v14 = vmul.f32 %v2996_v41, %v4574_v43  ;;  %v2000_v17 = vadd.f32 0.4994258, %v1999_v37  ;;  %v2477_v35 = vmul.f32 %v2476_v55, %v4569_v8 }
 0x217   : > { %v1062_v20 = vmul.f32 2.1237322e-06, %v4599_v23  ;;  %v1073_v10 = vmul.f32 3.8918573e-05, %v4599_v23  ;;  %v471_v54 = vadd.f32 %v4549_v32, %v470_v38  ;;  %v2467_v11 = vadd.f32 0.05243302, %v2466_v42 }
 0x218   : > { %v2628_v13 = vadd.f32 1.0, %v2872_v22  ;;  %v1525_v51 = vsub.f32 1.0, %v1524_v14  ;;  %v2001_v48 = vmul.f32 %v2000_v17, %v4528_v31  ;;  %v2478_v57 = vadd.f32 0.112945676, %v2477_v35  ;;  %v500_v35 = vpop.f32.mrf.mxu3 }
 0x219   : > { %v1063_v34 = vadd.f32 0.00028619796, %v1062_v20  ;;  %vm1529_vm13 = vweird.f32 %v2996_v41  ;;  %v1074_v45 = vadd.f32 0.001143296, %v1073_v10  ;;  %v2468_v5 = vmul.f32 %v2467_v11, %v4569_v8 }
 0x21a   : > { %v2676_v30 = vmul.f32 %v2628_v13, %v4488_v29  ;;  %v1526_v24 = vmul.f32 %v2996_v41, %v1525_v51  ;;  %v4613_v28 = vadd.f32 1.0, %v2001_v48  ;;  %v2479_v52 = vmul.f32 %v2478_v57, %v4569_v8 }
 0x21b   : > { %v1064_v7 = vmul.f32 %v1063_v34, %v4599_v23  ;;  %vm1528_vm14 = vweird.f32 %v4574_v43  ;;  %vm1533_vm15 = vcmp.eq.f32.partialorder %v1532_v63, 8.507059e+37  ;;  %v1075_v29 = vmul.f32 %v1074_v45, %v4599_v23 }
 0x21c   : > { %2724 = vst.msk [vmem:[%s3359_s11 + $0x40] sm:$0xff] %vm306_vm0, %v2676_v30  ;;  %v1527_v31 = vadd.f32 %v2996_v41, %v1526_v24  ;;  %vm1530_vm1 = vmor %vm1528_vm14, %vm1529_vm13  ;;  %v1535_v61 = vor.u32 1.1754944e-38, %v1534_v62  ;;  %2997 = vrcp.f32 %v4613_v28  ;;  %v4624_v25 = vmul.f32 0.70710677, %v4603_v36 }
 0x21d   : > { %v4626_v3 = vadd.f32 %v541_v60, %v471_v54  ;;  %v2469_v27 = vadd.f32 0.18741608, %v2468_v5  ;;  %v2480_v50 = vadd.f32 0.4994258, %v2479_v52  ;;  %v1065_v26 = vadd.f32 0.0036580483, %v1064_v7 }
 0x21e   : > { %v1531_v21 = vsel %vm1530_vm1, %v2996_v41, %v1527_v31  ;;  %v624_v12 = vmul.f32 0.5, %v4440_v53  ;;  %v1991_v43 = vadd.f32 1.1283791, %v1990_v4  ;;  %v1076_v59 = vadd.f32 0.014752088, %v1075_v29 }
 0x21f   : > { %v1536_v44 = vsel %vm1533_vm15, %v1535_v61, %v1531_v21  ;;  %v2012_v39 = vand.u32 2147483647, %v4613_v28  ;;  %v2481_v58 = vmul.f32 %v2480_v50, %v4569_v8  ;;  %v1066_v0 = vmul.f32 %v1065_v26, %v4599_v23  ;;  %v553_v26 = vld [vmem:[%s3166_s6 + $0x168] sm:$0xff] }
 0x220   : > { %v1537_v6 = vmul.f32 %v1536_v44, %v1512_v9  ;;  %v2470_v19 = vmul.f32 %v2469_v27, %v4569_v8  ;;  %v1077_v40 = vmul.f32 %v1076_v59, %v4599_v23  ;;  %v1540_v46 = vmul.f32 %v4624_v25, %v4624_v25 }
 0x221   : > { %v4637_v47 = vmul.f32 0.70710677, %v4626_v3  ;;  %v4640_v18 = vmul.f32 0.5, %v4493_v16  ;;  %v4642_v9 = vadd.f32 1.0, %v2481_v58  ;;  %v1067_v37 = vadd.f32 0.05243302, %v1066_v0  ;;  %v413_v58 = vpop.f32.mrf.mxu0 }
 0x222   : > { %v2884_v53 = vclamps-f32 %v1537_v6, 1.0  ;;  %v2998_v56 = vpop.eup %2997  ;;  %v2014_v41 = vand.u32 2147483648, %v4613_v28  ;;  %v4646_v8 = vmul.f32 0.5, %v4525_v15  ;;  %v1078_v63 = vadd.f32 0.112945676, %v1077_v40 }
 0x223   : > { %v4648_v62 = vmin.f32 %v1540_v46, 16.0  ;;  %v1992_v38 = vmul.f32 %v1991_v43, %v4512_v2  ;;  %v2004_v22 = vmul.f32 %v2998_v56, %v4613_v28  ;;  %v2020_v16 = vmul.f32 %v4637_v47, %v4637_v47 }
 0x224   : > { %v2640_v55 = vadd.f32 1.0, %v2884_v53  ;;  %vm2008_vm2 = vweird.f32 %v4613_v28  ;;  %vm4655_vm3 = vcmp.eq.f32.partialorder %v2012_v39, 8.507059e+37  ;;  %v2471_v15 = vadd.f32 1.1283791, %v2470_v19 }
 0x225   : > { %2999 = vrcp.f32 %v4642_v9  ;;  %v2005_v17 = vsub.f32 1.0, %v2004_v22  ;;  %v1068_v42 = vmul.f32 %v1067_v37, %v4599_v23  ;;  %v1079_v2 = vmul.f32 %v1078_v63, %v4599_v23 }
 0x226   : > { %v2688_v4 = vmul.f32 %v2640_v55, %v624_v12  ;;  %vm2009_vm4 = vweird.f32 %v2998_v56  ;;  %v2015_v20 = vor.u32 1.1754944e-38, %v2014_v41  ;;  %v1542_v13 = vmul.f32 2.1237322e-06, %v4648_v62 }
 0x227   : > { %v1553_v51 = vmul.f32 3.8918573e-05, %v4648_v62  ;;  %v2006_v10 = vmul.f32 %v2998_v56, %v2005_v17  ;;  %v1069_v54 = vadd.f32 0.18741608, %v1068_v42  ;;  %v1080_v48 = vadd.f32 0.4994258, %v1079_v2  ;;  %vm2010_vm5 = vmor %vm2008_vm2, %vm2009_vm4 }
 0x228   : > { %2736 = vst.msk [vmem:[%s3359_s11 + $0xa0] sm:$0xff] %vm306_vm0, %v2688_v4  ;;  %v4666_v11 = vmin.f32 %v2020_v16, 16.0  ;;  %v2472_v57 = vmul.f32 %v2471_v15, %v4543_v33  ;;  %v1543_v34 = vadd.f32 0.00028619796, %v1542_v13  ;;  %v501_v24 = vadd.f32 %v4549_v32, %v500_v35 }
 0x229   : > { %v1554_v30 = vadd.f32 0.001143296, %v1553_v51  ;;  %v2007_v45 = vadd.f32 %v2998_v56, %v2006_v10  ;;  %v2492_v60 = vand.u32 2147483647, %v4642_v9  ;;  %v1081_v5 = vmul.f32 %v1080_v48, %v4599_v23 }
 0x22a   : > { %v2022_v52 = vmul.f32 2.1237322e-06, %v4666_v11  ;;  %vm2488_vm6 = vweird.f32 %v4642_v9  ;;  %v1070_v33 = vmul.f32 %v1069_v54, %v4599_v23  ;;  %v1544_v31 = vmul.f32 %v1543_v34, %v4648_v62 }
 0x22b   : > { %v3000_v7 = vpop.eup %2999  ;;  %v1555_v29 = vmul.f32 %v1554_v30, %v4648_v62  ;;  %v2011_v61 = vsel %vm2010_vm5, %v2998_v56, %v2007_v45  ;;  %v2494_v27 = vand.u32 2147483648, %v4642_v9  ;;  %v2033_v50 = vmul.f32 3.8918573e-05, %v4666_v11 }
 0x22c   : > { %v2484_v21 = vmul.f32 %v3000_v7, %v4642_v9  ;;  %v2016_v28 = vsel %vm4655_vm3, %v2015_v20, %v2011_v61  ;;  %v4686_v12 = vadd.f32 1.0, %v1081_v5  ;;  %v1545_v44 = vadd.f32 0.0036580483, %v1544_v31 }
 0x22d   : > { %v1556_v43 = vadd.f32 0.014752088, %v1555_v29  ;;  %v2017_v23 = vmul.f32 %v2016_v28, %v1992_v38  ;;  %vm4688_vm7 = vcmp.eq.f32.partialorder %v2492_v60, 8.507059e+37  ;;  %v2023_v39 = vadd.f32 0.00028619796, %v2022_v52  ;;  %v518_v28 = vld [vmem:[%s3166_s6 + $0x50] sm:$0xff] }
 0x22e   : > { %v2485_v59 = vsub.f32 1.0, %v2484_v21  ;;  %vm2489_vm8 = vweird.f32 %v3000_v7  ;;  %v1071_v0 = vadd.f32 1.1283791, %v1070_v33  ;;  %3001 = vrcp.f32 %v4686_v12 }
 0x22f   : > { %v4693_v19 = vadd.f32 %v553_v26, %v501_v24  ;;  %v2896_v40 = vclamps-f32 %v2017_v23, 1.0  ;;  %v1546_v53 = vmul.f32 %v1545_v44, %v4648_v62  ;;  %v1557_v37 = vmul.f32 %v1556_v43, %v4648_v62  ;;  %vm2490_vm9 = vmor %vm2488_vm6, %vm2489_vm8 }
 0x230   : > { %v2486_v46 = vmul.f32 %v3000_v7, %v2485_v59  ;;  %v2495_v56 = vor.u32 1.1754944e-38, %v2494_v27  ;;  %v2024_v41 = vmul.f32 %v2023_v39, %v4666_v11  ;;  %v2034_v63 = vadd.f32 0.001143296, %v2033_v50 }
 0x231   : > { %v414_v55 = vadd.f32 %v4549_v32, %v413_v58  ;;  %v2652_v38 = vadd.f32 1.0, %v2896_v40  ;;  %v1547_v16 = vadd.f32 0.05243302, %v1546_v53  ;;  %v1558_v14 = vadd.f32 0.112945676, %v1557_v37  ;;  %v443_v37 = vpop.f32.mrf.mxu1 }
 0x232   : > { %v2487_v22 = vadd.f32 %v3000_v7, %v2486_v46  ;;  %v1072_v15 = vmul.f32 %v1071_v0, %v4587_v49  ;;  %v2025_v4 = vadd.f32 0.0036580483, %v2024_v41  ;;  %v2035_v17 = vmul.f32 %v2034_v63, %v4666_v11 }
 0x233   : > { %v4705_v42 = vmul.f32 0.70710677, %v4693_v19  ;;  %v2700_v2 = vmul.f32 %v2652_v38, %v4640_v18  ;;  %v1548_v20 = vmul.f32 %v1547_v16, %v4648_v62  ;;  %v1559_v13 = vmul.f32 %v1558_v14, %v4648_v62 }
 0x234   : > { %v2491_v35 = vsel %vm2490_vm9, %v3000_v7, %v2487_v22  ;;  %v3002_v51 = vpop.eup %3001  ;;  %v2026_v10 = vmul.f32 %v2025_v4, %v4666_v11  ;;  %v2036_v49 = vadd.f32 0.014752088, %v2035_v17  ;;  %v1092_v34 = vand.u32 2147483647, %v4686_v12 }
 0x235   : > { %v2496_v9 = vsel %vm4688_vm7, %v2495_v56, %v2491_v35  ;;  %v2500_v54 = vmul.f32 %v4705_v42, %v4705_v42  ;;  %2748 = vst.msk [vmem:[%s3359_s11 + $0x100] sm:$0xff] %vm306_vm0, %v2700_v2  ;;  %v1084_v18 = vmul.f32 %v3002_v51, %v4686_v12  ;;  %v1549_v30 = vadd.f32 0.18741608, %v1548_v20  ;;  %v473_v20 = vpop.f32.mrf.mxu2 }
 0x236   : > { %v2497_v48 = vmul.f32 %v2496_v9, %v2472_v57  ;;  %v1560_v24 = vadd.f32 0.4994258, %v1559_v13  ;;  %v2027_v45 = vadd.f32 0.05243302, %v2026_v10  ;;  %v2037_v60 = vmul.f32 %v2036_v49, %v4666_v11 }
 0x237   : > { %v4720_v5 = vmin.f32 %v2500_v54, 16.0  ;;  %v1085_v7 = vsub.f32 1.0, %v1084_v18  ;;  %vm1089_vm10 = vweird.f32 %v3002_v51  ;;  %v1094_v33 = vand.u32 2147483648, %v4686_v12 }
 0x238   : > { %v2908_v52 = vclamps-f32 %v2497_v48, 1.0  ;;  %v1561_v31 = vmul.f32 %v1560_v24, %v4648_v62  ;;  %v2028_v57 = vmul.f32 %v2027_v45, %v4666_v11  ;;  %v2038_v29 = vadd.f32 0.112945676, %v2037_v60 }
 0x239   : > { %v2502_v61 = vmul.f32 2.1237322e-06, %v4720_v5  ;;  %v1086_v27 = vmul.f32 %v3002_v51, %v1085_v7  ;;  %v1550_v50 = vmul.f32 %v1549_v30, %v4648_v62  ;;  %v2513_v26 = vmul.f32 3.8918573e-05, %v4720_v5 }
 0x23a   : > { %v2664_v21 = vadd.f32 1.0, %v2908_v52  ;;  %vm1088_vm11 = vweird.f32 %v4686_v12  ;;  %v4730_v44 = vadd.f32 1.0, %v1561_v31  ;;  %v2039_v43 = vmul.f32 %v2038_v29, %v4666_v11  ;;  %v542_v52 = vld [vmem:[%s3166_s6 + $0x110] sm:$0xff] }
 0x23b   : > { %v2503_v23 = vadd.f32 0.00028619796, %v2502_v61  ;;  %v1087_v6 = vadd.f32 %v3002_v51, %v1086_v27  ;;  %vm1093_vm12 = vcmp.eq.f32.partialorder %v1092_v34, 8.507059e+37  ;;  %v2514_v39 = vadd.f32 0.001143296, %v2513_v26  ;;  %vm1090_vm13 = vmor %vm1088_vm11, %vm1089_vm10 }
 0x23c   : > { %v2712_v59 = vmul.f32 %v2664_v21, %v4646_v8  ;;  %v1095_v58 = vor.u32 1.1754944e-38, %v1094_v33  ;;  %3003 = vrcp.f32 %v4730_v44  ;;  %v2029_v62 = vadd.f32 0.18741608, %v2028_v57 }
 0x23d   : > { %v4736_v0 = vadd.f32 %v518_v28, %v414_v55  ;;  %v1091_v12 = vsel %vm1090_vm13, %v3002_v51, %v1087_v6  ;;  %v1551_v40 = vadd.f32 1.1283791, %v1550_v50  ;;  %v2040_v46 = vadd.f32 0.4994258, %v2039_v43 }
 0x23e   : > { %2760 = vst.msk [vmem:[%s3359_s11 + $0x160] sm:$0xff] %vm306_vm0, %v2712_v59  ;;  %v2504_v53 = vmul.f32 %v2503_v23, %v4720_v5  ;;  %v613_v8 = vmul.f32 0.5, %v4571_v1  ;;  %v1096_v56 = vsel %vm1093_vm12, %v1095_v58, %v1091_v12  ;;  %v2515_v41 = vmul.f32 %v2514_v39, %v4720_v5 }
 0x23f   : > { %v1097_v63 = vmul.f32 %v1096_v56, %v1072_v15  ;;  %v4744_v38 = vmul.f32 0.5, %v4603_v36  ;;  %v2041_v55 = vmul.f32 %v2040_v46, %v4666_v11  ;;  %v2030_v16 = vmul.f32 %v2029_v62, %v4666_v11  ;;  %v530_v36 = vld [vmem:[%s3166_s6 + $0xb0] sm:$0xff] }
 0x240   : > { %v2505_v22 = vadd.f32 0.0036580483, %v2504_v53  ;;  %v2516_v14 = vadd.f32 0.014752088, %v2515_v41  ;;  %v4749_v4 = vmul.f32 0.70710677, %v4736_v0  ;;  %v444_v17 = vadd.f32 %v4549_v32, %v443_v37 }
 0x241   : > { %v2873_v2 = vclamps-f32 %v1097_v63, 1.0  ;;  %v1552_v1 = vmul.f32 %v1551_v40, %v4624_v25  ;;  %v4753_v35 = vadd.f32 1.0, %v2041_v55  ;;  %v1572_v51 = vand.u32 2147483647, %v4730_v44 }
 0x242   : > { %v2506_v15 = vmul.f32 %v2505_v22, %v4720_v5  ;;  %v3004_v13 = vpop.eup %3003  ;;  %v1574_v11 = vand.u32 2147483648, %v4730_v44  ;;  %v2517_v9 = vmul.f32 %v2516_v14, %v4720_v5  ;;  %v1100_v10 = vmul.f32 %v4749_v4, %v4749_v4 }
 0x243   : > { %v2629_v49 = vadd.f32 1.0, %v2873_v2  ;;  %v1564_v25 = vmul.f32 %v3004_v13, %v4730_v44  ;;  %vm1568_vm14 = vweird.f32 %v4730_v44  ;;  %3005 = vrcp.f32 %v4753_v35 }
 0x244   : > { %v2031_v54 = vadd.f32 1.1283791, %v2030_v16  ;;  %v2507_v48 = vadd.f32 0.05243302, %v2506_v15  ;;  %v4765_v18 = vadd.f32 %v530_v36, %v444_v17  ;;  %v474_v34 = vadd.f32 %v4549_v32, %v473_v20 }
 0x245   : > { %v2677_v30 = vmul.f32 %v2629_v49, %v613_v8  ;;  %v1565_v24 = vsub.f32 1.0, %v1564_v25  ;;  %v2518_v45 = vadd.f32 0.112945676, %v2517_v9  ;;  %v4768_v60 = vmin.f32 %v1100_v10, 16.0 }
 0x246   : > { %vm1569_vm15 = vweird.f32 %v3004_v13  ;;  %vm4771_vm1 = vcmp.eq.f32.partialorder %v1572_v51, 8.507059e+37  ;;  %v1575_v33 = vor.u32 1.1754944e-38, %v1574_v11  ;;  %v2508_v31 = vmul.f32 %v2507_v48, %v4720_v5 }
 0x247   : > { %2725 = vst.msk [vmem:[%s3359_s11 + $0x48] sm:$0xff] %vm306_vm0, %v2677_v30  ;;  %v1566_v57 = vmul.f32 %v3004_v13, %v1565_v24  ;;  %v2519_v29 = vmul.f32 %v2518_v45, %v4720_v5  ;;  %v1102_v61 = vmul.f32 2.1237322e-06, %v4768_v60  ;;  %v1113_v21 = vmul.f32 3.8918573e-05, %v4768_v60  ;;  %vm1570_vm2 = vmor %vm1568_vm14, %vm1569_vm15 }
 0x248   : > { %v2032_v27 = vmul.f32 %v2031_v54, %v4637_v47  ;;  %v2509_v50 = vadd.f32 0.18741608, %v2508_v31  ;;  %v4783_v26 = vmul.f32 0.70710677, %v4765_v18  ;;  %v4785_v28 = vadd.f32 %v542_v52, %v474_v34  ;;  %v554_v52 = vld [vmem:[%s3166_s6 + $0x170] sm:$0xff] }
 0x249   : > { %v3006_v43 = vpop.eup %3005  ;;  %v1567_v23 = vadd.f32 %v3004_v13, %v1566_v57  ;;  %v2520_v59 = vadd.f32 0.4994258, %v2519_v29  ;;  %v1103_v6 = vadd.f32 0.00028619796, %v1102_v61  ;;  %v1114_v39 = vadd.f32 0.001143296, %v1113_v21 }
 0x24a   : > { %v2044_v58 = vmul.f32 %v3006_v43, %v4753_v35  ;;  %v2052_v62 = vand.u32 2147483647, %v4753_v35  ;;  %v2054_v47 = vand.u32 2147483648, %v4753_v35  ;;  %v1580_v12 = vmul.f32 %v4783_v26, %v4783_v26 }
 0x24b   : > { %v1571_v40 = vsel %vm1570_vm2, %v3004_v13, %v1567_v23  ;;  %v2521_v46 = vmul.f32 %v2520_v59, %v4720_v5  ;;  %v1104_v53 = vmul.f32 %v1103_v6, %v4768_v60  ;;  %v1115_v37 = vmul.f32 %v1114_v39, %v4768_v60 }
 0x24c   : > { %v1576_v44 = vsel %vm4771_vm1, %v1575_v33, %v1571_v40  ;;  %v2045_v8 = vsub.f32 1.0, %v2044_v58  ;;  %v2510_v56 = vmul.f32 %v2509_v50, %v4720_v5  ;;  %v4801_v41 = vmin.f32 %v1580_v12, 16.0  ;;  %v503_v5 = vpop.f32.mrf.mxu3 }
 0x24d   : > { %v1577_v63 = vmul.f32 %v1576_v44, %v1552_v1  ;;  %v4803_v55 = vadd.f32 1.0, %v2521_v46  ;;  %v1105_v22 = vadd.f32 0.0036580483, %v1104_v53  ;;  %v1116_v16 = vadd.f32 0.014752088, %v1115_v37 }
 0x24e   : > { %v2046_v14 = vmul.f32 %v3006_v43, %v2045_v8  ;;  %vm2049_vm3 = vweird.f32 %v3006_v43  ;;  %v1582_v17 = vmul.f32 2.1237322e-06, %v4801_v41  ;;  %v1593_v2 = vmul.f32 3.8918573e-05, %v4801_v41 }
 0x24f   : > { %v2885_v15 = vclamps-f32 %v1577_v63, 1.0  ;;  %vm2048_vm4 = vweird.f32 %v4753_v35  ;;  %vm4808_vm5 = vcmp.eq.f32.partialorder %v2052_v62, 8.507059e+37  ;;  %3007 = vrcp.f32 %v4803_v55 }
 0x250   : > { %v2047_v1 = vadd.f32 %v3006_v43, %v2046_v14  ;;  %v2511_v20 = vadd.f32 1.1283791, %v2510_v56  ;;  %v1106_v13 = vmul.f32 %v1105_v22, %v4768_v60  ;;  %v1117_v51 = vmul.f32 %v1116_v16, %v4768_v60  ;;  %vm2050_vm6 = vmor %vm2048_vm4, %vm2049_vm3 }
 0x251   : > { %v2641_v11 = vadd.f32 1.0, %v2885_v15  ;;  %v2055_v9 = vor.u32 1.1754944e-38, %v2054_v47  ;;  %v1583_v10 = vadd.f32 0.00028619796, %v1582_v17  ;;  %v1594_v35 = vadd.f32 0.001143296, %v1593_v2 }
 0x252   : > { %v2051_v49 = vsel %vm2050_vm6, %v3006_v43, %v2047_v1  ;;  %v1107_v25 = vadd.f32 0.05243302, %v1106_v13  ;;  %v1118_v54 = vadd.f32 0.112945676, %v1117_v51  ;;  %v504_v48 = vadd.f32 %v4549_v32, %v503_v5 }
 0x253   : > { %v2689_v34 = vmul.f32 %v2641_v11, %v4744_v38  ;;  %v2056_v30 = vsel %vm4808_vm5, %v2055_v9, %v2051_v49  ;;  %v1584_v24 = vmul.f32 %v1583_v10, %v4801_v41  ;;  %v1595_v45 = vmul.f32 %v1594_v35, %v4801_v41  ;;  %v415_v11 = vpop.f32.mrf.mxu0 }
 0x254   : > { %v2057_v7 = vmul.f32 %v2056_v30, %v2032_v27  ;;  %v1108_v33 = vmul.f32 %v1107_v25, %v4768_v60  ;;  %v1119_v31 = vmul.f32 %v1118_v54, %v4768_v60  ;;  %v4825_v57 = vmul.f32 0.70710677, %v4785_v28 }
 0x255   : > { %v3008_v29 = vpop.eup %3007  ;;  %2737 = vst.msk [vmem:[%s3359_s11 + $0xa8] sm:$0xff] %vm306_vm0, %v2689_v34  ;;  %v637_v38 = vmul.f32 0.5, %v4626_v3  ;;  %v2512_v61 = vmul.f32 %v2511_v20, %v4705_v42  ;;  %v1585_v21 = vadd.f32 0.0036580483, %v1584_v24  ;;  %v1596_v50 = vadd.f32 0.014752088, %v1595_v45 }
 0x256   : > { %v2897_v43 = vclamps-f32 %v2057_v7, 1.0  ;;  %v2524_v23 = vmul.f32 %v3008_v29, %v4803_v55  ;;  %v2532_v27 = vand.u32 2147483647, %v4803_v55  ;;  %v4833_v59 = vadd.f32 %v554_v52, %v504_v48 }
 0x257   : > { %v1120_v6 = vadd.f32 0.4994258, %v1119_v31  ;;  %v1586_v39 = vmul.f32 %v1585_v21, %v4801_v41  ;;  %v1597_v58 = vmul.f32 %v1596_v50, %v4801_v41  ;;  %v2060_v62 = vmul.f32 %v4825_v57, %v4825_v57 }
 0x258   : > { %v2653_v3 = vadd.f32 1.0, %v2897_v43  ;;  %v2525_v42 = vsub.f32 1.0, %v2524_v23  ;;  %v2534_v47 = vand.u32 2147483648, %v4803_v55  ;;  %v1109_v12 = vadd.f32 0.18741608, %v1108_v33  ;;  %v445_v33 = vpop.f32.mrf.mxu1 }
 0x259   : > { %v1121_v40 = vmul.f32 %v1120_v6, %v4768_v60  ;;  %v1587_v46 = vadd.f32 0.05243302, %v1586_v39  ;;  %v1598_v53 = vadd.f32 0.112945676, %v1597_v58  ;;  %v4841_v37 = vmin.f32 %v2060_v62, 16.0 }
 0x25a   : > { %v2701_v44 = vmul.f32 %v2653_v3, %v637_v38  ;;  %v2526_v8 = vmul.f32 %v3008_v29, %v2525_v42  ;;  %vm2529_vm7 = vweird.f32 %v3008_v29  ;;  %v4844_v56 = vmul.f32 0.70710677, %v4833_v59 }
 0x25b   : > { %v4846_v63 = vadd.f32 1.0, %v1121_v40  ;;  %v1588_v22 = vmul.f32 %v1587_v46, %v4801_v41  ;;  %v1599_v16 = vmul.f32 %v1598_v53, %v4801_v41  ;;  %v2062_v14 = vmul.f32 2.1237322e-06, %v4841_v37 }
 0x25c   : > { %2749 = vst.msk [vmem:[%s3359_s11 + $0x108] sm:$0xff] %vm306_vm0, %v2701_v44  ;;  %v2527_v17 = vadd.f32 %v3008_v29, %v2526_v8  ;;  %vm2528_vm8 = vweird.f32 %v4803_v55  ;;  %v1110_v2 = vmul.f32 %v1109_v12, %v4768_v60  ;;  %v2073_v15 = vmul.f32 3.8918573e-05, %v4841_v37  ;;  %v531_v12 = vld [vmem:[%s3166_s6 + $0xb8] sm:$0xff] }
 0x25d   : > { %vm2530_vm9 = vmor %vm2528_vm8, %vm2529_vm7  ;;  %vm2533_vm10 = vcmp.eq.f32.partialorder %v2532_v27, 8.507059e+37  ;;  %v2535_v36 = vor.u32 1.1754944e-38, %v2534_v47  ;;  %3009 = vrcp.f32 %v4846_v63  ;;  %v2540_v5 = vmul.f32 %v4844_v56, %v4844_v56 }
 0x25e   : > { %v2531_v1 = vsel %vm2530_vm9, %v3008_v29, %v2527_v17  ;;  %v1589_v20 = vadd.f32 0.18741608, %v1588_v22  ;;  %v1600_v13 = vadd.f32 0.4994258, %v1599_v16  ;;  %v2063_v51 = vadd.f32 0.00028619796, %v2062_v14 }
 0x25f   : > { %v649_v55 = vmul.f32 0.5, %v4693_v19  ;;  %v2536_v9 = vsel %vm2533_vm10, %v2535_v36, %v2531_v1  ;;  %v4861_v60 = vmul.f32 0.5, %v4736_v0  ;;  %v2074_v10 = vadd.f32 0.001143296, %v2073_v15  ;;  %v519_v19 = vld [vmem:[%s3166_s6 + $0x58] sm:$0xff] }
 0x260   : > { %v2537_v35 = vmul.f32 %v2536_v9, %v2512_v61  ;;  %v1111_v49 = vadd.f32 1.1283791, %v1110_v2  ;;  %v1601_v25 = vmul.f32 %v1600_v13, %v4801_v41  ;;  %v2064_v54 = vmul.f32 %v2063_v51, %v4841_v37 }
 0x261   : > { %v1590_v48 = vmul.f32 %v1589_v20, %v4801_v41  ;;  %v2075_v34 = vmul.f32 %v2074_v10, %v4841_v37  ;;  %v4867_v30 = vmin.f32 %v2540_v5, 16.0  ;;  %v416_v24 = vadd.f32 %v4549_v32, %v415_v11 }
 0x262   : > { %v2909_v45 = vclamps-f32 %v2537_v35, 1.0  ;;  %v1132_v0 = vand.u32 2147483647, %v4846_v63  ;;  %v4872_v52 = vadd.f32 1.0, %v1601_v25  ;;  %v2065_v7 = vadd.f32 0.0036580483, %v2064_v54 }
 0x263   : > { %v3010_v31 = vpop.eup %3009  ;;  %v2076_v29 = vadd.f32 0.014752088, %v2075_v34  ;;  %v2542_v38 = vmul.f32 2.1237322e-06, %v4867_v30  ;;  %v2553_v41 = vmul.f32 3.8918573e-05, %v4867_v30  ;;  %v1112_v21 = vmul.f32 %v1111_v49, %v4749_v4 }
 0x264   : > { %v2665_v61 = vadd.f32 1.0, %v2909_v45  ;;  %v1124_v50 = vmul.f32 %v3010_v31, %v4846_v63  ;;  %v1134_v43 = vand.u32 2147483648, %v4846_v63  ;;  %v1591_v23 = vadd.f32 1.1283791, %v1590_v48 }
 0x265   : > { %3011 = vrcp.f32 %v4872_v52  ;;  %v4880_v27 = vadd.f32 %v519_v19, %v416_v24  ;;  %v446_v6 = vadd.f32 %v4549_v32, %v445_v33  ;;  %v2066_v62 = vmul.f32 %v2065_v7, %v4841_v37 }
 0x266   : > { %v2713_v39 = vmul.f32 %v2665_v61, %v649_v55  ;;  %v1125_v58 = vsub.f32 1.0, %v1124_v50  ;;  %v2077_v3 = vmul.f32 %v2076_v29, %v4841_v37  ;;  %vm1128_vm11 = vweird.f32 %v4846_v63 }
 0x267   : > { %vm4886_vm12 = vcmp.eq.f32.partialorder %v1132_v0, 8.507059e+37  ;;  %v2543_v42 = vadd.f32 0.00028619796, %v2542_v38  ;;  %v2554_v47 = vadd.f32 0.001143296, %v2553_v41  ;;  %vm1129_vm13 = vweird.f32 %v3010_v31 }
 0x268   : > { %2761 = vst.msk [vmem:[%s3359_s11 + $0x168] sm:$0xff] %vm306_vm0, %v2713_v39  ;;  %v1126_v40 = vmul.f32 %v3010_v31, %v1125_v58  ;;  %v2067_v46 = vadd.f32 0.05243302, %v2066_v62  ;;  %v2078_v53 = vadd.f32 0.112945676, %v2077_v3  ;;  %v1135_v44 = vor.u32 1.1754944e-38, %v1134_v43  ;;  %vm1130_vm14 = vmor %vm1128_vm11, %vm1129_vm13 }
 0x269   : > { %v2544_v8 = vmul.f32 %v2543_v42, %v4867_v30  ;;  %v2555_v22 = vmul.f32 %v2554_v47, %v4867_v30  ;;  %v4896_v16 = vmul.f32 0.70710677, %v4880_v27  ;;  %v1592_v17 = vmul.f32 %v1591_v23, %v4783_v26 }
 0x26a   : > { %v1127_v14 = vadd.f32 %v3010_v31, %v1126_v40  ;;  %v2079_v2 = vmul.f32 %v2078_v53, %v4841_v37  ;;  %v4900_v15 = vadd.f32 %v531_v12, %v446_v6  ;;  %v2068_v5 = vmul.f32 %v2067_v46, %v4841_v37  ;;  %v475_v6 = vpop.f32.mrf.mxu2 }
 0x26b   : > { %v3012_v36 = vpop.eup %3011  ;;  %v2545_v1 = vadd.f32 0.0036580483, %v2544_v8  ;;  %v2556_v20 = vadd.f32 0.014752088, %v2555_v22  ;;  %v1140_v13 = vmul.f32 %v4896_v16, %v4896_v16  ;;  %v1612_v26 = vand.u32 2147483647, %v4872_v52 }
 0x26c   : > { %v1131_v51 = vsel %vm1130_vm14, %v3010_v31, %v1127_v14  ;;  %v1604_v11 = vmul.f32 %v3012_v36, %v4872_v52  ;;  %v1614_v55 = vand.u32 2147483648, %v4872_v52  ;;  %v2080_v10 = vadd.f32 0.4994258, %v2079_v2 }
 0x26d   : > { %v1136_v9 = vsel %vm4886_vm12, %v1135_v44, %v1131_v51  ;;  %v2546_v63 = vmul.f32 %v2545_v1, %v4867_v30  ;;  %v2557_v35 = vmul.f32 %v2556_v20, %v4867_v30  ;;  %v4914_v54 = vmin.f32 %v1140_v13, 16.0 }
 0x26e   : > { %v1137_v49 = vmul.f32 %v1136_v9, %v1112_v21  ;;  %v1605_v25 = vsub.f32 1.0, %v1604_v11  ;;  %v4917_v48 = vmul.f32 0.70710677, %v4900_v15  ;;  %v2069_v34 = vadd.f32 0.18741608, %v2068_v5 }
 0x26f   : > { %v2081_v24 = vmul.f32 %v2080_v10, %v4841_v37  ;;  %v2547_v19 = vadd.f32 0.05243302, %v2546_v63  ;;  %v2558_v45 = vadd.f32 0.112945676, %v2557_v35  ;;  %vm1609_vm15 = vweird.f32 %v3012_v36 }
 0x270   : > { %v2874_v0 = vclamps-f32 %v1137_v49, 1.0  ;;  %v1606_v7 = vmul.f32 %v3012_v36, %v1605_v25  ;;  %v1142_v33 = vmul.f32 2.1237322e-06, %v4914_v54  ;;  %vm1608_vm1 = vweird.f32 %v4872_v52 }
 0x271   : > { %v4922_v31 = vadd.f32 1.0, %v2081_v24  ;;  %v2548_v29 = vmul.f32 %v2547_v19, %v4867_v30  ;;  %v2559_v38 = vmul.f32 %v2558_v45, %v4867_v30  ;;  %v1153_v50 = vmul.f32 3.8918573e-05, %v4914_v54  ;;  %vm1610_vm2 = vmor %vm1608_vm1, %vm1609_vm15 }
 0x272   : > { %v2630_v41 = vadd.f32 1.0, %v2874_v0  ;;  %v1607_v61 = vadd.f32 %v3012_v36, %v1606_v7  ;;  %v1143_v21 = vadd.f32 0.00028619796, %v1142_v33  ;;  %v1615_v43 = vor.u32 1.1754944e-38, %v1614_v55 }
 0x273   : > { %v2070_v23 = vmul.f32 %v2069_v34, %v4841_v37  ;;  %3013 = vrcp.f32 %v4922_v31  ;;  %v1620_v52 = vmul.f32 %v4917_v48, %v4917_v48  ;;  %vm1613_vm3 = vcmp.eq.f32.partialorder %v1612_v26, 8.507059e+37  ;;  %v505_v34 = vpop.f32.mrf.mxu3 }
 0x274   : > { %v2678_v39 = vmul.f32 %v2630_v41, %v4861_v60  ;;  %v1611_v58 = vsel %vm1610_vm2, %v3012_v36, %v1607_v61  ;;  %v2560_v62 = vadd.f32 0.4994258, %v2559_v38  ;;  %v2549_v4 = vadd.f32 0.18741608, %v2548_v29  ;;  %v543_v60 = vld [vmem:[%s3166_s6 + $0x118] sm:$0xff] }
 0x275   : > { %v1616_v3 = vsel %vm1613_vm3, %v1615_v43, %v1611_v58  ;;  %v1144_v42 = vmul.f32 %v1143_v21, %v4914_v54  ;;  %v1154_v12 = vadd.f32 0.001143296, %v1153_v50  ;;  %v476_v40 = vadd.f32 %v4549_v32, %v475_v6  ;;  %v3028_v43 = vld [vmem:[%s5070_s3] ss:$0 sm:$0xff]  ;;  %v555_v58 = vld [vmem:[%s3166_s6 + $0x178] sm:$0xff] }
 0x276   : > { %2726 = vst.msk [vmem:[%s3359_s11 + $0x50] sm:$0xff] %vm306_vm0, %v2678_v39  ;;  %v1617_v47 = vmul.f32 %v1616_v3, %v1592_v17  ;;  %v2561_v37 = vmul.f32 %v2560_v62, %v4867_v30  ;;  %v2071_v46 = vadd.f32 1.1283791, %v2070_v23  ;;  %v4937_v44 = vmin.f32 %v1620_v52, 16.0 }
 0x277   : > { %v1145_v53 = vadd.f32 0.0036580483, %v1144_v42  ;;  %v1155_v14 = vmul.f32 %v1154_v12, %v4914_v54  ;;  %v626_v36 = vmul.f32 0.5, %v4765_v18  ;;  %v2550_v17 = vmul.f32 %v2549_v4, %v4867_v30 }
 0x278   : > { %v2886_v8 = vclamps-f32 %v1617_v47, 1.0  ;;  %v4940_v22 = vadd.f32 1.0, %v2561_v37  ;;  %v1622_v5 = vmul.f32 2.1237322e-06, %v4937_v44  ;;  %v1633_v1 = vmul.f32 3.8918573e-05, %v4937_v44 }
 0x279   : > { %v3014_v2 = vpop.eup %3013  ;;  %v4948_v20 = vmul.f32 0.5, %v4785_v28  ;;  %v4951_v51 = vadd.f32 %v543_v60, %v476_v40  ;;  %v2072_v11 = vmul.f32 %v2071_v46, %v4825_v57  ;;  %v2092_v26 = vand.u32 2147483647, %v4922_v31 }
 0x27a   : > { %v2642_v32 = vadd.f32 1.0, %v2886_v8  ;;  %v2084_v13 = vmul.f32 %v3014_v2, %v4922_v31  ;;  %3015 = vrcp.f32 %v4940_v22  ;;  %v1146_v18 = vmul.f32 %v1145_v53, %v4914_v54 }
 0x27b   : > { %v2094_v9 = vand.u32 2147483648, %v4922_v31  ;;  %v1156_v10 = vadd.f32 0.014752088, %v1155_v14  ;;  %vm2088_vm4 = vweird.f32 %v4922_v31  ;;  %v2551_v28 = vadd.f32 1.1283791, %v2550_v17 }
 0x27c   : > { %v2690_v30 = vmul.f32 %v2642_v32, %v626_v36  ;;  %v2085_v55 = vsub.f32 1.0, %v2084_v13  ;;  %v1623_v63 = vadd.f32 0.00028619796, %v1622_v5  ;;  %v1634_v35 = vadd.f32 0.001143296, %v1633_v1 }
 0x27d   : > { %vm2089_vm5 = vweird.f32 %v3014_v2  ;;  %v1157_v57 = vmul.f32 %v1156_v10, %v4914_v54  ;;  %v4963_v25 = vmul.f32 0.70710677, %v4951_v51  ;;  %vm4965_vm6 = vcmp.eq.f32.partialorder %v2092_v26, 8.507059e+37 }
 0x27e   : > { %2738 = vst.msk [vmem:[%s3359_s11 + $0xb0] sm:$0xff] %vm306_vm0, %v2690_v30  ;;  %v2086_v49 = vmul.f32 %v3014_v2, %v2085_v55  ;;  %v1147_v19 = vadd.f32 0.05243302, %v1146_v18  ;;  %v1624_v45 = vmul.f32 %v1623_v63, %v4937_v44  ;;  %v1635_v0 = vmul.f32 %v1634_v35, %v4937_v44  ;;  %vm2090_vm7 = vmor %vm2088_vm4, %vm2089_vm5 }
 0x27f   : > { %v2095_v33 = vor.u32 1.1754944e-38, %v2094_v9  ;;  %v1158_v29 = vadd.f32 0.112945676, %v1157_v57  ;;  %v2100_v38 = vmul.f32 %v4963_v25, %v4963_v25  ;;  %v2552_v61 = vmul.f32 %v2551_v28, %v4844_v56 }
 0x280   : > { %v2087_v7 = vadd.f32 %v3014_v2, %v2086_v49  ;;  %v3016_v41 = vpop.eup %3015  ;;  %v1625_v21 = vadd.f32 0.0036580483, %v1624_v45  ;;  %v1636_v50 = vadd.f32 0.014752088, %v1635_v0  ;;  %v506_v23 = vadd.f32 %v3028_v43, %v505_v34 }
 0x281   : > { %v2564_v6 = vmul.f32 %v3016_v41, %v4940_v22  ;;  %vm2568_vm8 = vweird.f32 %v4940_v22  ;;  %v2572_v39 = vand.u32 2147483647, %v4940_v22  ;;  %v1148_v56 = vmul.f32 %v1147_v19, %v4914_v54 }
 0x282   : > { %v2091_v52 = vsel %vm2090_vm7, %v3014_v2, %v2087_v7  ;;  %v1159_v62 = vmul.f32 %v1158_v29, %v4914_v54  ;;  %v1637_v3 = vmul.f32 %v1636_v50, %v4937_v44  ;;  %v1626_v47 = vmul.f32 %v1625_v21, %v4937_v44 }
 0x283   : > { %v2096_v31 = vsel %vm4965_vm6, %v2095_v33, %v2091_v52  ;;  %v2565_v42 = vsub.f32 1.0, %v2564_v6  ;;  %v4989_v37 = vmin.f32 %v2100_v38, 16.0  ;;  %v2574_v12 = vand.u32 2147483648, %v4940_v22 }
 0x284   : > { %v2097_v4 = vmul.f32 %v2096_v31, %v2072_v11  ;;  %v1160_v40 = vadd.f32 0.4994258, %v1159_v62  ;;  %v1638_v46 = vadd.f32 0.112945676, %v1637_v3  ;;  %v4992_v53 = vadd.f32 %v555_v58, %v506_v23 }
 0x285   : > { %v2566_v8 = vmul.f32 %v3016_v41, %v2565_v42  ;;  %vm2569_vm9 = vweird.f32 %v3016_v41  ;;  %v2102_v14 = vmul.f32 2.1237322e-06, %v4989_v37  ;;  %v1149_v2 = vadd.f32 0.18741608, %v1148_v56 }
 0x286   : > { %v2898_v60 = vclamps-f32 %v2097_v4, 1.0  ;;  %v1161_v36 = vmul.f32 %v1160_v40, %v4914_v54  ;;  %v1639_v17 = vmul.f32 %v1638_v46, %v4937_v44  ;;  %v2113_v5 = vmul.f32 3.8918573e-05, %v4989_v37  ;;  %vm2570_vm10 = vmor %vm2568_vm8, %vm2569_vm9 }
 0x287   : > { %v2567_v32 = vadd.f32 %v3016_v41, %v2566_v8  ;;  %v1627_v13 = vadd.f32 0.05243302, %v1626_v47  ;;  %v2103_v11 = vadd.f32 0.00028619796, %v2102_v14  ;;  %v2575_v26 = vor.u32 1.1754944e-38, %v2574_v12 }
 0x288   : > { %v2654_v1 = vadd.f32 1.0, %v2898_v60  ;;  %v1162_v18 = vadd.f32 1.0, %v1161_v36  ;;  %v1640_v30 = vadd.f32 0.4994258, %v1639_v17  ;;  %v5001_v55 = vmul.f32 0.70710677, %v4992_v53 }
 0x289   : > { %v2571_v10 = vsel %vm2570_vm10, %v3016_v41, %v2567_v32  ;;  %vm2573_vm11 = vcmp.eq.f32.partialorder %v2572_v39, 8.507059e+37  ;;  %v2114_v28 = vadd.f32 0.001143296, %v2113_v5  ;;  %v2104_v22 = vmul.f32 %v2103_v11, %v4989_v37 }
 0x28a   : > { %v2702_v9 = vmul.f32 %v2654_v1, %v4948_v20  ;;  %v2576_v63 = vsel %vm2573_vm11, %v2575_v26, %v2571_v10  ;;  %3017 = vrcp.f32 %v1162_v18  ;;  %v1641_v49 = vmul.f32 %v1640_v30, %v4937_v44 }
 0x28b   : > { %v2577_v35 = vmul.f32 %v2576_v63, %v2552_v61  ;;  %v1150_v57 = vmul.f32 %v1149_v2, %v4914_v54  ;;  %v1628_v34 = vmul.f32 %v1627_v13, %v4937_v44  ;;  %v2115_v24 = vmul.f32 %v2114_v28, %v4989_v37 }
 0x28c   : > { %2750 = vst.msk [vmem:[%s3359_s11 + $0x110] sm:$0xff] %vm306_vm0, %v2702_v9  ;;  %v2580_v20 = vmul.f32 %v5001_v55, %v5001_v55  ;;  %v5013_v45 = vadd.f32 1.0, %v1641_v49  ;;  %v650_v33 = vmul.f32 0.5, %v4833_v59  ;;  %v2105_v54 = vadd.f32 0.0036580483, %v2104_v22 }
 0x28d   : > { %v2910_v19 = vclamps-f32 %v2577_v35, 1.0  ;;  %v2116_v0 = vadd.f32 0.014752088, %v2115_v24  ;;  %v1151_v41 = vadd.f32 1.1283791, %v1150_v57  ;;  %v1174_v6 = vand.u32 2147483648, %v1162_v18 }
 0x28e   : > { %v5015_v7 = vmin.f32 %v2580_v20, 16.0  ;;  %3019 = vrcp.f32 %v5013_v45  ;;  %v1629_v61 = vadd.f32 0.18741608, %v1628_v34  ;;  %v1172_v52 = vand.u32 2147483647, %v1162_v18 }
 0x28f   : > { %v2666_v29 = vadd.f32 1.0, %v2910_v19  ;;  %v2117_v21 = vmul.f32 %v2116_v0, %v4989_v37  ;;  %v2106_v59 = vmul.f32 %v2105_v54, %v4989_v37  ;;  %v1152_v62 = vmul.f32 %v1151_v41, %v4896_v16 }
 0x290   : > { %v3018_v38 = vpop.eup %3017  ;;  %v2582_v23 = vmul.f32 2.1237322e-06, %v5015_v7  ;;  %v2593_v56 = vmul.f32 3.8918573e-05, %v5015_v7  ;;  %v1630_v3 = vmul.f32 %v1629_v61, %v4937_v44  ;;  %vm1168_vm12 = vweird.f32 %v1162_v18 }
 0x291   : > { %v2714_v50 = vmul.f32 %v2666_v29, %v650_v33  ;;  %v1164_v43 = vmul.f32 %v3018_v38, %v1162_v18  ;;  %v2118_v39 = vadd.f32 0.112945676, %v2117_v21  ;;  %vm1169_vm13 = vweird.f32 %v3018_v38 }
 0x292   : > { %v2583_v31 = vadd.f32 0.00028619796, %v2582_v23  ;;  %v2594_v12 = vadd.f32 0.001143296, %v2593_v56  ;;  %vm5028_vm14 = vcmp.eq.f32.partialorder %v1172_v52, 8.507059e+37  ;;  %v1175_v16 = vor.u32 1.1754944e-38, %v1174_v6  ;;  %vm1170_vm15 = vmor %vm1168_vm12, %vm1169_vm13 }
 0x293   : > { %2762 = vst.msk [vmem:[%s3359_s11 + $0x170] sm:$0xff] %vm306_vm0, %v2714_v50  ;;  %v1165_v58 = vsub.f32 1.0, %v1164_v43  ;;  %v2119_v4 = vmul.f32 %v2118_v39, %v4989_v37  ;;  %v2107_v2 = vadd.f32 0.05243302, %v2106_v59  ;;  %v1631_v36 = vadd.f32 1.1283791, %v1630_v3 }
 0x294   : > { %v3020_v42 = vpop.eup %3019  ;;  %v2584_v8 = vmul.f32 %v2583_v31, %v5015_v7  ;;  %v2595_v44 = vmul.f32 %v2594_v12, %v5015_v7  ;;  %v1652_v5 = vand.u32 2147483647, %v5013_v45  ;;  %v1654_v13 = vand.u32 2147483648, %v5013_v45 }
 0x295   : > { %v1166_v47 = vmul.f32 %v3018_v38, %v1165_v58  ;;  %v1644_v46 = vmul.f32 %v3020_v42, %v5013_v45  ;;  %v2120_v60 = vadd.f32 0.4994258, %v2119_v4  ;;  %vm1649_vm1 = vweird.f32 %v3020_v42 }
 0x296   : > { %v2596_v11 = vadd.f32 0.014752088, %v2595_v44  ;;  %v2585_v9 = vadd.f32 0.0036580483, %v2584_v8  ;;  %v2108_v28 = vmul.f32 %v2107_v2, %v4989_v37  ;;  %vm1648_vm2 = vweird.f32 %v5013_v45 }
 0x297   : > { %v1167_v14 = vadd.f32 %v3018_v38, %v1166_v47  ;;  %v1645_v17 = vsub.f32 1.0, %v1644_v46  ;;  %v2121_v1 = vmul.f32 %v2120_v60, %v4989_v37  ;;  %vm1650_vm3 = vmor %vm1648_vm2, %vm1649_vm1  ;;  %v1655_v22 = vor.u32 1.1754944e-38, %v1654_v13 }
 0x298   : > { %v2597_v63 = vmul.f32 %v2596_v11, %v5015_v7  ;;  %v1632_v34 = vmul.f32 %v1631_v36, %v4917_v48  ;;  %vm1653_vm4 = vcmp.eq.f32.partialorder %v1652_v5, 8.507059e+37  ;;  %v2586_v20 = vmul.f32 %v2585_v9, %v5015_v7 }
 0x299   : > { %v1171_v32 = vsel %vm1170_vm15, %v3018_v38, %v1167_v14  ;;  %v1646_v18 = vmul.f32 %v3020_v42, %v1645_v17  ;;  %v2122_v30 = vadd.f32 1.0, %v2121_v1  ;;  %v615_v19 = vmul.f32 0.5, %v4880_v27 }
 0x29a   : > { %v1176_v26 = vsel %vm5028_vm14, %v1175_v16, %v1171_v32  ;;  %v2598_v57 = vadd.f32 0.112945676, %v2597_v63  ;;  %v2109_v29 = vadd.f32 0.18741608, %v2108_v28  ;;  %v2587_v21 = vadd.f32 0.05243302, %v2586_v20 }
 0x29b   : > { %v1177_v10 = vmul.f32 %v1176_v26, %v1152_v62  ;;  %v1647_v35 = vadd.f32 %v3020_v42, %v1646_v18  ;;  %3021 = vrcp.f32 %v2122_v30  ;;  %v627_v23 = vmul.f32 0.5, %v4900_v15 }
 0x29c   : > { %v2599_v45 = vmul.f32 %v2598_v57, %v5015_v7  ;;  %v2110_v48 = vmul.f32 %v2109_v29, %v4989_v37  ;;  %v2134_v58 = vand.u32 2147483648, %v2122_v30  ;;  %v2588_v59 = vmul.f32 %v2587_v21, %v5015_v7 }
 0x29d   : > { %v2875_v49 = vclamps-f32 %v1177_v10, 1.0  ;;  %v1651_v24 = vsel %vm1650_vm3, %v3020_v42, %v1647_v35  ;;  %v2132_v3 = vand.u32 2147483647, %v2122_v30  ;;  %vm2128_vm6 = vweird.f32 %v2122_v30 }
 0x29e   : > { %v1656_v33 = vsel %vm1653_vm4, %v1655_v22, %v1651_v24  ;;  %v2600_v50 = vadd.f32 0.4994258, %v2599_v45  ;;  %v2111_v56 = vadd.f32 1.1283791, %v2110_v48  ;;  %v2135_v15 = vor.u32 1.1754944e-38, %v2134_v58 }
 0x29f   : > { %v2631_v0 = vadd.f32 1.0, %v2875_v49  ;;  %v1657_v54 = vmul.f32 %v1656_v33, %v1632_v34  ;;  %v2589_v4 = vadd.f32 0.18741608, %v2588_v59  ;;  %vm2133_vm8 = vcmp.eq.f32.partialorder %v2132_v3, 8.507059e+37 }
 0x2a0   : > { %v2601_v52 = vmul.f32 %v2600_v50, %v5015_v7  ;;  %v2112_v42 = vmul.f32 %v2111_v56, %v4963_v25  ;;  %v639_v16 = vmul.f32 0.5, %v4951_v51 }
 0x2a1   : > { %v2679_v38 = vmul.f32 %v2631_v0, %v615_v19  ;;  %v3022_v41 = vpop.eup %3021  ;;  %v2887_v61 = vclamps-f32 %v1657_v54, 1.0  ;;  %v2590_v60 = vmul.f32 %v2589_v4, %v5015_v7 }
 0x2a2   : > { %v2124_v43 = vmul.f32 %v3022_v41, %v2122_v30  ;;  %v2602_v31 = vadd.f32 1.0, %v2601_v52  ;;  %vm2129_vm5 = vweird.f32 %v3022_v41  ;;  %v651_v30 = vmul.f32 0.5, %v4992_v53 }
 0x2a3   : > { %2727 = vst.msk [vmem:[%s3359_s11 + $0x58] sm:$0xff] %vm306_vm0, %v2679_v38  ;;  %v2643_v27 = vadd.f32 1.0, %v2887_v61  ;;  %vm2130_vm7 = vmor %vm2128_vm6, %vm2129_vm5  ;;  %v2591_v36 = vadd.f32 1.1283791, %v2590_v60 }
 0x2a4   : > { %v2125_v6 = vsub.f32 1.0, %v2124_v43  ;;  %3023 = vrcp.f32 %v2602_v31  ;;  %v2614_v17 = vand.u32 2147483648, %v2602_v31  ;;  %v2612_v25 = vand.u32 2147483647, %v2602_v31 }
 0x2a5   : > { %v2691_v39 = vmul.f32 %v2643_v27, %v627_v23  ;;  %vm2608_vm10 = vweird.f32 %v2602_v31  ;;  %v2592_v7 = vmul.f32 %v2591_v36, %v5001_v55 }
 0x2a6   : > { %v2126_v62 = vmul.f32 %v3022_v41, %v2125_v6  ;;  %v2615_v13 = vor.u32 1.1754944e-38, %v2614_v17  ;;  %vm2613_vm12 = vcmp.eq.f32.partialorder %v2612_v25, 8.507059e+37 }
 0x2a7   : > { %2739 = vst.msk [vmem:[%s3359_s11 + $0xb8] sm:$0xff] %vm306_vm0, %v2691_v39 }
 0x2a8   : > { %v2127_v37 = vadd.f32 %v3022_v41, %v2126_v62 }
 0x2aa   : > { %v2131_v47 = vsel %vm2130_vm7, %v3022_v41, %v2127_v37  ;;  %v3024_v46 = vpop.eup %3023 }
 0x2ab   : > { %v2136_v12 = vsel %vm2133_vm8, %v2135_v15, %v2131_v47  ;;  %v2604_v14 = vmul.f32 %v3024_v46, %v2602_v31  ;;  %vm2609_vm9 = vweird.f32 %v3024_v46 }
 0x2ac   : > { %v2137_v40 = vmul.f32 %v2136_v12, %v2112_v42  ;;  %vm2610_vm11 = vmor %vm2608_vm10, %vm2609_vm9 }
 0x2ad   : > { %v2605_v44 = vsub.f32 1.0, %v2604_v14 }
 0x2ae   : > { %v2899_v8 = vclamps-f32 %v2137_v40, 1.0 }
 0x2af   : > { %v2606_v1 = vmul.f32 %v3024_v46, %v2605_v44 }
 0x2b0   : > { %v2655_v2 = vadd.f32 1.0, %v2899_v8 }
 0x2b1   : > { %v2607_v32 = vadd.f32 %v3024_v46, %v2606_v1 }
 0x2b2   : > { %v2703_v5 = vmul.f32 %v2655_v2, %v639_v16 }
 0x2b3   : > { %v2611_v11 = vsel %vm2610_vm11, %v3024_v46, %v2607_v32 }
 0x2b4   : > { %2751 = vst.msk [vmem:[%s3359_s11 + $0x118] sm:$0xff] %vm306_vm0, %v2703_v5  ;;  %v2616_v51 = vsel %vm2613_vm12, %v2615_v13, %v2611_v11 }
 0x2b5   : > { %v2617_v26 = vmul.f32 %v2616_v51, %v2592_v7 }
 0x2b7   : > { %v2911_v18 = vclamps-f32 %v2617_v26, 1.0 }
 0x2b9   : > { %v2667_v9 = vadd.f32 1.0, %v2911_v18 }
 0x2bb   : > { %v2715_v10 = vmul.f32 %v2667_v9, %v651_v30 }
 0x2bd   : > { %2763 = vst.msk [vmem:[%s3359_s11 + $0x178] sm:$0xff] %vm306_vm0, %v2715_v10 }
 0x2be PF: > { %s14_s15 = sadd.s32 1, %s3035_s15  }
 0x2bf   : > { %p11_p4 = scmp.ge.s32.totalorder %s14_s15, 4  }
 0x2c1   :  { %13 = sbr.rel (!%p11_p4) target bundleno = 1 (0x1), region = 69 }

// kernel: fno2d_forward.11
= control target key start
LH: loop header
LB: loop body
LE: loop exit
PB: predicated region body
PF: predicated region fallthrough
CT: control target
= control target key end

     0   :  { %s2177_s20 = smov 0   ;;  %s4169_s0 = inlined_call_operand.vmem [shape: f32[512,32], index: 0, kind: input, shape index: {}]   ;;  %s4170_s1 = inlined_call_operand.vmem [shape: f32[32,32], index: 1, kind: input, shape index: {}]   ;;  %s4171_s2 = inlined_call_operand.vmem [shape: f32[1,32], index: 2, kind: input, shape index: {}]   ;;  %s4172_s3 = inlined_call_operand.vmem [shape: f32[1,32], index: 3, kind: input, shape index: {}]   ;;  %s4173_s4 = inlined_call_operand.<no memory space> [shape: f32[1,1], index: 4, kind: input, shape index: {}]   ;;  %s4174_s5 = inlined_call_operand.vmem [shape: f32[1,512], index: 5, kind: output, shape index: {}]  }
   0x1   :  { %v10_v0 = vstv %s4173_s4 }
   0x2   :  { %11 = vst [vmem:[#allocation2] sm:$0x1] %v10_v0 }
   0x3 LB: > { %s1996_s21 = sadd.s32 4294967295, %s2141_s20   ;;  %p2000_p0 = scmp.ge.s32.totalorder %s2141_s20, 1  ;;  %s2141_s20 = sphi %s2177_s20, %s17_s20  }
   0x4   : > { %p190_p1 = scmp.lt.s32.totalorder %s2141_s20, 3 }
   0x6   : > { %p191_p2 = pnand %p2000_p0, %p190_p1 }
   0x8   : > { %194 = sbr.rel (%p191_p2) target bundleno = 705 (0x2c1), region = 40 }
   0xd   : > { %v279_v1 = vld [vmem:[%s4170_s1 + $0x10] sm:$0xff]  ;;  %v280_v2 = vld [vmem:[%s4170_s1 + $0x18] sm:$0xff]  ;;  %v277_v3 = vld [vmem:[%s4170_s1] sm:$0xff]  ;;  %s2001_s27 = sshll.u32 %s1996_s21, 5  ;;  %vm287_vm0 = vcmask 261120   ;;  %s2003_s17 = sshll.u32 %s1996_s21, 1 }
   0xe   : > { %v282_v4 = vpack.c.bf16 %v280_v2, %v279_v1  ;;  %v278_v5 = vld [vmem:[%s4170_s1 + $0x8] sm:$0xff]  ;;  %p218_p3 = scmp.lt.s32.totalorder %s2001_s27, 63  ;;  %v2252_v52 = vld [vmem:[%s4171_s2] ss:$0 sm:$0xff]  ;;  %p224_p4 = scmp.lt.s32.totalorder %s2003_s17, 3 }
   0xf   : > { %v281_v6 = vpack.c.bf16 %v278_v5, %v277_v3 }
  0x10   : > { %342 = vmatpush.bf16.msra.mxu0 %v282_v4  ;;  %2056 = vmatpush.bf16.msra.mxu3 %v282_v4  ;;  %s4359_s27 = smov (!%p218_p3, %s2001_s27), 63  ;;  %s4361_s17 = smov (!%p224_p4, %s2003_s17), 3 }
  0x11   : > { %s2002_s30 = sshll.u32 %s4359_s27, 3  ;;  %s226_s22 = scalar_lea.vmem %s4174_s5, %s4361_s17 }
  0x12   : > { %s2202_s8 = scalar_lea.vmem %s4169_s0, %s2002_s30 }
  0x13   : > { %v229_v7 = vld [vmem:[%s2202_s8] sm:$0xff]  ;;  %v230_v8 = vld [vmem:[%s2202_s8 + $0x8] sm:$0xff]  ;;  %v243_v9 = vld [vmem:[%s2202_s8 + $0x70] sm:$0xff] }
  0x14   : > { %343 = vmatpush.bf16.msra.mxu0 %v281_v6  ;;  %2057 = vmatpush.bf16.msra.mxu3 %v281_v6  ;;  %v261_v10 = vpack.c.bf16 %v230_v8, %v229_v7  ;;  %v244_v11 = vld [vmem:[%s2202_s8 + $0x78] sm:$0xff]  ;;  %v231_v13 = vld [vmem:[%s2202_s8 + $0x10] sm:$0xff]  ;;  %v245_v15 = vld [vmem:[%s2202_s8 + $0x80] sm:$0xff] }
  0x15   : > { %v268_v12 = vpack.c.bf16 %v244_v11, %v243_v9  ;;  %v232_v14 = vld [vmem:[%s2202_s8 + $0x18] sm:$0xff]  ;;  %v246_v16 = vld [vmem:[%s2202_s8 + $0x88] sm:$0xff]  ;;  %v233_v19 = vld [vmem:[%s2202_s8 + $0x20] sm:$0xff] }
  0x16   : > { %v262_v17 = vpack.c.bf16 %v232_v14, %v231_v13  ;;  %v269_v18 = vpack.c.bf16 %v246_v16, %v245_v15  ;;  %v234_v20 = vld [vmem:[%s2202_s8 + $0x28] sm:$0xff]  ;;  %v247_v21 = vld [vmem:[%s2202_s8 + $0x90] sm:$0xff]  ;;  %v248_v22 = vld [vmem:[%s2202_s8 + $0x98] sm:$0xff] }
  0x17   : > { %2004 = vmatmul.msk.bf16.vlgmr.msra.gmra.mxu0 %vm287_vm0, %v261_v10  ;;  %2011 = vmatmul.msk.bf16.vlgmr.msra.gmra.mxu3 %vm287_vm0, %v268_v12  ;;  %v263_v23 = vpack.c.bf16 %v234_v20, %v233_v19  ;;  %v270_v24 = vpack.c.bf16 %v248_v22, %v247_v21  ;;  %v235_v25 = vld [vmem:[%s2202_s8 + $0x30] sm:$0xff]  ;;  %v236_v26 = vld [vmem:[%s2202_s8 + $0x38] sm:$0xff]  ;;  %v249_v27 = vld [vmem:[%s2202_s8 + $0xa0] sm:$0xff] }
  0x18   : > { %v250_v28 = vld [vmem:[%s2202_s8 + $0xa8] sm:$0xff]  ;;  %v264_v29 = vpack.c.bf16 %v236_v26, %v235_v25  ;;  %v237_v31 = vld [vmem:[%s2202_s8 + $0x40] sm:$0xff]  ;;  %v251_v33 = vld [vmem:[%s2202_s8 + $0xb0] sm:$0xff] }
  0x19   : > { %v271_v30 = vpack.c.bf16 %v250_v28, %v249_v27  ;;  %v238_v32 = vld [vmem:[%s2202_s8 + $0x48] sm:$0xff]  ;;  %v252_v34 = vld [vmem:[%s2202_s8 + $0xb8] sm:$0xff]  ;;  %v239_v37 = vld [vmem:[%s2202_s8 + $0x50] sm:$0xff] }
  0x1a   : > { %v265_v35 = vpack.c.bf16 %v238_v32, %v237_v31  ;;  %v272_v36 = vpack.c.bf16 %v252_v34, %v251_v33  ;;  %v240_v38 = vld [vmem:[%s2202_s8 + $0x58] sm:$0xff]  ;;  %v253_v39 = vld [vmem:[%s2202_s8 + $0xc0] sm:$0xff]  ;;  %v254_v40 = vld [vmem:[%s2202_s8 + $0xc8] sm:$0xff] }
  0x1b   : > { %v266_v41 = vpack.c.bf16 %v240_v38, %v239_v37  ;;  %v273_v42 = vpack.c.bf16 %v254_v40, %v253_v39  ;;  %v241_v43 = vld [vmem:[%s2202_s8 + $0x60] sm:$0xff]  ;;  %v242_v44 = vld [vmem:[%s2202_s8 + $0x68] sm:$0xff]  ;;  %v255_v45 = vld [vmem:[%s2202_s8 + $0xd0] sm:$0xff] }
  0x1c   : > { %v256_v46 = vld [vmem:[%s2202_s8 + $0xd8] sm:$0xff]  ;;  %v267_v47 = vpack.c.bf16 %v242_v44, %v241_v43  ;;  %v257_v49 = vld [vmem:[%s2202_s8 + $0xe0] sm:$0xff]  ;;  %v258_v50 = vld [vmem:[%s2202_s8 + $0xe8] sm:$0xff] }
  0x1d   : > { %v274_v48 = vpack.c.bf16 %v256_v46, %v255_v45  ;;  %v275_v51 = vpack.c.bf16 %v258_v50, %v257_v49  ;;  %v259_v53 = vld [vmem:[%s2202_s8 + $0xf0] sm:$0xff]  ;;  %v260_v54 = vld [vmem:[%s2202_s8 + $0xf8] sm:$0xff] }
  0x1e   : > { %v276_v56 = vpack.c.bf16 %v260_v54, %v259_v53 }
  0x27   : > { %2005 = vmatmul.msk.bf16.gmra.mxu0 %vm287_vm0, %v262_v17  ;;  %2012 = vmatmul.msk.bf16.gmra.mxu3 %vm287_vm0, %v269_v18 }
  0x37   : > { %2006 = vmatmul.msk.bf16.gmra.mxu0 %vm287_vm0, %v263_v23  ;;  %2013 = vmatmul.msk.bf16.gmra.mxu3 %vm287_vm0, %v270_v24 }
  0x47   : > { %2007 = vmatmul.msk.bf16.gmra.mxu0 %vm287_vm0, %v264_v29  ;;  %2014 = vmatmul.msk.bf16.gmra.mxu3 %vm287_vm0, %v271_v30 }
  0x57   : > { %2008 = vmatmul.msk.bf16.gmra.mxu0 %vm287_vm0, %v265_v35  ;;  %2015 = vmatmul.msk.bf16.gmra.mxu3 %vm287_vm0, %v272_v36 }
  0x67   : > { %2009 = vmatmul.msk.bf16.gmra.mxu0 %vm287_vm0, %v266_v41  ;;  %2016 = vmatmul.msk.bf16.gmra.mxu3 %vm287_vm0, %v273_v42 }
  0x77   : > { %2010 = vmatmul.msk.bf16.gmra.mxu0 %vm287_vm0, %v267_v47  ;;  %2017 = vmatmul.msk.bf16.gmra.mxu3 %vm287_vm0, %v274_v48 }
  0x87   : > { %2018 = vmatmul.msk.bf16.gmra.mxu3 %vm287_vm0, %v275_v51 }
  0x94   : > { %v345_v55 = vpop.f32.mrf.mxu0 }
  0x95   : > { %v2257_v57 = vadd.f32 %v2252_v52, %v345_v55 }
  0x97   : > { %v2260_v58 = vmul.f32 0.70710677, %v2257_v57  ;;  %2019 = vmatmul.msk.bf16.gmra.mxu3 %vm287_vm0, %v276_v56 }
  0x99   : > { %v489_v59 = vmul.f32 %v2260_v58, %v2260_v58 }
  0x9a   : > { %v380_v61 = vpop.f32.mrf.mxu3 }
  0x9b   : > { %v2265_v60 = vmin.f32 %v489_v59, 16.0  ;;  %v2268_v62 = vadd.f32 %v2252_v52, %v380_v61 }
  0x9c   : > { %v347_v63 = vpop.f32.mrf.mxu0 }
  0x9d   : > { %v491_v0 = vmul.f32 2.1237322e-06, %v2265_v60  ;;  %v502_v1 = vmul.f32 3.8918573e-05, %v2265_v60  ;;  %v2273_v2 = vadd.f32 %v2252_v52, %v347_v63  ;;  %v2276_v3 = vmul.f32 0.70710677, %v2268_v62 }
  0x9f   : > { %v503_v4 = vadd.f32 0.001143296, %v502_v1  ;;  %v2279_v5 = vmul.f32 0.70710677, %v2273_v2  ;;  %v1049_v6 = vmul.f32 %v2276_v3, %v2276_v3  ;;  %v492_v7 = vadd.f32 0.00028619796, %v491_v0 }
  0xa1   : > { %v504_v8 = vmul.f32 %v503_v4, %v2265_v60  ;;  %v529_v9 = vmul.f32 %v2279_v5, %v2279_v5  ;;  %v2286_v10 = vmin.f32 %v1049_v6, 16.0  ;;  %v493_v17 = vmul.f32 %v492_v7, %v2265_v60 }
  0xa2   : > { %v382_v13 = vpop.f32.mrf.mxu3 }
  0xa3   : > { %v505_v11 = vadd.f32 0.014752088, %v504_v8  ;;  %v2288_v12 = vmin.f32 %v529_v9, 16.0  ;;  %v1051_v14 = vmul.f32 2.1237322e-06, %v2286_v10  ;;  %v2293_v16 = vadd.f32 %v2252_v52, %v382_v13 }
  0xa4   : > { %v1062_v15 = vmul.f32 3.8918573e-05, %v2286_v10  ;;  %v494_v27 = vadd.f32 0.0036580483, %v493_v17  ;;  %v350_v39 = vpop.f32.mrf.mxu0 }
  0xa5   : > { %v506_v18 = vmul.f32 %v505_v11, %v2265_v60  ;;  %v542_v19 = vmul.f32 3.8918573e-05, %v2288_v12  ;;  %v1052_v20 = vadd.f32 0.00028619796, %v1051_v14  ;;  %v531_v24 = vmul.f32 2.1237322e-06, %v2288_v12 }
  0xa6   : > { %v1063_v21 = vadd.f32 0.001143296, %v1062_v15  ;;  %v2301_v26 = vmul.f32 0.70710677, %v2293_v16  ;;  %v495_v36 = vmul.f32 %v494_v27, %v2265_v60  ;;  %v2312_v42 = vadd.f32 %v2252_v52, %v350_v39 }
  0xa7   : > { %v507_v22 = vadd.f32 0.112945676, %v506_v18  ;;  %v543_v25 = vadd.f32 0.001143296, %v542_v19  ;;  %v1053_v29 = vmul.f32 %v1052_v20, %v2286_v10  ;;  %v532_v34 = vadd.f32 0.00028619796, %v531_v24 }
  0xa8   : > { %v1064_v23 = vmul.f32 %v1063_v21, %v2286_v10  ;;  %v1089_v32 = vmul.f32 %v2301_v26, %v2301_v26  ;;  %v496_v47 = vadd.f32 0.05243302, %v495_v36  ;;  %v2321_v51 = vmul.f32 0.70710677, %v2312_v42 }
  0xa9   : > { %v508_v28 = vmul.f32 %v507_v22, %v2265_v60  ;;  %v544_v31 = vmul.f32 %v543_v25, %v2288_v12  ;;  %v1054_v38 = vadd.f32 0.0036580483, %v1053_v29  ;;  %v533_v45 = vmul.f32 %v532_v34, %v2288_v12 }
  0xaa   : > { %v1065_v30 = vadd.f32 0.014752088, %v1064_v23  ;;  %v2314_v43 = vmin.f32 %v1089_v32, 16.0  ;;  %v497_v59 = vmul.f32 %v496_v47, %v2265_v60  ;;  %v569_v4 = vmul.f32 %v2321_v51, %v2321_v51  ;;  %v385_v8 = vpop.f32.mrf.mxu3 }
  0xab   : > { %v545_v35 = vadd.f32 0.014752088, %v544_v31  ;;  %v509_v37 = vadd.f32 0.4994258, %v508_v28  ;;  %v1055_v49 = vmul.f32 %v1054_v38, %v2286_v10  ;;  %v534_v55 = vadd.f32 0.0036580483, %v533_v45 }
  0xac   : > { %v1066_v33 = vmul.f32 %v1065_v30, %v2286_v10  ;;  %v1102_v54 = vmul.f32 3.8918573e-05, %v2314_v43  ;;  %v1091_v56 = vmul.f32 2.1237322e-06, %v2314_v43  ;;  %v498_v13 = vadd.f32 0.18741608, %v497_v59 }
  0xad   : > { %v546_v41 = vmul.f32 %v545_v35, %v2288_v12  ;;  %v510_v48 = vmul.f32 %v509_v37, %v2265_v60  ;;  %v1056_v63 = vadd.f32 0.05243302, %v1055_v49  ;;  %v535_v9 = vmul.f32 %v534_v55, %v2288_v12 }
  0xae   : > { %v1067_v40 = vadd.f32 0.112945676, %v1066_v33  ;;  %v1103_v0 = vadd.f32 0.001143296, %v1102_v54  ;;  %v1092_v11 = vadd.f32 0.00028619796, %v1091_v56  ;;  %v386_v19 = vadd.f32 %v2252_v52, %v385_v8 }
  0xaf   : > { %v547_v46 = vadd.f32 0.112945676, %v546_v41  ;;  %v2327_v61 = vadd.f32 1.0, %v510_v48  ;;  %v1057_v14 = vmul.f32 %v1056_v63, %v2286_v10  ;;  %v2338_v18 = vmin.f32 %v569_v4, 16.0 }
  0xb0   : > { %v1068_v44 = vmul.f32 %v1067_v40, %v2286_v10  ;;  %v1104_v7 = vmul.f32 %v1103_v0, %v2314_v43  ;;  %v536_v21 = vadd.f32 0.05243302, %v535_v9  ;;  %v1093_v22 = vmul.f32 %v1092_v11, %v2314_v43 }
  0xb1   : > { %v548_v53 = vmul.f32 %v547_v46, %v2288_v12  ;;  %2069 = vrcp.f32 %v2327_v61  ;;  %v499_v23 = vmul.f32 %v498_v13, %v2265_v60  ;;  %v1058_v25 = vadd.f32 0.18741608, %v1057_v14  ;;  %v352_v46 = vpop.f32.mrf.mxu0 }
  0xb2   : > { %v1069_v50 = vadd.f32 0.4994258, %v1068_v44  ;;  %v1105_v17 = vadd.f32 0.014752088, %v1104_v7  ;;  %v582_v27 = vmul.f32 3.8918573e-05, %v2338_v18  ;;  %v537_v31 = vmul.f32 %v536_v21, %v2288_v12 }
  0xb3   : > { %v549_v6 = vadd.f32 0.4994258, %v548_v53  ;;  %v2347_v28 = vmul.f32 0.70710677, %v386_v19  ;;  %v1094_v32 = vadd.f32 0.0036580483, %v1093_v22  ;;  %v1059_v39 = vmul.f32 %v1058_v25, %v2286_v10 }
  0xb4   : > { %v1070_v1 = vmul.f32 %v1069_v50, %v2286_v10  ;;  %v1106_v24 = vmul.f32 %v1105_v17, %v2314_v43  ;;  %v583_v34 = vadd.f32 0.001143296, %v582_v27  ;;  %v2355_v60 = vmul.f32 0.5, %v2257_v57 }
  0xb5   : > { %v550_v20 = vmul.f32 %v549_v6, %v2288_v12  ;;  %v500_v35 = vadd.f32 1.1283791, %v499_v23  ;;  %v571_v36 = vmul.f32 2.1237322e-06, %v2338_v18  ;;  %v1129_v37 = vmul.f32 %v2347_v28, %v2347_v28 }
  0xb6   : > { %v2336_v15 = vadd.f32 1.0, %v1070_v1  ;;  %v1107_v33 = vadd.f32 0.112945676, %v1106_v24  ;;  %4178 = vst [vmem:[#allocation3_spill] sm:$0xff] %v2355_v60  ;;  %v2361_v38 = vmul.f32 0.5, %v2268_v62  ;;  %v584_v41 = vmul.f32 %v583_v34, %v2338_v18 }
  0xb7   : > { %v2349_v29 = vpop.eup %2069  ;;  %v2351_v30 = vadd.f32 1.0, %v550_v20  ;;  %v523_v57 = vand.u32 2147483648, %v2327_v61  ;;  %v2371_v45 = vmul.f32 0.5, %v2293_v16  ;;  %v538_v62 = vadd.f32 0.18741608, %v537_v31 }
  0xb8   : > { %2071 = vrcp.f32 %v2336_v15  ;;  %v1108_v40 = vmul.f32 %v1107_v33, %v2314_v43  ;;  %v513_v44 = vmul.f32 %v2349_v29, %v2327_v61  ;;  %v1095_v10 = vmul.f32 %v1094_v32, %v2314_v43 }
  0xb9   : > { %2073 = vrcp.f32 %v2351_v30  ;;  %v585_v49 = vadd.f32 0.014752088, %v584_v41  ;;  %v2377_v50 = vmul.f32 %v500_v35, %v2260_v58  ;;  %v2380_v53 = vmul.f32 0.5, %v2273_v2 }
  0xba   : > { %v1109_v48 = vadd.f32 0.4994258, %v1108_v40  ;;  %v572_v54 = vadd.f32 0.00028619796, %v571_v36  ;;  %v2382_v55 = vmin.f32 %v1129_v37, 16.0  ;;  %vm517_vm1 = vweird.f32 %v2327_v61 }
  0xbb   : > { %4179 = vst [vmem:[#allocation4_spill] sm:$0xff] %v2380_v53  ;;  %v1060_v16 = vadd.f32 1.1283791, %v1059_v39  ;;  %v586_v59 = vmul.f32 %v585_v49, %v2338_v18  ;;  %v2388_v63 = vadd.f32 %v2252_v52, %v352_v46  ;;  %v514_v0 = vsub.f32 1.0, %v513_v44 }
  0xbc   : > { %v1110_v56 = vmul.f32 %v1109_v48, %v2314_v43  ;;  %v521_v58 = vand.u32 2147483647, %v2327_v61  ;;  %v1142_v1 = vmul.f32 3.8918573e-05, %v2382_v55  ;;  %v2394_v4 = vor.u32 1.1754944e-38, %v523_v57 }
  0xbd   : > { %v539_v6 = vmul.f32 %v538_v62, %v2288_v12  ;;  %v1096_v7 = vadd.f32 0.05243302, %v1095_v10  ;;  %v587_v8 = vadd.f32 0.112945676, %v586_v59  ;;  %v573_v13 = vmul.f32 %v572_v54, %v2338_v18 }
  0xbe   : > { %v2373_v47 = vpop.eup %2071  ;;  %v2399_v11 = vadd.f32 1.0, %v1110_v56  ;;  %v2402_v14 = vmul.f32 0.5, %v386_v19  ;;  %v1143_v17 = vadd.f32 0.001143296, %v1142_v1  ;;  %vm518_vm2 = vweird.f32 %v2349_v29  ;;  %v387_v19 = vpop.f32.mrf.mxu3 }
  0xbf   : > { %v1073_v2 = vmul.f32 %v2373_v47, %v2336_v15  ;;  %v2397_v9 = vpop.eup %2073  ;;  %v2406_v20 = vmul.f32 %v1060_v16, %v2276_v3  ;;  %v1131_v21 = vmul.f32 2.1237322e-06, %v2382_v55  ;;  %v2410_v12 = vmul.f32 0.70710677, %v2388_v63  ;;  %vm2441_vm5 = vmor %vm517_vm1, %vm518_vm2 }
  0xc0   : > { %4180 = vst [vmem:[#allocation5_spill] sm:$0xff] %v2402_v14  ;;  %v515_v22 = vmul.f32 %v2349_v29, %v514_v0  ;;  %v1083_v24 = vand.u32 2147483648, %v2336_v15  ;;  %v588_v25 = vmul.f32 %v587_v8, %v2338_v18  ;;  %v1081_v27 = vand.u32 2147483647, %v2336_v15 }
  0xc1   : > { %v1074_v23 = vsub.f32 1.0, %v1073_v2  ;;  %v553_v31 = vmul.f32 %v2397_v9, %v2351_v30  ;;  %v1097_v3 = vmul.f32 %v1096_v7, %v2314_v43  ;;  %v1144_v32 = vmul.f32 %v1143_v17, %v2382_v55 }
  0xc2   : > { %vm2420_vm3 = vcmp.eq.f32.partialorder %v521_v58, 8.507059e+37  ;;  %v540_v34 = vadd.f32 1.1283791, %v539_v6  ;;  %2075 = vrcp.f32 %v2399_v11  ;;  %v574_v35 = vadd.f32 0.0036580483, %v573_v13 }
  0xc3   : > { %v589_v36 = vadd.f32 0.4994258, %v588_v25  ;;  %v1132_v37 = vadd.f32 0.00028619796, %v1131_v21  ;;  %v1145_v39 = vadd.f32 0.014752088, %v1144_v32  ;;  %v609_v40 = vmul.f32 %v2410_v12, %v2410_v12 }
  0xc4   : > { %v2428_v41 = vadd.f32 %v2252_v52, %v387_v19  ;;  %v516_v44 = vadd.f32 %v2349_v29, %v515_v22  ;;  %v1075_v57 = vmul.f32 %v2373_v47, %v1074_v23  ;;  %vm1077_vm4 = vweird.f32 %v2336_v15 }
  0xc5   : > { %v1084_v46 = vor.u32 1.1754944e-38, %v1083_v24  ;;  %v554_v62 = vsub.f32 1.0, %v553_v31  ;;  %v1098_v10 = vadd.f32 0.18741608, %v1097_v3  ;;  %v1146_v48 = vmul.f32 %v1145_v39, %v2382_v55  ;;  %v355_v31 = vpop.f32.mrf.mxu0 }
  0xc6   : > { %v2435_v49 = vmul.f32 0.70710677, %v2428_v41  ;;  %vm2445_vm6 = vcmp.eq.f32.partialorder %v1081_v27, 8.507059e+37  ;;  %v2450_v56 = vmul.f32 %v540_v34, %v2279_v5  ;;  %v575_v59 = vmul.f32 %v574_v35, %v2338_v18 }
  0xc7   : > { %v590_v0 = vmul.f32 %v589_v36, %v2338_v18  ;;  %v2454_v58 = vmin.f32 %v609_v40, 16.0  ;;  %v2457_v2 = vmul.f32 0.5, %v2312_v42  ;;  %v1133_v61 = vmul.f32 %v1132_v37, %v2382_v55 }
  0xc8   : > { %v1147_v1 = vadd.f32 0.112945676, %v1146_v48  ;;  %v1169_v6 = vmul.f32 %v2435_v49, %v2435_v49  ;;  %v2462_v7 = vpop.eup %2075  ;;  %v1076_v5 = vadd.f32 %v2373_v47, %v1075_v57  ;;  %vm1078_vm7 = vweird.f32 %v2373_v47 }
  0xc9   : > { %vm557_vm8 = vweird.f32 %v2351_v30  ;;  %v561_v8 = vand.u32 2147483647, %v2351_v30  ;;  %v520_v42 = vsel %vm2441_vm5, %v2349_v29, %v516_v44  ;;  %v555_v13 = vmul.f32 %v2397_v9, %v554_v62  ;;  %vm2481_vm9 = vmor %vm1077_vm4, %vm1078_vm7 }
  0xca   : > { %v1099_v17 = vmul.f32 %v1098_v10, %v2314_v43  ;;  %v1148_v21 = vmul.f32 %v1147_v1, %v2382_v55  ;;  %v576_v22 = vadd.f32 0.05243302, %v575_v59  ;;  %v2474_v23 = vadd.f32 1.0, %v590_v0 }
  0xcb   : > { %v622_v24 = vmul.f32 3.8918573e-05, %v2454_v58  ;;  %v2477_v25 = vmin.f32 %v1169_v6, 16.0  ;;  %vm558_vm10 = vweird.f32 %v2397_v9  ;;  %v1113_v43 = vmul.f32 %v2462_v7, %v2399_v11 }
  0xcc   : > { %v1134_v29 = vadd.f32 0.0036580483, %v1133_v61  ;;  %v611_v27 = vmul.f32 2.1237322e-06, %v2454_v58  ;;  %v1080_v3 = vsel %vm2481_vm9, %v2373_v47, %v1076_v5  ;;  %v1149_v32 = vadd.f32 0.4994258, %v1148_v21  ;;  %vm2510_vm11 = vmor %vm557_vm8, %vm558_vm10 }
  0xcd   : > { %v623_v34 = vadd.f32 0.001143296, %v622_v24  ;;  %v2493_v15 = vadd.f32 %v2252_v52, %v355_v31  ;;  %v525_v35 = vsel %vm2420_vm3, %v2394_v4, %v520_v42  ;;  %v563_v36 = vand.u32 2147483648, %v2351_v30 }
  0xce   : > { %v1100_v37 = vadd.f32 1.1283791, %v1099_v17  ;;  %v1182_v39 = vmul.f32 3.8918573e-05, %v2477_v25  ;;  %v556_v40 = vadd.f32 %v2397_v9, %v555_v13  ;;  %v577_v44 = vmul.f32 %v576_v22, %v2338_v18 }
  0xcf   : > { %2077 = vrcp.f32 %v2474_v23  ;;  %v624_v47 = vmul.f32 %v623_v34, %v2454_v58  ;;  %v1085_v57 = vsel %vm2445_vm6, %v1084_v46, %v1080_v3  ;;  %v1114_v33 = vsub.f32 1.0, %v1113_v43 }
  0xd0   : > { %v1135_v62 = vmul.f32 %v1134_v29, %v2382_v55  ;;  %v612_v10 = vadd.f32 0.00028619796, %v611_v27  ;;  %v1150_v48 = vmul.f32 %v1149_v32, %v2382_v55  ;;  %v1171_v59 = vmul.f32 2.1237322e-06, %v2477_v25  ;;  %v390_v32 = vpop.f32.mrf.mxu3 }
  0xd1   : > { %v625_v54 = vadd.f32 0.014752088, %v624_v47  ;;  %v2518_v16 = vmul.f32 0.70710677, %v2493_v15  ;;  %v2521_v46 = vmul.f32 %v525_v35, %v2377_v50  ;;  %vm2523_vm12 = vcmp.eq.f32.partialorder %v561_v8, 8.507059e+37 }
  0xd2   : > { %v564_v0 = vor.u32 1.1754944e-38, %v563_v36  ;;  %v1183_v61 = vadd.f32 0.001143296, %v1182_v39  ;;  %v2528_v1 = vmul.f32 %v1085_v57, %v2406_v20  ;;  %v560_v6 = vsel %vm2510_vm11, %v2397_v9, %v556_v40 }
  0xd3   : > { %v2534_v5 = vmul.f32 %v1100_v37, %v2301_v26  ;;  %v578_v42 = vadd.f32 0.18741608, %v577_v44  ;;  %v1115_v50 = vmul.f32 %v2462_v7, %v1114_v33  ;;  %v1136_v13 = vadd.f32 0.05243302, %v1135_v62 }
  0xd4   : > { %v613_v8 = vmul.f32 %v612_v10, %v2454_v58  ;;  %v626_v17 = vmul.f32 %v625_v54, %v2454_v58  ;;  %v2541_v22 = vadd.f32 1.0, %v1150_v48  ;;  %v1172_v20 = vadd.f32 0.00028619796, %v1171_v59 }
  0xd5   : > { %v2539_v21 = vpop.eup %2077  ;;  %v1184_v24 = vmul.f32 %v1183_v61, %v2477_v25  ;;  %v649_v9 = vmul.f32 %v2518_v16, %v2518_v16  ;;  %v565_v26 = vsel %vm2523_vm12, %v564_v0, %v560_v6  ;;  %v1121_v19 = vand.u32 2147483647, %v2399_v11 }
  0xd6   : > { %v1123_v43 = vand.u32 2147483648, %v2399_v11  ;;  %v627_v29 = vadd.f32 0.112945676, %v626_v17  ;;  %vm1118_vm13 = vweird.f32 %v2462_v7  ;;  %v579_v27 = vmul.f32 %v578_v42, %v2338_v18 }
  0xd7   : > { %v1185_v31 = vadd.f32 0.014752088, %v1184_v24  ;;  %v2552_v3 = vmin.f32 %v649_v9, 16.0  ;;  %v1116_v34 = vadd.f32 %v2462_v7, %v1115_v50  ;;  %v593_v35 = vmul.f32 %v2539_v21, %v2474_v23 }
  0xd8   : > { %v1137_v36 = vmul.f32 %v1136_v13, %v2382_v55  ;;  %v614_v37 = vadd.f32 0.0036580483, %v613_v8  ;;  %2079 = vrcp.f32 %v2541_v22  ;;  %v1173_v39 = vmul.f32 %v1172_v20, %v2477_v25  ;;  %v392_v48 = vpop.f32.mrf.mxu3 }
  0xd9   : > { %v1186_v40 = vmul.f32 %v1185_v31, %v2477_v25  ;;  %v662_v18 = vmul.f32 3.8918573e-05, %v2552_v3  ;;  %vm1117_vm14 = vweird.f32 %v2399_v11  ;;  %vm2563_vm15 = vcmp.eq.f32.partialorder %v1121_v19, 8.507059e+37 }
  0xda   : > { %v628_v47 = vmul.f32 %v627_v29, %v2454_v58  ;;  %v2569_v57 = vadd.f32 %v2252_v52, %v390_v32  ;;  %v2572_v4 = vmul.f32 %v565_v26, %v2450_v56  ;;  %v1124_v33 = vor.u32 1.1754944e-38, %v1123_v43  ;;  %vm2576_vm1 = vmor %vm1117_vm14, %vm1118_vm13  ;;  %v357_v43 = vpop.f32.mrf.mxu0 }
  0xdb   : > { %v580_v62 = vadd.f32 1.1283791, %v579_v27  ;;  %v1187_v10 = vadd.f32 0.112945676, %v1186_v40  ;;  %v1138_v11 = vadd.f32 0.18741608, %v1137_v36  ;;  %v615_v59 = vmul.f32 %v614_v37, %v2454_v58 }
  0xdc   : > { %4195 = vst [vmem:[#allocation6_spill] sm:$0xff] %v2572_v4  ;;  %v2581_v54 = vmul.f32 0.5, %v2388_v63  ;;  %v663_v30 = vadd.f32 0.001143296, %v662_v18  ;;  %v1120_v56 = vsel %vm2576_vm1, %v2462_v7, %v1116_v34  ;;  %v594_v0 = vsub.f32 1.0, %v593_v35 }
  0xdd   : > { %v1174_v61 = vadd.f32 0.0036580483, %v1173_v39  ;;  %v651_v6 = vmul.f32 2.1237322e-06, %v2552_v3  ;;  %v629_v42 = vadd.f32 0.4994258, %v628_v47  ;;  %v1188_v50 = vmul.f32 %v1187_v10, %v2477_v25 }
  0xde   : > { %v664_v13 = vmul.f32 %v663_v30, %v2552_v3  ;;  %v2591_v8 = vmul.f32 0.70710677, %v2569_v57  ;;  %v2593_v63 = vpop.eup %2079  ;;  %v2596_v17 = vmul.f32 %v580_v62, %v2321_v51  ;;  %vm597_vm2 = vweird.f32 %v2474_v23 }
  0xdf   : > { %v601_v7 = vand.u32 2147483647, %v2474_v23  ;;  %v2601_v20 = vmul.f32 0.5, %v2428_v41  ;;  %v603_v24 = vand.u32 2147483648, %v2474_v23  ;;  %v1139_v9 = vmul.f32 %v1138_v11, %v2382_v55 }
  0xe0   : > { %v616_v26 = vadd.f32 0.05243302, %v615_v59  ;;  %v665_v19 = vadd.f32 0.014752088, %v664_v13  ;;  %v1125_v29 = vsel %vm2563_vm15, %v1124_v33, %v1120_v56  ;;  %v595_v51 = vmul.f32 %v2539_v21, %v594_v0 }
  0xe1   : > { %4198 = vst [vmem:[#allocation7_spill] sm:$0xff] %v2601_v20  ;;  %v1175_v27 = vmul.f32 %v1174_v61, %v2477_v25  ;;  %v1209_v31 = vmul.f32 %v2591_v8, %v2591_v8  ;;  %v1153_v41 = vmul.f32 %v2593_v63, %v2541_v22  ;;  %v630_v32 = vmul.f32 %v629_v42, %v2454_v58 }
  0xe2   : > { %v1189_v34 = vadd.f32 0.4994258, %v1188_v50  ;;  %v652_v55 = vadd.f32 0.00028619796, %v651_v6  ;;  %vm598_vm3 = vweird.f32 %v2539_v21  ;;  %vm2615_vm4 = vcmp.eq.f32.partialorder %v601_v7, 8.507059e+37 }
  0xe3   : > { %v666_v36 = vmul.f32 %v665_v19, %v2552_v3  ;;  %v2621_v37 = vadd.f32 %v2252_v52, %v357_v43  ;;  %v2624_v39 = vmul.f32 %v1125_v29, %v2534_v5  ;;  %v604_v40 = vor.u32 1.1754944e-38, %v603_v24  ;;  %vm2632_vm5 = vmor %vm597_vm2, %vm598_vm3 }
  0xe4   : > { %v1140_v18 = vadd.f32 1.1283791, %v1139_v9  ;;  %v617_v44 = vmul.f32 %v616_v26, %v2454_v58  ;;  %v596_v47 = vadd.f32 %v2539_v21, %v595_v51  ;;  %v1176_v33 = vadd.f32 0.05243302, %v1175_v27 }
  0xe5   : > { %v667_v62 = vadd.f32 0.112945676, %v666_v36  ;;  %v2628_v10 = vmin.f32 %v1209_v31, 16.0  ;;  %v1154_v59 = vsub.f32 1.0, %v1153_v41  ;;  %v2636_v5 = vadd.f32 1.0, %v630_v32 }
  0xe6   : > { %v1190_v30 = vmul.f32 %v1189_v34, %v2477_v25  ;;  %v653_v56 = vmul.f32 %v652_v55, %v2552_v3  ;;  %v2644_v42 = vmul.f32 0.70710677, %v2621_v37  ;;  %v2647_v23 = vmul.f32 %v1140_v18, %v2347_v28 }
  0xe7   : > { %v668_v0 = vmul.f32 %v667_v62, %v2552_v3  ;;  %v1211_v61 = vmul.f32 2.1237322e-06, %v2628_v10  ;;  %v1222_v6 = vmul.f32 3.8918573e-05, %v2628_v10  ;;  %v1161_v50 = vand.u32 2147483647, %v2541_v22 }
  0xe8   : > { %v618_v13 = vadd.f32 0.18741608, %v617_v44  ;;  %v2651_v7 = vadd.f32 %v2252_v52, %v392_v48  ;;  %v600_v24 = vsel %vm2632_vm5, %v2539_v21, %v596_v47  ;;  %v1163_v9 = vand.u32 2147483648, %v2541_v22 }
  0xe9   : > { %v1177_v26 = vmul.f32 %v1176_v33, %v2477_v25  ;;  %v669_v19 = vadd.f32 0.4994258, %v668_v0  ;;  %v1155_v43 = vmul.f32 %v2593_v63, %v1154_v59  ;;  %v654_v29 = vadd.f32 0.0036580483, %v653_v56  ;;  %v360_v56 = vpop.f32.mrf.mxu0 }
  0xea   : > { %v1212_v28 = vadd.f32 0.00028619796, %v1211_v61  ;;  %v1223_v51 = vadd.f32 0.001143296, %v1222_v6  ;;  %2081 = vrcp.f32 %v2636_v5  ;;  %v2660_v27 = vadd.f32 1.0, %v1190_v30 }
  0xeb   : > { %v670_v31 = vmul.f32 %v669_v19, %v2552_v3  ;;  %v689_v41 = vmul.f32 %v2644_v42, %v2644_v42  ;;  %vm1157_vm6 = vweird.f32 %v2541_v22  ;;  %v619_v21 = vmul.f32 %v618_v13, %v2454_v58 }
  0xec   : > { %v1224_v32 = vmul.f32 %v1223_v51, %v2628_v10  ;;  %v2669_v34 = vmul.f32 0.70710677, %v2651_v7  ;;  %v605_v55 = vsel %vm2615_vm4, %v604_v40, %v600_v24  ;;  %vm2673_vm7 = vcmp.eq.f32.partialorder %v1161_v50, 8.507059e+37 }
  0xed   : > { %v1164_v18 = vor.u32 1.1754944e-38, %v1163_v9  ;;  %v2677_v44 = vadd.f32 1.0, %v670_v31  ;;  %v1178_v47 = vadd.f32 0.18741608, %v1177_v26  ;;  %v655_v33 = vmul.f32 %v654_v29, %v2552_v3 }
  0xee   : > { %v1213_v58 = vmul.f32 %v1212_v28, %v2628_v10  ;;  %v1225_v62 = vadd.f32 0.014752088, %v1224_v32  ;;  %v1156_v48 = vadd.f32 %v2593_v63, %v1155_v43  ;;  %vm1158_vm8 = vweird.f32 %v2593_v63 }
  0xef   : > { %2083 = vrcp.f32 %v2660_v27  ;;  %v2684_v35 = vmin.f32 %v689_v41, 16.0  ;;  %v2687_v40 = vmul.f32 %v605_v55, %v2596_v17  ;;  %v620_v11 = vadd.f32 1.1283791, %v619_v21  ;;  %vm2704_vm9 = vmor %vm1157_vm6, %vm1158_vm8 }
  0xf0   : > { %v2690_v59 = vmul.f32 0.5, %v2493_v15  ;;  %v1249_v30 = vmul.f32 %v2669_v34, %v2669_v34  ;;  %v2694_v0 = vpop.eup %2081  ;;  %2085 = vrcp.f32 %v2677_v44  ;;  %v1226_v61 = vmul.f32 %v1225_v62, %v2628_v10 }
  0xf1   : > { %v691_v6 = vmul.f32 2.1237322e-06, %v2684_v35  ;;  %v2700_v50 = vadd.f32 %v2252_v52, %v360_v56  ;;  %v643_v17 = vand.u32 2147483648, %v2636_v5  ;;  %v1179_v13 = vmul.f32 %v1178_v47, %v2477_v25 }
  0xf2   : > { %v656_v24 = vadd.f32 0.05243302, %v655_v33  ;;  %v1214_v9 = vadd.f32 0.0036580483, %v1213_v58  ;;  %v1160_v26 = vsel %vm2704_vm9, %v2593_v63, %v1156_v48  ;;  %v1227_v19 = vadd.f32 0.112945676, %v1226_v61 }
  0xf3   : > { %v692_v43 = vadd.f32 0.00028619796, %v691_v6  ;;  %v702_v29 = vmul.f32 3.8918573e-05, %v2684_v35  ;;  %v2715_v22 = vmul.f32 %v620_v11, %v2410_v12  ;;  %v633_v28 = vmul.f32 %v2694_v0, %v2636_v5 }
  0xf4   : > { %v2720_v51 = vmul.f32 0.5, %v2569_v57  ;;  %v2722_v25 = vmin.f32 %v1249_v30, 16.0  ;;  %v641_v41 = vand.u32 2147483647, %v2636_v5  ;;  %v1228_v63 = vmul.f32 %v1227_v19, %v2628_v10 }
  0xf5   : > { %v2724_v31 = vpop.eup %2083  ;;  %v703_v21 = vadd.f32 0.001143296, %v702_v29  ;;  %v2729_v32 = vmul.f32 0.70710677, %v2700_v50  ;;  %v1165_v12 = vsel %vm2673_vm7, %v1164_v18, %v1160_v26  ;;  %vm637_vm10 = vweird.f32 %v2636_v5 }
  0xf6   : > { %4207 = vst [vmem:[#allocation8_spill] sm:$0xff] %v2720_v51  ;;  %v1180_v55 = vadd.f32 1.1283791, %v1179_v13  ;;  %v1215_v57 = vmul.f32 %v1214_v9, %v2628_v10  ;;  %v693_v47 = vmul.f32 %v692_v43, %v2684_v35  ;;  %v2736_v33 = vpop.eup %2085  ;;  %v2738_v58 = vor.u32 1.1754944e-38, %v643_v17 }
  0xf7   : > { %v657_v62 = vmul.f32 %v656_v24, %v2552_v3  ;;  %v1229_v48 = vadd.f32 0.4994258, %v1228_v63  ;;  %v704_v11 = vmul.f32 %v703_v21, %v2684_v35  ;;  %v634_v30 = vsub.f32 1.0, %v633_v28 }
  0xf8   : > { %v1193_v36 = vmul.f32 %v2724_v31, %v2660_v27  ;;  %v1251_v18 = vmul.f32 2.1237322e-06, %v2722_v25  ;;  %v1262_v56 = vmul.f32 3.8918573e-05, %v2722_v25  ;;  %v2747_v61 = vmul.f32 %v1165_v12, %v2647_v23 }
  0xf9   : > { %v1203_v6 = vand.u32 2147483648, %v2660_v27  ;;  %v705_v15 = vadd.f32 0.014752088, %v704_v11  ;;  %v729_v17 = vmul.f32 %v2729_v32, %v2729_v32  ;;  %v673_v13 = vmul.f32 %v2736_v33, %v2677_v44 }
  0xfa   : > { %4208 = vst [vmem:[#allocation9_spill] sm:$0xff] %v2747_v61  ;;  %v1216_v24 = vadd.f32 0.05243302, %v1215_v57  ;;  %v694_v9 = vadd.f32 0.0036580483, %v693_v47  ;;  %v2755_v19 = vmul.f32 %v1180_v55, %v2435_v49  ;;  %v1230_v43 = vmul.f32 %v1229_v48, %v2628_v10 }
  0xfb   : > { %v1263_v26 = vadd.f32 0.001143296, %v1262_v56  ;;  %v706_v23 = vmul.f32 %v705_v15, %v2684_v35  ;;  %v1252_v29 = vadd.f32 0.00028619796, %v1251_v18  ;;  %v635_v28 = vmul.f32 %v2694_v0, %v634_v30 }
  0xfc   : > { %v1194_v63 = vsub.f32 1.0, %v1193_v36  ;;  %v658_v21 = vadd.f32 0.18741608, %v657_v62  ;;  %vm638_vm11 = vweird.f32 %v2694_v0  ;;  %vm2762_vm12 = vcmp.eq.f32.partialorder %v641_v41, 8.507059e+37  ;;  %v395_v36 = vpop.f32.mrf.mxu3 }
  0xfd   : > { %v1264_v12 = vmul.f32 %v1263_v26, %v2722_v25  ;;  %v1201_v49 = vand.u32 2147483647, %v2660_v27  ;;  %v2767_v55 = vor.u32 1.1754944e-38, %v1203_v6  ;;  %v2769_v47 = vmin.f32 %v729_v17, 16.0  ;;  %vm2788_vm14 = vmor %vm637_vm10, %vm638_vm11 }
  0xfe   : > { %vm1197_vm13 = vweird.f32 %v2660_v27  ;;  %v674_v48 = vsub.f32 1.0, %v673_v13  ;;  %v1217_v11 = vmul.f32 %v1216_v24, %v2628_v10  ;;  %v695_v62 = vmul.f32 %v694_v9, %v2684_v35 }
  0xff   : > { %v707_v30 = vadd.f32 0.112945676, %v706_v23  ;;  %v2774_v18 = vadd.f32 1.0, %v1230_v43  ;;  %v2777_v41 = vmul.f32 0.5, %v2651_v7  ;;  %v1253_v56 = vmul.f32 %v1252_v29, %v2722_v25 }
 0x100   : > { %v1265_v6 = vadd.f32 0.014752088, %v1264_v12  ;;  %v636_v15 = vadd.f32 %v2694_v0, %v635_v28  ;;  %v1195_v17 = vmul.f32 %v2724_v31, %v1194_v63  ;;  %v659_v13 = vmul.f32 %v658_v21, %v2552_v3 }
 0x101   : > { %4211 = vst [vmem:[#allocation10_spill] sm:$0xff] %v2777_v41  ;;  %v708_v24 = vmul.f32 %v707_v30, %v2684_v35  ;;  %vm1198_vm15 = vweird.f32 %v2724_v31  ;;  %v742_v26 = vmul.f32 3.8918573e-05, %v2769_v47  ;;  %v2796_v43 = vadd.f32 %v2252_v52, %v395_v36 }
 0x102   : > { %v1266_v7 = vmul.f32 %v1265_v6, %v2722_v25  ;;  %vm2798_vm1 = vcmp.eq.f32.partialorder %v1201_v49, 8.507059e+37  ;;  %v675_v23 = vmul.f32 %v2736_v33, %v674_v48  ;;  %v1218_v5 = vadd.f32 0.18741608, %v1217_v11  ;;  %vm2824_vm4 = vmor %vm1197_vm13, %vm1198_vm15 }
 0x103   : > { %v696_v29 = vadd.f32 0.05243302, %v695_v62  ;;  %v709_v28 = vadd.f32 0.4994258, %v708_v24  ;;  %2087 = vrcp.f32 %v2774_v18  ;;  %v1254_v63 = vadd.f32 0.0036580483, %v1253_v56 }
 0x104   : > { %v1267_v21 = vadd.f32 0.112945676, %v1266_v7  ;;  %v743_v12 = vadd.f32 0.001143296, %v742_v26  ;;  %v640_v30 = vsel %vm2788_vm14, %v2694_v0, %v636_v15  ;;  %v1196_v36 = vadd.f32 %v2724_v31, %v1195_v17  ;;  %v362_v17 = vpop.f32.mrf.mxu0  ;;  %v397_v27 = vpop.f32.mrf.mxu3 }
 0x105   : > { %vm677_vm2 = vweird.f32 %v2677_v44  ;;  %v731_v49 = vmul.f32 2.1237322e-06, %v2769_v47  ;;  %vm678_vm3 = vweird.f32 %v2736_v33  ;;  %v681_v48 = vand.u32 2147483647, %v2677_v44 }
 0x106   : > { %v710_v11 = vmul.f32 %v709_v28, %v2684_v35  ;;  %v1268_v62 = vmul.f32 %v1267_v21, %v2722_v25  ;;  %v683_v56 = vand.u32 2147483648, %v2677_v44  ;;  %v1219_v6 = vmul.f32 %v1218_v5, %v2628_v10  ;;  %vm2841_vm5 = vmor %vm677_vm2, %vm678_vm3 }
 0x107   : > { %v744_v0 = vmul.f32 %v743_v12, %v2769_v47  ;;  %v2818_v15 = vmul.f32 0.70710677, %v2796_v43  ;;  %v660_v9 = vadd.f32 1.1283791, %v659_v13  ;;  %v676_v7 = vadd.f32 %v2736_v33, %v675_v23 }
 0x108   : > { %v697_v26 = vmul.f32 %v696_v29, %v2684_v35  ;;  %v1255_v10 = vmul.f32 %v1254_v63, %v2722_v25  ;;  %v645_v5 = vsel %vm2762_vm12, %v2738_v58, %v640_v30  ;;  %v1200_v28 = vsel %vm2824_vm4, %v2724_v31, %v1196_v36 }
 0x109   : > { %v2846_v13 = vmul.f32 0.5, %v2621_v37  ;;  %v732_v23 = vadd.f32 0.00028619796, %v731_v49  ;;  %v2848_v29 = vpop.eup %2087  ;;  %vm2850_vm6 = vcmp.eq.f32.partialorder %v681_v48, 8.507059e+37  ;;  %v2854_v57 = vadd.f32 1.0, %v710_v11 }
 0x10a   : > { %v1269_v31 = vadd.f32 0.4994258, %v1268_v62  ;;  %v2857_v63 = vadd.f32 %v2252_v52, %v362_v17  ;;  %v684_v44 = vor.u32 1.1754944e-38, %v683_v56  ;;  %v1220_v21 = vadd.f32 1.1283791, %v1219_v6 }
 0x10b   : > { %v745_v12 = vadd.f32 0.014752088, %v744_v0  ;;  %v1289_v37 = vmul.f32 %v2818_v15, %v2818_v15  ;;  %v1205_v30 = vsel %vm2798_vm1, %v2767_v55, %v1200_v28  ;;  %v680_v36 = vsel %vm2841_vm5, %v2736_v33, %v676_v7 }
 0x10c   : > { %v698_v49 = vadd.f32 0.18741608, %v697_v26  ;;  %v1256_v48 = vadd.f32 0.05243302, %v1255_v10  ;;  %v1233_v11 = vmul.f32 %v2848_v29, %v2774_v18  ;;  %v733_v62 = vmul.f32 %v732_v23, %v2769_v47 }
 0x10d   : > { %v746_v56 = vmul.f32 %v745_v12, %v2769_v47  ;;  %v2871_v6 = vmin.f32 %v1289_v37, 16.0  ;;  %v661_v0 = vmul.f32 %v660_v9, %v2518_v16  ;;  %2089 = vrcp.f32 %v2854_v57 }
 0x10e   : > { %v1270_v55 = vmul.f32 %v1269_v31, %v2722_v25  ;;  %v2877_v3 = vmul.f32 0.70710677, %v2857_v63  ;;  %v2880_v33 = vmul.f32 %v645_v5, %v2715_v22  ;;  %v2883_v17 = vmul.f32 %v1205_v30, %v2755_v19 }
 0x10f   : > { %v2886_v24 = vmul.f32 %v1220_v21, %v2591_v8  ;;  %v1243_v7 = vand.u32 2147483648, %v2774_v18  ;;  %v685_v16 = vsel %vm2850_vm6, %v684_v44, %v680_v36  ;;  %v699_v9 = vmul.f32 %v698_v49, %v2684_v35 }
 0x110   : > { %4222 = vst [vmem:[#allocation11_spill] sm:$0xff] %v2883_v17  ;;  %v747_v26 = vadd.f32 0.112945676, %v746_v56  ;;  %v1291_v10 = vmul.f32 2.1237322e-06, %v2871_v6  ;;  %v1234_v28 = vsub.f32 1.0, %v1233_v11  ;;  %v1257_v22 = vmul.f32 %v1256_v48, %v2722_v25 }
 0x111   : > { %v734_v5 = vadd.f32 0.0036580483, %v733_v62  ;;  %v1302_v19 = vmul.f32 3.8918573e-05, %v2871_v6  ;;  %v2895_v23 = vadd.f32 1.0, %v1270_v55  ;;  %v769_v58 = vmul.f32 %v2877_v3, %v2877_v3 }
 0x112   : > { %v748_v8 = vmul.f32 %v747_v26, %v2769_v47  ;;  %v1292_v31 = vadd.f32 0.00028619796, %v1291_v10  ;;  %v2900_v44 = vmul.f32 %v685_v16, %v661_v0  ;;  %vm1237_vm7 = vweird.f32 %v2774_v18 }
 0x113   : > { %v1241_v35 = vand.u32 2147483647, %v2774_v18  ;;  %v1244_v21 = vor.u32 1.1754944e-38, %v1243_v7  ;;  %v1303_v12 = vadd.f32 0.001143296, %v1302_v19  ;;  %v2904_v37 = vpop.eup %2089  ;;  %v2907_v30 = vmul.f32 0.5, %v2700_v50 }
 0x114   : > { %v749_v36 = vadd.f32 0.4994258, %v748_v8  ;;  %v2909_v49 = vmin.f32 %v769_v58, 16.0  ;;  %v2912_v48 = vadd.f32 %v2252_v52, %v397_v27  ;;  %v1235_v11 = vmul.f32 %v2848_v29, %v1234_v28 }
 0x115   : > { %v700_v62 = vadd.f32 1.1283791, %v699_v9  ;;  %v735_v56 = vmul.f32 %v734_v5, %v2769_v47  ;;  %v1304_v0 = vmul.f32 %v1303_v12, %v2871_v6  ;;  %v1258_v55 = vadd.f32 0.18741608, %v1257_v22 }
 0x116   : > { %4223 = vst [vmem:[#allocation12_spill] sm:$0xff] %v2912_v48  ;;  %2091 = vrcp.f32 %v2895_v23  ;;  %v750_v7 = vmul.f32 %v749_v36, %v2769_v47  ;;  %v1293_v50 = vmul.f32 %v1292_v31, %v2871_v6  ;;  %vm1238_vm8 = vweird.f32 %v2848_v29 }
 0x117   : > { %vm2921_vm9 = vcmp.eq.f32.partialorder %v1241_v35, 8.507059e+37  ;;  %v713_v52 = vmul.f32 %v2904_v37, %v2854_v57  ;;  %v1305_v9 = vadd.f32 0.014752088, %v1304_v0  ;;  %v771_v26 = vmul.f32 2.1237322e-06, %v2909_v49  ;;  %vm2952_vm10 = vmor %vm1237_vm7, %vm1238_vm8 }
 0x118   : > { %v723_v10 = vand.u32 2147483648, %v2854_v57  ;;  %v2929_v28 = vadd.f32 1.0, %v750_v7  ;;  %v782_v22 = vmul.f32 3.8918573e-05, %v2909_v49  ;;  %v2933_v5 = vmul.f32 0.70710677, %v2912_v48 }
 0x119   : > { %v1236_v19 = vadd.f32 %v2848_v29, %v1235_v11  ;;  %v736_v27 = vadd.f32 0.05243302, %v735_v56  ;;  %v1306_v8 = vmul.f32 %v1305_v9, %v2871_v6  ;;  %v772_v31 = vadd.f32 0.00028619796, %v771_v26 }
 0x11a   : > { %v2938_v58 = vmul.f32 %v700_v62, %v2644_v42  ;;  %v1259_v35 = vmul.f32 %v1258_v55, %v2722_v25  ;;  %v2942_v12 = vmul.f32 0.5, %v2796_v43  ;;  %v1294_v36 = vadd.f32 0.0036580483, %v1293_v50  ;;  %v365_v42 = vpop.f32.mrf.mxu0 }
 0x11b   : > { %v714_v0 = vsub.f32 1.0, %v713_v52  ;;  %v721_v7 = vand.u32 2147483647, %v2854_v57  ;;  %2093 = vrcp.f32 %v2929_v28  ;;  %v1307_v20 = vadd.f32 0.112945676, %v1306_v8 }
 0x11c   : > { %4226 = vst [vmem:[#allocation13_spill] sm:$0xff] %v2942_v12  ;;  %v2946_v11 = vpop.eup %2091  ;;  %vm717_vm11 = vweird.f32 %v2854_v57  ;;  %v773_v25 = vmul.f32 %v772_v31, %v2909_v49  ;;  %v783_v43 = vadd.f32 0.001143296, %v782_v22  ;;  %v1329_v62 = vmul.f32 %v2933_v5, %v2933_v5 }
 0x11d   : > { %v1240_v56 = vsel %vm2952_vm10, %v2848_v29, %v1236_v19  ;;  %v724_v55 = vor.u32 1.1754944e-38, %v723_v10  ;;  %v737_v50 = vmul.f32 %v736_v27, %v2769_v47  ;;  %v1308_v18 = vmul.f32 %v1307_v20, %v2871_v6 }
 0x11e   : > { %v1260_v52 = vadd.f32 1.1283791, %v1259_v35  ;;  %v1295_v9 = vmul.f32 %v1294_v36, %v2871_v6  ;;  %v784_v26 = vmul.f32 %v783_v43, %v2909_v49  ;;  %v2967_v8 = vmin.f32 %v1329_v62, 16.0 }
 0x11f   : > { %v715_v22 = vmul.f32 %v2904_v37, %v714_v0  ;;  %vm2970_vm12 = vcmp.eq.f32.partialorder %v721_v7, 8.507059e+37  ;;  %v1273_v29 = vmul.f32 %v2946_v11, %v2895_v23  ;;  %v1309_v10 = vadd.f32 0.4994258, %v1308_v18 }
 0x120   : > { %v774_v19 = vadd.f32 0.0036580483, %v773_v25  ;;  %v1245_v20 = vsel %vm2921_vm9, %v1244_v21, %v1240_v56  ;;  %v785_v27 = vadd.f32 0.014752088, %v784_v26  ;;  %v1331_v35 = vmul.f32 2.1237322e-06, %v2967_v8 }
 0x121   : > { %v1342_v36 = vmul.f32 3.8918573e-05, %v2967_v8  ;;  %v2980_v43 = vpop.eup %2093  ;;  %vm718_vm13 = vweird.f32 %v2904_v37  ;;  %v1283_v0 = vand.u32 2147483648, %v2895_v23  ;;  %v738_v7 = vadd.f32 0.18741608, %v737_v50 }
 0x122   : > { %v2987_v25 = vld [vmem:[%s4171_s2] ss:$0 sm:$0xff]  ;;  %v1296_v16 = vadd.f32 0.05243302, %v1295_v9  ;;  %v1310_v62 = vmul.f32 %v1309_v10, %v2871_v6  ;;  %v786_v56 = vmul.f32 %v785_v27, %v2909_v49  ;;  %v716_v26 = vadd.f32 %v2904_v37, %v715_v22  ;;  %vm3000_vm14 = vmor %vm717_vm11, %vm718_vm13 }
 0x123   : > { %v2990_v21 = vadd.f32 %v2987_v25, %v365_v42  ;;  %v1343_v18 = vadd.f32 0.001143296, %v1342_v36  ;;  %v2996_v12 = vmul.f32 %v1260_v52, %v2669_v34  ;;  %v1274_v50 = vsub.f32 1.0, %v1273_v29 }
 0x124   : > { %v1332_v14 = vadd.f32 0.00028619796, %v1331_v35  ;;  %v753_v9 = vmul.f32 %v2980_v43, %v2929_v28  ;;  %v775_v10 = vmul.f32 %v774_v19, %v2909_v49  ;;  %v787_v27 = vadd.f32 0.112945676, %v786_v56 }
 0x125   : > { %v1344_v36 = vmul.f32 %v1343_v18, %v2967_v8  ;;  %v3009_v22 = vmul.f32 %v1245_v20, %v2886_v24  ;;  %vm1277_vm15 = vweird.f32 %v2895_v23  ;;  %v1281_v34 = vand.u32 2147483647, %v2895_v23 }
 0x126   : > { %v739_v57 = vmul.f32 %v738_v7, %v2769_v47  ;;  %v3015_v52 = vmul.f32 0.70710677, %v2990_v21  ;;  %v1284_v29 = vor.u32 1.1754944e-38, %v1283_v0  ;;  %v1297_v35 = vmul.f32 %v1296_v16, %v2871_v6 }
 0x127   : > { %4233 = vst [vmem:[#allocation14_spill] sm:$0xff] %v3009_v22  ;;  %v3018_v42 = vadd.f32 1.0, %v1310_v62  ;;  %v788_v19 = vmul.f32 %v787_v27, %v2909_v49  ;;  %v720_v24 = vsel %vm3000_vm14, %v2904_v37, %v716_v26  ;;  %v1275_v20 = vmul.f32 %v2946_v11, %v1274_v50 }
 0x128   : > { %v1333_v56 = vmul.f32 %v1332_v14, %v2967_v8  ;;  %v1345_v18 = vadd.f32 0.014752088, %v1344_v36  ;;  %vm1278_vm1 = vweird.f32 %v2946_v11  ;;  %v754_v47 = vsub.f32 1.0, %v753_v9  ;;  %v400_v9 = vpop.f32.mrf.mxu3 }
 0x129   : > { %v776_v7 = vadd.f32 0.05243302, %v775_v10  ;;  %v789_v0 = vadd.f32 0.4994258, %v788_v19  ;;  %vm3027_vm2 = vcmp.eq.f32.partialorder %v1281_v34, 8.507059e+37  ;;  %v3032_v27 = vmul.f32 0.5, %v2857_v63  ;;  %vm3059_vm3 = vmor %vm1277_vm15, %vm1278_vm1 }
 0x12a   : > { %v740_v62 = vadd.f32 1.1283791, %v739_v57  ;;  %v1346_v37 = vmul.f32 %v1345_v18, %v2967_v8  ;;  %v809_v48 = vmul.f32 %v3015_v52, %v3015_v52  ;;  %v725_v14 = vsel %vm2970_vm12, %v724_v55, %v720_v24 }
 0x12b   : > { %v1298_v26 = vadd.f32 0.18741608, %v1297_v35  ;;  %2095 = vrcp.f32 %v3018_v42  ;;  %v790_v50 = vmul.f32 %v789_v0, %v2909_v49  ;;  %v1276_v10 = vadd.f32 %v2946_v11, %v1275_v20 }
 0x12c   : > { %v1334_v36 = vadd.f32 0.0036580483, %v1333_v56  ;;  %v1347_v34 = vadd.f32 0.112945676, %v1346_v37  ;;  %v3042_v63 = vmin.f32 %v809_v48, 16.0  ;;  %v755_v57 = vmul.f32 %v2980_v43, %v754_v47 }
 0x12d   : > { %v761_v19 = vand.u32 2147483647, %v2929_v28  ;;  %v777_v18 = vmul.f32 %v776_v7, %v2909_v49  ;;  %v3047_v31 = vadd.f32 1.0, %v790_v50  ;;  %v3053_v20 = vadd.f32 %v2987_v25, %v400_v9 }
 0x12e   : > { %v1348_v55 = vmul.f32 %v1347_v34, %v2967_v8  ;;  %v811_v35 = vmul.f32 2.1237322e-06, %v3042_v63  ;;  %v822_v24 = vmul.f32 3.8918573e-05, %v3042_v63  ;;  %v3064_v47 = vmul.f32 %v740_v62, %v2729_v32 }
 0x12f   : > { %vm757_vm4 = vweird.f32 %v2929_v28  ;;  %v763_v7 = vand.u32 2147483648, %v2929_v28  ;;  %v1299_v0 = vmul.f32 %v1298_v26, %v2871_v6  ;;  %v1280_v37 = vsel %vm3059_vm3, %v2946_v11, %v1276_v10 }
 0x130   : > { %vm758_vm5 = vweird.f32 %v2980_v43  ;;  %v1335_v23 = vmul.f32 %v1334_v36, %v2967_v8  ;;  %v1349_v48 = vadd.f32 0.4994258, %v1348_v55  ;;  %v3077_v32 = vmul.f32 %v725_v14, %v2938_v58 }
 0x131   : > { %v3074_v50 = vpop.eup %2095  ;;  %2097 = vrcp.f32 %v3047_v31  ;;  %v812_v62 = vadd.f32 0.00028619796, %v811_v35  ;;  %v823_v9 = vadd.f32 0.001143296, %v822_v24  ;;  %v756_v6 = vadd.f32 %v2980_v43, %v755_v57  ;;  %vm3092_vm7 = vmor %vm757_vm4, %vm758_vm5 }
 0x132   : > { %vm3081_vm6 = vcmp.eq.f32.partialorder %v761_v19, 8.507059e+37  ;;  %v778_v11 = vadd.f32 0.18741608, %v777_v18  ;;  %v3086_v10 = vmul.f32 0.70710677, %v3053_v20  ;;  %v1285_v36 = vsel %vm3027_vm2, %v1284_v29, %v1280_v37 }
 0x133   : > { %v1300_v14 = vadd.f32 1.1283791, %v1299_v0  ;;  %v824_v34 = vmul.f32 %v823_v9, %v3042_v63  ;;  %v2034_v57 = vclamps-f32 %v2528_v1, 1.0  ;;  %v764_v19 = vor.u32 1.1754944e-38, %v763_v7 }
 0x134   : > { %v1313_v18 = vmul.f32 %v3074_v50, %v3018_v42  ;;  %v1336_v55 = vadd.f32 0.05243302, %v1335_v23  ;;  %v1350_v35 = vmul.f32 %v1349_v48, %v2967_v8  ;;  %v813_v29 = vmul.f32 %v812_v62, %v3042_v63 }
 0x135   : > { %v825_v16 = vadd.f32 0.014752088, %v824_v34  ;;  %v1369_v28 = vmul.f32 %v3086_v10, %v3086_v10  ;;  %v2035_v24 = vclamps-f32 %v2624_v39, 1.0  ;;  %v3106_v56 = vmul.f32 %v1285_v36, %v2996_v12 }
 0x136   : > { %v760_v1 = vsel %vm3092_vm7, %v2980_v43, %v756_v6  ;;  %v779_v7 = vmul.f32 %v778_v11, %v2909_v49  ;;  %v1783_v0 = vadd.f32 1.0, %v2034_v57  ;;  %v3115_v23 = vmul.f32 %v1300_v14, %v2818_v15  ;;  %v367_v43 = vpop.f32.mrf.mxu0 }
 0x137   : > { %4242 = vst [vmem:[#allocation15_spill] sm:$0xff] %v3106_v56  ;;  %v3112_v37 = vpop.eup %2097  ;;  %v1321_v48 = vand.u32 2147483647, %v3018_v42  ;;  %v1323_v62 = vand.u32 2147483648, %v3018_v42  ;;  %v3120_v39 = vmul.f32 0.5, %v2990_v21  ;;  %v1314_v12 = vsub.f32 1.0, %v1313_v18 }
 0x138   : > { %v1337_v9 = vmul.f32 %v1336_v55, %v2967_v8  ;;  %v3123_v36 = vadd.f32 1.0, %v1350_v35  ;;  %v826_v49 = vmul.f32 %v825_v16, %v3042_v63  ;;  %v765_v6 = vsel %vm3081_vm6, %v764_v19, %v760_v1 }
 0x139   : > { %v814_v15 = vadd.f32 0.0036580483, %v813_v29  ;;  %v3128_v11 = vmin.f32 %v1369_v28, 16.0  ;;  %v1784_v58 = vadd.f32 1.0, %v2035_v24  ;;  %vm1317_vm8 = vweird.f32 %v3018_v42 }
 0x13a   : > { %v780_v14 = vadd.f32 1.1283791, %v779_v7  ;;  %v793_v21 = vmul.f32 %v3112_v37, %v3047_v31  ;;  %v827_v34 = vadd.f32 0.112945676, %v826_v49  ;;  %v1815_v57 = vmul.f32 %v1783_v0, %v2361_v38 }
 0x13b   : > { %v1371_v18 = vmul.f32 2.1237322e-06, %v3128_v11  ;;  %v1382_v55 = vmul.f32 3.8918573e-05, %v3128_v11  ;;  %v1816_v26 = vmul.f32 %v1784_v58, %v2371_v45  ;;  %v3138_v19 = vadd.f32 %v2987_v25, %v367_v43 }
 0x13c   : > { %v1315_v35 = vmul.f32 %v3074_v50, %v1314_v12  ;;  %v1338_v29 = vadd.f32 0.18741608, %v1337_v9  ;;  %2099 = vrcp.f32 %v3123_v36  ;;  %v828_v16 = vmul.f32 %v827_v34, %v3042_v63  ;;  %v402_v12 = vpop.f32.mrf.mxu3 }
 0x13d   : > { %v815_v28 = vmul.f32 %v814_v15, %v3042_v63  ;;  %v1372_v24 = vadd.f32 0.00028619796, %v1371_v18  ;;  %v1383_v38 = vadd.f32 0.001143296, %v1382_v55  ;;  %v1842_v1 = vpack.c.bf16 %v1816_v26, %v1815_v57 }
 0x13e   : > { %v3145_v7 = vmul.f32 %v765_v6, %v3064_v47  ;;  %vm1318_vm9 = vweird.f32 %v3074_v50  ;;  %v1324_v45 = vor.u32 1.1754944e-38, %v1323_v62  ;;  %v3149_v0 = vmul.f32 0.70710677, %v3138_v19 }
 0x13f   : > { %vm3151_vm10 = vcmp.eq.f32.partialorder %v1321_v48, 8.507059e+37  ;;  %v794_v49 = vsub.f32 1.0, %v793_v21  ;;  %v829_v43 = vadd.f32 0.4994258, %v828_v16  ;;  %v1373_v15 = vmul.f32 %v1372_v24, %v3128_v11  ;;  %vm3178_vm12 = vmor %vm1317_vm8, %vm1318_vm9 }
 0x140   : > { %v1384_v58 = vmul.f32 %v1383_v38, %v3128_v11  ;;  %v1316_v47 = vadd.f32 %v3074_v50, %v1315_v35  ;;  %v801_v6 = vand.u32 2147483647, %v3047_v31  ;;  %v1339_v62 = vmul.f32 %v1338_v29, %v2967_v8 }
 0x141   : > { %v1883_v34 = vsel %vm287_vm0, %v1842_v1, 0  ;;  %v3162_v57 = vmul.f32 %v780_v14, %v2877_v3  ;;  %v816_v48 = vadd.f32 0.05243302, %v815_v28  ;;  %v3165_v21 = vadd.f32 %v2987_v25, %v402_v12  ;;  %v370_v12 = vpop.f32.mrf.mxu0 }
 0x142   : > { %v1385_v18 = vadd.f32 0.014752088, %v1384_v58  ;;  %1909 = vmatpush.bf16.xpose.msra.mxu1 %v1883_v34  ;;  %v3167_v55 = vpop.eup %2099  ;;  %vm797_vm11 = vweird.f32 %v3047_v31  ;;  %v803_v26 = vand.u32 2147483648, %v3047_v31  ;;  %v830_v35 = vmul.f32 %v829_v43, %v3042_v63 }
 0x143   : > { %v849_v8 = vmul.f32 %v3149_v0, %v3149_v0  ;;  %v795_v14 = vmul.f32 %v3112_v37, %v794_v49  ;;  %v3184_v29 = vmul.f32 0.5, %v3053_v20  ;;  %v1374_v16 = vadd.f32 0.0036580483, %v1373_v15 }
 0x144   : > { %v1386_v28 = vmul.f32 %v1385_v18, %v3128_v11  ;;  %v1320_v24 = vsel %vm3178_vm12, %v3074_v50, %v1316_v47  ;;  %vm3190_vm13 = vcmp.eq.f32.partialorder %v801_v6, 8.507059e+37  ;;  %v1340_v42 = vadd.f32 1.1283791, %v1339_v62  ;;  %v405_v41 = vpop.f32.mrf.mxu3 }
 0x145   : > { %4247 = vst [vmem:[#allocation16_spill] sm:$0xff] %v3184_v29  ;;  %v3194_v1 = vmin.f32 %v849_v8, 16.0  ;;  %vm798_vm14 = vweird.f32 %v3112_v37  ;;  %v817_v20 = vmul.f32 %v816_v48, %v3042_v63  ;;  %v3199_v49 = vmul.f32 0.70710677, %v3165_v21 }
 0x146   : > { %v3202_v43 = vadd.f32 %v2987_v25, %v370_v12  ;;  %v1353_v50 = vmul.f32 %v3167_v55, %v3123_v36  ;;  %v3206_v15 = vadd.f32 1.0, %v830_v35  ;;  %v1387_v58 = vadd.f32 0.112945676, %v1386_v28  ;;  %vm3216_vm15 = vmor %vm797_vm11, %vm798_vm14 }
 0x147   : > { %v851_v47 = vmul.f32 2.1237322e-06, %v3194_v1  ;;  %v796_v6 = vadd.f32 %v3112_v37, %v795_v14  ;;  %v804_v62 = vor.u32 1.1754944e-38, %v803_v26  ;;  %v1375_v34 = vmul.f32 %v1374_v16, %v3128_v11 }
 0x148   : > { %v862_v48 = vmul.f32 3.8918573e-05, %v3194_v1  ;;  %v1325_v18 = vsel %vm3151_vm10, %v1324_v45, %v1320_v24  ;;  %v3221_v35 = vmul.f32 %v1340_v42, %v2933_v5  ;;  %v1388_v3 = vmul.f32 %v1387_v58, %v3128_v11 }
 0x149   : > { %v852_v14 = vadd.f32 0.00028619796, %v851_v47  ;;  %v818_v26 = vadd.f32 0.18741608, %v817_v20  ;;  %v1409_v16 = vmul.f32 %v3199_v49, %v3199_v49  ;;  %v3227_v9 = vmul.f32 0.70710677, %v3202_v43 }
 0x14a   : > { %v863_v28 = vadd.f32 0.001143296, %v862_v48  ;;  %v1354_v45 = vsub.f32 1.0, %v1353_v50  ;;  %2101 = vrcp.f32 %v3206_v15  ;;  %v1389_v31 = vadd.f32 0.4994258, %v1388_v3 }
 0x14b   : > { %v853_v24 = vmul.f32 %v852_v14, %v3194_v1  ;;  %v800_v5 = vsel %vm3216_vm15, %v3112_v37, %v796_v6  ;;  %v1376_v42 = vadd.f32 0.05243302, %v1375_v34  ;;  %v3235_v20 = vmin.f32 %v1409_v16, 16.0 }
 0x14c   : > { %v864_v12 = vmul.f32 %v863_v28, %v3194_v1  ;;  %v3238_v58 = vmul.f32 %v1325_v18, %v3115_v23  ;;  %v1361_v47 = vand.u32 2147483647, %v3123_v36  ;;  %v1363_v50 = vand.u32 2147483648, %v3123_v36 }
 0x14d   : > { %v1390_v48 = vmul.f32 %v1389_v31, %v3128_v11  ;;  %v819_v3 = vmul.f32 %v818_v26, %v3042_v63  ;;  %v1411_v8 = vmul.f32 2.1237322e-06, %v3235_v20  ;;  %v889_v37 = vmul.f32 %v3227_v9, %v3227_v9 }
 0x14e   : > { %4252 = vst [vmem:[#allocation17_spill] sm:$0xff] %v3238_v58  ;;  %v865_v14 = vadd.f32 0.014752088, %v864_v12  ;;  %v805_v6 = vsel %vm3190_vm13, %v804_v62, %v800_v5  ;;  %v1355_v23 = vmul.f32 %v3167_v55, %v1354_v45  ;;  %v854_v34 = vadd.f32 0.0036580483, %v853_v24 }
 0x14f   : > { %v1422_v18 = vmul.f32 3.8918573e-05, %v3235_v20  ;;  %v1377_v28 = vmul.f32 %v1376_v42, %v3128_v11  ;;  %v3252_v16 = vadd.f32 1.0, %v1390_v48  ;;  %v1412_v26 = vadd.f32 0.00028619796, %v1411_v8 }
 0x150   : > { %v866_v63 = vmul.f32 %v865_v14, %v3194_v1  ;;  %v3255_v31 = vpop.eup %2101  ;;  %vm1357_vm1 = vweird.f32 %v3123_v36  ;;  %vm1358_vm2 = vweird.f32 %v3167_v55  ;;  %vm3259_vm3 = vcmp.eq.f32.partialorder %v1361_v47, 8.507059e+37 }
 0x151   : > { %v1364_v62 = vor.u32 1.1754944e-38, %v1363_v50  ;;  %v3264_v45 = vmul.f32 %v805_v6, %v3162_v57  ;;  %v820_v24 = vadd.f32 1.1283791, %v819_v3  ;;  %v1413_v5 = vmul.f32 %v1412_v26, %v3235_v20  ;;  %vm3287_vm4 = vmor %vm1357_vm1, %vm1358_vm2 }
 0x152   : > { %v3267_v42 = vmin.f32 %v889_v37, 16.0  ;;  %v1356_v12 = vadd.f32 %v3167_v55, %v1355_v23  ;;  %v855_v48 = vmul.f32 %v854_v34, %v3194_v1  ;;  %v867_v14 = vadd.f32 0.112945676, %v866_v63 }
 0x153   : > { %v1423_v8 = vadd.f32 0.001143296, %v1422_v18  ;;  %v833_v47 = vmul.f32 %v3255_v31, %v3206_v15  ;;  %v1378_v51 = vadd.f32 0.18741608, %v1377_v28  ;;  %2103 = vrcp.f32 %v3252_v16 }
 0x154   : > { %v891_v57 = vmul.f32 2.1237322e-06, %v3267_v42  ;;  %v3276_v50 = vmul.f32 0.5, %v3138_v19  ;;  %v868_v3 = vmul.f32 %v867_v14, %v3194_v1  ;;  %v3280_v37 = vmul.f32 0.5, %v3165_v21 }
 0x155   : > { %v1424_v6 = vmul.f32 %v1423_v8, %v3235_v20  ;;  %v3292_v34 = vmul.f32 %v820_v24, %v3015_v52  ;;  %v1414_v19 = vadd.f32 0.0036580483, %v1413_v5  ;;  %v902_v18 = vmul.f32 3.8918573e-05, %v3267_v42 }
 0x156   : > { %4255 = vst [vmem:[#allocation18_spill] sm:$0xff] %v3280_v37  ;;  %v406_v28 = vadd.f32 %v2987_v25, %v405_v41  ;;  %v1360_v21 = vsel %vm3287_vm4, %v3167_v55, %v1356_v12  ;;  %v856_v63 = vadd.f32 0.05243302, %v855_v48  ;;  %v869_v26 = vadd.f32 0.4994258, %v868_v3  ;;  %v372_v3 = vpop.f32.mrf.mxu0 }
 0x157   : > { %v1425_v14 = vadd.f32 0.014752088, %v1424_v6  ;;  %v834_v36 = vsub.f32 1.0, %v833_v47  ;;  %v841_v8 = vand.u32 2147483647, %v3206_v15  ;;  %v1379_v58 = vmul.f32 %v1378_v51, %v3128_v11 }
 0x158   : > { %v892_v17 = vadd.f32 0.00028619796, %v891_v57  ;;  %v843_v52 = vand.u32 2147483648, %v3206_v15  ;;  %v870_v24 = vmul.f32 %v869_v26, %v3194_v1  ;;  %v903_v41 = vadd.f32 0.001143296, %v902_v18 }
 0x159   : > { %v1426_v5 = vmul.f32 %v1425_v14, %v3235_v20  ;;  %v3304_v37 = vpop.eup %2103  ;;  %v1365_v55 = vsel %vm3259_vm3, %v1364_v62, %v1360_v21  ;;  %vm837_vm5 = vweird.f32 %v3206_v15  ;;  %v1415_v12 = vmul.f32 %v1414_v19, %v3235_v20 }
 0x15a   : > { %v3310_v48 = vmul.f32 0.70710677, %v406_v28  ;;  %v857_v51 = vmul.f32 %v856_v63, %v3194_v1  ;;  %v3313_v11 = vadd.f32 1.0, %v870_v24  ;;  %v904_v57 = vmul.f32 %v903_v41, %v3267_v42 }
 0x15b   : > { %v1427_v47 = vadd.f32 0.112945676, %v1426_v5  ;;  %v835_v6 = vmul.f32 %v3255_v31, %v834_v36  ;;  %vm3317_vm6 = vcmp.eq.f32.partialorder %v841_v8, 8.507059e+37  ;;  %v1380_v38 = vadd.f32 1.1283791, %v1379_v58 }
 0x15c   : > { %v893_v62 = vmul.f32 %v892_v17, %v3267_v42  ;;  %v1449_v19 = vmul.f32 %v3310_v48, %v3310_v48  ;;  %v3325_v18 = vmul.f32 %v1365_v55, %v3221_v35  ;;  %v844_v21 = vor.u32 1.1754944e-38, %v843_v52 }
 0x15d   : > { %v1393_v63 = vmul.f32 %v3304_v37, %v3252_v16  ;;  %2105 = vrcp.f32 %v3313_v11  ;;  %vm838_vm7 = vweird.f32 %v3255_v31  ;;  %v1416_v26 = vadd.f32 0.05243302, %v1415_v12 }
 0x15e   : > { %4260 = vst [vmem:[#allocation19_spill] sm:$0xff] %v3325_v18  ;;  %v1428_v14 = vmul.f32 %v1427_v47, %v3235_v20  ;;  %v3333_v58 = vadd.f32 %v2987_v25, %v372_v3  ;;  %v858_v17 = vadd.f32 0.18741608, %v857_v51  ;;  %v905_v36 = vadd.f32 0.014752088, %v904_v57  ;;  %vm3345_vm8 = vmor %vm837_vm5, %vm838_vm7 }
 0x15f   : > { %v3335_v8 = vmul.f32 0.5, %v406_v28  ;;  %v3337_v35 = vmin.f32 %v1449_v19, 16.0  ;;  %v836_v52 = vadd.f32 %v3255_v31, %v835_v6  ;;  %v3341_v24 = vmul.f32 %v1380_v38, %v3086_v10 }
 0x160   : > { %v1429_v5 = vadd.f32 0.4994258, %v1428_v14  ;;  %v894_v41 = vadd.f32 0.0036580483, %v893_v62  ;;  %v1394_v12 = vsub.f32 1.0, %v1393_v63  ;;  %v906_v51 = vmul.f32 %v905_v36, %v3267_v42 }
 0x161   : > { %4261 = vst [vmem:[#allocation20_spill] sm:$0xff] %v3335_v8  ;;  %v1451_v28 = vmul.f32 2.1237322e-06, %v3337_v35  ;;  %v1462_v47 = vmul.f32 3.8918573e-05, %v3337_v35  ;;  %v1403_v10 = vand.u32 2147483648, %v3252_v16  ;;  %v1417_v3 = vmul.f32 %v1416_v26, %v3235_v20 }
 0x162   : > { %v1401_v57 = vand.u32 2147483647, %v3252_v16  ;;  %v1430_v6 = vmul.f32 %v1429_v5, %v3235_v20  ;;  %v859_v38 = vmul.f32 %v858_v17, %v3194_v1  ;;  %v907_v62 = vadd.f32 0.112945676, %v906_v51  ;;  %v407_v51 = vpop.f32.mrf.mxu3 }
 0x163   : > { %v3356_v15 = vpop.eup %2105  ;;  %v1452_v19 = vadd.f32 0.00028619796, %v1451_v28  ;;  %v1463_v63 = vadd.f32 0.001143296, %v1462_v47  ;;  %v840_v14 = vsel %vm3345_vm8, %v3255_v31, %v836_v52  ;;  %vm1397_vm9 = vweird.f32 %v3252_v16 }
 0x164   : > { %v3363_v36 = vadd.f32 1.0, %v1430_v6  ;;  %v895_v18 = vmul.f32 %v894_v41, %v3267_v42  ;;  %v1395_v26 = vmul.f32 %v3304_v37, %v1394_v12  ;;  %v873_v5 = vmul.f32 %v3356_v15, %v3313_v11 }
 0x165   : > { %v908_v1 = vmul.f32 %v907_v62, %v3267_v42  ;;  %v1464_v17 = vmul.f32 %v1463_v63, %v3337_v35  ;;  %v1418_v28 = vadd.f32 0.18741608, %v1417_v3  ;;  %v1453_v31 = vmul.f32 %v1452_v19, %v3337_v35 }
 0x166   : > { %2107 = vrcp.f32 %v3363_v36  ;;  %v3374_v52 = vmul.f32 0.70710677, %v3333_v58  ;;  %v845_v41 = vsel %vm3317_vm6, %v844_v21, %v840_v14  ;;  %vm3378_vm10 = vcmp.eq.f32.partialorder %v1401_v57, 8.507059e+37 }
 0x167   : > { %v1404_v12 = vor.u32 1.1754944e-38, %v1403_v10  ;;  %v860_v47 = vadd.f32 1.1283791, %v859_v38  ;;  %v909_v6 = vadd.f32 0.4994258, %v908_v1  ;;  %vm1398_vm11 = vweird.f32 %v3304_v37 }
 0x168   : > { %v896_v3 = vadd.f32 0.05243302, %v895_v18  ;;  %v1465_v62 = vadd.f32 0.014752088, %v1464_v17  ;;  %v3384_v63 = vadd.f32 %v2987_v25, %v407_v51  ;;  %v1396_v19 = vadd.f32 %v3304_v37, %v1395_v26  ;;  %vm3410_vm12 = vmor %vm1397_vm9, %vm1398_vm11 }
 0x169   : > { %v874_v29 = vsub.f32 1.0, %v873_v5  ;;  %v881_v23 = vand.u32 2147483647, %v3313_v11  ;;  %v910_v21 = vmul.f32 %v909_v6, %v3267_v42  ;;  %v1419_v57 = vmul.f32 %v1418_v28, %v3235_v20 }
 0x16a   : > { %v1454_v14 = vadd.f32 0.0036580483, %v1453_v31  ;;  %v1466_v10 = vmul.f32 %v1465_v62, %v3337_v35  ;;  %v929_v38 = vmul.f32 %v3374_v52, %v3374_v52  ;;  %v3394_v18 = vmul.f32 %v845_v41, %v3292_v34 }
 0x16b   : > { %v3397_v1 = vmul.f32 %v860_v47, %v3149_v0  ;;  %v3400_v26 = vmul.f32 0.5, %v3202_v43  ;;  %v3402_v5 = vadd.f32 1.0, %v910_v21  ;;  %v897_v34 = vmul.f32 %v896_v3, %v3267_v42 }
 0x16c   : > { %v3404_v17 = vpop.eup %2107  ;;  %v1467_v51 = vadd.f32 0.112945676, %v1466_v10  ;;  %v3415_v0 = vmin.f32 %v929_v38, 16.0  ;;  %v3418_v43 = vmul.f32 0.70710677, %v3384_v63  ;;  %v1400_v28 = vsel %vm3410_vm12, %v3304_v37, %v1396_v19 }
 0x16d   : > { %v875_v31 = vmul.f32 %v3356_v15, %v874_v29  ;;  %vm877_vm13 = vweird.f32 %v3313_v11  ;;  %v883_v16 = vand.u32 2147483648, %v3313_v11  ;;  %vm3426_vm14 = vcmp.eq.f32.partialorder %v881_v23, 8.507059e+37 }
 0x16e   : > { %v1420_v47 = vadd.f32 1.1283791, %v1419_v57  ;;  %2109 = vrcp.f32 %v3402_v5  ;;  %v1455_v6 = vmul.f32 %v1454_v14, %v3337_v35  ;;  %vm878_vm15 = vweird.f32 %v3356_v15  ;;  %v375_v57 = vpop.f32.mrf.mxu0 }
 0x16f   : > { %v1433_v37 = vmul.f32 %v3404_v17, %v3363_v36  ;;  %v1468_v29 = vmul.f32 %v1467_v51, %v3337_v35  ;;  %v931_v3 = vmul.f32 2.1237322e-06, %v3415_v0  ;;  %v1405_v62 = vsel %vm3378_vm10, %v1404_v12, %v1400_v28  ;;  %vm3448_vm1 = vmor %vm877_vm13, %vm878_vm15 }
 0x170   : > { %v898_v19 = vadd.f32 0.18741608, %v897_v34  ;;  %v942_v23 = vmul.f32 3.8918573e-05, %v3415_v0  ;;  %v1489_v21 = vmul.f32 %v3418_v43, %v3418_v43  ;;  %v876_v14 = vadd.f32 %v3356_v15, %v875_v31 }
 0x171   : > { %v1469_v10 = vadd.f32 0.4994258, %v1468_v29  ;;  %v932_v38 = vadd.f32 0.00028619796, %v931_v3  ;;  %v3444_v20 = vadd.f32 %v2987_v25, %v375_v57  ;;  %v884_v55 = vor.u32 1.1754944e-38, %v883_v16 }
 0x172   : > { %v1456_v12 = vadd.f32 0.05243302, %v1455_v6  ;;  %v943_v34 = vadd.f32 0.001143296, %v942_v23  ;;  %v3452_v28 = vmin.f32 %v1489_v21, 16.0  ;;  %v3455_v61 = vmul.f32 %v1405_v62, %v3341_v24 }
 0x173   : > { %v3458_v31 = vmul.f32 %v1420_v47, %v3199_v49  ;;  %v1434_v29 = vsub.f32 1.0, %v1433_v37  ;;  %v1470_v3 = vmul.f32 %v1469_v10, %v3337_v35  ;;  %v899_v11 = vmul.f32 %v898_v19, %v3267_v42 }
 0x174   : > { %4272 = vst [vmem:[#allocation21_spill] sm:$0xff] %v3455_v61  ;;  %v3461_v57 = vpop.eup %2109  ;;  %v933_v56 = vmul.f32 %v932_v38, %v3415_v0  ;;  %v944_v16 = vmul.f32 %v943_v34, %v3415_v0  ;;  %v1491_v6 = vmul.f32 2.1237322e-06, %v3452_v28  ;;  %v880_v24 = vsel %vm3448_vm1, %v3356_v15, %v876_v14 }
 0x175   : > { %v1441_v49 = vand.u32 2147483647, %v3363_v36  ;;  %v3471_v47 = vadd.f32 1.0, %v1470_v3  ;;  %v3474_v37 = vmul.f32 0.70710677, %v3444_v20  ;;  %v1443_v62 = vand.u32 2147483648, %v3363_v36 }
 0x176   : > { %v1457_v42 = vmul.f32 %v1456_v12, %v3337_v35  ;;  %v945_v19 = vadd.f32 0.014752088, %v944_v16  ;;  %v1492_v23 = vadd.f32 0.00028619796, %v1491_v6  ;;  %v1435_v21 = vmul.f32 %v3404_v17, %v1434_v29 }
 0x177   : > { %vm1437_vm2 = vweird.f32 %v3363_v36  ;;  %v913_v15 = vmul.f32 %v3461_v57, %v3402_v5  ;;  %v3483_v14 = vmul.f32 0.5, %v3333_v58  ;;  %v885_v10 = vsel %vm3426_vm14, %v884_v55, %v880_v24 }
 0x178   : > { %v900_v38 = vadd.f32 1.1283791, %v899_v11  ;;  %2111 = vrcp.f32 %v3471_v47  ;;  %v934_v51 = vadd.f32 0.0036580483, %v933_v56  ;;  %vm3488_vm3 = vcmp.eq.f32.partialorder %v1441_v49, 8.507059e+37  ;;  %v410_v49 = vpop.f32.mrf.mxu3 }
 0x179   : > { %v946_v34 = vmul.f32 %v945_v19, %v3415_v0  ;;  %v1493_v29 = vmul.f32 %v1492_v23, %v3452_v28  ;;  %v1502_v3 = vmul.f32 3.8918573e-05, %v3452_v28  ;;  %v969_v58 = vmul.f32 %v3474_v37, %v3474_v37 }
 0x17a   : > { %vm1438_vm4 = vweird.f32 %v3404_v17  ;;  %v1444_v41 = vor.u32 1.1754944e-38, %v1443_v62  ;;  %v1458_v55 = vadd.f32 0.18741608, %v1457_v42  ;;  %v3499_v11 = vmul.f32 0.5, %v3384_v63 }
 0x17b   : > { %v1436_v56 = vadd.f32 %v3404_v17, %v1435_v21  ;;  %v914_v16 = vsub.f32 1.0, %v913_v15  ;;  %v947_v6 = vadd.f32 0.112945676, %v946_v34  ;;  %v1503_v24 = vadd.f32 0.001143296, %v1502_v3  ;;  %vm3520_vm6 = vmor %vm1437_vm2, %vm1438_vm4 }
 0x17c   : > { %4275 = vst [vmem:[#allocation22_spill] sm:$0xff] %v3499_v11  ;;  %v3503_v19 = vmul.f32 %v885_v10, %v3397_v1  ;;  %v3506_v23 = vmul.f32 %v900_v38, %v3227_v9  ;;  %v935_v22 = vmul.f32 %v934_v51, %v3415_v0  ;;  %v1494_v8 = vadd.f32 0.0036580483, %v1493_v29 }
 0x17d   : > { %vm917_vm5 = vweird.f32 %v3402_v5  ;;  %v948_v63 = vmul.f32 %v947_v6, %v3415_v0  ;;  %v1504_v62 = vmul.f32 %v1503_v24, %v3452_v28  ;;  %v3512_v42 = vmin.f32 %v969_v58, 16.0 }
 0x17e   : > { %v3514_v21 = vpop.eup %2111  ;;  %v921_v1 = vand.u32 2147483647, %v3402_v5  ;;  %v923_v15 = vand.u32 2147483648, %v3402_v5  ;;  %v1459_v10 = vmul.f32 %v1458_v55, %v3337_v35  ;;  %v3528_v38 = vadd.f32 %v2987_v25, %v410_v49  ;;  %v377_v49 = vpop.f32.mrf.mxu0 }
 0x17f   : > { %v1440_v51 = vsel %vm3520_vm6, %v3404_v17, %v1436_v56  ;;  %v915_v34 = vmul.f32 %v3461_v57, %v914_v16  ;;  %v949_v36 = vadd.f32 0.4994258, %v948_v63  ;;  %v1505_v29 = vadd.f32 0.014752088, %v1504_v62 }
 0x180   : > { %4278 = vst [vmem:[#allocation23_spill] sm:$0xff] %v3528_v38  ;;  %vm918_vm7 = vweird.f32 %v3461_v57  ;;  %v936_v3 = vadd.f32 0.05243302, %v935_v22  ;;  %v1495_v58 = vmul.f32 %v1494_v8, %v3452_v28  ;;  %v971_v6 = vmul.f32 2.1237322e-06, %v3512_v42 }
 0x181   : > { %v1473_v35 = vmul.f32 %v3514_v21, %v3471_v47  ;;  %v950_v55 = vmul.f32 %v949_v36, %v3415_v0  ;;  %v1506_v24 = vmul.f32 %v1505_v29, %v3452_v28  ;;  %v982_v17 = vmul.f32 3.8918573e-05, %v3512_v42  ;;  %vm3555_vm9 = vmor %vm917_vm5, %vm918_vm7 }
 0x182   : > { %v1445_v56 = vsel %vm3488_vm3, %v1444_v41, %v1440_v51  ;;  %vm3544_vm8 = vcmp.eq.f32.partialorder %v921_v1, 8.507059e+37  ;;  %v1460_v22 = vadd.f32 1.1283791, %v1459_v10  ;;  %v972_v8 = vadd.f32 0.00028619796, %v971_v6 }
 0x183   : > { %v916_v63 = vadd.f32 %v3461_v57, %v915_v34  ;;  %v924_v62 = vor.u32 1.1754944e-38, %v923_v15  ;;  %v3549_v9 = vadd.f32 1.0, %v950_v55  ;;  %v1507_v36 = vadd.f32 0.112945676, %v1506_v24 }
 0x184   : > { %v937_v41 = vmul.f32 %v936_v3, %v3415_v0  ;;  %v1496_v1 = vadd.f32 0.05243302, %v1495_v58  ;;  %v973_v10 = vmul.f32 %v972_v8, %v3512_v42  ;;  %v983_v51 = vadd.f32 0.001143296, %v982_v17  ;;  %v412_v58 = vpop.f32.mrf.mxu3 }
 0x185   : > { %v3562_v34 = vmul.f32 %v1445_v56, %v3458_v31  ;;  %v1474_v15 = vsub.f32 1.0, %v1473_v35  ;;  %v3565_v29 = vmul.f32 0.70710677, %v3528_v38  ;;  %v3568_v6 = vadd.f32 %v2987_v25, %v377_v49 }
 0x186   : > { %v3571_v5 = vmul.f32 %v1460_v22, %v3310_v48  ;;  %v1483_v55 = vand.u32 2147483648, %v3471_v47  ;;  %2113 = vrcp.f32 %v3549_v9  ;;  %v1508_v3 = vmul.f32 %v1507_v36, %v3452_v28 }
 0x187   : > { %4283 = vst [vmem:[#allocation24_spill] sm:$0xff] %v3562_v34  ;;  %v920_v31 = vsel %vm3555_vm9, %v3461_v57, %v916_v63  ;;  %vm1477_vm10 = vweird.f32 %v3471_v47  ;;  %v974_v35 = vadd.f32 0.0036580483, %v973_v10  ;;  %v984_v24 = vmul.f32 %v983_v51, %v3512_v42 }
 0x188   : > { %v1481_v17 = vand.u32 2147483647, %v3471_v47  ;;  %v938_v48 = vadd.f32 0.18741608, %v937_v41  ;;  %v1497_v56 = vmul.f32 %v1496_v1, %v3452_v28  ;;  %v1509_v22 = vadd.f32 0.4994258, %v1508_v3 }
 0x189   : > { %v1475_v8 = vmul.f32 %v3514_v21, %v1474_v15  ;;  %v985_v49 = vadd.f32 0.014752088, %v984_v24  ;;  %v1529_v36 = vmul.f32 %v3565_v29, %v3565_v29  ;;  %v3587_v12 = vmul.f32 0.70710677, %v3568_v6 }
 0x18a   : > { %v925_v57 = vsel %vm3544_vm8, %v924_v62, %v920_v31  ;;  %v1484_v63 = vor.u32 1.1754944e-38, %v1483_v55  ;;  %v1510_v10 = vmul.f32 %v1509_v22, %v3452_v28  ;;  %v3593_v41 = vadd.f32 %v2987_v25, %v412_v58 }
 0x18b   : > { %vm1478_vm11 = vweird.f32 %v3514_v21  ;;  %v975_v1 = vmul.f32 %v974_v35, %v3512_v42  ;;  %v986_v51 = vmul.f32 %v985_v49, %v3512_v42  ;;  %v3598_v15 = vmin.f32 %v1529_v36, 16.0 }
 0x18c   : > { %4284 = vst [vmem:[#allocation25_spill] sm:$0xff] %v3593_v41  ;;  %v3600_v3 = vpop.eup %2113  ;;  %vm3602_vm12 = vcmp.eq.f32.partialorder %v1481_v17, 8.507059e+37  ;;  %v939_v16 = vmul.f32 %v938_v48, %v3415_v0  ;;  %v1498_v62 = vadd.f32 0.18741608, %v1497_v56  ;;  %v3607_v55 = vadd.f32 1.0, %v1510_v10  ;;  %vm3631_vm13 = vmor %vm1477_vm10, %vm1478_vm11  ;;  %v415_v38 = vpop.f32.mrf.mxu3 }
 0x18d   : > { %v1009_v25 = vmul.f32 %v3587_v12, %v3587_v12  ;;  %v1476_v58 = vadd.f32 %v3514_v21, %v1475_v8  ;;  %v987_v31 = vadd.f32 0.112945676, %v986_v51  ;;  %v1531_v35 = vmul.f32 2.1237322e-06, %v3598_v15 }
 0x18e   : > { %v1542_v22 = vmul.f32 3.8918573e-05, %v3598_v15  ;;  %v3615_v17 = vmul.f32 %v925_v57, %v3506_v23  ;;  %2115 = vrcp.f32 %v3607_v55  ;;  %v3619_v0 = vmul.f32 0.5, %v3444_v20 }
 0x18f   : > { %v3622_v48 = vmul.f32 0.70710677, %v3593_v41  ;;  %v953_v56 = vmul.f32 %v3600_v3, %v3549_v9  ;;  %v976_v8 = vadd.f32 0.05243302, %v975_v1  ;;  %v988_v49 = vmul.f32 %v987_v31, %v3512_v42 }
 0x190   : > { %v1532_v36 = vadd.f32 0.00028619796, %v1531_v35  ;;  %v940_v20 = vadd.f32 1.1283791, %v939_v16  ;;  %v963_v57 = vand.u32 2147483648, %v3549_v9  ;;  %v3636_v51 = vmin.f32 %v1009_v25, 16.0 }
 0x191   : > { %v1543_v10 = vadd.f32 0.001143296, %v1542_v22  ;;  %v1480_v1 = vsel %vm3631_vm13, %v3514_v21, %v1476_v58  ;;  %v1499_v31 = vmul.f32 %v1498_v62, %v3452_v28  ;;  %v989_v35 = vadd.f32 0.4994258, %v988_v49 }
 0x192   : > { %v1533_v47 = vmul.f32 %v1532_v36, %v3598_v15  ;;  %v1011_v11 = vmul.f32 2.1237322e-06, %v3636_v51  ;;  %v1022_v16 = vmul.f32 3.8918573e-05, %v3636_v51  ;;  %v1569_v25 = vmul.f32 %v3622_v48, %v3622_v48 }
 0x193   : > { %v1544_v41 = vmul.f32 %v1543_v10, %v3598_v15  ;;  %v954_v22 = vsub.f32 1.0, %v953_v56  ;;  %v977_v34 = vmul.f32 %v976_v8, %v3512_v42  ;;  %v990_v23 = vmul.f32 %v989_v35, %v3512_v42 }
 0x194   : > { %v1534_v21 = vadd.f32 0.0036580483, %v1533_v47  ;;  %v3650_v58 = vpop.eup %2115  ;;  %v3653_v28 = vmul.f32 %v940_v20, %v3374_v52  ;;  %v1012_v49 = vadd.f32 0.00028619796, %v1011_v11  ;;  %v1023_v36 = vadd.f32 0.001143296, %v1022_v16 }
 0x195   : > { %v1545_v62 = vadd.f32 0.014752088, %v1544_v41  ;;  %v1485_v10 = vsel %vm3602_vm12, %v1484_v63, %v1480_v1  ;;  %v961_v61 = vand.u32 2147483647, %v3549_v9  ;;  %v1500_v53 = vadd.f32 1.1283791, %v1499_v31 }
 0x196   : > { %v1513_v56 = vmul.f32 %v3650_v58, %v3607_v55  ;;  %v3660_v8 = vadd.f32 1.0, %v990_v23  ;;  %v1535_v35 = vmul.f32 %v1534_v21, %v3598_v15  ;;  %v3664_v52 = vmin.f32 %v1569_v25, 16.0 }
 0x197   : > { %v1546_v47 = vmul.f32 %v1545_v62, %v3598_v15  ;;  %vm957_vm14 = vweird.f32 %v3549_v9  ;;  %v978_v11 = vadd.f32 0.18741608, %v977_v34  ;;  %v1013_v41 = vmul.f32 %v1012_v49, %v3636_v51 }
 0x198   : > { %v1024_v63 = vmul.f32 %v1023_v36, %v3636_v51  ;;  %v3670_v24 = vmul.f32 %v1485_v10, %v3571_v5  ;;  %v955_v20 = vmul.f32 %v3600_v3, %v954_v22  ;;  %v964_v1 = vor.u32 1.1754944e-38, %v963_v57  ;;  %v417_v22 = vpop.f32.mrf.mxu3 }
 0x199   : > { %2117 = vrcp.f32 %v3660_v8  ;;  %vm3674_vm15 = vcmp.eq.f32.partialorder %v961_v61, 8.507059e+37  ;;  %v3679_v16 = vmul.f32 %v1500_v53, %v3418_v43  ;;  %v1514_v34 = vsub.f32 1.0, %v1513_v56  ;;  %v3689_v53 = vld [vmem:[%s4171_s2] ss:$0 sm:$0xff] }
 0x19a   : > { %4289 = vst [vmem:[#allocation26_spill] sm:$0xff] %v3670_v24  ;;  %v1547_v25 = vadd.f32 0.112945676, %v1546_v47  ;;  %v1014_v23 = vadd.f32 0.0036580483, %v1013_v41  ;;  %vm958_vm1 = vweird.f32 %v3600_v3  ;;  %v979_v57 = vmul.f32 %v978_v11, %v3512_v42 }
 0x19b   : > { %v1536_v21 = vadd.f32 0.05243302, %v1535_v35  ;;  %v1025_v5 = vadd.f32 0.014752088, %v1024_v63  ;;  %v1571_v62 = vmul.f32 2.1237322e-06, %v3664_v52  ;;  %v3692_v43 = vadd.f32 %v3689_v53, %v415_v38  ;;  %vm3699_vm2 = vmor %vm957_vm14, %vm958_vm1 }
 0x19c   : > { %v1548_v61 = vmul.f32 %v1547_v25, %v3598_v15  ;;  %v1015_v49 = vmul.f32 %v1014_v23, %v3636_v51  ;;  %v956_v36 = vadd.f32 %v3600_v3, %v955_v20  ;;  %v1582_v35 = vmul.f32 3.8918573e-05, %v3664_v52 }
 0x19d   : > { %v1026_v10 = vmul.f32 %v1025_v5, %v3636_v51  ;;  %v1572_v56 = vadd.f32 0.00028619796, %v1571_v62  ;;  %v1515_v47 = vmul.f32 %v3650_v58, %v1514_v34  ;;  %v1521_v11 = vand.u32 2147483647, %v3607_v55 }
 0x19e   : > { %v1549_v41 = vadd.f32 0.4994258, %v1548_v61  ;;  %v3706_v38 = vadd.f32 %v3689_v53, %v417_v22  ;;  %v1537_v20 = vmul.f32 %v1536_v21, %v3598_v15  ;;  %v1583_v9 = vadd.f32 0.001143296, %v1582_v35 }
 0x19f   : > { %v3708_v63 = vpop.eup %2117  ;;  %v1027_v25 = vadd.f32 0.112945676, %v1026_v10  ;;  %v1573_v23 = vmul.f32 %v1572_v56, %v3664_v52  ;;  %vm1517_vm3 = vweird.f32 %v3607_v55  ;;  %v1523_v5 = vand.u32 2147483648, %v3607_v55 }
 0x1a0   : > { %v993_v34 = vmul.f32 %v3708_v63, %v3660_v8  ;;  %v1016_v62 = vadd.f32 0.05243302, %v1015_v49  ;;  %v960_v22 = vsel %vm3699_vm2, %v3600_v3, %v956_v36  ;;  %v980_v61 = vadd.f32 1.1283791, %v979_v57 }
 0x1a1   : > { %v1550_v60 = vmul.f32 %v1549_v41, %v3598_v15  ;;  %v1028_v21 = vmul.f32 %v1027_v25, %v3636_v51  ;;  %vm1518_vm4 = vweird.f32 %v3650_v58  ;;  %vm3722_vm5 = vcmp.eq.f32.partialorder %v1521_v11, 8.507059e+37 }
 0x1a2   : > { %v1574_v56 = vadd.f32 0.0036580483, %v1573_v23  ;;  %v1584_v35 = vmul.f32 %v1583_v9, %v3664_v52  ;;  %v3728_v49 = vmul.f32 0.70710677, %v3692_v43  ;;  %v1516_v42 = vadd.f32 %v3650_v58, %v1515_v47  ;;  %vm3752_vm6 = vmor %vm1517_vm3, %vm1518_vm4 }
 0x1a3   : > { %v1538_v3 = vadd.f32 0.18741608, %v1537_v20  ;;  %v3731_v57 = vadd.f32 1.0, %v1550_v60  ;;  %v1029_v36 = vadd.f32 0.4994258, %v1028_v21  ;;  %v994_v41 = vsub.f32 1.0, %v993_v34 }
 0x1a4   : > { %v1017_v25 = vmul.f32 %v1016_v62, %v3636_v51  ;;  %v1585_v24 = vadd.f32 0.014752088, %v1584_v35  ;;  %v1609_v11 = vmul.f32 %v3728_v49, %v3728_v49  ;;  %v965_v23 = vsel %vm3674_vm15, %v964_v1, %v960_v22 }
 0x1a5   : > { %v1524_v9 = vor.u32 1.1754944e-38, %v1523_v5  ;;  %v3739_v4 = vmul.f32 %v980_v61, %v3474_v37  ;;  %v3742_v47 = vmul.f32 0.5, %v3568_v6  ;;  %v1001_v60 = vand.u32 2147483647, %v3660_v8 }
 0x1a6   : > { %2119 = vrcp.f32 %v3731_v57  ;;  %v1030_v20 = vmul.f32 %v1029_v36, %v3636_v51  ;;  %v1575_v34 = vmul.f32 %v1574_v56, %v3664_v52  ;;  %v1003_v37 = vand.u32 2147483648, %v3660_v8  ;;  %v420_v36 = vpop.f32.mrf.mxu3 }
 0x1a7   : > { %v1539_v6 = vmul.f32 %v1538_v3, %v3598_v15  ;;  %v1586_v31 = vmul.f32 %v1585_v24, %v3664_v52  ;;  %v3759_v5 = vmin.f32 %v1609_v11, 16.0  ;;  %v1520_v62 = vsel %vm3752_vm6, %v3650_v58, %v1516_v42 }
 0x1a8   : > { %v995_v22 = vmul.f32 %v3708_v63, %v994_v41  ;;  %v1018_v61 = vadd.f32 0.18741608, %v1017_v25  ;;  %v3765_v55 = vadd.f32 1.0, %v1030_v20  ;;  %v3768_v21 = vmul.f32 %v965_v23, %v3653_v28 }
 0x1a9   : > { %v1587_v56 = vadd.f32 0.112945676, %v1586_v31  ;;  %v1611_v35 = vmul.f32 2.1237322e-06, %v3759_v5  ;;  %v1622_v15 = vmul.f32 3.8918573e-05, %v3759_v5  ;;  %vm997_vm7 = vweird.f32 %v3660_v8 }
 0x1aa   : > { %vm998_vm8 = vweird.f32 %v3708_v63  ;;  %2121 = vrcp.f32 %v3765_v55  ;;  %v1576_v58 = vadd.f32 0.05243302, %v1575_v34  ;;  %v1525_v24 = vsel %vm3722_vm5, %v1524_v9, %v1520_v62 }
 0x1ab   : > { %vm3777_vm9 = vcmp.eq.f32.partialorder %v1001_v60, 8.507059e+37  ;;  %v1540_v28 = vadd.f32 1.1283791, %v1539_v6  ;;  %v1588_v3 = vmul.f32 %v1587_v56, %v3664_v52  ;;  %v996_v8 = vadd.f32 %v3708_v63, %v995_v22  ;;  %vm3785_vm10 = vmor %vm997_vm7, %vm998_vm8 }
 0x1ac   : > { %v3782_v41 = vpop.eup %2119  ;;  %v1004_v25 = vor.u32 1.1754944e-38, %v1003_v37  ;;  %v1612_v11 = vadd.f32 0.00028619796, %v1611_v35  ;;  %v1623_v23 = vadd.f32 0.001143296, %v1622_v15  ;;  %v1563_v10 = vand.u32 2147483648, %v3731_v57 }
 0x1ad   : > { %v1019_v9 = vmul.f32 %v1018_v61, %v3636_v51  ;;  %v1589_v60 = vadd.f32 0.4994258, %v1588_v3  ;;  %v3792_v34 = vmul.f32 0.5, %v3692_v43  ;;  %v3795_v1 = vmul.f32 %v1525_v24, %v3679_v16 }
 0x1ae   : > { %v1577_v6 = vmul.f32 %v1576_v58, %v3664_v52  ;;  %v1613_v37 = vmul.f32 %v1612_v11, %v3759_v5  ;;  %v1624_v31 = vmul.f32 %v1623_v23, %v3759_v5  ;;  %v3801_v62 = vmul.f32 %v1540_v28, %v3565_v29 }
 0x1af   : > { %4302 = vst [vmem:[#allocation27_spill] sm:$0xff] %v3792_v34  ;;  %v1553_v22 = vmul.f32 %v3782_v41, %v3731_v57  ;;  %v1590_v51 = vmul.f32 %v1589_v60, %v3664_v52  ;;  %v3807_v43 = vmul.f32 0.70710677, %v3706_v38  ;;  %v1000_v16 = vsel %vm3785_vm10, %v3708_v63, %v996_v8 }
 0x1b0   : > { %4303 = vst [vmem:[#allocation28_spill] sm:$0xff] %v3795_v1  ;;  %v3809_v61 = vpop.eup %2121  ;;  %v1561_v56 = vand.u32 2147483647, %v3731_v57  ;;  %v1614_v35 = vadd.f32 0.0036580483, %v1613_v37  ;;  %v3815_v29 = vor.u32 1.1754944e-38, %v1563_v10  ;;  %v1005_v8 = vsel %vm3777_vm9, %v1004_v25, %v1000_v16 }
 0x1b1   : > { %v1625_v15 = vadd.f32 0.014752088, %v1624_v31  ;;  %v1020_v58 = vadd.f32 1.1283791, %v1019_v9  ;;  %v1033_v24 = vmul.f32 %v3809_v61, %v3765_v55  ;;  %v3819_v28 = vadd.f32 1.0, %v1590_v51 }
 0x1b2   : > { %v1578_v3 = vadd.f32 0.18741608, %v1577_v6  ;;  %v1615_v11 = vmul.f32 %v1614_v35, %v3759_v5  ;;  %v1649_v63 = vmul.f32 %v3807_v43, %v3807_v43  ;;  %v1554_v20 = vsub.f32 1.0, %v1553_v22  ;;  %v422_v22 = vpop.f32.mrf.mxu3 }
 0x1b3   : > { %v1626_v23 = vmul.f32 %v1625_v15, %v3759_v5  ;;  %v1034_v10 = vsub.f32 1.0, %v1033_v24  ;;  %2123 = vrcp.f32 %v3819_v28  ;;  %vm1037_vm11 = vweird.f32 %v3765_v55 }
 0x1b4   : > { %v1616_v9 = vadd.f32 0.05243302, %v1615_v11  ;;  %v3830_v6 = vadd.f32 %v3689_v53, %v420_v36  ;;  %vm1557_vm12 = vweird.f32 %v3731_v57  ;;  %v1041_v31 = vand.u32 2147483647, %v3765_v55 }
 0x1b5   : > { %v1627_v60 = vadd.f32 0.112945676, %v1626_v23  ;;  %v1035_v37 = vmul.f32 %v3809_v61, %v1034_v10  ;;  %v1043_v42 = vand.u32 2147483648, %v3765_v55  ;;  %v3836_v25 = vmin.f32 %v1649_v63, 16.0 }
 0x1b6   : > { %vm1038_vm13 = vweird.f32 %v3809_v61  ;;  %v1579_v51 = vmul.f32 %v1578_v3, %v3664_v52  ;;  %v1617_v16 = vmul.f32 %v1616_v9, %v3759_v5  ;;  %v3843_v35 = vmul.f32 %v1005_v8, %v3739_v4 }
 0x1b7   : > { %v1628_v36 = vmul.f32 %v1627_v60, %v3759_v5  ;;  %v1555_v15 = vmul.f32 %v3782_v41, %v1554_v20  ;;  %v1651_v24 = vmul.f32 2.1237322e-06, %v3836_v25  ;;  %v1662_v11 = vmul.f32 3.8918573e-05, %v3836_v25  ;;  %vm3866_vm15 = vmor %vm1037_vm11, %vm1038_vm13 }
 0x1b8   : > { %v1036_v23 = vadd.f32 %v3809_v61, %v1035_v37  ;;  %v3850_v10 = vmul.f32 0.70710677, %v3830_v6  ;;  %v3853_v52 = vadd.f32 %v3689_v53, %v422_v22  ;;  %vm3857_vm14 = vcmp.eq.f32.partialorder %v1561_v56, 8.507059e+37 }
 0x1b9   : > { %v1629_v63 = vadd.f32 0.4994258, %v1628_v36  ;;  %v3855_v3 = vpop.eup %2123  ;;  %v1021_v8 = vmul.f32 %v1020_v58, %v3587_v12  ;;  %v1618_v9 = vadd.f32 0.18741608, %v1617_v16  ;;  %v1652_v60 = vadd.f32 0.00028619796, %v1651_v24 }
 0x1ba   : > { %v1663_v53 = vadd.f32 0.001143296, %v1662_v11  ;;  %vm1558_vm1 = vweird.f32 %v3782_v41  ;;  %vm3871_vm2 = vcmp.eq.f32.partialorder %v1041_v31, 8.507059e+37  ;;  %v1044_v37 = vor.u32 1.1754944e-38, %v1043_v42 }
 0x1bb   : > { %v1580_v22 = vadd.f32 1.1283791, %v1579_v51  ;;  %v1556_v12 = vadd.f32 %v3782_v41, %v1555_v15  ;;  %v1630_v58 = vmul.f32 %v1629_v63, %v3759_v5  ;;  %v1653_v55 = vmul.f32 %v1652_v60, %v3836_v25  ;;  %vm3896_vm3 = vmor %vm1557_vm12, %vm1558_vm1 }
 0x1bc   : > { %v1664_v36 = vmul.f32 %v1663_v53, %v3836_v25  ;;  %v1040_v16 = vsel %vm3866_vm15, %v3809_v61, %v1036_v23  ;;  %v1593_v31 = vmul.f32 %v3855_v3, %v3819_v28  ;;  %v1689_v24 = vmul.f32 %v3850_v10, %v3850_v10 }
 0x1bd   : > { %v3887_v42 = vmul.f32 0.70710677, %v3853_v52  ;;  %v1619_v51 = vmul.f32 %v1618_v9, %v3759_v5  ;;  %v3890_v15 = vadd.f32 1.0, %v1630_v58  ;;  %v1654_v11 = vadd.f32 0.0036580483, %v1653_v55 }
 0x1be   : > { %v1665_v63 = vadd.f32 0.014752088, %v1664_v36  ;;  %v3901_v23 = vmul.f32 %v1580_v22, %v3622_v48  ;;  %v3904_v20 = vmul.f32 0.5, %v3706_v38  ;;  %v3906_v60 = vmin.f32 %v1689_v24, 16.0 }
 0x1bf   : > { %v1729_v5 = vmul.f32 %v3887_v42, %v3887_v42  ;;  %v1560_v9 = vsel %vm3896_vm3, %v3782_v41, %v1556_v12  ;;  %2125 = vrcp.f32 %v3890_v15  ;;  %v1045_v48 = vsel %vm3871_vm2, %v1044_v37, %v1040_v16 }
 0x1c0   : > { %4312 = vst [vmem:[#allocation29_spill] sm:$0xff] %v3901_v23  ;;  %v1655_v38 = vmul.f32 %v1654_v11, %v3836_v25  ;;  %v1666_v22 = vmul.f32 %v1665_v63, %v3836_v25  ;;  %v1691_v58 = vmul.f32 2.1237322e-06, %v3906_v60  ;;  %v1594_v55 = vsub.f32 1.0, %v1593_v31 }
 0x1c1   : > { %4313 = vst [vmem:[#allocation30_spill] sm:$0xff] %v3904_v20  ;;  %v1620_v36 = vadd.f32 1.1283791, %v1619_v51  ;;  %v1702_v24 = vmul.f32 3.8918573e-05, %v3906_v60  ;;  %v3922_v41 = vmin.f32 %v1729_v5, 16.0  ;;  %v3927_v12 = vsel %vm3857_vm14, %v3815_v29, %v1560_v9 }
 0x1c2   : > { %v1656_v61 = vadd.f32 0.05243302, %v1655_v38  ;;  %v1667_v56 = vadd.f32 0.112945676, %v1666_v22  ;;  %v1692_v37 = vadd.f32 0.00028619796, %v1691_v58  ;;  %v1046_v16 = vmul.f32 %v1045_v48, %v1021_v8 }
 0x1c3   : > { %vm1598_vm4 = vweird.f32 %v3855_v3  ;;  %v1703_v11 = vadd.f32 0.001143296, %v1702_v24  ;;  %v1731_v63 = vmul.f32 2.1237322e-06, %v3922_v41  ;;  %v1742_v31 = vmul.f32 3.8918573e-05, %v3922_v41 }
 0x1c4   : > { %v1657_v51 = vmul.f32 %v1656_v61, %v3836_v25  ;;  %v1668_v5 = vmul.f32 %v1667_v56, %v3836_v25  ;;  %v1693_v53 = vmul.f32 %v1692_v37, %v3906_v60  ;;  %v2032_v29 = vclamps-f32 %v3843_v35, 1.0 }
 0x1c5   : > { %v3936_v4 = vpop.eup %2125  ;;  %v1595_v9 = vmul.f32 %v3855_v3, %v1594_v55  ;;  %vm1597_vm5 = vweird.f32 %v3819_v28  ;;  %v1704_v8 = vmul.f32 %v1703_v11, %v3906_v60  ;;  %v1732_v48 = vadd.f32 0.00028619796, %v1731_v63 }
 0x1c6   : > { %v1743_v38 = vadd.f32 0.001143296, %v1742_v31  ;;  %v1633_v22 = vmul.f32 %v3936_v4, %v3890_v15  ;;  %v1641_v58 = vand.u32 2147483647, %v3890_v15  ;;  %v1658_v24 = vadd.f32 0.18741608, %v1657_v51  ;;  %vm3968_vm7 = vmor %vm1597_vm5, %vm1598_vm4 }
 0x1c7   : > { %v1669_v61 = vadd.f32 0.4994258, %v1668_v5  ;;  %v1694_v56 = vadd.f32 0.0036580483, %v1693_v53  ;;  %v1705_v37 = vadd.f32 0.014752088, %v1704_v8  ;;  %v1733_v35 = vmul.f32 %v1732_v48, %v3922_v41 }
 0x1c8   : > { %v1744_v57 = vmul.f32 %v1743_v38, %v3922_v41  ;;  %v1634_v55 = vsub.f32 1.0, %v1633_v22  ;;  %v1659_v34 = vmul.f32 %v1658_v24, %v3836_v25  ;;  %v2033_v63 = vclamps-f32 %v1046_v16, 1.0 }
 0x1c9   : > { %v1670_v11 = vmul.f32 %v1669_v61, %v3836_v25  ;;  %v1695_v31 = vmul.f32 %v1694_v56, %v3906_v60  ;;  %v1706_v20 = vmul.f32 %v1705_v37, %v3906_v60  ;;  %v1734_v1 = vadd.f32 0.0036580483, %v1733_v35 }
 0x1ca   : > { %v1745_v23 = vadd.f32 0.014752088, %v1744_v57  ;;  %v3951_v51 = vadd.f32 %v3855_v3, %v1595_v9  ;;  %v1635_v53 = vmul.f32 %v3936_v4, %v1634_v55  ;;  %v1643_v5 = vand.u32 2147483648, %v3890_v15 }
 0x1cb   : > { %v3955_v8 = vadd.f32 1.0, %v1670_v11  ;;  %v1696_v48 = vadd.f32 0.05243302, %v1695_v31  ;;  %v1707_v38 = vadd.f32 0.112945676, %v1706_v20  ;;  %v1735_v25 = vmul.f32 %v1734_v1, %v3922_v41 }
 0x1cc   : > { %v1746_v16 = vmul.f32 %v1745_v23, %v3922_v41  ;;  %v1621_v22 = vmul.f32 %v1620_v36, %v3728_v49  ;;  %vm1637_vm6 = vweird.f32 %v3890_v15  ;;  %v1660_v57 = vadd.f32 1.1283791, %v1659_v34 }
 0x1cd   : > { %2127 = vrcp.f32 %v3955_v8  ;;  %v1697_v9 = vmul.f32 %v1696_v48, %v3906_v60  ;;  %v1708_v24 = vmul.f32 %v1707_v38, %v3906_v60  ;;  %v1781_v61 = vadd.f32 1.0, %v2032_v29 }
 0x1ce   : > { %v1782_v56 = vadd.f32 1.0, %v2033_v63  ;;  %vm3972_vm8 = vcmp.eq.f32.partialorder %v1641_v58, 8.507059e+37  ;;  %v1644_v34 = vor.u32 1.1754944e-38, %v1643_v5  ;;  %v1736_v23 = vadd.f32 0.05243302, %v1735_v25 }
 0x1cf   : > { %v1747_v20 = vadd.f32 0.112945676, %v1746_v16  ;;  %v1600_v36 = vsel %vm3968_vm7, %v3855_v3, %v3951_v51  ;;  %v1636_v29 = vadd.f32 %v3936_v4, %v1635_v53  ;;  %vm1638_vm9 = vweird.f32 %v3936_v4 }
 0x1d0   : > { %v1698_v37 = vadd.f32 0.18741608, %v1697_v9  ;;  %v3983_v35 = vmul.f32 %v1660_v57, %v3807_v43  ;;  %v1709_v58 = vadd.f32 0.4994258, %v1708_v24  ;;  %v1737_v55 = vmul.f32 %v1736_v23, %v3922_v41  ;;  %vm3995_vm10 = vmor %vm1637_vm6, %vm1638_vm9 }
 0x1d1   : > { %v1748_v11 = vmul.f32 %v1747_v20, %v3922_v41  ;;  %v1813_v63 = vmul.f32 %v1781_v61, %v3619_v0  ;;  %v1814_v31 = vmul.f32 %v1782_v56, %v3742_v47  ;;  %v2030_v5 = vclamps-f32 %v3615_v17, 1.0 }
 0x1d2   : > { %v2031_v48 = vclamps-f32 %v3768_v21, 1.0  ;;  %v1683_v38 = vand.u32 2147483648, %v3955_v8  ;;  %v1699_v25 = vmul.f32 %v1698_v37, %v3906_v60  ;;  %v1710_v0 = vmul.f32 %v1709_v58, %v3906_v60 }
 0x1d3   : > { %v3991_v53 = vpop.eup %2127  ;;  %v1749_v16 = vadd.f32 0.4994258, %v1748_v11  ;;  %v1640_v17 = vsel %vm3995_vm10, %v3936_v4, %v1636_v29  ;;  %v1738_v21 = vadd.f32 0.18741608, %v1737_v55  ;;  %v1841_v15 = vpack.c.bf16 %v1814_v31, %v1813_v63 }
 0x1d4   : > { %v1673_v47 = vmul.f32 %v3991_v53, %v3955_v8  ;;  %vm1677_vm11 = vweird.f32 %v3955_v8  ;;  %v4008_v57 = vadd.f32 1.0, %v1710_v0  ;;  %v1779_v24 = vadd.f32 1.0, %v2030_v5 }
 0x1d5   : > { %v1750_v9 = vmul.f32 %v1749_v16, %v3922_v41  ;;  %v1681_v60 = vand.u32 2147483647, %v3955_v8  ;;  %v1880_v56 = vsel %vm287_vm0, %v1841_v15, 0  ;;  %v1780_v23 = vadd.f32 1.0, %v2031_v48 }
 0x1d6   : > { %v1674_v61 = vsub.f32 1.0, %v1673_v47  ;;  %v1645_v4 = vsel %vm3972_vm8, %v1644_v34, %v1640_v17  ;;  %v1700_v20 = vadd.f32 1.1283791, %v1699_v25  ;;  %2129 = vrcp.f32 %v4008_v57  ;;  %1910 = vmatpush.bf16.xpose.msra.mxu1 %v1880_v56 }
 0x1d7   : > { %v2028_v29 = vclamps-f32 %v3394_v18, 1.0  ;;  %v1684_v58 = vor.u32 1.1754944e-38, %v1683_v38  ;;  %v1739_v55 = vmul.f32 %v1738_v21, %v3922_v41  ;;  %v4019_v11 = vadd.f32 1.0, %v1750_v9 }
 0x1d8   : > { %v1675_v37 = vmul.f32 %v3991_v53, %v1674_v61  ;;  %v1723_v63 = vand.u32 2147483648, %v4008_v57  ;;  %v1811_v31 = vmul.f32 %v1779_v24, %v3400_v26  ;;  %v1812_v49 = vmul.f32 %v1780_v23, %v3483_v14 }
 0x1d9   : > { %v2029_v34 = vclamps-f32 %v3503_v19, 1.0  ;;  %vm1678_vm12 = vweird.f32 %v3991_v53  ;;  %vm4027_vm13 = vcmp.eq.f32.partialorder %v1681_v60, 8.507059e+37  ;;  %v1721_v41 = vand.u32 2147483647, %v4008_v57 }
 0x1da   : > { %v1676_v5 = vadd.f32 %v3991_v53, %v1675_v37  ;;  %2131 = vrcp.f32 %v4019_v11  ;;  %v4033_v48 = vmul.f32 %v1645_v4, %v1621_v22  ;;  %v1701_v26 = vmul.f32 %v1700_v20, %v3850_v10  ;;  %vm4041_vm15 = vmor %vm1677_vm11, %vm1678_vm12 }
 0x1db   : > { %v1840_v43 = vpack.c.bf16 %v1812_v49, %v1811_v31  ;;  %v1777_v14 = vadd.f32 1.0, %v2028_v29  ;;  %vm1717_vm14 = vweird.f32 %v4008_v57  ;;  %v1778_v19 = vadd.f32 1.0, %v2029_v34 }
 0x1dc   : > { %v2026_v38 = vclamps-f32 %v3145_v7, 1.0  ;;  %v2027_v25 = vclamps-f32 %v3264_v45, 1.0  ;;  %v2130_v0 = vpop.eup %2129  ;;  %v1724_v22 = vor.u32 1.1754944e-38, %v1723_v63  ;;  %v1740_v17 = vadd.f32 1.1283791, %v1739_v55 }
 0x1dd   : > { %v1761_v10 = vand.u32 2147483647, %v4019_v11  ;;  %v1763_v47 = vand.u32 2147483648, %v4019_v11  ;;  %v1680_v21 = vsel %vm4041_vm15, %v3991_v53, %v1676_v5  ;;  %v1713_v7 = vmul.f32 %v2130_v0, %v4008_v57 }
 0x1de   : > { %vm4051_vm1 = vcmp.eq.f32.partialorder %v1721_v41, 8.507059e+37  ;;  %v1877_v8 = vsel %vm287_vm0, %v1840_v43, 0  ;;  %v1809_v15 = vmul.f32 %v1777_v14, %v3120_v39  ;;  %v1810_v9 = vmul.f32 %v1778_v19, %v3276_v50 }
 0x1df   : > { %1911 = vmatpush.bf16.xpose.msra.mxu1 %v1877_v8  ;;  %v1775_v24 = vadd.f32 1.0, %v2026_v38  ;;  %v1776_v61 = vadd.f32 1.0, %v2027_v25  ;;  %v2024_v60 = vclamps-f32 %v2900_v44, 1.0  ;;  %v1714_v23 = vsub.f32 1.0, %v1713_v7 }
 0x1e0   : > { %v2132_v56 = vpop.eup %2131  ;;  %v2025_v53 = vclamps-f32 %v3077_v32, 1.0  ;;  %v2022_v4 = vclamps-f32 %v2687_v40, 1.0  ;;  %v2023_v20 = vclamps-f32 %v2880_v33, 1.0  ;;  %v4326_v29 = vand.u32 2147483647, %v3819_v28 }
 0x1e1   : > { %vm1718_vm3 = vweird.f32 %v2130_v0  ;;  %v1753_v39 = vmul.f32 %v2132_v56, %v4019_v11  ;;  %v1839_v50 = vpack.c.bf16 %v1810_v9, %v1809_v15  ;;  %v1807_v44 = vmul.f32 %v1775_v24, %v2907_v30  ;;  %v4331_v9 = vld [vmem:[#allocation26_spill] sm:$0xff] }
 0x1e2   : > { %vm4064_vm2 = vcmp.eq.f32.partialorder %v4326_v29, 8.507059e+37  ;;  %v1715_v55 = vmul.f32 %v2130_v0, %v1714_v23  ;;  %v1808_v63 = vmul.f32 %v1776_v61, %v3032_v27  ;;  %v1773_v32 = vadd.f32 1.0, %v2024_v60  ;;  %vm1719_vm4 = vmor %vm1717_vm14, %vm1718_vm3  ;;  %v4333_v60 = vld [vmem:[#allocation4_spill] sm:$0xff] }
 0x1e3   : > { %v1774_v31 = vadd.f32 1.0, %v2025_v53  ;;  %v1685_v40 = vsel %vm4027_vm13, %v1684_v58, %v1680_v21  ;;  %v1754_v33 = vsub.f32 1.0, %v1753_v39  ;;  %v1771_v49 = vadd.f32 1.0, %v2022_v4  ;;  %v4335_v4 = vld [vmem:[#allocation28_spill] sm:$0xff] }
 0x1e4   : > { %v1772_v34 = vadd.f32 1.0, %v2023_v20  ;;  %v1716_v5 = vadd.f32 %v2130_v0, %v1715_v55  ;;  %v1838_v41 = vpack.c.bf16 %v1808_v63, %v1807_v44  ;;  %v1805_v43 = vmul.f32 %v1773_v32, %v2690_v59  ;;  %v4337_v55 = vld [vmem:[#allocation24_spill] sm:$0xff] }
 0x1e5   : > { %v1806_v14 = vmul.f32 %v1774_v31, %v2846_v13  ;;  %v1755_v30 = vmul.f32 %v2132_v56, %v1754_v33  ;;  %vm1758_vm5 = vweird.f32 %v2132_v56  ;;  %v4079_v27 = vmul.f32 %v1771_v49, %v2457_v2  ;;  %v4339_v49 = vld [vmem:[#allocation14_spill] sm:$0xff] }
 0x1e6   : > { %v4082_v58 = vmul.f32 %v1772_v34, %v2581_v54  ;;  %v1720_v18 = vsel %vm1719_vm4, %v2130_v0, %v1716_v5  ;;  %vm1757_vm6 = vweird.f32 %v4019_v11  ;;  %v1874_v19 = vsel %vm287_vm0, %v1839_v50, 0  ;;  %v4336_v50 = vld [vmem:[#allocation21_spill] sm:$0xff]  ;;  %v4340_v5 = vld [vmem:[#allocation22_spill] sm:$0xff] }
 0x1e7   : > { %v1837_v59 = vpack.c.bf16 %v1806_v14, %v1805_v43  ;;  %v1686_v13 = vmul.f32 %v1685_v40, %v3983_v35  ;;  %v1725_v57 = vsel %vm4051_vm1, %v1724_v22, %v1720_v18  ;;  %v1756_v38 = vadd.f32 %v2132_v56, %v1755_v30  ;;  %1912 = vmatpush.bf16.xpose.msra.mxu1 %v1874_v19  ;;  %vm1759_vm8 = vmor %vm1757_vm6, %vm1758_vm5  ;;  %v4330_v35 = vld [vmem:[#allocation6_spill] sm:$0xff]  ;;  %v4338_v40 = vld [vmem:[#allocation20_spill] sm:$0xff] }
 0x1e8   : > { %v1836_v2 = vpack.c.bf16 %v4082_v58, %v4079_v27  ;;  %v4329_v25 = vand.u32 2147483648, %v3819_v28  ;;  %v1726_v16 = vmul.f32 %v1725_v57, %v1701_v26  ;;  %v1764_v0 = vor.u32 1.1754944e-38, %v1763_v47  ;;  %v4341_v30 = vld [vmem:[#allocation15_spill] sm:$0xff] }
 0x1e9   : > { %v2020_v11 = vclamps-f32 %v2521_v46, 1.0  ;;  %v1741_v21 = vmul.f32 %v1740_v17, %v3887_v42  ;;  %v1760_v7 = vsel %vm1759_vm8, %v2132_v56, %v1756_v38  ;;  %vm1762_vm9 = vcmp.eq.f32.partialorder %v1761_v10, 8.507059e+37  ;;  %v4343_v38 = vld [vmem:[#allocation9_spill] sm:$0xff] }
 0x1ea   : > { %v1604_v54 = vor.u32 1.1754944e-38, %v4329_v25  ;;  %v2021_v45 = vclamps-f32 %v4330_v35, 1.0  ;;  %v1765_v22 = vsel %vm1762_vm9, %v1764_v0, %v1760_v7  ;;  %v2050_v26 = vclamps-f32 %v1726_v16, 1.0  ;;  %v4344_v16 = vld [vmem:[#allocation16_spill] sm:$0xff] }
 0x1eb   : > { %v1769_v8 = vadd.f32 1.0, %v2020_v11  ;;  %v1766_v47 = vmul.f32 %v1765_v22, %v1741_v21  ;;  %v2048_v46 = vclamps-f32 %v4033_v48, 1.0  ;;  %v2049_v15 = vclamps-f32 %v1686_v13, 1.0  ;;  %v4334_v48 = vld [vmem:[#allocation29_spill] sm:$0xff]  ;;  %v4342_v13 = vld [vmem:[#allocation30_spill] sm:$0xff] }
 0x1ec   : > { %v1605_v28 = vsel %vm4064_vm2, %v1604_v54, %v1600_v36  ;;  %v1770_v42 = vadd.f32 1.0, %v2021_v45  ;;  %v1566_v17 = vmul.f32 %v3927_v12, %v3801_v62  ;;  %v455_v10 = vmul.f32 0.5, %v3830_v6  ;;  %v4332_v36 = vld [vmem:[#allocation3_spill] sm:$0xff]  ;;  %v4345_v11 = vld [vmem:[#allocation18_spill] sm:$0xff] }
 0x1ed   : > { %v456_v1 = vmul.f32 0.5, %v3853_v52  ;;  %v2044_v3 = vclamps-f32 %v4331_v9, 1.0  ;;  %v2051_v51 = vclamps-f32 %v1766_v47, 1.0  ;;  %v1799_v24 = vadd.f32 1.0, %v2050_v26 }
 0x1ee   : > { %v4110_v61 = vmul.f32 %v1769_v8, %v4332_v36  ;;  %v4113_v56 = vmul.f32 %v1770_v42, %v4333_v60  ;;  %v1606_v23 = vmul.f32 %v1605_v28, %v4334_v48  ;;  %v1871_v53 = vsel %vm287_vm0, %v1838_v41, 0  ;;  %v4346_v28 = vld [vmem:[#allocation11_spill] sm:$0xff]  ;;  %v4352_v60 = vld [vmem:[#allocation12_spill] sm:$0xff] }
 0x1ef   : > { %v2045_v62 = vclamps-f32 %v4335_v4, 1.0  ;;  %v1793_v12 = vadd.f32 1.0, %v2044_v3  ;;  %1913 = vmatpush.bf16.xpose.msra.mxu1 %v1871_v53  ;;  %v1800_v6 = vadd.f32 1.0, %v2051_v51  ;;  %v1797_v52 = vadd.f32 1.0, %v2048_v46  ;;  %v4347_v8 = vld [vmem:[#allocation27_spill] sm:$0xff]  ;;  %v4350_v3 = vld [vmem:[#allocation8_spill] sm:$0xff] }
 0x1f0   : > { %v1798_v20 = vadd.f32 1.0, %v2049_v15  ;;  %v1835_v29 = vpack.c.bf16 %v4113_v56, %v4110_v61  ;;  %v1868_v37 = vsel %vm287_vm0, %v1837_v59, 0  ;;  %v2042_v44 = vclamps-f32 %v4336_v50, 1.0  ;;  %v4348_v15 = vld [vmem:[#allocation17_spill] sm:$0xff] }
 0x1f1   : > { %v1794_v39 = vadd.f32 1.0, %v2045_v62  ;;  %v2043_v63 = vclamps-f32 %v4337_v55, 1.0  ;;  %v1831_v32 = vmul.f32 %v1799_v24, %v455_v10  ;;  %v1832_v31 = vmul.f32 %v1800_v6, %v456_v1  ;;  %v4349_v10 = vld [vmem:[#allocation19_spill] sm:$0xff]  ;;  %v4351_v24 = vld [vmem:[#allocation10_spill] sm:$0xff] }
 0x1f2   : > { %v1825_v33 = vmul.f32 %v1793_v12, %v4338_v40  ;;  %v2038_v34 = vclamps-f32 %v4339_v49, 1.0  ;;  %v1791_v43 = vadd.f32 1.0, %v2042_v44  ;;  %v2039_v18 = vclamps-f32 %v4341_v30, 1.0  ;;  %v4353_v12 = vld [vmem:[#allocation5_spill] sm:$0xff] }
 0x1f3   : > { %v1826_v41 = vmul.f32 %v1794_v39, %v4340_v5  ;;  %v1792_v14 = vadd.f32 1.0, %v2043_v63  ;;  %v1850_v19 = vpack.c.bf16 %v1832_v31, %v1831_v32  ;;  %v1830_v59 = vmul.f32 %v1798_v20, %v4342_v13  ;;  %v4355_v39 = vld [vmem:[#allocation13_spill] sm:$0xff]  ;;  %v4357_v31 = vld [vmem:[#allocation23_spill] sm:$0xff] }
 0x1f4   : > { %v1787_v57 = vadd.f32 1.0, %v2038_v34  ;;  %v2036_v25 = vclamps-f32 %v4343_v38, 1.0  ;;  %v1823_v0 = vmul.f32 %v1791_v43, %v4344_v16  ;;  %v1788_v7 = vadd.f32 1.0, %v2039_v18  ;;  %v1833_v18 = vld [vmem:[%s4172_s3] sm:$0x1] }
 0x1f5   : > { %v1847_v54 = vpack.c.bf16 %v1826_v41, %v1825_v33  ;;  %v1824_v21 = vmul.f32 %v1792_v14, %v4345_v11  ;;  %v1907_v35 = vsel %vm287_vm0, %v1850_v19, 0  ;;  %v2047_v45 = vclamps-f32 %v1606_v23, 1.0 }
 0x1f6   : > { %v2037_v22 = vclamps-f32 %v4346_v28, 1.0  ;;  %v1785_v26 = vadd.f32 1.0, %v2036_v25  ;;  %1922 = vmatpush.bf16.xpose.msra.mxu2 %v1907_v35  ;;  %v1829_v47 = vmul.f32 %v1797_v52, %v4347_v8  ;;  %v2040_v42 = vclamps-f32 %v4348_v15, 1.0  ;;  %v4354_v52 = vld [vmem:[#allocation7_spill] sm:$0xff] }
 0x1f7   : > { %v1846_v46 = vpack.c.bf16 %v1824_v21, %v1823_v0  ;;  %v2041_v1 = vclamps-f32 %v4349_v10, 1.0  ;;  %1914 = vmatpush.bf16.xpose.msra.mxu1 %v1868_v37  ;;  %v2046_v9 = vclamps-f32 %v1566_v17, 1.0  ;;  %v1819_v51 = vmul.f32 %v1787_v57, %v4350_v3  ;;  %v4356_v17 = vld [vmem:[#allocation25_spill] sm:$0xff] }
 0x1f8   : > { %v1820_v36 = vmul.f32 %v1788_v7, %v4351_v24  ;;  %v1786_v61 = vadd.f32 1.0, %v2037_v22  ;;  %v446_v56 = vmul.f32 0.5, %v4352_v60  ;;  %v1849_v48 = vpack.c.bf16 %v1830_v59, %v1829_v47 }
 0x1f9   : > { %v1789_v23 = vadd.f32 1.0, %v2040_v42  ;;  %v1790_v53 = vadd.f32 1.0, %v2041_v1  ;;  %v1796_v4 = vadd.f32 1.0, %v2047_v45  ;;  %v1817_v6 = vmul.f32 %v1785_v26, %v4353_v12 }
 0x1fa   : > { %v1844_v62 = vpack.c.bf16 %v1820_v36, %v1819_v51  ;;  %v1818_v20 = vmul.f32 %v1786_v61, %v4354_v52  ;;  %v452_v44 = vmul.f32 0.5, %v4356_v17  ;;  %v1795_v55 = vadd.f32 1.0, %v2046_v9 }
 0x1fb   : > { %v1821_v50 = vmul.f32 %v1789_v23, %v4355_v39  ;;  %v1822_v37 = vmul.f32 %v1790_v53, %v446_v56  ;;  %v451_v40 = vmul.f32 0.5, %v4357_v31  ;;  %v1904_v33 = vsel %vm287_vm0, %v1849_v48, 0 }
 0x1fc   : > { %v1843_v63 = vpack.c.bf16 %v1818_v20, %v1817_v6  ;;  %v1828_v49 = vmul.f32 %v1796_v4, %v452_v44  ;;  %v1865_v34 = vsel %vm287_vm0, %v1836_v2, 0  ;;  %v1862_v14 = vsel %vm287_vm0, %v1835_v29, 0  ;;  %v1851_v2 = vld [vmem:[#allocation2] sm:$0x1] }
 0x1fd   : > { %v1845_v32 = vpack.c.bf16 %v1822_v37, %v1821_v50  ;;  %v1827_v5 = vmul.f32 %v1795_v55, %v451_v40  ;;  %v1898_v30 = vsel %vm287_vm0, %v1847_v54, 0  ;;  %v1834_v27 = vpack.c.bf16 %v1833_v18, %v1833_v18 }
 0x1fe   : > { %1923 = vmatpush.bf16.xpose.msra.mxu2 %v1904_v33  ;;  %v1895_v58 = vsel %vm287_vm0, %v1846_v46, 0  ;;  %v2143_v19 = vmov 0   ;;  %v1889_v13 = vsel %vm287_vm0, %v1844_v62, 0  ;;  %v1886_v59 = vsel %vm287_vm0, %v1843_v63, 0 }
 0x1ff   : > { %1915 = vmatpush.bf16.xpose.msra.mxu1 %v1865_v34  ;;  %v1848_v41 = vpack.c.bf16 %v1828_v49, %v1827_v5  ;;  %2067 = vset.pattern.permute.xlu0 %v2143_v19  ;;  %v1892_v29 = vsel %vm287_vm0, %v1845_v32, 0  ;;  %v1941_v16 = vlaneseq  ;;  %vm1938_vm7 = vcmask 1040384  }
 0x200   : > { %1854 = vperm.xlu0 %2067, %v1851_v2  }
 0x201   : > { %v1901_v43 = vsel %vm287_vm0, %v1848_v41, 0  ;;  %vm1943_vm10 = vcmp.lt.s32.totalorder %v1941_v16, 256 }
 0x206   : > { %1924 = vmatpush.bf16.xpose.msra.mxu2 %v1901_v43 }
 0x207   : > { %1916 = vmatpush.bf16.xpose.msra.mxu1 %v1862_v14 }
 0x20e   : > { %1925 = vmatpush.bf16.xpose.msra.mxu2 %v1898_v30  ;;  %2052 = vmatmul.msk.bf16.vlgmr.msra.gmra.mxu1 %vm287_vm0, %v1834_v27 }
 0x216   : > { %1926 = vmatpush.bf16.xpose.msra.mxu2 %v1895_v58 }
 0x21e   : > { %1927 = vmatpush.bf16.xpose.msra.mxu2 %v1892_v29 }
 0x226   : > { %1928 = vmatpush.bf16.xpose.msra.mxu2 %v1889_v13 }
 0x22e   : > { %1929 = vmatpush.bf16.xpose.msra.mxu2 %v1886_v59 }
 0x235   : > { %2053 = vmatmul.msk.bf16.vlgmr.msra.gmra.mxu2 %vm287_vm0, %v1834_v27 }
 0x272   : > { %v1855_v25 = vpop.permute.xlu0 %1854 }
 0x273   : > { %v1857_v54 = vperm.slane %v1855_v25, 0 }
 0x28b   : > { %v1918_v57 = vpop.f32.mrf.mxu1 }
 0x28c   : > { %v1919_v21 = vadd.f32 %v1918_v57, %v1857_v54 }
 0x293   : > { %v1920_v38 = vpop.f32.mrf.mxu1 }
 0x2b8   : > { %v1931_v0 = vpop.f32.mrf.mxu2 }
 0x2b9   : > { %v1932_v11 = vadd.f32 %v1931_v0, %v1857_v54 }
 0x2bb   : > { %v1937_v7 = vrot.slane %v1932_v11, 7 }
 0x2bd   : > { %v1939_v35 = vsel %vm1938_vm7, %v1919_v21, %v1937_v7 }
 0x2be   : > { %1945 = vst.msk [vmem:[%s226_s22] sm:$0x3] %vm1943_vm10, %v1939_v35 }
 0x2c0   : > { %v1933_v45 = vpop.f32.mrf.mxu2 }
 0x2c1 PF: > { %s17_s20 = sadd.s32 1, %s2141_s20  }
 0x2c2   : > { %p14_p5 = scmp.ge.s32.totalorder %s17_s20, 4  }
 0x2c4   :  { %16 = sbr.rel (!%p14_p5) target bundleno = 3 (0x3), region = 70 }

</bundles_post_ra>
